<compile_context>
chip_gen: v5e
topology: v5e:2x2
jax: 0.10.0
libtpu: 0.0.40
codegen_flags: <defaults>
</compile_context>

<pallas_src>
import functools

import jax
import jax.numpy as jnp
from jax.experimental import pallas as pl
from jax.experimental.pallas import tpu as pltpu

LANE = 128


def _round_up(x, m):
    return (x + m - 1) // m * m


# --------------------------- hardware-aware tile knobs --------------------------- #

@functools.lru_cache(maxsize=None)
def _vmem_capacity_bytes():
    try:
        return int(pltpu.get_tpu_info().vmem_capacity_bytes)
    except Exception:
        return 64 << 20  # assume the smallest (v7x) budget if the query is unavailable


def _tm_cap():
    # v5e/v6e: 128 MiB VMEM -> allow 4096-row tiles; v7x: 64 MiB -> cap at 2048.
    return 4096 if _vmem_capacity_bytes() >= (96 << 20) else 2048


def _mosaic_params():
    vmem = _vmem_capacity_bytes()
    return pltpu.CompilerParams(
        dimension_semantics=("parallel",),  # shard the row-tile grid across v7x's 2 TCs
        vmem_limit_bytes=min(vmem // 2, 64 << 20),
    )


def _pick_tm(m):
    """Largest power-of-two row tile <= generation cap that keeps grid length >= 2."""
    cap = _tm_cap()
    tm = 256
    for cand in (512, 1024, 2048, 4096):
        if cand <= cap and m >= 2 * cand:
            tm = cand
    return tm


# ------------------------------ Pallas kernels ------------------------------ #

def _slow_chain_kernel(x_ref, we_ref, be_ref, wcd_ref, bcd_ref, o_ref):
    """Fused slow branch: encoder_slow (Cin->256) -> folded conv@decoders (256->Np)."""
    # bias add fused into the single bf16 materialization (no f32 copy kept live)
    enc = (jnp.dot(x_ref[...], we_ref[...], preferred_element_type=jnp.float32)
           + be_ref[...]).astype(wcd_ref.dtype)
    o_ref[...] = (jnp.dot(enc, wcd_ref[...], preferred_element_type=jnp.float32)
                  + bcd_ref[...]).astype(o_ref.dtype)


def _combined_chain_kernel(xf_ref, xs_ref, wef_ref, bef_ref, wes_ref, bes_ref,
                           wdf_ref, wds_ref, bd_ref, o_ref):
    """Fused combined branch: decoders(concat([enc_fast, enc_slow_tiled], channel)) without
    materializing the 512-channel concat (decoder weight split along K, partials summed)."""
    enc_f = (jnp.dot(xf_ref[...], wef_ref[...], preferred_element_type=jnp.float32)
             + bef_ref[...]).astype(wdf_ref.dtype)
    enc_s = (jnp.dot(xs_ref[...], wes_ref[...], preferred_element_type=jnp.float32)
             + bes_ref[...]).astype(wds_ref.dtype)
    o_ref[...] = (jnp.dot(enc_f, wdf_ref[...], preferred_element_type=jnp.float32)
                  + jnp.dot(enc_s, wds_ref[...], preferred_element_type=jnp.float32)
                  + bd_ref[...]).astype(o_ref.dtype)


# ------------------------------ kernel wrappers ----------------------------- #

def _full_spec(arr):
    # Whole (small) weight/bias array resident per grid step, constant index map.
    # Post-fold the weights total ~0.2 MiB, so default double-buffering costs ~nothing;
    # pl.Buffered(1) single-buffering is intentionally not used.
    assert arr.ndim == 2
    return pl.BlockSpec(arr.shape, lambda i: (0, 0))


def _run_slow_chain(x_rows, p):
    """x_rows: (M, cin_pad) channel-last pixel rows of the keyframes.  Returns (M, Np) bf16."""
    M, cin_pad = x_rows.shape
    tm = _pick_tm(M)
    Mp = _round_up(M, tm)
    Np = p["w_cd"].shape[1]
    if Mp != M:
        x_rows = jnp.pad(x_rows, ((0, Mp - M), (0, 0)))
    out = pl.pallas_call(
        _slow_chain_kernel,
        out_shape=jax.ShapeDtypeStruct((Mp, Np), p["w_cd"].dtype),  # bf16 writeback
        grid_spec=pltpu.PrefetchScalarGridSpec(
            num_scalar_prefetch=0,
            grid=(Mp // tm,),
            in_specs=[
                pl.BlockSpec((tm, cin_pad), lambda i: (i, 0)),
                _full_spec(p["we_slow"]), _full_spec(p["be_slow"]),
                _full_spec(p["w_cd"]), _full_spec(p["b_cd"]),
            ],
            out_specs=pl.BlockSpec((tm, Np), lambda i: (i, 0)),
        ),
        compiler_params=_mosaic_params(),
    )(x_rows, p["we_slow"], p["be_slow"], p["w_cd"], p["b_cd"])
    return out[:M]


def _run_combined_chain(xf_rows, xs_rows, p):
    """xf_rows: (Mf, cin_pad) fast pixel rows; xs_rows: (Ms, cin_pad) slow pixel rows.
    Mf == 2*Ms and fast row i pairs with slow row i % Ms (torch tile((2,1,1,1)) + cat)."""
    Mf, cin_pad = xf_rows.shape
    Ms = xs_rows.shape[0]
    Np = p["wd_fast_half"].shape[1]
    cap = _tm_cap()

    tm = 0
    for cand in (256, 512, 1024, 2048, 4096):
        if cand <= cap and cand <= Ms and Ms % cand == 0:
            tm = cand
    if tm:
        # Slow rows re-read via a wrapping index_map instead of materializing a doubled
        # copy in HBM (removes an XLA concat + an extra HBM write/read of those rows).
        nsb = Ms // tm
        grid = (Mf // tm,)
        Mp = Mf
        xf_in, xs_in = xf_rows, xs_rows
        xs_spec = pl.BlockSpec((tm, cin_pad), lambda i, _n=nsb: (i % _n, 0))
    else:
        # Fallback (Ms not a multiple of 256): materialize the tiled slow rows.
        tm = _pick_tm(Mf)
        Mp = _round_up(Mf, tm)
        xs_full = jnp.concatenate([xs_rows, xs_rows], axis=0)
        if Mp != Mf:
            xf_rows = jnp.pad(xf_rows, ((0, Mp - Mf), (0, 0)))
            xs_full = jnp.pad(xs_full, ((0, Mp - Mf), (0, 0)))
        grid = (Mp // tm,)
        xf_in, xs_in = xf_rows, xs_full
        xs_spec = pl.BlockSpec((tm, cin_pad), lambda i: (i, 0))

    out = pl.pallas_call(
        _combined_chain_kernel,
        out_shape=jax.ShapeDtypeStruct((Mp, Np), p["wd_fast_half"].dtype),  # bf16 writeback
        grid_spec=pltpu.PrefetchScalarGridSpec(
            num_scalar_prefetch=0,
            grid=grid,
            in_specs=[
                pl.BlockSpec((tm, cin_pad), lambda i: (i, 0)),
                xs_spec,
                _full_spec(p["we_fast"]), _full_spec(p["be_fast"]),
                _full_spec(p["we_slow"]), _full_spec(p["be_slow"]),
                _full_spec(p["wd_fast_half"]), _full_spec(p["wd_slow_half"]),
                _full_spec(p["bd_all"]),
            ],
            out_specs=pl.BlockSpec((tm, Np), lambda i: (i, 0)),
        ),
        compiler_params=_mosaic_params(),
    )(xf_in, xs_in, p["we_fast"], p["be_fast"], p["we_slow"], p["be_slow"],
      p["wd_fast_half"], p["wd_slow_half"], p["bd_all"])
    return out[:Mf]


# ------------------------- parameters (prepared once) ----------------------- #

def init_params(key, c_in, task_channels, enc_ch=256, conv_out=512, scale=0.05,
                compute_dtype=jnp.bfloat16):
    """Returns (kernel_params, raw_f32_weights). Kernel params are transposed/padded/folded/cast."""
    cin_pad = _round_up(c_in, 8)
    n_dec = sum(task_channels)
    n_dec_pad = _round_up(n_dec, LANE)

    ks = jax.random.split(key, 6)

    def enc_weights(kw, kb):
        w = scale * jax.random.normal(kw, (enc_ch, c_in), jnp.float32)  # torch (Cout, Cin)
        b = scale * jax.random.normal(kb, (enc_ch,), jnp.float32)
        return w, b

    we_slow_raw, be_slow_raw = enc_weights(ks[0], ks[1])
    we_fast_raw, be_fast_raw = enc_weights(ks[2], ks[3])

    # self.conv = nn.Conv2d(256, 512, kernel_size=1)
    conv_w = scale * jax.random.normal(ks[4], (conv_out, enc_ch), jnp.float32)
    conv_b = scale * jax.random.normal(ks[5], (conv_out,), jnp.float32)

    dec_ws, dec_bs = [], []
    for i, ct in enumerate(task_channels):
        kd = jax.random.split(jax.random.fold_in(key, 100 + i), 2)
        dec_ws.append(scale * jax.random.normal(kd[0], (ct, conv_out), jnp.float32))
        dec_bs.append(scale * jax.random.normal(kd[1], (ct,), jnp.float32))

    # --- kernel-side params ---
    def enc_pack(w, b):
        w_p = jnp.zeros((cin_pad, enc_ch), jnp.float32).at[:c_in].set(w.T)
        return w_p.astype(compute_dtype), b.reshape(1, enc_ch)

    we_slow, be_slow = enc_pack(we_slow_raw, be_slow_raw)
    we_fast, be_fast = enc_pack(we_fast_raw, be_fast_raw)

    # task decoders fused along N: 512 -> (19 + 3 + 1), padded to 128 lanes
    wd_raw = jnp.concatenate(dec_ws, axis=0)     # (n_dec, 512)
    bd_raw = jnp.concatenate(dec_bs, axis=0)     # (n_dec,)
    wd_all_f32 = jnp.zeros((conv_out, n_dec_pad), jnp.float32).at[:, :n_dec].set(wd_raw.T)
    bd_all = jnp.zeros((1, n_dec_pad), jnp.float32).at[0, :n_dec].set(bd_raw)

    # Fold the affine self.conv (256->512) into the fused decoders (512->Np):
    #   out = (enc @ Wc^T + bc) @ Wd^T + bd = enc @ (Wc^T @ Wd^T) + (bc @ Wd^T + bd)
    # TODO(synk): exact only because the synthetic decoders are affine 1x1 convs and there is
    # no activation after self.conv; a non-affine decoder would forbid this fold.
    wc_t = conv_w.T                                            # (256, 512)
    w_cd = (wc_t @ wd_all_f32).astype(compute_dtype)           # (256, Np)
    b_cd = conv_b.reshape(1, conv_out) @ wd_all_f32 + bd_all   # (1, Np) f32

    params = {
        "we_slow": we_slow, "be_slow": be_slow,
        "we_fast": we_fast, "be_fast": be_fast,
        "w_cd": w_cd, "b_cd": b_cd,
        # combined-branch decoder split along K: concat order is [enc_fast, enc_slow_tiled]
        "wd_fast_half": wd_all_f32[:enc_ch].astype(compute_dtype),
        "wd_slow_half": wd_all_f32[enc_ch:].astype(compute_dtype),
        "bd_all": bd_all,
    }
    raw = {
        "we_slow": we_slow_raw, "be_slow": be_slow_raw,
        "we_fast": we_fast_raw, "be_fast": be_fast_raw,
        "wc": conv_w, "bc": conv_b,
        "dec_ws": dec_ws, "dec_bs": dec_bs,
    }
    return params, raw


# --------------------------------- forward ---------------------------------- #

@functools.partial(jax.jit, static_argnames=("k", "task_channels"))
def multitask_forward(x, params, *, k, task_channels):
    """x: [B, T, C, H, W] float32 (PyTorch NCHW-per-frame convention)."""
    B, T, C, H, W = x.shape
    kf_idx = tuple(t for t in range(T) if t % k == 0)
    nonkf_idx = tuple(sorted(set(range(T)) - set(kf_idx)))
    Ts, Tf = len(kf_idx), len(nonkf_idx)
    assert Tf == 2 * Ts, "original model's tile((2,1,1,1)) requires Tf == 2 * Ts"

    cin_pad = params["we_slow"].shape[0]
    compute_dtype = params["we_slow"].dtype
    assert C <= cin_pad

    def to_rows(frames):  # [B, n, C, H, W] -> channel-last pixel rows (B*n*H*W, cin_pad)
        n = frames.shape[1]
        r = jnp.transpose(frames, (0, 1, 3, 4, 2)).reshape(B * n * H * W, C)
        r = r.astype(compute_dtype)
        if C < cin_pad:
            r = jnp.pad(r, ((0, 0), (0, cin_pad - C)))
        return r

    x_slow = to_rows(x[:, list(kf_idx)])        # (Ms, cin_pad)
    x_fast = to_rows(x[:, list(nonkf_idx)])     # (Mf, cin_pad), Mf == 2*Ms

    # TODO(synk): the two launches below are latency-bound at demo sizes; merging them into
    # a single pallas_call is possible but not worth the complexity at realistic H*W.
    out_slow_flat = _run_slow_chain(x_slow, params)               # (Ms, Np) bf16
    out_fast_flat = _run_combined_chain(x_fast, x_slow, params)   # (Mf, Np) bf16

    Np = out_slow_flat.shape[1]
    total_ct = sum(task_channels)
    out_slow = out_slow_flat.reshape(B, Ts, H, W, Np)
    out_fast = out_fast_flat.reshape(B, Tf, H, W, Np)

    # Assemble per-frame predictions with ONE concat + ONE static gather along T +
    # ONE slice/transpose/cast, instead of per-task zeros + scatter passes.
    full = jnp.concatenate([out_slow, out_fast], axis=1)          # (B, Ts+Tf, H, W, Np)
    perm = [0] * T
    for j, t in enumerate(kf_idx):
        perm[t] = j
    for j, t in enumerate(nonkf_idx):
        perm[t] = Ts + j
    full = jnp.take(full, jnp.asarray(perm, jnp.int32), axis=1)   # (B, T, H, W, Np)
    full = jnp.transpose(full[..., :total_ct], (0, 1, 4, 2, 3)).astype(jnp.float32)

    task_predictions = []
    off = 0
    for ct in task_channels:
        task_predictions.append(full[:, :, off:off + ct])
        off += ct
    return task_predictions


# ----------------------------- pure-JAX reference --------------------------- #

def _reference_forward(x, raw, k, task_channels):
    """f32 reference mirroring the original (un-folded) forward semantics."""
    B, T, C, H, W = x.shape
    kf = [t for t in range(T) if t % k == 0]
    nkf = sorted(set(range(T)) - set(kf))
    Ts, Tf = len(kf), len(nkf)

    def rows(fr):
        return jnp.transpose(fr, (0, 1, 3, 4, 2)).reshape(-1, C)

    xs, xf = rows(x[:, kf]), rows(x[:, nkf])
    enc_s = xs @ raw["we_slow"].T + raw["be_slow"]
    enc_f = xf @ raw["we_fast"].T + raw["be_fast"]
    h = enc_s @ raw["wc"].T + raw["bc"]
    comb = jnp.concatenate([enc_f, jnp.concatenate([enc_s, enc_s], axis=0)], axis=1)

    preds = []
    for w, b in zip(raw["dec_ws"], raw["dec_bs"]):
        ct = w.shape[0]
        os_ = jnp.transpose((h @ w.T + b).reshape(B, Ts, H, W, ct), (0, 1, 4, 2, 3))
        of_ = jnp.transpose((comb @ w.T + b).reshape(B, Tf, H, W, ct), (0, 1, 4, 2, 3))
        pred = jnp.zeros((B, T, ct, H, W), jnp.float32)
        pred = pred.at[:, jnp.asarray(kf)].set(os_).at[:, jnp.asarray(nkf)].set(of_)
        preds.append(pred)
    return preds


if __name__ == "__main__":
    key = jax.random.PRNGKey(0)
    # Small shapes: B=2, T=6 frames, C=3, 16x16 spatial, K=3 -> 2 keyframes, 4 non-keyframes.
    B, T, C, H, W = 2, 6, 3, 16, 16
    K = 3
    task_channels = (19, 3, 1)

    kx, kp = jax.random.split(key)
    x = jax.random.normal(kx, (B, T, C, H, W), jnp.float32)
    params, raw = init_params(kp, C, task_channels)

    preds = multitask_forward(x, params, k=K, task_channels=task_channels)
    for p in preds:
        jax.block_until_ready(p)

    # shape sanity: [B, T, Ct, H, W] per task
    assert [tuple(p.shape) for p in preds] == [(B, T, ct, H, W) for ct in task_channels]

    # numerical sanity vs the un-folded f32 reference (bf16 MXU operands -> loose tolerance)
    refs = _reference_forward(x, raw, K, task_channels)
    for p, r in zip(preds, refs):
        err = float(jnp.max(jnp.abs(p - r)))
        assert err < 5e-2, f"max abs err {err}"

    print("KERNEL_OK")
</pallas_src>

<mosaic_0001>
module attributes {stable_mosaic.version = 11 : i64} {
  func.func @_slow_chain_kernel(%arg0: i32, %arg1: memref<512x8xbf16, #tpu.memory_space<vmem>>, %arg2: memref<8x256xbf16, #tpu.memory_space<vmem>>, %arg3: memref<1x256xf32, #tpu.memory_space<vmem>>, %arg4: memref<256x128xbf16, #tpu.memory_space<vmem>>, %arg5: memref<1x128xf32, #tpu.memory_space<vmem>>, %arg6: memref<512x128xbf16, #tpu.memory_space<vmem>>) attributes {dimension_semantics = [#tpu.dimension_semantics<parallel>], iteration_bounds = array<i64: 2>, scalar_prefetch = 0 : i64, scratch_operands = 0 : i64, tpu.core_type = #tpu.core_type<tc>, window_params = [{transform_indices = @transform_0, window_bounds = array<i64: 512, 8>}, {pipeline_mode = #tpu.pipeline_mode<synchronous>, transform_indices = @transform_1, window_bounds = array<i64: 8, 256>}, {pipeline_mode = #tpu.pipeline_mode<synchronous>, transform_indices = @transform_2, window_bounds = array<i64: 1, 256>}, {pipeline_mode = #tpu.pipeline_mode<synchronous>, transform_indices = @transform_3, window_bounds = array<i64: 256, 128>}, {pipeline_mode = #tpu.pipeline_mode<synchronous>, transform_indices = @transform_4, window_bounds = array<i64: 1, 128>}, {transform_indices = @transform_5, window_bounds = array<i64: 512, 128>}]} {
    %c0 = arith.constant 0 : index
    %c0_0 = arith.constant 0 : index
    %0 = vector.load %arg1[%c0, %c0_0] : memref<512x8xbf16, #tpu.memory_space<vmem>>, vector<512x8xbf16>
    %c0_1 = arith.constant 0 : index
    %c0_2 = arith.constant 0 : index
    %1 = vector.load %arg2[%c0_1, %c0_2] : memref<8x256xbf16, #tpu.memory_space<vmem>>, vector<8x256xbf16>
    %cst = arith.constant dense<0.000000e+00> : vector<512x256xf32>
    %2 = tpu.matmul %0, %1, %cst {dimension_numbers = #tpu.dot_dimension_numbers<[1], [0], [0], [1], [0, 0, 1, 1], [], []>} : vector<512x8xbf16>, vector<8x256xbf16>, vector<512x256xf32> -> vector<512x256xf32>
    %c0_3 = arith.constant 0 : index
    %c0_4 = arith.constant 0 : index
    %3 = vector.load %arg3[%c0_3, %c0_4] : memref<1x256xf32, #tpu.memory_space<vmem>>, vector<1x256xf32>
    %4 = vector.broadcast %3 : vector<1x256xf32> to vector<512x256xf32>
    %5 = arith.addf %2, %4 : vector<512x256xf32>
    %6 = arith.truncf %5 : vector<512x256xf32> to vector<512x256xbf16>
    %c0_5 = arith.constant 0 : index
    %c0_6 = arith.constant 0 : index
    %7 = vector.load %arg4[%c0_5, %c0_6] : memref<256x128xbf16, #tpu.memory_space<vmem>>, vector<256x128xbf16>
    %cst_7 = arith.constant dense<0.000000e+00> : vector<512x128xf32>
    %8 = tpu.matmul %6, %7, %cst_7 {dimension_numbers = #tpu.dot_dimension_numbers<[1], [0], [0], [1], [0, 0, 1, 1], [], []>} : vector<512x256xbf16>, vector<256x128xbf16>, vector<512x128xf32> -> vector<512x128xf32>
    %c0_8 = arith.constant 0 : index
    %c0_9 = arith.constant 0 : index
    %9 = vector.load %arg5[%c0_8, %c0_9] : memref<1x128xf32, #tpu.memory_space<vmem>>, vector<1x128xf32>
    %10 = vector.broadcast %9 : vector<1x128xf32> to vector<512x128xf32>
    %11 = arith.addf %8, %10 : vector<512x128xf32>
    %12 = arith.truncf %11 : vector<512x128xf32> to vector<512x128xbf16>
    %c0_10 = arith.constant 0 : index
    %c0_11 = arith.constant 0 : index
    %13 = vector.load %arg6[%c0_10, %c0_11] : memref<512x128xbf16, #tpu.memory_space<vmem>>, vector<512x128xbf16>
    tpu.vector_store %arg6[%c0_10, %c0_11], %12 {strides = array<i32>} : memref<512x128xbf16, #tpu.memory_space<vmem>>, vector<512x128xbf16>,
    return
  }
  func.func @transform_0(%arg0: i32) -> (i32, i32) {
    %c0_i32 = arith.constant 0 : i32
    %c0_i32_0 = arith.constant 0 : i32
    return %arg0, %c0_i32 : i32, i32
  }
  func.func @transform_1(%arg0: i32) -> (i32, i32) {
    %c0_i32 = arith.constant 0 : i32
    %c0_i32_0 = arith.constant 0 : i32
    %c0_i32_1 = arith.constant 0 : i32
    return %c0_i32, %c0_i32_0 : i32, i32
  }
  func.func @transform_2(%arg0: i32) -> (i32, i32) {
    %c0_i32 = arith.constant 0 : i32
    %c0_i32_0 = arith.constant 0 : i32
    %c0_i32_1 = arith.constant 0 : i32
    return %c0_i32, %c0_i32_0 : i32, i32
  }
  func.func @transform_3(%arg0: i32) -> (i32, i32) {
    %c0_i32 = arith.constant 0 : i32
    %c0_i32_0 = arith.constant 0 : i32
    %c0_i32_1 = arith.constant 0 : i32
    return %c0_i32, %c0_i32_0 : i32, i32
  }
  func.func @transform_4(%arg0: i32) -> (i32, i32) {
    %c0_i32 = arith.constant 0 : i32
    %c0_i32_0 = arith.constant 0 : i32
    %c0_i32_1 = arith.constant 0 : i32
    return %c0_i32, %c0_i32_0 : i32, i32
  }
  func.func @transform_5(%arg0: i32) -> (i32, i32) {
    %c0_i32 = arith.constant 0 : i32
    %c0_i32_0 = arith.constant 0 : i32
    return %arg0, %c0_i32 : i32, i32
  }
}

module attributes {stable_mosaic.version = 11 : i64} {
  func.func @_combined_chain_kernel(%arg0: i32, %arg1: memref<1024x8xbf16, #tpu.memory_space<vmem>>, %arg2: memref<1024x8xbf16, #tpu.memory_space<vmem>>, %arg3: memref<8x256xbf16, #tpu.memory_space<vmem>>, %arg4: memref<1x256xf32, #tpu.memory_space<vmem>>, %arg5: memref<8x256xbf16, #tpu.memory_space<vmem>>, %arg6: memref<1x256xf32, #tpu.memory_space<vmem>>, %arg7: memref<256x128xbf16, #tpu.memory_space<vmem>>, %arg8: memref<256x128xbf16, #tpu.memory_space<vmem>>, %arg9: memref<1x128xf32, #tpu.memory_space<vmem>>, %arg10: memref<1024x128xbf16, #tpu.memory_space<vmem>>) attributes {dimension_semantics = [#tpu.dimension_semantics<parallel>], iteration_bounds = array<i64: 2>, scalar_prefetch = 0 : i64, scratch_operands = 0 : i64, tpu.core_type = #tpu.core_type<tc>, window_params = [{transform_indices = @transform_0, window_bounds = array<i64: 1024, 8>}, {transform_indices = @transform_1, window_bounds = array<i64: 1024, 8>}, {pipeline_mode = #tpu.pipeline_mode<synchronous>, transform_indices = @transform_2, window_bounds = array<i64: 8, 256>}, {pipeline_mode = #tpu.pipeline_mode<synchronous>, transform_indices = @transform_3, window_bounds = array<i64: 1, 256>}, {pipeline_mode = #tpu.pipeline_mode<synchronous>, transform_indices = @transform_4, window_bounds = array<i64: 8, 256>}, {pipeline_mode = #tpu.pipeline_mode<synchronous>, transform_indices = @transform_5, window_bounds = array<i64: 1, 256>}, {pipeline_mode = #tpu.pipeline_mode<synchronous>, transform_indices = @transform_6, window_bounds = array<i64: 256, 128>}, {pipeline_mode = #tpu.pipeline_mode<synchronous>, transform_indices = @transform_7, window_bounds = array<i64: 256, 128>}, {pipeline_mode = #tpu.pipeline_mode<synchronous>, transform_indices = @transform_8, window_bounds = array<i64: 1, 128>}, {transform_indices = @transform_9, window_bounds = array<i64: 1024, 128>}]} {
    %c0 = arith.constant 0 : index
    %c0_0 = arith.constant 0 : index
    %0 = vector.load %arg1[%c0, %c0_0] : memref<1024x8xbf16, #tpu.memory_space<vmem>>, vector<1024x8xbf16>
    %c0_1 = arith.constant 0 : index
    %c0_2 = arith.constant 0 : index
    %1 = vector.load %arg3[%c0_1, %c0_2] : memref<8x256xbf16, #tpu.memory_space<vmem>>, vector<8x256xbf16>
    %cst = arith.constant dense<0.000000e+00> : vector<1024x256xf32>
    %2 = tpu.matmul %0, %1, %cst {dimension_numbers = #tpu.dot_dimension_numbers<[1], [0], [0], [1], [0, 0, 1, 1], [], []>} : vector<1024x8xbf16>, vector<8x256xbf16>, vector<1024x256xf32> -> vector<1024x256xf32>
    %c0_3 = arith.constant 0 : index
    %c0_4 = arith.constant 0 : index
    %3 = vector.load %arg4[%c0_3, %c0_4] : memref<1x256xf32, #tpu.memory_space<vmem>>, vector<1x256xf32>
    %4 = vector.broadcast %3 : vector<1x256xf32> to vector<1024x256xf32>
    %5 = arith.addf %2, %4 : vector<1024x256xf32>
    %6 = arith.truncf %5 : vector<1024x256xf32> to vector<1024x256xbf16>
    %c0_5 = arith.constant 0 : index
    %c0_6 = arith.constant 0 : index
    %7 = vector.load %arg2[%c0_5, %c0_6] : memref<1024x8xbf16, #tpu.memory_space<vmem>>, vector<1024x8xbf16>
    %c0_7 = arith.constant 0 : index
    %c0_8 = arith.constant 0 : index
    %8 = vector.load %arg5[%c0_7, %c0_8] : memref<8x256xbf16, #tpu.memory_space<vmem>>, vector<8x256xbf16>
    %cst_9 = arith.constant dense<0.000000e+00> : vector<1024x256xf32>
    %9 = tpu.matmul %7, %8, %cst_9 {dimension_numbers = #tpu.dot_dimension_numbers<[1], [0], [0], [1], [0, 0, 1, 1], [], []>} : vector<1024x8xbf16>, vector<8x256xbf16>, vector<1024x256xf32> -> vector<1024x256xf32>
    %c0_10 = arith.constant 0 : index
    %c0_11 = arith.constant 0 : index
    %10 = vector.load %arg6[%c0_10, %c0_11] : memref<1x256xf32, #tpu.memory_space<vmem>>, vector<1x256xf32>
    %11 = vector.broadcast %10 : vector<1x256xf32> to vector<1024x256xf32>
    %12 = arith.addf %9, %11 : vector<1024x256xf32>
    %13 = arith.truncf %12 : vector<1024x256xf32> to vector<1024x256xbf16>
    %c0_12 = arith.constant 0 : index
    %c0_13 = arith.constant 0 : index
    %14 = vector.load %arg7[%c0_12, %c0_13] : memref<256x128xbf16, #tpu.memory_space<vmem>>, vector<256x128xbf16>
    %cst_14 = arith.constant dense<0.000000e+00> : vector<1024x128xf32>
    %15 = tpu.matmul %6, %14, %cst_14 {dimension_numbers = #tpu.dot_dimension_numbers<[1], [0], [0], [1], [0, 0, 1, 1], [], []>} : vector<1024x256xbf16>, vector<256x128xbf16>, vector<1024x128xf32> -> vector<1024x128xf32>
    %c0_15 = arith.constant 0 : index
    %c0_16 = arith.constant 0 : index
    %16 = vector.load %arg8[%c0_15, %c0_16] : memref<256x128xbf16, #tpu.memory_space<vmem>>, vector<256x128xbf16>
    %cst_17 = arith.constant dense<0.000000e+00> : vector<1024x128xf32>
    %17 = tpu.matmul %13, %16, %cst_17 {dimension_numbers = #tpu.dot_dimension_numbers<[1], [0], [0], [1], [0, 0, 1, 1], [], []>} : vector<1024x256xbf16>, vector<256x128xbf16>, vector<1024x128xf32> -> vector<1024x128xf32>
    %18 = arith.addf %15, %17 : vector<1024x128xf32>
    %c0_18 = arith.constant 0 : index
    %c0_19 = arith.constant 0 : index
    %19 = vector.load %arg9[%c0_18, %c0_19] : memref<1x128xf32, #tpu.memory_space<vmem>>, vector<1x128xf32>
    %20 = vector.broadcast %19 : vector<1x128xf32> to vector<1024x128xf32>
    %21 = arith.addf %18, %20 : vector<1024x128xf32>
    %22 = arith.truncf %21 : vector<1024x128xf32> to vector<1024x128xbf16>
    %c0_20 = arith.constant 0 : index
    %c0_21 = arith.constant 0 : index
    %23 = vector.load %arg10[%c0_20, %c0_21] : memref<1024x128xbf16, #tpu.memory_space<vmem>>, vector<1024x128xbf16>
    tpu.vector_store %arg10[%c0_20, %c0_21], %22 {strides = array<i32>} : memref<1024x128xbf16, #tpu.memory_space<vmem>>, vector<1024x128xbf16>,
    return
  }
  func.func @transform_0(%arg0: i32) -> (i32, i32) {
    %c0_i32 = arith.constant 0 : i32
    %c0_i32_0 = arith.constant 0 : i32
    return %arg0, %c0_i32 : i32, i32
  }
  func.func @transform_1(%arg0: i32) -> (i32, i32) {
    %c1_i32 = arith.constant 1 : i32
    %c0_i32 = arith.constant 0 : i32
    %0 = arith.cmpi eq, %c1_i32, %c0_i32 : i32
    %c1_i32_0 = arith.constant 1 : i32
    %1 = arith.select %0, %c1_i32_0, %c1_i32 : i32
    %2 = arith.remsi %arg0, %1 : i32
    %c0_i32_1 = arith.constant 0 : i32
    %3 = arith.cmpi ne, %2, %c0_i32_1 : i32
    %c0_i32_2 = arith.constant 0 : i32
    %4 = arith.cmpi slt, %2, %c0_i32_2 : i32
    %c0_i32_3 = arith.constant 0 : i32
    %5 = arith.cmpi slt, %1, %c0_i32_3 : i32
    %6 = arith.xori %4, %5 : i1
    %7 = arith.andi %6, %3 : i1
    %8 = arith.addi %2, %1 : i32
    %9 = arith.select %7, %8, %2 : i32
    %c0_i32_4 = arith.constant 0 : i32
    %c0_i32_5 = arith.constant 0 : i32
    return %9, %c0_i32_4 : i32, i32
  }
  func.func @transform_2(%arg0: i32) -> (i32, i32) {
    %c0_i32 = arith.constant 0 : i32
    %c0_i32_0 = arith.constant 0 : i32
    %c0_i32_1 = arith.constant 0 : i32
    return %c0_i32, %c0_i32_0 : i32, i32
  }
  func.func @transform_3(%arg0: i32) -> (i32, i32) {
    %c0_i32 = arith.constant 0 : i32
    %c0_i32_0 = arith.constant 0 : i32
    %c0_i32_1 = arith.constant 0 : i32
    return %c0_i32, %c0_i32_0 : i32, i32
  }
  func.func @transform_4(%arg0: i32) -> (i32, i32) {
    %c0_i32 = arith.constant 0 : i32
    %c0_i32_0 = arith.constant 0 : i32
    %c0_i32_1 = arith.constant 0 : i32
    return %c0_i32, %c0_i32_0 : i32, i32
  }
  func.func @transform_5(%arg0: i32) -> (i32, i32) {
    %c0_i32 = arith.constant 0 : i32
    %c0_i32_0 = arith.constant 0 : i32
    %c0_i32_1 = arith.constant 0 : i32
    return %c0_i32, %c0_i32_0 : i32, i32
  }
  func.func @transform_6(%arg0: i32) -> (i32, i32) {
    %c0_i32 = arith.constant 0 : i32
    %c0_i32_0 = arith.constant 0 : i32
    %c0_i32_1 = arith.constant 0 : i32
    return %c0_i32, %c0_i32_0 : i32, i32
  }
  func.func @transform_7(%arg0: i32) -> (i32, i32) {
    %c0_i32 = arith.constant 0 : i32
    %c0_i32_0 = arith.constant 0 : i32
    %c0_i32_1 = arith.constant 0 : i32
    return %c0_i32, %c0_i32_0 : i32, i32
  }
  func.func @transform_8(%arg0: i32) -> (i32, i32) {
    %c0_i32 = arith.constant 0 : i32
    %c0_i32_0 = arith.constant 0 : i32
    %c0_i32_1 = arith.constant 0 : i32
    return %c0_i32, %c0_i32_0 : i32, i32
  }
  func.func @transform_9(%arg0: i32) -> (i32, i32) {
    %c0_i32 = arith.constant 0 : i32
    %c0_i32_0 = arith.constant 0 : i32
    return %arg0, %c0_i32 : i32, i32
  }
}

</mosaic_0001>

<bundles_post_ra>
// kernel: multitask_forward.2
= control target key start
LH: loop header
LB: loop body
LE: loop exit
PB: predicated region body
PF: predicated region fallthrough
CT: control target
= control target key end

     0   :  { %s2179_s18 = smov 0   ;;  %s2595_s0 = inlined_call_operand.vmem [shape: bf16[1024,8], index: 0, kind: input, shape index: {}]   ;;  %s2596_s1 = inlined_call_operand.vmem [shape: bf16[8,256], index: 1, kind: input, shape index: {}]   ;;  %s2597_s2 = inlined_call_operand.vmem [shape: f32[1,256], index: 2, kind: input, shape index: {}]   ;;  %s2598_s3 = inlined_call_operand.vmem [shape: bf16[256,128], index: 3, kind: input, shape index: {}]   ;;  %s2599_s4 = inlined_call_operand.vmem [shape: f32[1,128], index: 4, kind: input, shape index: {}]   ;;  %s2600_s5 = inlined_call_operand.vmem [shape: bf16[1024,128], index: 5, kind: output, shape index: {}]  }
   0x1 LB: > { %s1625_s19 = sadd.s32 4294967295, %s2147_s18   ;;  %p1629_p0 = scmp.ge.s32.totalorder %s2147_s18, 1  ;;  %s2147_s18 = sphi %s2179_s18, %s15_s18  }
   0x2   : > { %p188_p1 = scmp.lt.s32.totalorder %s2147_s18, 3 }
   0x4   : > { %p189_p2 = pnand %p1629_p0, %p188_p1 }
   0x5   : > { %s1630_s22 = sshll.u32 (!%p189_p2), %s1625_s19, 6 }
   0x6   : > { %192 = sbr.rel (%p189_p2) target bundleno = 802 (0x322), region = 40  ;;  %p217_p3 = scmp.lt.s32.totalorder (!%p189_p2), %s1630_s22, 127 }
   0xb   : > { %v293_v0 = vld [vmem:[%s2596_s1] sm:$0xff]  ;;  %vm562_vm0 = vcmask 1043456   ;;  %s2602_s22 = smov (!%p217_p3, %s1630_s22), 127  ;;  %vm465_vm1 = vcmask 64512   ;;  %v1931_v12 = vld [vmem:[%s2598_s3 + $0x38] sm:$0xff]  ;;  %v1930_v14 = vld [vmem:[%s2598_s3 + $0x30] sm:$0xff] }
   0xc   : > { %v461_v1 = vunpack.c.l.b16 %v293_v0  ;;  %v462_v2 = vunpack.c.h.b16 %v293_v0  ;;  %s1631_s23 = sshll.u32 %s2602_s22, 2  ;;  %v1939_v13 = vld [vmem:[%s2598_s3 + $0x78] sm:$0xff]  ;;  %1103 = vmatpush.bf16.msra.mxu2 %v1931_v12  ;;  %v1938_v15 = vld [vmem:[%s2598_s3 + $0x70] sm:$0xff]  ;;  %v1929_v17 = vld [vmem:[%s2598_s3 + $0x28] sm:$0xff] }
   0xd   : > { %s2198_s26 = scalar_lea.vmem %s2595_s0, %s1631_s23  ;;  %1272 = vmatpush.bf16.msra.mxu3 %v1939_v13  ;;  %v1937_v18 = vld [vmem:[%s2598_s3 + $0x68] sm:$0xff]  ;;  %v1928_v19 = vld [vmem:[%s2598_s3 + $0x20] sm:$0xff]  ;;  %v1927_v21 = vld [vmem:[%s2598_s3 + $0x18] sm:$0xff]  ;;  %s2361_s20 = scalar_lea.vmem %s2600_s5, %s1631_s23 }
   0xe   : > { %v463_v3 = vpack.c.b16 %v461_v1, %v461_v1  ;;  %v464_v4 = vpack.c.b16 %v462_v2, %v462_v2  ;;  %v1892_v7 = vld [vmem:[%s2198_s26] sm:$0xff]  ;;  %v1893_v8 = vld [vmem:[%s2198_s26 + $0x8] sm:$0xff]  ;;  %v1894_v9 = vld [vmem:[%s2198_s26 + $0x10] sm:$0xff] }
   0xf   : > { %v1895_v10 = vld [vmem:[%s2198_s26 + $0x18] sm:$0xff]  ;;  %v1896_v11 = vld [vmem:[%s2198_s26 + $0x20] sm:$0xff]  ;;  %v1897_v16 = vld [vmem:[%s2198_s26 + $0x28] sm:$0xff] }
  0x10   : > { %v564_v5 = vsel %vm562_vm0, %v463_v3, 0  ;;  %v567_v6 = vsel %vm562_vm0, %v464_v4, 0  ;;  %1104 = vmatpush.bf16.msra.mxu2 %v1930_v14  ;;  %v1936_v20 = vld [vmem:[%s2598_s3 + $0x60] sm:$0xff]  ;;  %v1935_v22 = vld [vmem:[%s2598_s3 + $0x58] sm:$0xff]  ;;  %v1898_v23 = vld [vmem:[%s2198_s26 + $0x30] sm:$0xff] }
  0x11   : > { %576 = vmatpush.bf16.msra.mxu0 %v564_v5  ;;  %745 = vmatpush.bf16.msra.mxu1 %v567_v6  ;;  %v1926_v24 = vld [vmem:[%s2598_s3 + $0x10] sm:$0xff]  ;;  %v1925_v26 = vld [vmem:[%s2598_s3 + $0x8] sm:$0xff]  ;;  %v1924_v28 = vld [vmem:[%s2598_s3] sm:$0xff] }
  0x12   : > { %1273 = vmatpush.bf16.msra.mxu3 %v1938_v15  ;;  %v1934_v25 = vld [vmem:[%s2598_s3 + $0x50] sm:$0xff]  ;;  %v1933_v27 = vld [vmem:[%s2598_s3 + $0x48] sm:$0xff]  ;;  %v1932_v29 = vld [vmem:[%s2598_s3 + $0x40] sm:$0xff] }
  0x13   : > { %v1899_v30 = vld [vmem:[%s2198_s26 + $0x38] sm:$0xff]  ;;  %v1900_v31 = vld [vmem:[%s2198_s26 + $0x40] sm:$0xff]  ;;  %v1901_v45 = vld [vmem:[%s2198_s26 + $0x48] sm:$0xff] }
  0x14   : > { %1762 = vmatmul.msk.bf16.vlgmr.msra.gmra.mxu0 %vm465_vm1, %v1892_v7  ;;  %1794 = vmatmul.msk.bf16.vlgmr.msra.gmra.mxu1 %vm465_vm1, %v1892_v7  ;;  %v294_v34 = vld [vmem:[%s2597_s2] sm:$0x3]  ;;  %v1902_v56 = vld [vmem:[%s2198_s26 + $0x50] sm:$0xff]  ;;  %v1903_v3 = vld [vmem:[%s2198_s26 + $0x58] sm:$0xff] }
  0x15   : > { %1105 = vmatpush.bf16.msra.mxu2 %v1929_v17  ;;  %v2278_v35 = vperm.slane %v294_v34, 0  ;;  %v2280_v36 = vperm.slane %v294_v34, 1  ;;  %v1904_v14 = vld [vmem:[%s2198_s26 + $0x60] sm:$0xff] }
  0x16   : > { %1274 = vmatpush.bf16.msra.mxu3 %v1937_v18 }
  0x19   : > { %1106 = vmatpush.bf16.msra.mxu2 %v1928_v19 }
  0x1a   : > { %1275 = vmatpush.bf16.msra.mxu3 %v1936_v20 }
  0x1d   : > { %1107 = vmatpush.bf16.msra.mxu2 %v1927_v21 }
  0x1e   : > { %1276 = vmatpush.bf16.msra.mxu3 %v1935_v22 }
  0x21   : > { %1108 = vmatpush.bf16.msra.mxu2 %v1926_v24 }
  0x22   : > { %1277 = vmatpush.bf16.msra.mxu3 %v1934_v25  ;;  %v1905_v25 = vld [vmem:[%s2198_s26 + $0x68] sm:$0xff] }
  0x24   : > { %1763 = vmatmul.msk.bf16.gmra.mxu0 %vm465_vm1, %v1893_v8  ;;  %1795 = vmatmul.msk.bf16.gmra.mxu1 %vm465_vm1, %v1893_v8 }
  0x25   : > { %1109 = vmatpush.bf16.msra.mxu2 %v1925_v26 }
  0x26   : > { %1278 = vmatpush.bf16.msra.mxu3 %v1933_v27 }
  0x29   : > { %1110 = vmatpush.bf16.msra.mxu2 %v1924_v28 }
  0x2a   : > { %1279 = vmatpush.bf16.msra.mxu3 %v1932_v29 }
  0x34   : > { %1764 = vmatmul.msk.bf16.gmra.mxu0 %vm465_vm1, %v1894_v9  ;;  %1796 = vmatmul.msk.bf16.gmra.mxu1 %vm465_vm1, %v1894_v9 }
  0x44   : > { %1765 = vmatmul.msk.bf16.gmra.mxu0 %vm465_vm1, %v1895_v10  ;;  %1797 = vmatmul.msk.bf16.gmra.mxu1 %vm465_vm1, %v1895_v10 }
  0x54   : > { %1766 = vmatmul.msk.bf16.gmra.mxu0 %vm465_vm1, %v1896_v11  ;;  %1798 = vmatmul.msk.bf16.gmra.mxu1 %vm465_vm1, %v1896_v11 }
  0x64   : > { %1767 = vmatmul.msk.bf16.gmra.mxu0 %vm465_vm1, %v1897_v16  ;;  %1799 = vmatmul.msk.bf16.gmra.mxu1 %vm465_vm1, %v1897_v16 }
  0x74   : > { %1768 = vmatmul.msk.bf16.gmra.mxu0 %vm465_vm1, %v1898_v23  ;;  %1800 = vmatmul.msk.bf16.gmra.mxu1 %vm465_vm1, %v1898_v23 }
  0x84   : > { %1769 = vmatmul.msk.bf16.gmra.mxu0 %vm465_vm1, %v1899_v30  ;;  %1801 = vmatmul.msk.bf16.gmra.mxu1 %vm465_vm1, %v1899_v30 }
  0x91   : > { %v578_v32 = vpop.f32.mrf.mxu0  ;;  %v747_v33 = vpop.f32.mrf.mxu1 }
  0x92   : > { %v579_v39 = vadd.f32 %v578_v32, %v2278_v35  ;;  %v748_v40 = vadd.f32 %v747_v33, %v2280_v36 }
  0x94   : > { %1770 = vmatmul.msk.bf16.gmra.mxu0 %vm465_vm1, %v1900_v31  ;;  %1802 = vmatmul.msk.bf16.gmra.mxu1 %vm465_vm1, %v1900_v31 }
  0x99   : > { %v580_v37 = vpop.f32.mrf.mxu0  ;;  %v749_v38 = vpop.f32.mrf.mxu1 }
  0x9a   : > { %v581_v41 = vadd.f32 %v580_v37, %v2278_v35  ;;  %v750_v42 = vadd.f32 %v749_v38, %v2280_v36  ;;  %v1906_v38 = vld [vmem:[%s2198_s26 + $0x70] sm:$0xff] }
  0x9c   : > { %v907_v43 = vpack.c.bf16 %v581_v41, %v579_v39  ;;  %v908_v44 = vpack.c.bf16 %v750_v42, %v748_v40 }
  0x9e   : > { %1111 = vmatmul.bf16.vlgmr.msra.gmra.mxu2 %v907_v43  ;;  %1280 = vmatmul.bf16.vlgmr.msra.gmra.mxu3 %v908_v44 }
  0xa1   : > { %v583_v46 = vpop.f32.mrf.mxu0  ;;  %v752_v47 = vpop.f32.mrf.mxu1 }
  0xa2   : > { %v584_v50 = vadd.f32 %v583_v46, %v2278_v35  ;;  %v753_v51 = vadd.f32 %v752_v47, %v2280_v36 }
  0xa4   : > { %1771 = vmatmul.msk.bf16.gmra.mxu0 %vm465_vm1, %v1901_v45  ;;  %1803 = vmatmul.msk.bf16.gmra.mxu1 %vm465_vm1, %v1901_v45 }
  0xa9   : > { %v585_v48 = vpop.f32.mrf.mxu0  ;;  %v754_v49 = vpop.f32.mrf.mxu1 }
  0xaa   : > { %v586_v52 = vadd.f32 %v585_v48, %v2278_v35  ;;  %v755_v53 = vadd.f32 %v754_v49, %v2280_v36  ;;  %v1907_v49 = vld [vmem:[%s2198_s26 + $0x78] sm:$0xff] }
  0xac   : > { %v909_v54 = vpack.c.bf16 %v586_v52, %v584_v50  ;;  %v910_v55 = vpack.c.bf16 %v755_v53, %v753_v51 }
  0xae   : > { %1116 = vmatmul.bf16.gmra.mxu2 %v909_v54  ;;  %1285 = vmatmul.bf16.gmra.mxu3 %v910_v55 }
  0xb1   : > { %v588_v57 = vpop.f32.mrf.mxu0  ;;  %v757_v58 = vpop.f32.mrf.mxu1 }
  0xb2   : > { %v589_v61 = vadd.f32 %v588_v57, %v2278_v35  ;;  %v758_v62 = vadd.f32 %v757_v58, %v2280_v36 }
  0xb4   : > { %1772 = vmatmul.msk.bf16.gmra.mxu0 %vm465_vm1, %v1902_v56  ;;  %1804 = vmatmul.msk.bf16.gmra.mxu1 %vm465_vm1, %v1902_v56 }
  0xb9   : > { %v590_v59 = vpop.f32.mrf.mxu0  ;;  %v759_v60 = vpop.f32.mrf.mxu1 }
  0xba   : > { %v591_v63 = vadd.f32 %v590_v59, %v2278_v35  ;;  %v760_v0 = vadd.f32 %v759_v60, %v2280_v36  ;;  %v1908_v60 = vld [vmem:[%s2198_s26 + $0x80] sm:$0xff] }
  0xbc   : > { %v911_v1 = vpack.c.bf16 %v591_v63, %v589_v61  ;;  %v912_v2 = vpack.c.bf16 %v760_v0, %v758_v62 }
  0xbe   : > { %1121 = vmatmul.bf16.gmra.mxu2 %v911_v1  ;;  %1290 = vmatmul.bf16.gmra.mxu3 %v912_v2 }
  0xc1   : > { %v593_v4 = vpop.f32.mrf.mxu0  ;;  %v762_v5 = vpop.f32.mrf.mxu1 }
  0xc2   : > { %v594_v8 = vadd.f32 %v593_v4, %v2278_v35  ;;  %v763_v9 = vadd.f32 %v762_v5, %v2280_v36 }
  0xc4   : > { %1773 = vmatmul.msk.bf16.gmra.mxu0 %vm465_vm1, %v1903_v3  ;;  %1805 = vmatmul.msk.bf16.gmra.mxu1 %vm465_vm1, %v1903_v3 }
  0xc9   : > { %v595_v6 = vpop.f32.mrf.mxu0  ;;  %v764_v7 = vpop.f32.mrf.mxu1 }
  0xca   : > { %v596_v10 = vadd.f32 %v595_v6, %v2278_v35  ;;  %v765_v11 = vadd.f32 %v764_v7, %v2280_v36  ;;  %v1909_v7 = vld [vmem:[%s2198_s26 + $0x88] sm:$0xff] }
  0xcc   : > { %v913_v12 = vpack.c.bf16 %v596_v10, %v594_v8  ;;  %v914_v13 = vpack.c.bf16 %v765_v11, %v763_v9 }
  0xce   : > { %1126 = vmatmul.bf16.gmra.mxu2 %v913_v12  ;;  %1295 = vmatmul.bf16.gmra.mxu3 %v914_v13  ;;  %v2348_v12 = vld [vmem:[%s2599_s4] ss:$0 sm:$0xff] }
  0xd1   : > { %v598_v15 = vpop.f32.mrf.mxu0  ;;  %v767_v16 = vpop.f32.mrf.mxu1 }
  0xd2   : > { %v599_v19 = vadd.f32 %v598_v15, %v2278_v35  ;;  %v768_v20 = vadd.f32 %v767_v16, %v2280_v36 }
  0xd4   : > { %1774 = vmatmul.msk.bf16.gmra.mxu0 %vm465_vm1, %v1904_v14  ;;  %1806 = vmatmul.msk.bf16.gmra.mxu1 %vm465_vm1, %v1904_v14 }
  0xd9   : > { %v600_v17 = vpop.f32.mrf.mxu0  ;;  %v769_v18 = vpop.f32.mrf.mxu1 }
  0xda   : > { %v601_v21 = vadd.f32 %v600_v17, %v2278_v35  ;;  %v770_v22 = vadd.f32 %v769_v18, %v2280_v36 }
  0xdc   : > { %v915_v23 = vpack.c.bf16 %v601_v21, %v599_v19  ;;  %v916_v24 = vpack.c.bf16 %v770_v22, %v768_v20 }
  0xde   : > { %1131 = vmatmul.bf16.gmra.mxu2 %v915_v23  ;;  %1300 = vmatmul.bf16.gmra.mxu3 %v916_v24 }
  0xe1   : > { %v603_v26 = vpop.f32.mrf.mxu0  ;;  %v772_v27 = vpop.f32.mrf.mxu1 }
  0xe2   : > { %v604_v30 = vadd.f32 %v603_v26, %v2278_v35  ;;  %v773_v31 = vadd.f32 %v772_v27, %v2280_v36 }
  0xe4   : > { %1775 = vmatmul.msk.bf16.gmra.mxu0 %vm465_vm1, %v1905_v25  ;;  %1807 = vmatmul.msk.bf16.gmra.mxu1 %vm465_vm1, %v1905_v25 }
  0xe9   : > { %v605_v28 = vpop.f32.mrf.mxu0  ;;  %v774_v29 = vpop.f32.mrf.mxu1 }
  0xea   : > { %v606_v32 = vadd.f32 %v605_v28, %v2278_v35  ;;  %v775_v33 = vadd.f32 %v774_v29, %v2280_v36  ;;  %v1910_v28 = vld [vmem:[%s2198_s26 + $0x90] sm:$0xff] }
  0xec   : > { %v917_v34 = vpack.c.bf16 %v606_v32, %v604_v30  ;;  %v918_v37 = vpack.c.bf16 %v775_v33, %v773_v31 }
  0xee   : > { %1136 = vmatmul.bf16.gmra.mxu2 %v917_v34  ;;  %1305 = vmatmul.bf16.gmra.mxu3 %v918_v37 }
  0xf1   : > { %v608_v39 = vpop.f32.mrf.mxu0  ;;  %v777_v40 = vpop.f32.mrf.mxu1 }
  0xf2   : > { %v609_v43 = vadd.f32 %v608_v39, %v2278_v35  ;;  %v778_v44 = vadd.f32 %v777_v40, %v2280_v36 }
  0xf4   : > { %1776 = vmatmul.msk.bf16.gmra.mxu0 %vm465_vm1, %v1906_v38  ;;  %1808 = vmatmul.msk.bf16.gmra.mxu1 %vm465_vm1, %v1906_v38 }
  0xf9   : > { %v610_v41 = vpop.f32.mrf.mxu0  ;;  %v779_v42 = vpop.f32.mrf.mxu1 }
  0xfa   : > { %v611_v45 = vadd.f32 %v610_v41, %v2278_v35  ;;  %v780_v46 = vadd.f32 %v779_v42, %v2280_v36 }
  0xfc   : > { %v919_v47 = vpack.c.bf16 %v611_v45, %v609_v43  ;;  %v920_v48 = vpack.c.bf16 %v780_v46, %v778_v44 }
  0xfe   : > { %1141 = vmatmul.bf16.gmra.mxu2 %v919_v47  ;;  %1310 = vmatmul.bf16.gmra.mxu3 %v920_v48 }
 0x101   : > { %v613_v50 = vpop.f32.mrf.mxu0  ;;  %v782_v51 = vpop.f32.mrf.mxu1 }
 0x102   : > { %v614_v54 = vadd.f32 %v613_v50, %v2278_v35  ;;  %v783_v55 = vadd.f32 %v782_v51, %v2280_v36  ;;  %v1911_v50 = vld [vmem:[%s2198_s26 + $0x98] sm:$0xff] }
 0x104   : > { %1777 = vmatmul.msk.bf16.gmra.mxu0 %vm465_vm1, %v1907_v49  ;;  %1809 = vmatmul.msk.bf16.gmra.mxu1 %vm465_vm1, %v1907_v49 }
 0x109   : > { %v615_v52 = vpop.f32.mrf.mxu0  ;;  %v784_v53 = vpop.f32.mrf.mxu1 }
 0x10a   : > { %v616_v56 = vadd.f32 %v615_v52, %v2278_v35  ;;  %v785_v57 = vadd.f32 %v784_v53, %v2280_v36 }
 0x10c   : > { %v921_v58 = vpack.c.bf16 %v616_v56, %v614_v54  ;;  %v922_v59 = vpack.c.bf16 %v785_v57, %v783_v55 }
 0x10e   : > { %1146 = vmatmul.bf16.gmra.mxu2 %v921_v58  ;;  %1315 = vmatmul.bf16.gmra.mxu3 %v922_v59 }
 0x111   : > { %v618_v61 = vpop.f32.mrf.mxu0  ;;  %v787_v62 = vpop.f32.mrf.mxu1 }
 0x112   : > { %v619_v1 = vadd.f32 %v618_v61, %v2278_v35  ;;  %v788_v2 = vadd.f32 %v787_v62, %v2280_v36 }
 0x114   : > { %1778 = vmatmul.msk.bf16.gmra.mxu0 %vm465_vm1, %v1908_v60  ;;  %1810 = vmatmul.msk.bf16.gmra.mxu1 %vm465_vm1, %v1908_v60 }
 0x119   : > { %v620_v63 = vpop.f32.mrf.mxu0  ;;  %v789_v0 = vpop.f32.mrf.mxu1 }
 0x11a   : > { %v621_v3 = vadd.f32 %v620_v63, %v2278_v35  ;;  %v790_v4 = vadd.f32 %v789_v0, %v2280_v36 }
 0x11c   : > { %v923_v5 = vpack.c.bf16 %v621_v3, %v619_v1  ;;  %v924_v6 = vpack.c.bf16 %v790_v4, %v788_v2 }
 0x11e   : > { %1151 = vmatmul.bf16.gmra.mxu2 %v923_v5  ;;  %1320 = vmatmul.bf16.gmra.mxu3 %v924_v6  ;;  %v1912_v6 = vld [vmem:[%s2198_s26 + $0xa0] sm:$0xff] }
 0x121   : > { %v623_v8 = vpop.f32.mrf.mxu0  ;;  %v792_v9 = vpop.f32.mrf.mxu1 }
 0x122   : > { %v1112_v10 = vpop.f32.mrf.mxu2  ;;  %v1281_v11 = vpop.f32.mrf.mxu3  ;;  %v624_v16 = vadd.f32 %v623_v8, %v2278_v35  ;;  %v793_v17 = vadd.f32 %v792_v9, %v2280_v36 }
 0x123   : > { %v1113_v13 = vadd.f32 %v2348_v12, %v1112_v10 }
 0x124   : > { %1779 = vmatmul.msk.bf16.gmra.mxu0 %vm465_vm1, %v1909_v7  ;;  %1811 = vmatmul.msk.bf16.gmra.mxu1 %vm465_vm1, %v1909_v7 }
 0x125   : > { %v1282_v25 = vadd.f32 %v1281_v11, %v1113_v13 }
 0x129   : > { %v625_v14 = vpop.f32.mrf.mxu0  ;;  %v794_v15 = vpop.f32.mrf.mxu1 }
 0x12a   : > { %v626_v18 = vadd.f32 %v625_v14, %v2278_v35  ;;  %v795_v19 = vadd.f32 %v794_v15, %v2280_v36  ;;  %v1114_v20 = vpop.f32.mrf.mxu2  ;;  %v1283_v21 = vpop.f32.mrf.mxu3 }
 0x12b   : > { %v1115_v22 = vadd.f32 %v2348_v12, %v1114_v20 }
 0x12c   : > { %v925_v23 = vpack.c.bf16 %v626_v18, %v624_v16  ;;  %v926_v24 = vpack.c.bf16 %v795_v19, %v793_v17 }
 0x12d   : > { %v1284_v26 = vadd.f32 %v1283_v21, %v1115_v22 }
 0x12e   : > { %1156 = vmatmul.bf16.gmra.mxu2 %v925_v23  ;;  %1325 = vmatmul.bf16.gmra.mxu3 %v926_v24 }
 0x12f   : > { %v1943_v27 = vpack.c.bf16 %v1284_v26, %v1282_v25 }
 0x131   : > { %1944 = vst [vmem:[%s2361_s20] sm:$0xff] %v1943_v27   ;;  %v628_v29 = vpop.f32.mrf.mxu0  ;;  %v797_v30 = vpop.f32.mrf.mxu1  ;;  %v1913_v27 = vld [vmem:[%s2198_s26 + $0xa8] sm:$0xff] }
 0x132   : > { %v1117_v31 = vpop.f32.mrf.mxu2  ;;  %v1286_v32 = vpop.f32.mrf.mxu3  ;;  %v629_v38 = vadd.f32 %v628_v29, %v2278_v35  ;;  %v798_v39 = vadd.f32 %v797_v30, %v2280_v36 }
 0x133   : > { %v1118_v33 = vadd.f32 %v2348_v12, %v1117_v31 }
 0x134   : > { %1780 = vmatmul.msk.bf16.gmra.mxu0 %vm465_vm1, %v1910_v28  ;;  %1812 = vmatmul.msk.bf16.gmra.mxu1 %vm465_vm1, %v1910_v28 }
 0x135   : > { %v1287_v47 = vadd.f32 %v1286_v32, %v1118_v33 }
 0x139   : > { %v630_v34 = vpop.f32.mrf.mxu0  ;;  %v799_v37 = vpop.f32.mrf.mxu1 }
 0x13a   : > { %v631_v40 = vadd.f32 %v630_v34, %v2278_v35  ;;  %v800_v41 = vadd.f32 %v799_v37, %v2280_v36  ;;  %v1119_v42 = vpop.f32.mrf.mxu2  ;;  %v1288_v43 = vpop.f32.mrf.mxu3 }
 0x13b   : > { %v1120_v44 = vadd.f32 %v2348_v12, %v1119_v42 }
 0x13c   : > { %v927_v45 = vpack.c.bf16 %v631_v40, %v629_v38  ;;  %v928_v46 = vpack.c.bf16 %v800_v41, %v798_v39 }
 0x13d   : > { %v1289_v48 = vadd.f32 %v1288_v43, %v1120_v44 }
 0x13e   : > { %1161 = vmatmul.bf16.gmra.mxu2 %v927_v45  ;;  %1330 = vmatmul.bf16.gmra.mxu3 %v928_v46 }
 0x13f   : > { %v1948_v49 = vpack.c.bf16 %v1289_v48, %v1287_v47 }
 0x141   : > { %2100 = vst [vmem:[%s2361_s20 + $0x8] sm:$0xff] %v1948_v49   ;;  %v633_v51 = vpop.f32.mrf.mxu0  ;;  %v802_v52 = vpop.f32.mrf.mxu1  ;;  %v1914_v49 = vld [vmem:[%s2198_s26 + $0xb0] sm:$0xff] }
 0x142   : > { %v1122_v53 = vpop.f32.mrf.mxu2  ;;  %v1291_v54 = vpop.f32.mrf.mxu3  ;;  %v634_v58 = vadd.f32 %v633_v51, %v2278_v35  ;;  %v803_v59 = vadd.f32 %v802_v52, %v2280_v36 }
 0x143   : > { %v1123_v55 = vadd.f32 %v2348_v12, %v1122_v53 }
 0x144   : > { %1781 = vmatmul.msk.bf16.gmra.mxu0 %vm465_vm1, %v1911_v50  ;;  %1813 = vmatmul.msk.bf16.gmra.mxu1 %vm465_vm1, %v1911_v50 }
 0x145   : > { %v1292_v3 = vadd.f32 %v1291_v54, %v1123_v55 }
 0x149   : > { %v635_v56 = vpop.f32.mrf.mxu0  ;;  %v804_v57 = vpop.f32.mrf.mxu1 }
 0x14a   : > { %v636_v60 = vadd.f32 %v635_v56, %v2278_v35  ;;  %v805_v61 = vadd.f32 %v804_v57, %v2280_v36  ;;  %v1124_v62 = vpop.f32.mrf.mxu2  ;;  %v1293_v63 = vpop.f32.mrf.mxu3 }
 0x14b   : > { %v1125_v0 = vadd.f32 %v2348_v12, %v1124_v62 }
 0x14c   : > { %v929_v1 = vpack.c.bf16 %v636_v60, %v634_v58  ;;  %v930_v2 = vpack.c.bf16 %v805_v61, %v803_v59 }
 0x14d   : > { %v1294_v4 = vadd.f32 %v1293_v63, %v1125_v0 }
 0x14e   : > { %1166 = vmatmul.bf16.gmra.mxu2 %v929_v1  ;;  %1335 = vmatmul.bf16.gmra.mxu3 %v930_v2 }
 0x14f   : > { %v1953_v5 = vpack.c.bf16 %v1294_v4, %v1292_v3 }
 0x151   : > { %2101 = vst [vmem:[%s2361_s20 + $0x10] sm:$0xff] %v1953_v5   ;;  %v638_v7 = vpop.f32.mrf.mxu0  ;;  %v807_v8 = vpop.f32.mrf.mxu1  ;;  %v1915_v5 = vld [vmem:[%s2198_s26 + $0xb8] sm:$0xff] }
 0x152   : > { %v1127_v9 = vpop.f32.mrf.mxu2  ;;  %v1296_v10 = vpop.f32.mrf.mxu3  ;;  %v639_v15 = vadd.f32 %v638_v7, %v2278_v35  ;;  %v808_v16 = vadd.f32 %v807_v8, %v2280_v36 }
 0x153   : > { %v1128_v11 = vadd.f32 %v2348_v12, %v1127_v9 }
 0x154   : > { %1782 = vmatmul.msk.bf16.gmra.mxu0 %vm465_vm1, %v1912_v6  ;;  %1814 = vmatmul.msk.bf16.gmra.mxu1 %vm465_vm1, %v1912_v6 }
 0x155   : > { %v1297_v24 = vadd.f32 %v1296_v10, %v1128_v11 }
 0x159   : > { %v640_v13 = vpop.f32.mrf.mxu0  ;;  %v809_v14 = vpop.f32.mrf.mxu1 }
 0x15a   : > { %v641_v17 = vadd.f32 %v640_v13, %v2278_v35  ;;  %v810_v18 = vadd.f32 %v809_v14, %v2280_v36  ;;  %v1129_v19 = vpop.f32.mrf.mxu2  ;;  %v1298_v20 = vpop.f32.mrf.mxu3 }
 0x15b   : > { %v1130_v21 = vadd.f32 %v2348_v12, %v1129_v19 }
 0x15c   : > { %v931_v22 = vpack.c.bf16 %v641_v17, %v639_v15  ;;  %v932_v23 = vpack.c.bf16 %v810_v18, %v808_v16 }
 0x15d   : > { %v1299_v25 = vadd.f32 %v1298_v20, %v1130_v21 }
 0x15e   : > { %1171 = vmatmul.bf16.gmra.mxu2 %v931_v22  ;;  %1340 = vmatmul.bf16.gmra.mxu3 %v932_v23 }
 0x15f   : > { %v1958_v26 = vpack.c.bf16 %v1299_v25, %v1297_v24 }
 0x161   : > { %2102 = vst [vmem:[%s2361_s20 + $0x18] sm:$0xff] %v1958_v26   ;;  %v643_v28 = vpop.f32.mrf.mxu0  ;;  %v812_v29 = vpop.f32.mrf.mxu1  ;;  %v1916_v26 = vld [vmem:[%s2198_s26 + $0xc0] sm:$0xff] }
 0x162   : > { %v1132_v30 = vpop.f32.mrf.mxu2  ;;  %v1301_v31 = vpop.f32.mrf.mxu3  ;;  %v644_v37 = vadd.f32 %v643_v28, %v2278_v35  ;;  %v813_v38 = vadd.f32 %v812_v29, %v2280_v36 }
 0x163   : > { %v1133_v32 = vadd.f32 %v2348_v12, %v1132_v30 }
 0x164   : > { %1783 = vmatmul.msk.bf16.gmra.mxu0 %vm465_vm1, %v1913_v27  ;;  %1815 = vmatmul.msk.bf16.gmra.mxu1 %vm465_vm1, %v1913_v27 }
 0x165   : > { %v1302_v46 = vadd.f32 %v1301_v31, %v1133_v32 }
 0x169   : > { %v645_v33 = vpop.f32.mrf.mxu0  ;;  %v814_v34 = vpop.f32.mrf.mxu1 }
 0x16a   : > { %v646_v39 = vadd.f32 %v645_v33, %v2278_v35  ;;  %v815_v40 = vadd.f32 %v814_v34, %v2280_v36  ;;  %v1134_v41 = vpop.f32.mrf.mxu2  ;;  %v1303_v42 = vpop.f32.mrf.mxu3 }
 0x16b   : > { %v1135_v43 = vadd.f32 %v2348_v12, %v1134_v41 }
 0x16c   : > { %v933_v44 = vpack.c.bf16 %v646_v39, %v644_v37  ;;  %v934_v45 = vpack.c.bf16 %v815_v40, %v813_v38 }
 0x16d   : > { %v1304_v47 = vadd.f32 %v1303_v42, %v1135_v43 }
 0x16e   : > { %1176 = vmatmul.bf16.gmra.mxu2 %v933_v44  ;;  %1345 = vmatmul.bf16.gmra.mxu3 %v934_v45 }
 0x16f   : > { %v1963_v48 = vpack.c.bf16 %v1304_v47, %v1302_v46 }
 0x171   : > { %2103 = vst [vmem:[%s2361_s20 + $0x20] sm:$0xff] %v1963_v48   ;;  %v648_v50 = vpop.f32.mrf.mxu0  ;;  %v817_v51 = vpop.f32.mrf.mxu1  ;;  %v1917_v48 = vld [vmem:[%s2198_s26 + $0xc8] sm:$0xff] }
 0x172   : > { %v1137_v52 = vpop.f32.mrf.mxu2  ;;  %v1306_v53 = vpop.f32.mrf.mxu3  ;;  %v649_v57 = vadd.f32 %v648_v50, %v2278_v35  ;;  %v818_v58 = vadd.f32 %v817_v51, %v2280_v36 }
 0x173   : > { %v1138_v54 = vadd.f32 %v2348_v12, %v1137_v52 }
 0x174   : > { %1784 = vmatmul.msk.bf16.gmra.mxu0 %vm465_vm1, %v1914_v49  ;;  %1816 = vmatmul.msk.bf16.gmra.mxu1 %vm465_vm1, %v1914_v49 }
 0x175   : > { %v1307_v2 = vadd.f32 %v1306_v53, %v1138_v54 }
 0x179   : > { %v650_v55 = vpop.f32.mrf.mxu0  ;;  %v819_v56 = vpop.f32.mrf.mxu1 }
 0x17a   : > { %v651_v59 = vadd.f32 %v650_v55, %v2278_v35  ;;  %v820_v60 = vadd.f32 %v819_v56, %v2280_v36  ;;  %v1139_v61 = vpop.f32.mrf.mxu2  ;;  %v1308_v62 = vpop.f32.mrf.mxu3 }
 0x17b   : > { %v1140_v63 = vadd.f32 %v2348_v12, %v1139_v61 }
 0x17c   : > { %v935_v0 = vpack.c.bf16 %v651_v59, %v649_v57  ;;  %v936_v1 = vpack.c.bf16 %v820_v60, %v818_v58 }
 0x17d   : > { %v1309_v3 = vadd.f32 %v1308_v62, %v1140_v63 }
 0x17e   : > { %1181 = vmatmul.bf16.gmra.mxu2 %v935_v0  ;;  %1350 = vmatmul.bf16.gmra.mxu3 %v936_v1 }
 0x17f   : > { %v1968_v4 = vpack.c.bf16 %v1309_v3, %v1307_v2 }
 0x181   : > { %2104 = vst [vmem:[%s2361_s20 + $0x28] sm:$0xff] %v1968_v4   ;;  %v653_v6 = vpop.f32.mrf.mxu0  ;;  %v822_v7 = vpop.f32.mrf.mxu1  ;;  %v1918_v4 = vld [vmem:[%s2198_s26 + $0xd0] sm:$0xff] }
 0x182   : > { %v1142_v8 = vpop.f32.mrf.mxu2  ;;  %v1311_v9 = vpop.f32.mrf.mxu3  ;;  %v654_v14 = vadd.f32 %v653_v6, %v2278_v35  ;;  %v823_v15 = vadd.f32 %v822_v7, %v2280_v36 }
 0x183   : > { %v1143_v10 = vadd.f32 %v2348_v12, %v1142_v8 }
 0x184   : > { %1785 = vmatmul.msk.bf16.gmra.mxu0 %vm465_vm1, %v1915_v5  ;;  %1817 = vmatmul.msk.bf16.gmra.mxu1 %vm465_vm1, %v1915_v5 }
 0x185   : > { %v1312_v23 = vadd.f32 %v1311_v9, %v1143_v10 }
 0x189   : > { %v655_v11 = vpop.f32.mrf.mxu0  ;;  %v824_v13 = vpop.f32.mrf.mxu1 }
 0x18a   : > { %v656_v16 = vadd.f32 %v655_v11, %v2278_v35  ;;  %v825_v17 = vadd.f32 %v824_v13, %v2280_v36  ;;  %v1144_v18 = vpop.f32.mrf.mxu2  ;;  %v1313_v19 = vpop.f32.mrf.mxu3 }
 0x18b   : > { %v1145_v20 = vadd.f32 %v2348_v12, %v1144_v18 }
 0x18c   : > { %v937_v21 = vpack.c.bf16 %v656_v16, %v654_v14  ;;  %v938_v22 = vpack.c.bf16 %v825_v17, %v823_v15 }
 0x18d   : > { %v1314_v24 = vadd.f32 %v1313_v19, %v1145_v20 }
 0x18e   : > { %1186 = vmatmul.bf16.gmra.mxu2 %v937_v21  ;;  %1355 = vmatmul.bf16.gmra.mxu3 %v938_v22 }
 0x18f   : > { %v1973_v25 = vpack.c.bf16 %v1314_v24, %v1312_v23 }
 0x191   : > { %2105 = vst [vmem:[%s2361_s20 + $0x30] sm:$0xff] %v1973_v25   ;;  %v658_v27 = vpop.f32.mrf.mxu0  ;;  %v827_v28 = vpop.f32.mrf.mxu1  ;;  %v1919_v25 = vld [vmem:[%s2198_s26 + $0xd8] sm:$0xff] }
 0x192   : > { %v1147_v29 = vpop.f32.mrf.mxu2  ;;  %v1316_v30 = vpop.f32.mrf.mxu3  ;;  %v659_v34 = vadd.f32 %v658_v27, %v2278_v35  ;;  %v828_v37 = vadd.f32 %v827_v28, %v2280_v36 }
 0x193   : > { %v1148_v31 = vadd.f32 %v2348_v12, %v1147_v29 }
 0x194   : > { %1786 = vmatmul.msk.bf16.gmra.mxu0 %vm465_vm1, %v1916_v26  ;;  %1818 = vmatmul.msk.bf16.gmra.mxu1 %vm465_vm1, %v1916_v26 }
 0x195   : > { %v1317_v45 = vadd.f32 %v1316_v30, %v1148_v31 }
 0x199   : > { %v660_v32 = vpop.f32.mrf.mxu0  ;;  %v829_v33 = vpop.f32.mrf.mxu1 }
 0x19a   : > { %v661_v38 = vadd.f32 %v660_v32, %v2278_v35  ;;  %v830_v39 = vadd.f32 %v829_v33, %v2280_v36  ;;  %v1149_v40 = vpop.f32.mrf.mxu2  ;;  %v1318_v41 = vpop.f32.mrf.mxu3 }
 0x19b   : > { %v1150_v42 = vadd.f32 %v2348_v12, %v1149_v40 }
 0x19c   : > { %v939_v43 = vpack.c.bf16 %v661_v38, %v659_v34  ;;  %v940_v44 = vpack.c.bf16 %v830_v39, %v828_v37 }
 0x19d   : > { %v1319_v46 = vadd.f32 %v1318_v41, %v1150_v42 }
 0x19e   : > { %1191 = vmatmul.bf16.gmra.mxu2 %v939_v43  ;;  %1360 = vmatmul.bf16.gmra.mxu3 %v940_v44 }
 0x19f   : > { %v1978_v47 = vpack.c.bf16 %v1319_v46, %v1317_v45 }
 0x1a1   : > { %2106 = vst [vmem:[%s2361_s20 + $0x38] sm:$0xff] %v1978_v47   ;;  %v663_v49 = vpop.f32.mrf.mxu0  ;;  %v832_v50 = vpop.f32.mrf.mxu1  ;;  %v1920_v47 = vld [vmem:[%s2198_s26 + $0xe0] sm:$0xff] }
 0x1a2   : > { %v1152_v51 = vpop.f32.mrf.mxu2  ;;  %v1321_v52 = vpop.f32.mrf.mxu3  ;;  %v664_v56 = vadd.f32 %v663_v49, %v2278_v35  ;;  %v833_v57 = vadd.f32 %v832_v50, %v2280_v36 }
 0x1a3   : > { %v1153_v53 = vadd.f32 %v2348_v12, %v1152_v51 }
 0x1a4   : > { %1787 = vmatmul.msk.bf16.gmra.mxu0 %vm465_vm1, %v1917_v48  ;;  %1819 = vmatmul.msk.bf16.gmra.mxu1 %vm465_vm1, %v1917_v48 }
 0x1a5   : > { %v1322_v1 = vadd.f32 %v1321_v52, %v1153_v53 }
 0x1a9   : > { %v665_v54 = vpop.f32.mrf.mxu0  ;;  %v834_v55 = vpop.f32.mrf.mxu1 }
 0x1aa   : > { %v666_v58 = vadd.f32 %v665_v54, %v2278_v35  ;;  %v835_v59 = vadd.f32 %v834_v55, %v2280_v36  ;;  %v1154_v60 = vpop.f32.mrf.mxu2  ;;  %v1323_v61 = vpop.f32.mrf.mxu3 }
 0x1ab   : > { %v1155_v62 = vadd.f32 %v2348_v12, %v1154_v60 }
 0x1ac   : > { %v941_v63 = vpack.c.bf16 %v666_v58, %v664_v56  ;;  %v942_v0 = vpack.c.bf16 %v835_v59, %v833_v57 }
 0x1ad   : > { %v1324_v2 = vadd.f32 %v1323_v61, %v1155_v62 }
 0x1ae   : > { %1196 = vmatmul.bf16.gmra.mxu2 %v941_v63  ;;  %1365 = vmatmul.bf16.gmra.mxu3 %v942_v0 }
 0x1af   : > { %v1983_v3 = vpack.c.bf16 %v1324_v2, %v1322_v1 }
 0x1b1   : > { %2107 = vst [vmem:[%s2361_s20 + $0x40] sm:$0xff] %v1983_v3   ;;  %v668_v5 = vpop.f32.mrf.mxu0  ;;  %v837_v6 = vpop.f32.mrf.mxu1  ;;  %v1921_v3 = vld [vmem:[%s2198_s26 + $0xe8] sm:$0xff] }
 0x1b2   : > { %v1157_v7 = vpop.f32.mrf.mxu2  ;;  %v1326_v8 = vpop.f32.mrf.mxu3  ;;  %v669_v13 = vadd.f32 %v668_v5, %v2278_v35  ;;  %v838_v14 = vadd.f32 %v837_v6, %v2280_v36 }
 0x1b3   : > { %v1158_v9 = vadd.f32 %v2348_v12, %v1157_v7 }
 0x1b4   : > { %1788 = vmatmul.msk.bf16.gmra.mxu0 %vm465_vm1, %v1918_v4  ;;  %1820 = vmatmul.msk.bf16.gmra.mxu1 %vm465_vm1, %v1918_v4 }
 0x1b5   : > { %v1327_v22 = vadd.f32 %v1326_v8, %v1158_v9 }
 0x1b9   : > { %v670_v10 = vpop.f32.mrf.mxu0  ;;  %v839_v11 = vpop.f32.mrf.mxu1 }
 0x1ba   : > { %v671_v15 = vadd.f32 %v670_v10, %v2278_v35  ;;  %v840_v16 = vadd.f32 %v839_v11, %v2280_v36  ;;  %v1159_v17 = vpop.f32.mrf.mxu2  ;;  %v1328_v18 = vpop.f32.mrf.mxu3 }
 0x1bb   : > { %v1160_v19 = vadd.f32 %v2348_v12, %v1159_v17 }
 0x1bc   : > { %v943_v20 = vpack.c.bf16 %v671_v15, %v669_v13  ;;  %v944_v21 = vpack.c.bf16 %v840_v16, %v838_v14 }
 0x1bd   : > { %v1329_v23 = vadd.f32 %v1328_v18, %v1160_v19 }
 0x1be   : > { %1201 = vmatmul.bf16.gmra.mxu2 %v943_v20  ;;  %1370 = vmatmul.bf16.gmra.mxu3 %v944_v21 }
 0x1bf   : > { %v1988_v24 = vpack.c.bf16 %v1329_v23, %v1327_v22 }
 0x1c1   : > { %2108 = vst [vmem:[%s2361_s20 + $0x48] sm:$0xff] %v1988_v24   ;;  %v673_v26 = vpop.f32.mrf.mxu0  ;;  %v842_v27 = vpop.f32.mrf.mxu1  ;;  %v1922_v24 = vld [vmem:[%s2198_s26 + $0xf0] sm:$0xff] }
 0x1c2   : > { %v1162_v28 = vpop.f32.mrf.mxu2  ;;  %v1331_v29 = vpop.f32.mrf.mxu3  ;;  %v674_v33 = vadd.f32 %v673_v26, %v2278_v35  ;;  %v843_v34 = vadd.f32 %v842_v27, %v2280_v36 }
 0x1c3   : > { %v1163_v30 = vadd.f32 %v2348_v12, %v1162_v28 }
 0x1c4   : > { %1789 = vmatmul.msk.bf16.gmra.mxu0 %vm465_vm1, %v1919_v25  ;;  %1821 = vmatmul.msk.bf16.gmra.mxu1 %vm465_vm1, %v1919_v25 }
 0x1c5   : > { %v1332_v44 = vadd.f32 %v1331_v29, %v1163_v30 }
 0x1c9   : > { %v675_v31 = vpop.f32.mrf.mxu0  ;;  %v844_v32 = vpop.f32.mrf.mxu1 }
 0x1ca   : > { %v676_v37 = vadd.f32 %v675_v31, %v2278_v35  ;;  %v845_v38 = vadd.f32 %v844_v32, %v2280_v36  ;;  %v1164_v39 = vpop.f32.mrf.mxu2  ;;  %v1333_v40 = vpop.f32.mrf.mxu3 }
 0x1cb   : > { %v1165_v41 = vadd.f32 %v2348_v12, %v1164_v39 }
 0x1cc   : > { %v945_v42 = vpack.c.bf16 %v676_v37, %v674_v33  ;;  %v946_v43 = vpack.c.bf16 %v845_v38, %v843_v34 }
 0x1cd   : > { %v1334_v45 = vadd.f32 %v1333_v40, %v1165_v41 }
 0x1ce   : > { %1206 = vmatmul.bf16.gmra.mxu2 %v945_v42  ;;  %1375 = vmatmul.bf16.gmra.mxu3 %v946_v43 }
 0x1cf   : > { %v1993_v46 = vpack.c.bf16 %v1334_v45, %v1332_v44 }
 0x1d1   : > { %2109 = vst [vmem:[%s2361_s20 + $0x50] sm:$0xff] %v1993_v46   ;;  %v678_v48 = vpop.f32.mrf.mxu0  ;;  %v847_v49 = vpop.f32.mrf.mxu1  ;;  %v1923_v46 = vld [vmem:[%s2198_s26 + $0xf8] sm:$0xff] }
 0x1d2   : > { %v1167_v50 = vpop.f32.mrf.mxu2  ;;  %v1336_v51 = vpop.f32.mrf.mxu3  ;;  %v679_v55 = vadd.f32 %v678_v48, %v2278_v35  ;;  %v848_v56 = vadd.f32 %v847_v49, %v2280_v36 }
 0x1d3   : > { %v1168_v52 = vadd.f32 %v2348_v12, %v1167_v50 }
 0x1d4   : > { %1790 = vmatmul.msk.bf16.gmra.mxu0 %vm465_vm1, %v1920_v47  ;;  %1822 = vmatmul.msk.bf16.gmra.mxu1 %vm465_vm1, %v1920_v47 }
 0x1d5   : > { %v1337_v0 = vadd.f32 %v1336_v51, %v1168_v52 }
 0x1d9   : > { %v680_v53 = vpop.f32.mrf.mxu0  ;;  %v849_v54 = vpop.f32.mrf.mxu1 }
 0x1da   : > { %v681_v57 = vadd.f32 %v680_v53, %v2278_v35  ;;  %v850_v58 = vadd.f32 %v849_v54, %v2280_v36  ;;  %v1169_v59 = vpop.f32.mrf.mxu2  ;;  %v1338_v60 = vpop.f32.mrf.mxu3 }
 0x1db   : > { %v1170_v61 = vadd.f32 %v2348_v12, %v1169_v59 }
 0x1dc   : > { %v947_v62 = vpack.c.bf16 %v681_v57, %v679_v55  ;;  %v948_v63 = vpack.c.bf16 %v850_v58, %v848_v56 }
 0x1dd   : > { %v1339_v1 = vadd.f32 %v1338_v60, %v1170_v61 }
 0x1de   : > { %1211 = vmatmul.bf16.gmra.mxu2 %v947_v62  ;;  %1380 = vmatmul.bf16.gmra.mxu3 %v948_v63 }
 0x1df   : > { %v1998_v2 = vpack.c.bf16 %v1339_v1, %v1337_v0 }
 0x1e1   : > { %2110 = vst [vmem:[%s2361_s20 + $0x58] sm:$0xff] %v1998_v2   ;;  %v683_v4 = vpop.f32.mrf.mxu0  ;;  %v852_v5 = vpop.f32.mrf.mxu1 }
 0x1e2   : > { %v1172_v6 = vpop.f32.mrf.mxu2  ;;  %v1341_v7 = vpop.f32.mrf.mxu3  ;;  %v684_v11 = vadd.f32 %v683_v4, %v2278_v35  ;;  %v853_v13 = vadd.f32 %v852_v5, %v2280_v36 }
 0x1e3   : > { %v1173_v8 = vadd.f32 %v2348_v12, %v1172_v6 }
 0x1e4   : > { %1791 = vmatmul.msk.bf16.gmra.mxu0 %vm465_vm1, %v1921_v3  ;;  %1823 = vmatmul.msk.bf16.gmra.mxu1 %vm465_vm1, %v1921_v3 }
 0x1e5   : > { %v1342_v21 = vadd.f32 %v1341_v7, %v1173_v8 }
 0x1e9   : > { %v685_v9 = vpop.f32.mrf.mxu0  ;;  %v854_v10 = vpop.f32.mrf.mxu1 }
 0x1ea   : > { %v686_v14 = vadd.f32 %v685_v9, %v2278_v35  ;;  %v855_v15 = vadd.f32 %v854_v10, %v2280_v36  ;;  %v1174_v16 = vpop.f32.mrf.mxu2  ;;  %v1343_v17 = vpop.f32.mrf.mxu3 }
 0x1eb   : > { %v1175_v18 = vadd.f32 %v2348_v12, %v1174_v16 }
 0x1ec   : > { %v949_v19 = vpack.c.bf16 %v686_v14, %v684_v11  ;;  %v950_v20 = vpack.c.bf16 %v855_v15, %v853_v13 }
 0x1ed   : > { %v1344_v22 = vadd.f32 %v1343_v17, %v1175_v18 }
 0x1ee   : > { %1216 = vmatmul.bf16.gmra.mxu2 %v949_v19  ;;  %1385 = vmatmul.bf16.gmra.mxu3 %v950_v20 }
 0x1ef   : > { %v2003_v23 = vpack.c.bf16 %v1344_v22, %v1342_v21 }
 0x1f1   : > { %2111 = vst [vmem:[%s2361_s20 + $0x60] sm:$0xff] %v2003_v23   ;;  %v688_v25 = vpop.f32.mrf.mxu0  ;;  %v857_v26 = vpop.f32.mrf.mxu1 }
 0x1f2   : > { %v1177_v27 = vpop.f32.mrf.mxu2  ;;  %v1346_v28 = vpop.f32.mrf.mxu3  ;;  %v689_v32 = vadd.f32 %v688_v25, %v2278_v35  ;;  %v858_v33 = vadd.f32 %v857_v26, %v2280_v36 }
 0x1f3   : > { %v1178_v29 = vadd.f32 %v2348_v12, %v1177_v27 }
 0x1f4   : > { %1792 = vmatmul.msk.bf16.gmra.mxu0 %vm465_vm1, %v1922_v24  ;;  %1824 = vmatmul.msk.bf16.gmra.mxu1 %vm465_vm1, %v1922_v24 }
 0x1f5   : > { %v1347_v43 = vadd.f32 %v1346_v28, %v1178_v29 }
 0x1f9   : > { %v690_v30 = vpop.f32.mrf.mxu0  ;;  %v859_v31 = vpop.f32.mrf.mxu1 }
 0x1fa   : > { %v691_v34 = vadd.f32 %v690_v30, %v2278_v35  ;;  %v860_v37 = vadd.f32 %v859_v31, %v2280_v36  ;;  %v1179_v38 = vpop.f32.mrf.mxu2  ;;  %v1348_v39 = vpop.f32.mrf.mxu3 }
 0x1fb   : > { %v1180_v40 = vadd.f32 %v2348_v12, %v1179_v38 }
 0x1fc   : > { %v951_v41 = vpack.c.bf16 %v691_v34, %v689_v32  ;;  %v952_v42 = vpack.c.bf16 %v860_v37, %v858_v33 }
 0x1fd   : > { %v1349_v44 = vadd.f32 %v1348_v39, %v1180_v40 }
 0x1fe   : > { %1221 = vmatmul.bf16.gmra.mxu2 %v951_v41  ;;  %1390 = vmatmul.bf16.gmra.mxu3 %v952_v42 }
 0x1ff   : > { %v2008_v45 = vpack.c.bf16 %v1349_v44, %v1347_v43 }
 0x201   : > { %2112 = vst [vmem:[%s2361_s20 + $0x68] sm:$0xff] %v2008_v45   ;;  %v693_v47 = vpop.f32.mrf.mxu0  ;;  %v862_v48 = vpop.f32.mrf.mxu1 }
 0x202   : > { %v1182_v49 = vpop.f32.mrf.mxu2  ;;  %v1351_v50 = vpop.f32.mrf.mxu3  ;;  %v694_v54 = vadd.f32 %v693_v47, %v2278_v35  ;;  %v863_v55 = vadd.f32 %v862_v48, %v2280_v36 }
 0x203   : > { %v1183_v51 = vadd.f32 %v2348_v12, %v1182_v49 }
 0x204   : > { %1793 = vmatmul.msk.bf16.gmra.mxu0 %vm465_vm1, %v1923_v46  ;;  %1825 = vmatmul.msk.bf16.gmra.mxu1 %vm465_vm1, %v1923_v46 }
 0x205   : > { %v1352_v63 = vadd.f32 %v1351_v50, %v1183_v51 }
 0x209   : > { %v695_v52 = vpop.f32.mrf.mxu0  ;;  %v864_v53 = vpop.f32.mrf.mxu1 }
 0x20a   : > { %v696_v56 = vadd.f32 %v695_v52, %v2278_v35  ;;  %v865_v57 = vadd.f32 %v864_v53, %v2280_v36  ;;  %v1184_v58 = vpop.f32.mrf.mxu2  ;;  %v1353_v59 = vpop.f32.mrf.mxu3 }
 0x20b   : > { %v1185_v60 = vadd.f32 %v2348_v12, %v1184_v58 }
 0x20c   : > { %v953_v61 = vpack.c.bf16 %v696_v56, %v694_v54  ;;  %v954_v62 = vpack.c.bf16 %v865_v57, %v863_v55 }
 0x20d   : > { %v1354_v0 = vadd.f32 %v1353_v59, %v1185_v60 }
 0x20e   : > { %1226 = vmatmul.bf16.gmra.mxu2 %v953_v61  ;;  %1395 = vmatmul.bf16.gmra.mxu3 %v954_v62 }
 0x20f   : > { %v2013_v1 = vpack.c.bf16 %v1354_v0, %v1352_v63 }
 0x211   : > { %2113 = vst [vmem:[%s2361_s20 + $0x70] sm:$0xff] %v2013_v1   ;;  %v698_v2 = vpop.f32.mrf.mxu0  ;;  %v867_v3 = vpop.f32.mrf.mxu1 }
 0x212   : > { %v1187_v4 = vpop.f32.mrf.mxu2  ;;  %v1356_v5 = vpop.f32.mrf.mxu3  ;;  %v699_v9 = vadd.f32 %v698_v2, %v2278_v35  ;;  %v868_v10 = vadd.f32 %v867_v3, %v2280_v36 }
 0x213   : > { %v1188_v6 = vadd.f32 %v2348_v12, %v1187_v4 }
 0x215   : > { %v1357_v19 = vadd.f32 %v1356_v5, %v1188_v6 }
 0x219   : > { %v700_v7 = vpop.f32.mrf.mxu0  ;;  %v869_v8 = vpop.f32.mrf.mxu1 }
 0x21a   : > { %v701_v11 = vadd.f32 %v700_v7, %v2278_v35  ;;  %v870_v13 = vadd.f32 %v869_v8, %v2280_v36  ;;  %v1189_v14 = vpop.f32.mrf.mxu2  ;;  %v1358_v15 = vpop.f32.mrf.mxu3 }
 0x21b   : > { %v1190_v16 = vadd.f32 %v2348_v12, %v1189_v14 }
 0x21c   : > { %v955_v17 = vpack.c.bf16 %v701_v11, %v699_v9  ;;  %v956_v18 = vpack.c.bf16 %v870_v13, %v868_v10 }
 0x21d   : > { %v1359_v20 = vadd.f32 %v1358_v15, %v1190_v16 }
 0x21e   : > { %1231 = vmatmul.bf16.gmra.mxu2 %v955_v17  ;;  %1400 = vmatmul.bf16.gmra.mxu3 %v956_v18 }
 0x21f   : > { %v2018_v21 = vpack.c.bf16 %v1359_v20, %v1357_v19 }
 0x221   : > { %2114 = vst [vmem:[%s2361_s20 + $0x78] sm:$0xff] %v2018_v21   ;;  %v703_v22 = vpop.f32.mrf.mxu0  ;;  %v872_v23 = vpop.f32.mrf.mxu1 }
 0x222   : > { %v1192_v24 = vpop.f32.mrf.mxu2  ;;  %v1361_v25 = vpop.f32.mrf.mxu3  ;;  %v704_v29 = vadd.f32 %v703_v22, %v2278_v35  ;;  %v873_v30 = vadd.f32 %v872_v23, %v2280_v36 }
 0x223   : > { %v1193_v26 = vadd.f32 %v2348_v12, %v1192_v24 }
 0x225   : > { %v1362_v40 = vadd.f32 %v1361_v25, %v1193_v26 }
 0x229   : > { %v705_v27 = vpop.f32.mrf.mxu0  ;;  %v874_v28 = vpop.f32.mrf.mxu1 }
 0x22a   : > { %v706_v31 = vadd.f32 %v705_v27, %v2278_v35  ;;  %v875_v32 = vadd.f32 %v874_v28, %v2280_v36  ;;  %v1194_v33 = vpop.f32.mrf.mxu2  ;;  %v1363_v34 = vpop.f32.mrf.mxu3 }
 0x22b   : > { %v1195_v37 = vadd.f32 %v2348_v12, %v1194_v33 }
 0x22c   : > { %v957_v38 = vpack.c.bf16 %v706_v31, %v704_v29  ;;  %v958_v39 = vpack.c.bf16 %v875_v32, %v873_v30 }
 0x22d   : > { %v1364_v41 = vadd.f32 %v1363_v34, %v1195_v37 }
 0x22e   : > { %1236 = vmatmul.bf16.gmra.mxu2 %v957_v38  ;;  %1405 = vmatmul.bf16.gmra.mxu3 %v958_v39 }
 0x22f   : > { %v2023_v42 = vpack.c.bf16 %v1364_v41, %v1362_v40 }
 0x231   : > { %2115 = vst [vmem:[%s2361_s20 + $0x80] sm:$0xff] %v2023_v42   ;;  %v708_v43 = vpop.f32.mrf.mxu0  ;;  %v877_v44 = vpop.f32.mrf.mxu1 }
 0x232   : > { %v1197_v45 = vpop.f32.mrf.mxu2  ;;  %v1366_v46 = vpop.f32.mrf.mxu3  ;;  %v709_v50 = vadd.f32 %v708_v43, %v2278_v35  ;;  %v878_v51 = vadd.f32 %v877_v44, %v2280_v36 }
 0x233   : > { %v1198_v47 = vadd.f32 %v2348_v12, %v1197_v45 }
 0x235   : > { %v1367_v59 = vadd.f32 %v1366_v46, %v1198_v47 }
 0x239   : > { %v710_v48 = vpop.f32.mrf.mxu0  ;;  %v879_v49 = vpop.f32.mrf.mxu1 }
 0x23a   : > { %v711_v52 = vadd.f32 %v710_v48, %v2278_v35  ;;  %v880_v53 = vadd.f32 %v879_v49, %v2280_v36  ;;  %v1199_v54 = vpop.f32.mrf.mxu2  ;;  %v1368_v55 = vpop.f32.mrf.mxu3 }
 0x23b   : > { %v1200_v56 = vadd.f32 %v2348_v12, %v1199_v54 }
 0x23c   : > { %v959_v57 = vpack.c.bf16 %v711_v52, %v709_v50  ;;  %v960_v58 = vpack.c.bf16 %v880_v53, %v878_v51 }
 0x23d   : > { %v1369_v60 = vadd.f32 %v1368_v55, %v1200_v56 }
 0x23e   : > { %1241 = vmatmul.bf16.gmra.mxu2 %v959_v57  ;;  %1410 = vmatmul.bf16.gmra.mxu3 %v960_v58 }
 0x23f   : > { %v2028_v61 = vpack.c.bf16 %v1369_v60, %v1367_v59 }
 0x241   : > { %2116 = vst [vmem:[%s2361_s20 + $0x88] sm:$0xff] %v2028_v61   ;;  %v713_v62 = vpop.f32.mrf.mxu0  ;;  %v882_v63 = vpop.f32.mrf.mxu1 }
 0x242   : > { %v1202_v0 = vpop.f32.mrf.mxu2  ;;  %v1371_v1 = vpop.f32.mrf.mxu3  ;;  %v714_v5 = vadd.f32 %v713_v62, %v2278_v35  ;;  %v883_v6 = vadd.f32 %v882_v63, %v2280_v36 }
 0x243   : > { %v1203_v2 = vadd.f32 %v2348_v12, %v1202_v0 }
 0x245   : > { %v1372_v15 = vadd.f32 %v1371_v1, %v1203_v2 }
 0x249   : > { %v715_v3 = vpop.f32.mrf.mxu0  ;;  %v884_v4 = vpop.f32.mrf.mxu1 }
 0x24a   : > { %v716_v7 = vadd.f32 %v715_v3, %v2278_v35  ;;  %v885_v8 = vadd.f32 %v884_v4, %v2280_v36  ;;  %v1204_v9 = vpop.f32.mrf.mxu2  ;;  %v1373_v10 = vpop.f32.mrf.mxu3 }
 0x24b   : > { %v1205_v11 = vadd.f32 %v2348_v12, %v1204_v9 }
 0x24c   : > { %v961_v13 = vpack.c.bf16 %v716_v7, %v714_v5  ;;  %v962_v14 = vpack.c.bf16 %v885_v8, %v883_v6  ;;  %v2554_v7 = vld [vmem:[%s2599_s4] ss:$0 sm:$0xff] }
 0x24d   : > { %v1374_v16 = vadd.f32 %v1373_v10, %v1205_v11 }
 0x24e   : > { %1246 = vmatmul.bf16.gmra.mxu2 %v961_v13  ;;  %1415 = vmatmul.bf16.gmra.mxu3 %v962_v14 }
 0x24f   : > { %v2033_v17 = vpack.c.bf16 %v1374_v16, %v1372_v15 }
 0x251   : > { %2117 = vst [vmem:[%s2361_s20 + $0x90] sm:$0xff] %v2033_v17   ;;  %v718_v18 = vpop.f32.mrf.mxu0  ;;  %v887_v19 = vpop.f32.mrf.mxu1 }
 0x252   : > { %v1207_v20 = vpop.f32.mrf.mxu2  ;;  %v1376_v21 = vpop.f32.mrf.mxu3  ;;  %v719_v25 = vadd.f32 %v718_v18, %v2278_v35  ;;  %v888_v26 = vadd.f32 %v887_v19, %v2280_v36 }
 0x253   : > { %v1208_v22 = vadd.f32 %v2348_v12, %v1207_v20 }
 0x255   : > { %v1377_v34 = vadd.f32 %v1376_v21, %v1208_v22 }
 0x259   : > { %v720_v23 = vpop.f32.mrf.mxu0  ;;  %v889_v24 = vpop.f32.mrf.mxu1 }
 0x25a   : > { %v721_v27 = vadd.f32 %v720_v23, %v2278_v35  ;;  %v890_v28 = vadd.f32 %v889_v24, %v2280_v36  ;;  %v1209_v29 = vpop.f32.mrf.mxu2  ;;  %v1378_v30 = vpop.f32.mrf.mxu3 }
 0x25b   : > { %v1210_v31 = vadd.f32 %v2348_v12, %v1209_v29 }
 0x25c   : > { %v963_v32 = vpack.c.bf16 %v721_v27, %v719_v25  ;;  %v964_v33 = vpack.c.bf16 %v890_v28, %v888_v26 }
 0x25d   : > { %v1379_v37 = vadd.f32 %v1378_v30, %v1210_v31 }
 0x25e   : > { %1251 = vmatmul.bf16.gmra.mxu2 %v963_v32  ;;  %1420 = vmatmul.bf16.gmra.mxu3 %v964_v33 }
 0x25f   : > { %v2038_v38 = vpack.c.bf16 %v1379_v37, %v1377_v34 }
 0x261   : > { %2118 = vst [vmem:[%s2361_s20 + $0x98] sm:$0xff] %v2038_v38   ;;  %v723_v39 = vpop.f32.mrf.mxu0  ;;  %v892_v40 = vpop.f32.mrf.mxu1 }
 0x262   : > { %v1212_v41 = vpop.f32.mrf.mxu2  ;;  %v1381_v42 = vpop.f32.mrf.mxu3  ;;  %v724_v46 = vadd.f32 %v723_v39, %v2278_v35  ;;  %v893_v47 = vadd.f32 %v892_v40, %v2280_v36 }
 0x263   : > { %v1213_v43 = vadd.f32 %v2348_v12, %v1212_v41 }
 0x265   : > { %v1382_v55 = vadd.f32 %v1381_v42, %v1213_v43 }
 0x269   : > { %v725_v44 = vpop.f32.mrf.mxu0  ;;  %v894_v45 = vpop.f32.mrf.mxu1 }
 0x26a   : > { %v726_v48 = vadd.f32 %v725_v44, %v2278_v35  ;;  %v895_v49 = vadd.f32 %v894_v45, %v2280_v36  ;;  %v1214_v50 = vpop.f32.mrf.mxu2  ;;  %v1383_v51 = vpop.f32.mrf.mxu3 }
 0x26b   : > { %v1215_v52 = vadd.f32 %v2348_v12, %v1214_v50 }
 0x26c   : > { %v965_v53 = vpack.c.bf16 %v726_v48, %v724_v46  ;;  %v966_v54 = vpack.c.bf16 %v895_v49, %v893_v47 }
 0x26d   : > { %v1384_v56 = vadd.f32 %v1383_v51, %v1215_v52 }
 0x26e   : > { %1256 = vmatmul.bf16.gmra.mxu2 %v965_v53  ;;  %1425 = vmatmul.bf16.gmra.mxu3 %v966_v54 }
 0x26f   : > { %v2043_v57 = vpack.c.bf16 %v1384_v56, %v1382_v55 }
 0x271   : > { %2119 = vst [vmem:[%s2361_s20 + $0xa0] sm:$0xff] %v2043_v57   ;;  %v728_v58 = vpop.f32.mrf.mxu0  ;;  %v897_v59 = vpop.f32.mrf.mxu1 }
 0x272   : > { %v1217_v60 = vpop.f32.mrf.mxu2  ;;  %v1386_v61 = vpop.f32.mrf.mxu3  ;;  %v729_v1 = vadd.f32 %v728_v58, %v2278_v35  ;;  %v898_v2 = vadd.f32 %v897_v59, %v2280_v36 }
 0x273   : > { %v1218_v62 = vadd.f32 %v2348_v12, %v1217_v60 }
 0x275   : > { %v1387_v10 = vadd.f32 %v1386_v61, %v1218_v62 }
 0x279   : > { %v730_v63 = vpop.f32.mrf.mxu0  ;;  %v899_v0 = vpop.f32.mrf.mxu1 }
 0x27a   : > { %v731_v3 = vadd.f32 %v730_v63, %v2278_v35  ;;  %v900_v4 = vadd.f32 %v899_v0, %v2280_v36  ;;  %v1219_v5 = vpop.f32.mrf.mxu2  ;;  %v1388_v6 = vpop.f32.mrf.mxu3 }
 0x27b   : > { %v1220_v12 = vadd.f32 %v2554_v7, %v1219_v5 }
 0x27c   : > { %v967_v8 = vpack.c.bf16 %v731_v3, %v729_v1  ;;  %v968_v9 = vpack.c.bf16 %v900_v4, %v898_v2 }
 0x27d   : > { %v1389_v11 = vadd.f32 %v1388_v6, %v1220_v12 }
 0x27e   : > { %1261 = vmatmul.bf16.gmra.mxu2 %v967_v8  ;;  %1430 = vmatmul.bf16.gmra.mxu3 %v968_v9 }
 0x27f   : > { %v2048_v13 = vpack.c.bf16 %v1389_v11, %v1387_v10 }
 0x281   : > { %2120 = vst [vmem:[%s2361_s20 + $0xa8] sm:$0xff] %v2048_v13   ;;  %v733_v14 = vpop.f32.mrf.mxu0  ;;  %v902_v15 = vpop.f32.mrf.mxu1 }
 0x282   : > { %v1222_v16 = vpop.f32.mrf.mxu2  ;;  %v1391_v17 = vpop.f32.mrf.mxu3  ;;  %v734_v21 = vadd.f32 %v733_v14, %v2278_v35  ;;  %v903_v22 = vadd.f32 %v902_v15, %v2280_v36 }
 0x283   : > { %v1223_v18 = vadd.f32 %v2554_v7, %v1222_v16 }
 0x285   : > { %v1392_v30 = vadd.f32 %v1391_v17, %v1223_v18 }
 0x289   : > { %v735_v19 = vpop.f32.mrf.mxu0  ;;  %v904_v20 = vpop.f32.mrf.mxu1 }
 0x28a   : > { %v736_v23 = vadd.f32 %v735_v19, %v2278_v35  ;;  %v905_v24 = vadd.f32 %v904_v20, %v2280_v36  ;;  %v1224_v25 = vpop.f32.mrf.mxu2  ;;  %v1393_v26 = vpop.f32.mrf.mxu3 }
 0x28b   : > { %v1225_v27 = vadd.f32 %v2554_v7, %v1224_v25 }
 0x28c   : > { %v969_v28 = vpack.c.bf16 %v736_v23, %v734_v21  ;;  %v970_v29 = vpack.c.bf16 %v905_v24, %v903_v22 }
 0x28d   : > { %v1394_v31 = vadd.f32 %v1393_v26, %v1225_v27 }
 0x28e   : > { %1266 = vmatmul.bf16.gmra.mxu2 %v969_v28  ;;  %1435 = vmatmul.bf16.gmra.mxu3 %v970_v29 }
 0x28f   : > { %v2053_v32 = vpack.c.bf16 %v1394_v31, %v1392_v30 }
 0x291   : > { %2121 = vst [vmem:[%s2361_s20 + $0xb0] sm:$0xff] %v2053_v32  }
 0x292   : > { %v1227_v33 = vpop.f32.mrf.mxu2  ;;  %v1396_v34 = vpop.f32.mrf.mxu3 }
 0x293   : > { %v1228_v37 = vadd.f32 %v2554_v7, %v1227_v33 }
 0x295   : > { %v1397_v39 = vadd.f32 %v1396_v34, %v1228_v37 }
 0x29a   : > { %v1229_v35 = vpop.f32.mrf.mxu2  ;;  %v1398_v36 = vpop.f32.mrf.mxu3 }
 0x29b   : > { %v1230_v38 = vadd.f32 %v2554_v7, %v1229_v35 }
 0x29d   : > { %v1399_v40 = vadd.f32 %v1398_v36, %v1230_v38 }
 0x29f   : > { %v2058_v41 = vpack.c.bf16 %v1399_v40, %v1397_v39 }
 0x2a1   : > { %2122 = vst [vmem:[%s2361_s20 + $0xb8] sm:$0xff] %v2058_v41  }
 0x2a2   : > { %v1232_v42 = vpop.f32.mrf.mxu2  ;;  %v1401_v43 = vpop.f32.mrf.mxu3 }
 0x2a3   : > { %v1233_v44 = vadd.f32 %v2554_v7, %v1232_v42 }
 0x2a5   : > { %v1402_v48 = vadd.f32 %v1401_v43, %v1233_v44 }
 0x2aa   : > { %v1234_v45 = vpop.f32.mrf.mxu2  ;;  %v1403_v46 = vpop.f32.mrf.mxu3 }
 0x2ab   : > { %v1235_v47 = vadd.f32 %v2554_v7, %v1234_v45 }
 0x2ad   : > { %v1404_v49 = vadd.f32 %v1403_v46, %v1235_v47 }
 0x2af   : > { %v2063_v50 = vpack.c.bf16 %v1404_v49, %v1402_v48 }
 0x2b1   : > { %2123 = vst [vmem:[%s2361_s20 + $0xc0] sm:$0xff] %v2063_v50  }
 0x2b2   : > { %v1237_v51 = vpop.f32.mrf.mxu2  ;;  %v1406_v52 = vpop.f32.mrf.mxu3 }
 0x2b3   : > { %v1238_v53 = vadd.f32 %v2554_v7, %v1237_v51 }
 0x2b5   : > { %v1407_v57 = vadd.f32 %v1406_v52, %v1238_v53 }
 0x2ba   : > { %v1239_v54 = vpop.f32.mrf.mxu2  ;;  %v1408_v55 = vpop.f32.mrf.mxu3 }
 0x2bb   : > { %v1240_v56 = vadd.f32 %v2554_v7, %v1239_v54 }
 0x2bd   : > { %v1409_v58 = vadd.f32 %v1408_v55, %v1240_v56 }
 0x2bf   : > { %v2068_v59 = vpack.c.bf16 %v1409_v58, %v1407_v57 }
 0x2c1   : > { %2124 = vst [vmem:[%s2361_s20 + $0xc8] sm:$0xff] %v2068_v59  }
 0x2c2   : > { %v1242_v60 = vpop.f32.mrf.mxu2  ;;  %v1411_v61 = vpop.f32.mrf.mxu3 }
 0x2c3   : > { %v1243_v62 = vadd.f32 %v2554_v7, %v1242_v60 }
 0x2c5   : > { %v1412_v2 = vadd.f32 %v1411_v61, %v1243_v62 }
 0x2ca   : > { %v1244_v63 = vpop.f32.mrf.mxu2  ;;  %v1413_v0 = vpop.f32.mrf.mxu3 }
 0x2cb   : > { %v1245_v1 = vadd.f32 %v2554_v7, %v1244_v63 }
 0x2cd   : > { %v1414_v3 = vadd.f32 %v1413_v0, %v1245_v1 }
 0x2cf   : > { %v2073_v4 = vpack.c.bf16 %v1414_v3, %v1412_v2 }
 0x2d1   : > { %2125 = vst [vmem:[%s2361_s20 + $0xd0] sm:$0xff] %v2073_v4  }
 0x2d2   : > { %v1247_v5 = vpop.f32.mrf.mxu2  ;;  %v1416_v6 = vpop.f32.mrf.mxu3 }
 0x2d3   : > { %v1248_v12 = vadd.f32 %v2554_v7, %v1247_v5 }
 0x2d5   : > { %v1417_v11 = vadd.f32 %v1416_v6, %v1248_v12 }
 0x2da   : > { %v1249_v8 = vpop.f32.mrf.mxu2  ;;  %v1418_v9 = vpop.f32.mrf.mxu3 }
 0x2db   : > { %v1250_v10 = vadd.f32 %v2554_v7, %v1249_v8 }
 0x2dd   : > { %v1419_v13 = vadd.f32 %v1418_v9, %v1250_v10 }
 0x2df   : > { %v2078_v14 = vpack.c.bf16 %v1419_v13, %v1417_v11 }
 0x2e1   : > { %2126 = vst [vmem:[%s2361_s20 + $0xd8] sm:$0xff] %v2078_v14  }
 0x2e2   : > { %v1252_v15 = vpop.f32.mrf.mxu2  ;;  %v1421_v16 = vpop.f32.mrf.mxu3 }
 0x2e3   : > { %v1253_v17 = vadd.f32 %v2554_v7, %v1252_v15 }
 0x2e5   : > { %v1422_v21 = vadd.f32 %v1421_v16, %v1253_v17 }
 0x2ea   : > { %v1254_v18 = vpop.f32.mrf.mxu2  ;;  %v1423_v19 = vpop.f32.mrf.mxu3 }
 0x2eb   : > { %v1255_v20 = vadd.f32 %v2554_v7, %v1254_v18 }
 0x2ed   : > { %v1424_v22 = vadd.f32 %v1423_v19, %v1255_v20 }
 0x2ef   : > { %v2083_v23 = vpack.c.bf16 %v1424_v22, %v1422_v21 }
 0x2f1   : > { %2127 = vst [vmem:[%s2361_s20 + $0xe0] sm:$0xff] %v2083_v23  }
 0x2f2   : > { %v1257_v24 = vpop.f32.mrf.mxu2  ;;  %v1426_v25 = vpop.f32.mrf.mxu3 }
 0x2f3   : > { %v1258_v26 = vadd.f32 %v2554_v7, %v1257_v24 }
 0x2f5   : > { %v1427_v30 = vadd.f32 %v1426_v25, %v1258_v26 }
 0x2fa   : > { %v1259_v27 = vpop.f32.mrf.mxu2  ;;  %v1428_v28 = vpop.f32.mrf.mxu3 }
 0x2fb   : > { %v1260_v29 = vadd.f32 %v2554_v7, %v1259_v27 }
 0x2fd   : > { %v1429_v31 = vadd.f32 %v1428_v28, %v1260_v29 }
 0x2ff   : > { %v2088_v32 = vpack.c.bf16 %v1429_v31, %v1427_v30 }
 0x301   : > { %2128 = vst [vmem:[%s2361_s20 + $0xe8] sm:$0xff] %v2088_v32  }
 0x302   : > { %v1262_v33 = vpop.f32.mrf.mxu2  ;;  %v1431_v34 = vpop.f32.mrf.mxu3 }
 0x303   : > { %v1263_v37 = vadd.f32 %v2554_v7, %v1262_v33 }
 0x305   : > { %v1432_v39 = vadd.f32 %v1431_v34, %v1263_v37 }
 0x30a   : > { %v1264_v35 = vpop.f32.mrf.mxu2  ;;  %v1433_v36 = vpop.f32.mrf.mxu3 }
 0x30b   : > { %v1265_v38 = vadd.f32 %v2554_v7, %v1264_v35 }
 0x30d   : > { %v1434_v40 = vadd.f32 %v1433_v36, %v1265_v38 }
 0x30f   : > { %v2093_v41 = vpack.c.bf16 %v1434_v40, %v1432_v39 }
 0x311   : > { %2129 = vst [vmem:[%s2361_s20 + $0xf0] sm:$0xff] %v2093_v41  }
 0x312   : > { %v1267_v42 = vpop.f32.mrf.mxu2  ;;  %v1436_v43 = vpop.f32.mrf.mxu3 }
 0x313   : > { %v1268_v44 = vadd.f32 %v2554_v7, %v1267_v42 }
 0x315   : > { %v1437_v48 = vadd.f32 %v1436_v43, %v1268_v44 }
 0x31a   : > { %v1269_v45 = vpop.f32.mrf.mxu2  ;;  %v1438_v47 = vpop.f32.mrf.mxu3 }
 0x31b   : > { %v1270_v46 = vadd.f32 %v2554_v7, %v1269_v45 }
 0x31d   : > { %v1439_v49 = vadd.f32 %v1438_v47, %v1270_v46 }
 0x31f   : > { %v2098_v50 = vpack.c.bf16 %v1439_v49, %v1437_v48 }
 0x321   : > { %2130 = vst [vmem:[%s2361_s20 + $0xf8] sm:$0xff] %v2098_v50  }
 0x322 PF: > { %s15_s18 = sadd.s32 1, %s2147_s18  }
 0x323   : > { %p12_p4 = scmp.ge.s32.totalorder %s15_s18, 4  }
 0x325   :  { %14 = sbr.rel (!%p12_p4) target bundleno = 1 (0x1), region = 70 }

// kernel: multitask_forward.3
= control target key start
LH: loop header
LB: loop body
LE: loop exit
PB: predicated region body
PF: predicated region fallthrough
CT: control target
= control target key end

     0   :  { %s6762_s30 = smov 0   ;;  %s10441_s0 = inlined_call_operand.vmem [shape: bf16[2048,8], index: 0, kind: input, shape index: {}]   ;;  %s10442_s1 = inlined_call_operand.vmem [shape: bf16[1024,8], index: 1, kind: input, shape index: {}]   ;;  %s10443_s2 = inlined_call_operand.vmem [shape: bf16[8,256], index: 2, kind: input, shape index: {}]   ;;  %s10444_s3 = inlined_call_operand.vmem [shape: f32[1,256], index: 3, kind: input, shape index: {}]   ;;  %s10445_s4 = inlined_call_operand.vmem [shape: bf16[8,256], index: 4, kind: input, shape index: {}]   ;;  %s10446_s5 = inlined_call_operand.vmem [shape: f32[1,256], index: 5, kind: input, shape index: {}]   ;;  %s10447_s6 = inlined_call_operand.vmem [shape: bf16[256,128], index: 6, kind: input, shape index: {}]   ;;  %s10448_s7 = inlined_call_operand.vmem [shape: bf16[256,128], index: 7, kind: input, shape index: {}]   ;;  %s10449_s8 = inlined_call_operand.vmem [shape: f32[1,128], index: 8, kind: input, shape index: {}]   ;;  %s10450_s9 = inlined_call_operand.vmem [shape: bf16[2048,128], index: 9, kind: output, shape index: {}]  }
   0x1 LB: > { %s5243_s10 = sadd.s32 4294967295, %s6710_s30   ;;  %p5247_p0 = scmp.ge.s32.totalorder %s6710_s30, 1  ;;  %s6710_s30 = sphi %s6762_s30, %s19_s30  }
   0x2   : > { %p288_p1 = scmp.lt.s32.totalorder %s6710_s30, 3 }
   0x4   : > { %p289_p2 = pnand %p5247_p0, %p288_p1 }
   0x6   : > { %292 = sbr.rel (%p289_p2) target bundleno = 2201 (0x899), region = 56 }
   0xb   : > { %v1911_v0 = vld [vmem:[%s10445_s4] sm:$0xff]  ;;  %s5248_s15 = sshll.u32 %s5243_s10, 7  ;;  %vm990_vm0 = vcmask 1043456   ;;  %v6285_v10 = vld [vmem:[%s10447_s6 + $0x38] sm:$0xff]  ;;  %vm797_vm1 = vcmask 64512   ;;  %v6215_v20 = vld [vmem:[%s10442_s1 + $0x8] sm:$0xff] }
   0xc   : > { %v465_v1 = vld [vmem:[%s10443_s2] sm:$0xff]  ;;  %v2239_v2 = vunpack.c.l.b16 %v1911_v0  ;;  %v2240_v3 = vunpack.c.h.b16 %v1911_v0  ;;  %p325_p3 = scmp.lt.s32.totalorder %s5248_s15, 255  ;;  %v6293_v11 = vld [vmem:[%s10447_s6 + $0x78] sm:$0xff]  ;;  %v6216_v22 = vld [vmem:[%s10442_s1 + $0x10] sm:$0xff] }
   0xd   : > { %v793_v4 = vunpack.c.l.b16 %v465_v1  ;;  %v794_v5 = vunpack.c.h.b16 %v465_v1  ;;  %v6214_v16 = vld [vmem:[%s10442_s1] sm:$0xff]  ;;  %v6301_v18 = vld [vmem:[%s10448_s7 + $0x38] sm:$0xff]  ;;  %v6219_v28 = vld [vmem:[%s10442_s1 + $0x28] sm:$0xff] }
   0xe   : > { %v2241_v6 = vpack.c.b16 %v2239_v2, %v2239_v2  ;;  %v2242_v7 = vpack.c.b16 %v2240_v3, %v2240_v3  ;;  %s11986_s15 = smov (!%p325_p3, %s5248_s15), 255  ;;  %v6309_v19 = vld [vmem:[%s10448_s7 + $0x78] sm:$0xff]  ;;  %v6218_v26 = vld [vmem:[%s10442_s1 + $0x20] sm:$0xff]  ;;  %v6220_v30 = vld [vmem:[%s10442_s1 + $0x30] sm:$0xff] }
   0xf   : > { %v795_v8 = vpack.c.b16 %v793_v4, %v793_v4  ;;  %v796_v9 = vpack.c.b16 %v794_v5, %v794_v5  ;;  %s5249_s22 = sshll.u32 %s11986_s15, 2  ;;  %v6217_v24 = vld [vmem:[%s10442_s1 + $0x18] sm:$0xff]  ;;  %v6284_v32 = vld [vmem:[%s10447_s6 + $0x30] sm:$0xff]  ;;  %v6222_v38 = vld [vmem:[%s10442_s1 + $0x40] sm:$0xff] }
  0x10   : > { %v2436_v12 = vsel %vm990_vm0, %v2241_v6, 0  ;;  %v2439_v13 = vsel %vm990_vm0, %v2242_v7, 0  ;;  %s6793_s25 = scalar_lea.vmem %s10441_s0, %s5249_s22  ;;  %v6292_v33 = vld [vmem:[%s10447_s6 + $0x70] sm:$0xff]  ;;  %v6221_v36 = vld [vmem:[%s10442_s1 + $0x38] sm:$0xff]  ;;  %v466_v42 = vld [vmem:[%s10444_s3] sm:$0x3]  ;;  %s9582_s12 = scalar_lea.vmem %s10450_s9, %s5249_s22 }
  0x11   : > { %v992_v14 = vsel %vm990_vm0, %v795_v8, 0  ;;  %v995_v15 = vsel %vm990_vm0, %v796_v9, 0  ;;  %2448 = vmatpush.bf16.msra.mxu2 %v2436_v12  ;;  %2777 = vmatpush.bf16.msra.mxu3 %v2439_v13  ;;  %v6150_v17 = vld [vmem:[%s6793_s25] sm:$0xff]  ;;  %v6151_v21 = vld [vmem:[%s6793_s25 + $0x8] sm:$0xff]  ;;  %v6152_v23 = vld [vmem:[%s6793_s25 + $0x10] sm:$0xff]  ;;  %v6885_v43 = vperm.slane %v466_v42, 0 }
  0x12   : > { %1004 = vmatpush.bf16.msra.mxu0 %v992_v14  ;;  %1333 = vmatpush.bf16.msra.mxu1 %v995_v15  ;;  %v6153_v25 = vld [vmem:[%s6793_s25 + $0x18] sm:$0xff]  ;;  %v6154_v27 = vld [vmem:[%s6793_s25 + $0x20] sm:$0xff]  ;;  %v6155_v29 = vld [vmem:[%s6793_s25 + $0x28] sm:$0xff]  ;;  %v6887_v44 = vperm.slane %v466_v42, 1 }
  0x13   : > { %v6156_v31 = vld [vmem:[%s6793_s25 + $0x30] sm:$0xff]  ;;  %v6157_v37 = vld [vmem:[%s6793_s25 + $0x38] sm:$0xff]  ;;  %v6158_v39 = vld [vmem:[%s6793_s25 + $0x40] sm:$0xff] }
  0x14   : > { %5892 = vmatmul.msk.bf16.vlgmr.msra.gmra.mxu2 %vm797_vm1, %v6214_v16  ;;  %5956 = vmatmul.msk.bf16.vlgmr.msra.gmra.mxu3 %vm797_vm1, %v6214_v16  ;;  %v6300_v34 = vld [vmem:[%s10448_s7 + $0x30] sm:$0xff]  ;;  %v1912_v47 = vld [vmem:[%s10446_s5] sm:$0x3]  ;;  %v6223_v0 = vld [vmem:[%s10442_s1 + $0x48] sm:$0xff] }
  0x15   : > { %4141 = vmatpush.bf16.msrb.mxu2 %v6285_v10  ;;  %4470 = vmatpush.bf16.msrb.mxu3 %v6293_v11  ;;  %v6308_v35 = vld [vmem:[%s10448_s7 + $0x70] sm:$0xff]  ;;  %v6904_v54 = vperm.slane %v1912_v47, 0  ;;  %v6906_v55 = vperm.slane %v1912_v47, 1  ;;  %v6159_v1 = vld [vmem:[%s6793_s25 + $0x48] sm:$0xff]  ;;  %v6161_v47 = vld [vmem:[%s6793_s25 + $0x58] sm:$0xff] }
  0x16   : > { %5508 = vmatmul.msk.bf16.vlgmr.msra.gmra.mxu0 %vm797_vm1, %v6150_v17  ;;  %5572 = vmatmul.msk.bf16.vlgmr.msra.gmra.mxu1 %vm797_vm1, %v6150_v17  ;;  %v6164_v15 = vld [vmem:[%s6793_s25 + $0x70] sm:$0xff]  ;;  %v6307_v3 = vld [vmem:[%s10448_s7 + $0x68] sm:$0xff] }
  0x17   : > { %3387 = vmatpush.bf16.msrb.mxu0 %v6301_v18  ;;  %3716 = vmatpush.bf16.msrb.mxu1 %v6309_v19 }
  0x19   : > { %4142 = vmatpush.bf16.msrb.mxu2 %v6284_v32  ;;  %4471 = vmatpush.bf16.msrb.mxu3 %v6292_v33 }
  0x1b   : > { %3388 = vmatpush.bf16.msrb.mxu0 %v6300_v34  ;;  %3717 = vmatpush.bf16.msrb.mxu1 %v6308_v35 }
  0x1f   : > { %3718 = vmatpush.bf16.msrb.mxu1 %v6307_v3 }
  0x24   : > { %5893 = vmatmul.msk.bf16.gmra.mxu2 %vm797_vm1, %v6215_v20  ;;  %5957 = vmatmul.msk.bf16.gmra.mxu3 %vm797_vm1, %v6215_v20 }
  0x26   : > { %5509 = vmatmul.msk.bf16.gmra.mxu0 %vm797_vm1, %v6151_v21  ;;  %5573 = vmatmul.msk.bf16.gmra.mxu1 %vm797_vm1, %v6151_v21 }
  0x34   : > { %5894 = vmatmul.msk.bf16.gmra.mxu2 %vm797_vm1, %v6216_v22  ;;  %5958 = vmatmul.msk.bf16.gmra.mxu3 %vm797_vm1, %v6216_v22  ;;  %v6224_v22 = vld [vmem:[%s10442_s1 + $0x50] sm:$0xff] }
  0x36   : > { %5510 = vmatmul.msk.bf16.gmra.mxu0 %vm797_vm1, %v6152_v23  ;;  %5574 = vmatmul.msk.bf16.gmra.mxu1 %vm797_vm1, %v6152_v23  ;;  %v6160_v23 = vld [vmem:[%s6793_s25 + $0x50] sm:$0xff] }
  0x44   : > { %5895 = vmatmul.msk.bf16.gmra.mxu2 %vm797_vm1, %v6217_v24  ;;  %5959 = vmatmul.msk.bf16.gmra.mxu3 %vm797_vm1, %v6217_v24 }
  0x46   : > { %5511 = vmatmul.msk.bf16.gmra.mxu0 %vm797_vm1, %v6153_v25  ;;  %5575 = vmatmul.msk.bf16.gmra.mxu1 %vm797_vm1, %v6153_v25 }
  0x54   : > { %5896 = vmatmul.msk.bf16.gmra.mxu2 %vm797_vm1, %v6218_v26  ;;  %5960 = vmatmul.msk.bf16.gmra.mxu3 %vm797_vm1, %v6218_v26 }
  0x56   : > { %5512 = vmatmul.msk.bf16.gmra.mxu0 %vm797_vm1, %v6154_v27  ;;  %5576 = vmatmul.msk.bf16.gmra.mxu1 %vm797_vm1, %v6154_v27 }
  0x64   : > { %5897 = vmatmul.msk.bf16.gmra.mxu2 %vm797_vm1, %v6219_v28  ;;  %5961 = vmatmul.msk.bf16.gmra.mxu3 %vm797_vm1, %v6219_v28 }
  0x66   : > { %5513 = vmatmul.msk.bf16.gmra.mxu0 %vm797_vm1, %v6155_v29  ;;  %5577 = vmatmul.msk.bf16.gmra.mxu1 %vm797_vm1, %v6155_v29 }
  0x74   : > { %5898 = vmatmul.msk.bf16.gmra.mxu2 %vm797_vm1, %v6220_v30  ;;  %5962 = vmatmul.msk.bf16.gmra.mxu3 %vm797_vm1, %v6220_v30 }
  0x76   : > { %5514 = vmatmul.msk.bf16.gmra.mxu0 %vm797_vm1, %v6156_v31  ;;  %5578 = vmatmul.msk.bf16.gmra.mxu1 %vm797_vm1, %v6156_v31 }
  0x84   : > { %5899 = vmatmul.msk.bf16.gmra.mxu2 %vm797_vm1, %v6221_v36  ;;  %5963 = vmatmul.msk.bf16.gmra.mxu3 %vm797_vm1, %v6221_v36 }
  0x86   : > { %5515 = vmatmul.msk.bf16.gmra.mxu0 %vm797_vm1, %v6157_v37  ;;  %5579 = vmatmul.msk.bf16.gmra.mxu1 %vm797_vm1, %v6157_v37 }
  0x93   : > { %v1006_v40 = vpop.f32.mrf.mxu0  ;;  %v1335_v41 = vpop.f32.mrf.mxu1 }
  0x94   : > { %5900 = vmatmul.msk.bf16.gmra.mxu2 %vm797_vm1, %v6222_v38  ;;  %5964 = vmatmul.msk.bf16.gmra.mxu3 %vm797_vm1, %v6222_v38  ;;  %v6893_v50 = vadd.f32 %v1006_v40, %v6885_v43  ;;  %v6896_v51 = vadd.f32 %v1335_v41, %v6887_v44 }
  0x96   : > { %5516 = vmatmul.msk.bf16.gmra.mxu0 %vm797_vm1, %v6158_v39  ;;  %5580 = vmatmul.msk.bf16.gmra.mxu1 %vm797_vm1, %v6158_v39 }
  0x97   : > { %v2450_v45 = vpop.f32.mrf.mxu2  ;;  %v2779_v46 = vpop.f32.mrf.mxu3 }
  0x98   : > { %v6913_v60 = vadd.f32 %v2450_v45, %v6904_v54  ;;  %v6916_v61 = vadd.f32 %v2779_v46, %v6906_v55  ;;  %v6225_v46 = vld [vmem:[%s10442_s1 + $0x58] sm:$0xff] }
  0x9b   : > { %v1008_v48 = vpop.f32.mrf.mxu0  ;;  %v1337_v49 = vpop.f32.mrf.mxu1 }
  0x9c   : > { %v6899_v52 = vadd.f32 %v1008_v48, %v6885_v43  ;;  %v6902_v53 = vadd.f32 %v1337_v49, %v6887_v44 }
  0x9f   : > { %v2452_v58 = vpop.f32.mrf.mxu2  ;;  %v2781_v59 = vpop.f32.mrf.mxu3 }
  0xa0   : > { %v6919_v62 = vadd.f32 %v2452_v58, %v6904_v54  ;;  %v6922_v63 = vadd.f32 %v2781_v59, %v6906_v55 }
  0xa3   : > { %v1011_v4 = vpop.f32.mrf.mxu0  ;;  %v1340_v5 = vpop.f32.mrf.mxu1 }
  0xa4   : > { %5901 = vmatmul.msk.bf16.gmra.mxu2 %vm797_vm1, %v6223_v0  ;;  %5965 = vmatmul.msk.bf16.gmra.mxu3 %vm797_vm1, %v6223_v0  ;;  %v6937_v10 = vadd.f32 %v1011_v4, %v6885_v43  ;;  %v6940_v11 = vadd.f32 %v1340_v5, %v6887_v44 }
  0xa6   : > { %5517 = vmatmul.msk.bf16.gmra.mxu0 %vm797_vm1, %v6159_v1  ;;  %5581 = vmatmul.msk.bf16.gmra.mxu1 %vm797_vm1, %v6159_v1 }
  0xa7   : > { %v2455_v6 = vpop.f32.mrf.mxu2  ;;  %v2784_v7 = vpop.f32.mrf.mxu3 }
  0xa8   : > { %v6953_v18 = vadd.f32 %v2455_v6, %v6904_v54  ;;  %v6956_v19 = vadd.f32 %v2784_v7, %v6906_v55 }
  0xab   : > { %v1013_v8 = vpop.f32.mrf.mxu0  ;;  %v1342_v9 = vpop.f32.mrf.mxu1 }
  0xac   : > { %v6943_v12 = vadd.f32 %v1013_v8, %v6885_v43  ;;  %v6946_v13 = vadd.f32 %v1342_v9, %v6887_v44 }
  0xaf   : > { %v2457_v16 = vpop.f32.mrf.mxu2  ;;  %v2786_v17 = vpop.f32.mrf.mxu3 }
  0xb0   : > { %v6959_v20 = vadd.f32 %v2457_v16, %v6904_v54  ;;  %v6962_v21 = vadd.f32 %v2786_v17, %v6906_v55  ;;  %v6163_v17 = vld [vmem:[%s6793_s25 + $0x68] sm:$0xff] }
  0xb3   : > { %v1016_v26 = vpop.f32.mrf.mxu0  ;;  %v1345_v27 = vpop.f32.mrf.mxu1 }
  0xb4   : > { %5902 = vmatmul.msk.bf16.gmra.mxu2 %vm797_vm1, %v6224_v22  ;;  %5966 = vmatmul.msk.bf16.gmra.mxu3 %vm797_vm1, %v6224_v22  ;;  %v6977_v32 = vadd.f32 %v1016_v26, %v6885_v43  ;;  %v6980_v33 = vadd.f32 %v1345_v27, %v6887_v44 }
  0xb6   : > { %5518 = vmatmul.msk.bf16.gmra.mxu0 %vm797_vm1, %v6160_v23  ;;  %5582 = vmatmul.msk.bf16.gmra.mxu1 %vm797_vm1, %v6160_v23 }
  0xb7   : > { %v2460_v28 = vpop.f32.mrf.mxu2  ;;  %v2789_v29 = vpop.f32.mrf.mxu3 }
  0xb8   : > { %v6993_v40 = vadd.f32 %v2460_v28, %v6904_v54  ;;  %v6996_v41 = vadd.f32 %v2789_v29, %v6906_v55 }
  0xbb   : > { %v1018_v30 = vpop.f32.mrf.mxu0  ;;  %v1347_v31 = vpop.f32.mrf.mxu1 }
  0xbc   : > { %v6983_v34 = vadd.f32 %v1018_v30, %v6885_v43  ;;  %v6986_v35 = vadd.f32 %v1347_v31, %v6887_v44  ;;  %v6226_v30 = vld [vmem:[%s10442_s1 + $0x60] sm:$0xff] }
  0xbd   : > { %v6162_v31 = vld [vmem:[%s6793_s25 + $0x60] sm:$0xff] }
  0xbf   : > { %v2462_v38 = vpop.f32.mrf.mxu2  ;;  %v2791_v39 = vpop.f32.mrf.mxu3 }
  0xc0   : > { %v6999_v42 = vadd.f32 %v2462_v38, %v6904_v54  ;;  %v7002_v45 = vadd.f32 %v2791_v39, %v6906_v55 }
  0xc3   : > { %v1021_v58 = vpop.f32.mrf.mxu0  ;;  %v1350_v59 = vpop.f32.mrf.mxu1 }
  0xc4   : > { %5903 = vmatmul.msk.bf16.gmra.mxu2 %vm797_vm1, %v6225_v46  ;;  %5967 = vmatmul.msk.bf16.gmra.mxu3 %vm797_vm1, %v6225_v46  ;;  %v7017_v6 = vadd.f32 %v1021_v58, %v6885_v43  ;;  %v7020_v7 = vadd.f32 %v1350_v59, %v6887_v44 }
  0xc6   : > { %5519 = vmatmul.msk.bf16.gmra.mxu0 %vm797_vm1, %v6161_v47  ;;  %5583 = vmatmul.msk.bf16.gmra.mxu1 %vm797_vm1, %v6161_v47 }
  0xc7   : > { %v2465_v0 = vpop.f32.mrf.mxu2  ;;  %v2794_v1 = vpop.f32.mrf.mxu3 }
  0xc8   : > { %v7033_v26 = vadd.f32 %v2465_v0, %v6904_v54  ;;  %v7036_v27 = vadd.f32 %v2794_v1, %v6906_v55 }
  0xcb   : > { %v1023_v4 = vpop.f32.mrf.mxu0  ;;  %v1352_v5 = vpop.f32.mrf.mxu1 }
  0xcc   : > { %v7023_v8 = vadd.f32 %v1023_v4, %v6885_v43  ;;  %v7026_v9 = vadd.f32 %v1352_v5, %v6887_v44 }
  0xcf   : > { %v2467_v22 = vpop.f32.mrf.mxu2  ;;  %v2796_v23 = vpop.f32.mrf.mxu3 }
  0xd0   : > { %v7039_v28 = vadd.f32 %v2467_v22, %v6904_v54  ;;  %v7042_v29 = vadd.f32 %v2796_v23, %v6906_v55 }
  0xd3   : > { %v1026_v46 = vpop.f32.mrf.mxu0  ;;  %v1355_v47 = vpop.f32.mrf.mxu1 }
  0xd4   : > { %5904 = vmatmul.msk.bf16.gmra.mxu2 %vm797_vm1, %v6226_v30  ;;  %5968 = vmatmul.msk.bf16.gmra.mxu3 %vm797_vm1, %v6226_v30  ;;  %v7057_v4 = vadd.f32 %v1026_v46, %v6885_v43  ;;  %v7060_v5 = vadd.f32 %v1355_v47, %v6887_v44  ;;  %v6227_v30 = vld [vmem:[%s10442_s1 + $0x68] sm:$0xff] }
  0xd6   : > { %5520 = vmatmul.msk.bf16.gmra.mxu0 %vm797_vm1, %v6162_v31  ;;  %5584 = vmatmul.msk.bf16.gmra.mxu1 %vm797_vm1, %v6162_v31 }
  0xd7   : > { %v2470_v58 = vpop.f32.mrf.mxu2  ;;  %v2799_v59 = vpop.f32.mrf.mxu3 }
  0xd8   : > { %v7073_v46 = vadd.f32 %v2470_v58, %v6904_v54  ;;  %v7076_v47 = vadd.f32 %v2799_v59, %v6906_v55 }
  0xdb   : > { %v1028_v0 = vpop.f32.mrf.mxu0  ;;  %v1357_v1 = vpop.f32.mrf.mxu1 }
  0xdc   : > { %v7063_v22 = vadd.f32 %v1028_v0, %v6885_v43  ;;  %v7066_v23 = vadd.f32 %v1357_v1, %v6887_v44 }
  0xdf   : > { %v2472_v39 = vpop.f32.mrf.mxu2  ;;  %v2801_v38 = vpop.f32.mrf.mxu3 }
  0xe0   : > { %v7079_v0 = vadd.f32 %v2472_v39, %v6904_v54  ;;  %v7082_v1 = vadd.f32 %v2801_v38, %v6906_v55 }
  0xe3   : > { %v1031_v16 = vpop.f32.mrf.mxu0  ;;  %v1360_v59 = vpop.f32.mrf.mxu1 }
  0xe4   : > { %5905 = vmatmul.msk.bf16.gmra.mxu2 %vm797_vm1, %v6227_v30  ;;  %5969 = vmatmul.msk.bf16.gmra.mxu3 %vm797_vm1, %v6227_v30  ;;  %v7097_v31 = vadd.f32 %v1031_v16, %v6885_v43  ;;  %v7100_v58 = vadd.f32 %v1360_v59, %v6887_v44 }
  0xe6   : > { %5521 = vmatmul.msk.bf16.gmra.mxu0 %vm797_vm1, %v6163_v17  ;;  %5585 = vmatmul.msk.bf16.gmra.mxu1 %vm797_vm1, %v6163_v17  ;;  %v6228_v17 = vld [vmem:[%s10442_s1 + $0x70] sm:$0xff] }
  0xe7   : > { %v2475_v38 = vpop.f32.mrf.mxu2  ;;  %v2804_v39 = vpop.f32.mrf.mxu3 }
  0xe8   : > { %v7113_v16 = vadd.f32 %v2475_v38, %v6904_v54  ;;  %v7116_v59 = vadd.f32 %v2804_v39, %v6906_v55 }
  0xea   : > { %10877 = vst [vmem:[#allocation2_spill] sm:$0xff] %v7113_v16 }
  0xeb   : > { %v1033_v49 = vpop.f32.mrf.mxu0  ;;  %v1362_v48 = vpop.f32.mrf.mxu1  ;;  %10878 = vst [vmem:[#allocation3_spill] sm:$0xff] %v7116_v59  ;;  %v6229_v59 = vld [vmem:[%s10442_s1 + $0x78] sm:$0xff] }
  0xec   : > { %v7103_v37 = vadd.f32 %v1033_v49, %v6885_v43  ;;  %v7106_v30 = vadd.f32 %v1362_v48, %v6887_v44 }
  0xef   : > { %v2477_v25 = vpop.f32.mrf.mxu2  ;;  %v2806_v24 = vpop.f32.mrf.mxu3 }
  0xf0   : > { %v7119_v49 = vadd.f32 %v2477_v25, %v6904_v54  ;;  %v7122_v48 = vadd.f32 %v2806_v24, %v6906_v55  ;;  %v6283_v24 = vld [vmem:[%s10447_s6 + $0x28] sm:$0xff] }
  0xf1   : > { %v6291_v25 = vld [vmem:[%s10447_s6 + $0x68] sm:$0xff]  ;;  %4143 = vmatpush.bf16.msrb.mxu2 %v6283_v24 }
  0xf2   : > { %10879 = vst [vmem:[#allocation4_spill] sm:$0xff] %v7122_v48  ;;  %4472 = vmatpush.bf16.msrb.mxu3 %v6291_v25 }
  0xf3   : > { %v1036_v14 = vpop.f32.mrf.mxu0  ;;  %v1365_v39 = vpop.f32.mrf.mxu1 }
  0xf4   : > { %5906 = vmatmul.msk.bf16.gmra.mxu2 %vm797_vm1, %v6228_v17  ;;  %5970 = vmatmul.msk.bf16.gmra.mxu3 %vm797_vm1, %v6228_v17  ;;  %v6299_v17 = vld [vmem:[%s10448_s7 + $0x28] sm:$0xff]  ;;  %v7152_v24 = vadd.f32 %v1365_v39, %v6887_v44 }
  0xf5   : > { %3389 = vmatpush.bf16.msrb.mxu0 %v6299_v17 }
  0xf6   : > { %5522 = vmatmul.msk.bf16.gmra.mxu0 %vm797_vm1, %v6164_v15  ;;  %5586 = vmatmul.msk.bf16.gmra.mxu1 %vm797_vm1, %v6164_v15  ;;  %v7149_v15 = vadd.f32 %v1036_v14, %v6885_v43  ;;  %10881 = vst [vmem:[#allocation6_spill] sm:$0xff] %v7152_v24 }
  0xf7   : > { %v2480_v38 = vpop.f32.mrf.mxu2  ;;  %v2809_v36 = vpop.f32.mrf.mxu3 }
  0xf8   : > { %10880 = vst [vmem:[#allocation5_spill] sm:$0xff] %v7149_v15  ;;  %v7165_v14 = vadd.f32 %v2480_v38, %v6904_v54  ;;  %v7168_v39 = vadd.f32 %v2809_v36, %v6906_v55  ;;  %v6165_v15 = vld [vmem:[%s6793_s25 + $0x78] sm:$0xff] }
  0xfa   : > { %10884 = vst [vmem:[#allocation9_spill] sm:$0xff] %v7165_v14 }
  0xfb   : > { %v1038_v2 = vpop.f32.mrf.mxu0  ;;  %v1367_v57 = vpop.f32.mrf.mxu1  ;;  %10885 = vst [vmem:[#allocation10_spill] sm:$0xff] %v7168_v39 }
  0xfc   : > { %v7155_v25 = vadd.f32 %v1038_v2, %v6885_v43  ;;  %v7158_v56 = vadd.f32 %v1367_v57, %v6887_v44 }
  0xfe   : > { %10882 = vst [vmem:[#allocation7_spill] sm:$0xff] %v7155_v25 }
  0xff   : > { %10883 = vst [vmem:[#allocation8_spill] sm:$0xff] %v7158_v56  ;;  %v2482_v17 = vpop.f32.mrf.mxu2  ;;  %v2811_v3 = vpop.f32.mrf.mxu3 }
 0x100   : > { %v7171_v2 = vadd.f32 %v2482_v17, %v6904_v54  ;;  %v7174_v57 = vadd.f32 %v2811_v3, %v6906_v55 }
 0x102   : > { %10886 = vst [vmem:[#allocation11_spill] sm:$0xff] %v7171_v2 }
 0x103   : > { %10887 = vst [vmem:[#allocation12_spill] sm:$0xff] %v7174_v57  ;;  %v1041_v24 = vpop.f32.mrf.mxu0  ;;  %v1370_v36 = vpop.f32.mrf.mxu1 }
 0x104   : > { %5907 = vmatmul.msk.bf16.gmra.mxu2 %vm797_vm1, %v6229_v59  ;;  %5971 = vmatmul.msk.bf16.gmra.mxu3 %vm797_vm1, %v6229_v59  ;;  %v7189_v48 = vadd.f32 %v1041_v24, %v6885_v43  ;;  %v7192_v38 = vadd.f32 %v1370_v36, %v6887_v44 }
 0x106   : > { %5523 = vmatmul.msk.bf16.gmra.mxu0 %vm797_vm1, %v6165_v15  ;;  %5587 = vmatmul.msk.bf16.gmra.mxu1 %vm797_vm1, %v6165_v15  ;;  %10888 = vst [vmem:[#allocation13_spill] sm:$0xff] %v7189_v48  ;;  %v6230_v15 = vld [vmem:[%s10442_s1 + $0x80] sm:$0xff] }
 0x107   : > { %v2485_v17 = vpop.f32.mrf.mxu2  ;;  %v2814_v3 = vpop.f32.mrf.mxu3  ;;  %10889 = vst [vmem:[#allocation14_spill] sm:$0xff] %v7192_v38  ;;  %v6166_v48 = vld [vmem:[%s6793_s25 + $0x80] sm:$0xff] }
 0x108   : > { %v7205_v24 = vadd.f32 %v2485_v17, %v6904_v54  ;;  %v7208_v36 = vadd.f32 %v2814_v3, %v6906_v55 }
 0x10a   : > { %10892 = vst [vmem:[#allocation17_spill] sm:$0xff] %v7205_v24 }
 0x10b   : > { %v1043_v56 = vpop.f32.mrf.mxu0  ;;  %v1372_v25 = vpop.f32.mrf.mxu1  ;;  %10893 = vst [vmem:[#allocation18_spill] sm:$0xff] %v7208_v36 }
 0x10c   : > { %v7195_v39 = vadd.f32 %v1043_v56, %v6885_v43  ;;  %v7198_v59 = vadd.f32 %v1372_v25, %v6887_v44 }
 0x10e   : > { %10890 = vst [vmem:[#allocation15_spill] sm:$0xff] %v7195_v39 }
 0x10f   : > { %10891 = vst [vmem:[#allocation16_spill] sm:$0xff] %v7198_v59  ;;  %v2487_v14 = vpop.f32.mrf.mxu2  ;;  %v2816_v2 = vpop.f32.mrf.mxu3 }
 0x110   : > { %v7211_v56 = vadd.f32 %v2487_v14, %v6904_v54  ;;  %v7214_v25 = vadd.f32 %v2816_v2, %v6906_v55 }
 0x112   : > { %10894 = vst [vmem:[#allocation19_spill] sm:$0xff] %v7211_v56 }
 0x113   : > { %10895 = vst [vmem:[#allocation20_spill] sm:$0xff] %v7214_v25  ;;  %v1046_v38 = vpop.f32.mrf.mxu0  ;;  %v1375_v3 = vpop.f32.mrf.mxu1 }
 0x114   : > { %5908 = vmatmul.msk.bf16.gmra.mxu2 %vm797_vm1, %v6230_v15  ;;  %5972 = vmatmul.msk.bf16.gmra.mxu3 %vm797_vm1, %v6230_v15  ;;  %v7229_v57 = vadd.f32 %v1046_v38, %v6885_v43  ;;  %v7232_v17 = vadd.f32 %v1375_v3, %v6887_v44 }
 0x116   : > { %5524 = vmatmul.msk.bf16.gmra.mxu0 %vm797_vm1, %v6166_v48  ;;  %5588 = vmatmul.msk.bf16.gmra.mxu1 %vm797_vm1, %v6166_v48  ;;  %10896 = vst [vmem:[#allocation21_spill] sm:$0xff] %v7229_v57  ;;  %v6231_v48 = vld [vmem:[%s10442_s1 + $0x88] sm:$0xff] }
 0x117   : > { %v2490_v14 = vpop.f32.mrf.mxu2  ;;  %v2819_v2 = vpop.f32.mrf.mxu3  ;;  %10897 = vst [vmem:[#allocation22_spill] sm:$0xff] %v7232_v17  ;;  %v6167_v57 = vld [vmem:[%s6793_s25 + $0x88] sm:$0xff] }
 0x118   : > { %v7245_v38 = vadd.f32 %v2490_v14, %v6904_v54  ;;  %v7248_v3 = vadd.f32 %v2819_v2, %v6906_v55 }
 0x11a   : > { %10900 = vst [vmem:[#allocation25_spill] sm:$0xff] %v7245_v38 }
 0x11b   : > { %v1048_v59 = vpop.f32.mrf.mxu0  ;;  %v1377_v39 = vpop.f32.mrf.mxu1  ;;  %10901 = vst [vmem:[#allocation26_spill] sm:$0xff] %v7248_v3 }
 0x11c   : > { %v7235_v36 = vadd.f32 %v1048_v59, %v6885_v43  ;;  %v7238_v15 = vadd.f32 %v1377_v39, %v6887_v44 }
 0x11e   : > { %10898 = vst [vmem:[#allocation23_spill] sm:$0xff] %v7235_v36 }
 0x11f   : > { %10899 = vst [vmem:[#allocation24_spill] sm:$0xff] %v7238_v15  ;;  %v2492_v24 = vpop.f32.mrf.mxu2  ;;  %v2821_v56 = vpop.f32.mrf.mxu3 }
 0x120   : > { %v7251_v59 = vadd.f32 %v2492_v24, %v6904_v54  ;;  %v7254_v39 = vadd.f32 %v2821_v56, %v6906_v55 }
 0x122   : > { %10902 = vst [vmem:[#allocation27_spill] sm:$0xff] %v7251_v59 }
 0x123   : > { %10903 = vst [vmem:[#allocation28_spill] sm:$0xff] %v7254_v39  ;;  %v1051_v17 = vpop.f32.mrf.mxu0  ;;  %v1380_v2 = vpop.f32.mrf.mxu1 }
 0x124   : > { %5909 = vmatmul.msk.bf16.gmra.mxu2 %vm797_vm1, %v6231_v48  ;;  %5973 = vmatmul.msk.bf16.gmra.mxu3 %vm797_vm1, %v6231_v48  ;;  %v7269_v25 = vadd.f32 %v1051_v17, %v6885_v43  ;;  %v7272_v14 = vadd.f32 %v1380_v2, %v6887_v44 }
 0x126   : > { %5525 = vmatmul.msk.bf16.gmra.mxu0 %vm797_vm1, %v6167_v57  ;;  %5589 = vmatmul.msk.bf16.gmra.mxu1 %vm797_vm1, %v6167_v57  ;;  %10904 = vst [vmem:[#allocation29_spill] sm:$0xff] %v7269_v25  ;;  %v6232_v57 = vld [vmem:[%s10442_s1 + $0x90] sm:$0xff] }
 0x127   : > { %v2495_v24 = vpop.f32.mrf.mxu2  ;;  %v2824_v56 = vpop.f32.mrf.mxu3  ;;  %10905 = vst [vmem:[#allocation30_spill] sm:$0xff] %v7272_v14  ;;  %v6168_v25 = vld [vmem:[%s6793_s25 + $0x90] sm:$0xff] }
 0x128   : > { %v7285_v17 = vadd.f32 %v2495_v24, %v6904_v54  ;;  %v7288_v2 = vadd.f32 %v2824_v56, %v6906_v55 }
 0x12a   : > { %10908 = vst [vmem:[#allocation33_spill] sm:$0xff] %v7285_v17 }
 0x12b   : > { %v1053_v15 = vpop.f32.mrf.mxu0  ;;  %v1382_v36 = vpop.f32.mrf.mxu1  ;;  %10909 = vst [vmem:[#allocation34_spill] sm:$0xff] %v7288_v2 }
 0x12c   : > { %v7275_v3 = vadd.f32 %v1053_v15, %v6885_v43  ;;  %v7278_v48 = vadd.f32 %v1382_v36, %v6887_v44 }
 0x12e   : > { %10906 = vst [vmem:[#allocation31_spill] sm:$0xff] %v7275_v3 }
 0x12f   : > { %10907 = vst [vmem:[#allocation32_spill] sm:$0xff] %v7278_v48  ;;  %v2497_v38 = vpop.f32.mrf.mxu2  ;;  %v2826_v59 = vpop.f32.mrf.mxu3 }
 0x130   : > { %v7291_v15 = vadd.f32 %v2497_v38, %v6904_v54  ;;  %v7294_v36 = vadd.f32 %v2826_v59, %v6906_v55 }
 0x132   : > { %10910 = vst [vmem:[#allocation35_spill] sm:$0xff] %v7291_v15 }
 0x133   : > { %10911 = vst [vmem:[#allocation36_spill] sm:$0xff] %v7294_v36  ;;  %v1056_v14 = vpop.f32.mrf.mxu0  ;;  %v1385_v56 = vpop.f32.mrf.mxu1 }
 0x134   : > { %5910 = vmatmul.msk.bf16.gmra.mxu2 %vm797_vm1, %v6232_v57  ;;  %5974 = vmatmul.msk.bf16.gmra.mxu3 %vm797_vm1, %v6232_v57  ;;  %v7309_v39 = vadd.f32 %v1056_v14, %v6885_v43  ;;  %v7312_v24 = vadd.f32 %v1385_v56, %v6887_v44 }
 0x136   : > { %5526 = vmatmul.msk.bf16.gmra.mxu0 %vm797_vm1, %v6168_v25  ;;  %5590 = vmatmul.msk.bf16.gmra.mxu1 %vm797_vm1, %v6168_v25  ;;  %10912 = vst [vmem:[#allocation37_spill] sm:$0xff] %v7309_v39  ;;  %v6233_v25 = vld [vmem:[%s10442_s1 + $0x98] sm:$0xff] }
 0x137   : > { %v2500_v38 = vpop.f32.mrf.mxu2  ;;  %v2829_v59 = vpop.f32.mrf.mxu3  ;;  %10913 = vst [vmem:[#allocation38_spill] sm:$0xff] %v7312_v24  ;;  %v6169_v39 = vld [vmem:[%s6793_s25 + $0x98] sm:$0xff] }
 0x138   : > { %v7325_v14 = vadd.f32 %v2500_v38, %v6904_v54  ;;  %v7328_v56 = vadd.f32 %v2829_v59, %v6906_v55 }
 0x13a   : > { %10916 = vst [vmem:[#allocation41_spill] sm:$0xff] %v7325_v14 }
 0x13b   : > { %v1058_v48 = vpop.f32.mrf.mxu0  ;;  %v1387_v3 = vpop.f32.mrf.mxu1  ;;  %10917 = vst [vmem:[#allocation42_spill] sm:$0xff] %v7328_v56 }
 0x13c   : > { %v7315_v2 = vadd.f32 %v1058_v48, %v6885_v43  ;;  %v7318_v57 = vadd.f32 %v1387_v3, %v6887_v44 }
 0x13e   : > { %10914 = vst [vmem:[#allocation39_spill] sm:$0xff] %v7315_v2 }
 0x13f   : > { %10915 = vst [vmem:[#allocation40_spill] sm:$0xff] %v7318_v57  ;;  %v2502_v17 = vpop.f32.mrf.mxu2  ;;  %v2831_v15 = vpop.f32.mrf.mxu3 }
 0x140   : > { %v7331_v48 = vadd.f32 %v2502_v17, %v6904_v54  ;;  %v7334_v3 = vadd.f32 %v2831_v15, %v6906_v55 }
 0x142   : > { %10918 = vst [vmem:[#allocation43_spill] sm:$0xff] %v7331_v48 }
 0x143   : > { %10919 = vst [vmem:[#allocation44_spill] sm:$0xff] %v7334_v3  ;;  %v1061_v24 = vpop.f32.mrf.mxu0  ;;  %v1390_v59 = vpop.f32.mrf.mxu1 }
 0x144   : > { %5911 = vmatmul.msk.bf16.gmra.mxu2 %vm797_vm1, %v6233_v25  ;;  %5975 = vmatmul.msk.bf16.gmra.mxu3 %vm797_vm1, %v6233_v25  ;;  %v7349_v36 = vadd.f32 %v1061_v24, %v6885_v43  ;;  %v7352_v38 = vadd.f32 %v1390_v59, %v6887_v44 }
 0x146   : > { %5527 = vmatmul.msk.bf16.gmra.mxu0 %vm797_vm1, %v6169_v39  ;;  %5591 = vmatmul.msk.bf16.gmra.mxu1 %vm797_vm1, %v6169_v39  ;;  %10920 = vst [vmem:[#allocation45_spill] sm:$0xff] %v7349_v36  ;;  %v6234_v39 = vld [vmem:[%s10442_s1 + $0xa0] sm:$0xff] }
 0x147   : > { %v2505_v17 = vpop.f32.mrf.mxu2  ;;  %v2834_v15 = vpop.f32.mrf.mxu3  ;;  %10921 = vst [vmem:[#allocation46_spill] sm:$0xff] %v7352_v38  ;;  %v6170_v36 = vld [vmem:[%s6793_s25 + $0xa0] sm:$0xff] }
 0x148   : > { %v7365_v24 = vadd.f32 %v2505_v17, %v6904_v54  ;;  %v7368_v59 = vadd.f32 %v2834_v15, %v6906_v55 }
 0x14a   : > { %10924 = vst [vmem:[#allocation49_spill] sm:$0xff] %v7365_v24 }
 0x14b   : > { %v1063_v57 = vpop.f32.mrf.mxu0  ;;  %v1392_v2 = vpop.f32.mrf.mxu1  ;;  %10925 = vst [vmem:[#allocation50_spill] sm:$0xff] %v7368_v59 }
 0x14c   : > { %v7355_v56 = vadd.f32 %v1063_v57, %v6885_v43  ;;  %v7358_v25 = vadd.f32 %v1392_v2, %v6887_v44 }
 0x14e   : > { %10922 = vst [vmem:[#allocation47_spill] sm:$0xff] %v7355_v56 }
 0x14f   : > { %10923 = vst [vmem:[#allocation48_spill] sm:$0xff] %v7358_v25  ;;  %v2507_v14 = vpop.f32.mrf.mxu2  ;;  %v2836_v48 = vpop.f32.mrf.mxu3 }
 0x150   : > { %v7371_v57 = vadd.f32 %v2507_v14, %v6904_v54  ;;  %v7374_v2 = vadd.f32 %v2836_v48, %v6906_v55 }
 0x152   : > { %10926 = vst [vmem:[#allocation51_spill] sm:$0xff] %v7371_v57 }
 0x153   : > { %10927 = vst [vmem:[#allocation52_spill] sm:$0xff] %v7374_v2  ;;  %v1066_v38 = vpop.f32.mrf.mxu0  ;;  %v1395_v15 = vpop.f32.mrf.mxu1 }
 0x154   : > { %5912 = vmatmul.msk.bf16.gmra.mxu2 %vm797_vm1, %v6234_v39  ;;  %5976 = vmatmul.msk.bf16.gmra.mxu3 %vm797_vm1, %v6234_v39  ;;  %v7389_v3 = vadd.f32 %v1066_v38, %v6885_v43  ;;  %v7392_v17 = vadd.f32 %v1395_v15, %v6887_v44 }
 0x156   : > { %5528 = vmatmul.msk.bf16.gmra.mxu0 %vm797_vm1, %v6170_v36  ;;  %5592 = vmatmul.msk.bf16.gmra.mxu1 %vm797_vm1, %v6170_v36  ;;  %10928 = vst [vmem:[#allocation53_spill] sm:$0xff] %v7389_v3  ;;  %v6235_v36 = vld [vmem:[%s10442_s1 + $0xa8] sm:$0xff] }
 0x157   : > { %v2510_v14 = vpop.f32.mrf.mxu2  ;;  %v2839_v48 = vpop.f32.mrf.mxu3  ;;  %10929 = vst [vmem:[#allocation54_spill] sm:$0xff] %v7392_v17  ;;  %v6171_v3 = vld [vmem:[%s6793_s25 + $0xa8] sm:$0xff] }
 0x158   : > { %v7405_v38 = vadd.f32 %v2510_v14, %v6904_v54  ;;  %v7408_v15 = vadd.f32 %v2839_v48, %v6906_v55 }
 0x15a   : > { %10932 = vst [vmem:[#allocation57_spill] sm:$0xff] %v7405_v38 }
 0x15b   : > { %v1068_v25 = vpop.f32.mrf.mxu0  ;;  %v1397_v56 = vpop.f32.mrf.mxu1  ;;  %10933 = vst [vmem:[#allocation58_spill] sm:$0xff] %v7408_v15 }
 0x15c   : > { %v7395_v59 = vadd.f32 %v1068_v25, %v6885_v43  ;;  %v7398_v39 = vadd.f32 %v1397_v56, %v6887_v44 }
 0x15e   : > { %10930 = vst [vmem:[#allocation55_spill] sm:$0xff] %v7395_v59 }
 0x15f   : > { %10931 = vst [vmem:[#allocation56_spill] sm:$0xff] %v7398_v39  ;;  %v2512_v24 = vpop.f32.mrf.mxu2  ;;  %v2841_v57 = vpop.f32.mrf.mxu3 }
 0x160   : > { %v7411_v25 = vadd.f32 %v2512_v24, %v6904_v54  ;;  %v7414_v56 = vadd.f32 %v2841_v57, %v6906_v55 }
 0x162   : > { %10934 = vst [vmem:[#allocation59_spill] sm:$0xff] %v7411_v25 }
 0x163   : > { %10935 = vst [vmem:[#allocation60_spill] sm:$0xff] %v7414_v56  ;;  %v1071_v17 = vpop.f32.mrf.mxu0  ;;  %v1400_v48 = vpop.f32.mrf.mxu1 }
 0x164   : > { %5913 = vmatmul.msk.bf16.gmra.mxu2 %vm797_vm1, %v6235_v36  ;;  %5977 = vmatmul.msk.bf16.gmra.mxu3 %vm797_vm1, %v6235_v36  ;;  %v7429_v2 = vadd.f32 %v1071_v17, %v6885_v43  ;;  %v7432_v14 = vadd.f32 %v1400_v48, %v6887_v44 }
 0x166   : > { %5529 = vmatmul.msk.bf16.gmra.mxu0 %vm797_vm1, %v6171_v3  ;;  %5593 = vmatmul.msk.bf16.gmra.mxu1 %vm797_vm1, %v6171_v3  ;;  %10936 = vst [vmem:[#allocation61_spill] sm:$0xff] %v7429_v2  ;;  %v6236_v3 = vld [vmem:[%s10442_s1 + $0xb0] sm:$0xff] }
 0x167   : > { %v2515_v24 = vpop.f32.mrf.mxu2  ;;  %v2844_v57 = vpop.f32.mrf.mxu3  ;;  %10937 = vst [vmem:[#allocation62_spill] sm:$0xff] %v7432_v14  ;;  %v6172_v2 = vld [vmem:[%s6793_s25 + $0xb0] sm:$0xff] }
 0x168   : > { %v7445_v17 = vadd.f32 %v2515_v24, %v6904_v54  ;;  %v7448_v48 = vadd.f32 %v2844_v57, %v6906_v55 }
 0x16a   : > { %10940 = vst [vmem:[#allocation65_spill] sm:$0xff] %v7445_v17 }
 0x16b   : > { %v1073_v39 = vpop.f32.mrf.mxu0  ;;  %v1402_v59 = vpop.f32.mrf.mxu1  ;;  %10941 = vst [vmem:[#allocation66_spill] sm:$0xff] %v7448_v48  ;;  %v6306_v48 = vld [vmem:[%s10448_s7 + $0x60] sm:$0xff] }
 0x16c   : > { %v7435_v15 = vadd.f32 %v1073_v39, %v6885_v43  ;;  %v7438_v36 = vadd.f32 %v1402_v59, %v6887_v44  ;;  %3719 = vmatpush.bf16.msrb.mxu1 %v6306_v48 }
 0x16e   : > { %10938 = vst [vmem:[#allocation63_spill] sm:$0xff] %v7435_v15 }
 0x16f   : > { %10939 = vst [vmem:[#allocation64_spill] sm:$0xff] %v7438_v36  ;;  %v2517_v38 = vpop.f32.mrf.mxu2  ;;  %v2846_v25 = vpop.f32.mrf.mxu3  ;;  %v6237_v36 = vld [vmem:[%s10442_s1 + $0xb8] sm:$0xff] }
 0x170   : > { %v7451_v39 = vadd.f32 %v2517_v38, %v6904_v54  ;;  %v7454_v59 = vadd.f32 %v2846_v25, %v6906_v55  ;;  %v6282_v38 = vld [vmem:[%s10447_s6 + $0x20] sm:$0xff] }
 0x171   : > { %v6290_v25 = vld [vmem:[%s10447_s6 + $0x60] sm:$0xff]  ;;  %4144 = vmatpush.bf16.msrb.mxu2 %v6282_v38 }
 0x172   : > { %10942 = vst [vmem:[#allocation67_spill] sm:$0xff] %v7451_v39  ;;  %4473 = vmatpush.bf16.msrb.mxu3 %v6290_v25 }
 0x173   : > { %10943 = vst [vmem:[#allocation68_spill] sm:$0xff] %v7454_v59  ;;  %v1076_v14 = vpop.f32.mrf.mxu0  ;;  %v1405_v57 = vpop.f32.mrf.mxu1 }
 0x174   : > { %5914 = vmatmul.msk.bf16.gmra.mxu2 %vm797_vm1, %v6236_v3  ;;  %5978 = vmatmul.msk.bf16.gmra.mxu3 %vm797_vm1, %v6236_v3  ;;  %v6298_v3 = vld [vmem:[%s10448_s7 + $0x20] sm:$0xff]  ;;  %v7484_v38 = vadd.f32 %v1405_v57, %v6887_v44 }
 0x175   : > { %3390 = vmatpush.bf16.msrb.mxu0 %v6298_v3 }
 0x176   : > { %5530 = vmatmul.msk.bf16.gmra.mxu0 %vm797_vm1, %v6172_v2  ;;  %5594 = vmatmul.msk.bf16.gmra.mxu1 %vm797_vm1, %v6172_v2  ;;  %v7481_v2 = vadd.f32 %v1076_v14, %v6885_v43  ;;  %10945 = vst [vmem:[#allocation70_spill] sm:$0xff] %v7484_v38 }
 0x177   : > { %v2520_v24 = vpop.f32.mrf.mxu2  ;;  %v2849_v56 = vpop.f32.mrf.mxu3 }
 0x178   : > { %10944 = vst [vmem:[#allocation69_spill] sm:$0xff] %v7481_v2  ;;  %v7497_v14 = vadd.f32 %v2520_v24, %v6904_v54  ;;  %v7500_v57 = vadd.f32 %v2849_v56, %v6906_v55  ;;  %v6173_v2 = vld [vmem:[%s6793_s25 + $0xb8] sm:$0xff] }
 0x17a   : > { %10948 = vst [vmem:[#allocation73_spill] sm:$0xff] %v7497_v14 }
 0x17b   : > { %v1078_v59 = vpop.f32.mrf.mxu0  ;;  %v1407_v17 = vpop.f32.mrf.mxu1  ;;  %10949 = vst [vmem:[#allocation74_spill] sm:$0xff] %v7500_v57 }
 0x17c   : > { %v7487_v25 = vadd.f32 %v1078_v59, %v6885_v43  ;;  %v7490_v39 = vadd.f32 %v1407_v17, %v6887_v44 }
 0x17e   : > { %10946 = vst [vmem:[#allocation71_spill] sm:$0xff] %v7487_v25 }
 0x17f   : > { %10947 = vst [vmem:[#allocation72_spill] sm:$0xff] %v7490_v39  ;;  %v2522_v3 = vpop.f32.mrf.mxu2  ;;  %v2851_v48 = vpop.f32.mrf.mxu3 }
 0x180   : > { %v7503_v59 = vadd.f32 %v2522_v3, %v6904_v54  ;;  %v7506_v17 = vadd.f32 %v2851_v48, %v6906_v55 }
 0x182   : > { %10950 = vst [vmem:[#allocation75_spill] sm:$0xff] %v7503_v59 }
 0x183   : > { %10951 = vst [vmem:[#allocation76_spill] sm:$0xff] %v7506_v17  ;;  %v1081_v38 = vpop.f32.mrf.mxu0  ;;  %v1410_v56 = vpop.f32.mrf.mxu1 }
 0x184   : > { %5915 = vmatmul.msk.bf16.gmra.mxu2 %vm797_vm1, %v6237_v36  ;;  %5979 = vmatmul.msk.bf16.gmra.mxu3 %vm797_vm1, %v6237_v36  ;;  %v7521_v15 = vadd.f32 %v1081_v38, %v6885_v43  ;;  %v7524_v24 = vadd.f32 %v1410_v56, %v6887_v44 }
 0x186   : > { %5531 = vmatmul.msk.bf16.gmra.mxu0 %vm797_vm1, %v6173_v2  ;;  %5595 = vmatmul.msk.bf16.gmra.mxu1 %vm797_vm1, %v6173_v2  ;;  %10952 = vst [vmem:[#allocation77_spill] sm:$0xff] %v7521_v15  ;;  %v6238_v2 = vld [vmem:[%s10442_s1 + $0xc0] sm:$0xff] }
 0x187   : > { %v2525_v3 = vpop.f32.mrf.mxu2  ;;  %v2854_v48 = vpop.f32.mrf.mxu3  ;;  %10953 = vst [vmem:[#allocation78_spill] sm:$0xff] %v7524_v24  ;;  %v6174_v15 = vld [vmem:[%s6793_s25 + $0xc0] sm:$0xff] }
 0x188   : > { %v7537_v38 = vadd.f32 %v2525_v3, %v6904_v54  ;;  %v7540_v56 = vadd.f32 %v2854_v48, %v6906_v55 }
 0x18a   : > { %10956 = vst [vmem:[#allocation81_spill] sm:$0xff] %v7537_v38 }
 0x18b   : > { %v1083_v39 = vpop.f32.mrf.mxu0  ;;  %v1412_v25 = vpop.f32.mrf.mxu1  ;;  %10957 = vst [vmem:[#allocation82_spill] sm:$0xff] %v7540_v56 }
 0x18c   : > { %v7527_v57 = vadd.f32 %v1083_v39, %v6885_v43  ;;  %v7530_v36 = vadd.f32 %v1412_v25, %v6887_v44 }
 0x18e   : > { %10954 = vst [vmem:[#allocation79_spill] sm:$0xff] %v7527_v57 }
 0x18f   : > { %10955 = vst [vmem:[#allocation80_spill] sm:$0xff] %v7530_v36  ;;  %v2527_v14 = vpop.f32.mrf.mxu2  ;;  %v2856_v59 = vpop.f32.mrf.mxu3 }
 0x190   : > { %v7543_v39 = vadd.f32 %v2527_v14, %v6904_v54  ;;  %v7546_v25 = vadd.f32 %v2856_v59, %v6906_v55 }
 0x192   : > { %10958 = vst [vmem:[#allocation83_spill] sm:$0xff] %v7543_v39 }
 0x193   : > { %10959 = vst [vmem:[#allocation84_spill] sm:$0xff] %v7546_v25  ;;  %v1086_v24 = vpop.f32.mrf.mxu0  ;;  %v1415_v48 = vpop.f32.mrf.mxu1 }
 0x194   : > { %5916 = vmatmul.msk.bf16.gmra.mxu2 %vm797_vm1, %v6238_v2  ;;  %5980 = vmatmul.msk.bf16.gmra.mxu3 %vm797_vm1, %v6238_v2  ;;  %v7561_v17 = vadd.f32 %v1086_v24, %v6885_v43  ;;  %v7564_v3 = vadd.f32 %v1415_v48, %v6887_v44 }
 0x196   : > { %5532 = vmatmul.msk.bf16.gmra.mxu0 %vm797_vm1, %v6174_v15  ;;  %5596 = vmatmul.msk.bf16.gmra.mxu1 %vm797_vm1, %v6174_v15  ;;  %10960 = vst [vmem:[#allocation85_spill] sm:$0xff] %v7561_v17  ;;  %v6239_v15 = vld [vmem:[%s10442_s1 + $0xc8] sm:$0xff] }
 0x197   : > { %v2530_v14 = vpop.f32.mrf.mxu2  ;;  %v2859_v59 = vpop.f32.mrf.mxu3  ;;  %10961 = vst [vmem:[#allocation86_spill] sm:$0xff] %v7564_v3  ;;  %v6175_v17 = vld [vmem:[%s6793_s25 + $0xc8] sm:$0xff] }
 0x198   : > { %v7577_v24 = vadd.f32 %v2530_v14, %v6904_v54  ;;  %v7580_v48 = vadd.f32 %v2859_v59, %v6906_v55 }
 0x19a   : > { %10964 = vst [vmem:[#allocation89_spill] sm:$0xff] %v7577_v24 }
 0x19b   : > { %v1088_v36 = vpop.f32.mrf.mxu0  ;;  %v1417_v57 = vpop.f32.mrf.mxu1  ;;  %10965 = vst [vmem:[#allocation90_spill] sm:$0xff] %v7580_v48 }
 0x19c   : > { %v7567_v56 = vadd.f32 %v1088_v36, %v6885_v43  ;;  %v7570_v2 = vadd.f32 %v1417_v57, %v6887_v44 }
 0x19e   : > { %10962 = vst [vmem:[#allocation87_spill] sm:$0xff] %v7567_v56 }
 0x19f   : > { %10963 = vst [vmem:[#allocation88_spill] sm:$0xff] %v7570_v2  ;;  %v2532_v38 = vpop.f32.mrf.mxu2  ;;  %v2861_v39 = vpop.f32.mrf.mxu3 }
 0x1a0   : > { %v7583_v36 = vadd.f32 %v2532_v38, %v6904_v54  ;;  %v7586_v57 = vadd.f32 %v2861_v39, %v6906_v55 }
 0x1a2   : > { %10966 = vst [vmem:[#allocation91_spill] sm:$0xff] %v7583_v36 }
 0x1a3   : > { %10967 = vst [vmem:[#allocation92_spill] sm:$0xff] %v7586_v57  ;;  %v1091_v3 = vpop.f32.mrf.mxu0  ;;  %v1420_v59 = vpop.f32.mrf.mxu1 }
 0x1a4   : > { %5917 = vmatmul.msk.bf16.gmra.mxu2 %vm797_vm1, %v6239_v15  ;;  %5981 = vmatmul.msk.bf16.gmra.mxu3 %vm797_vm1, %v6239_v15  ;;  %v7601_v25 = vadd.f32 %v1091_v3, %v6885_v43  ;;  %v7604_v14 = vadd.f32 %v1420_v59, %v6887_v44 }
 0x1a6   : > { %5533 = vmatmul.msk.bf16.gmra.mxu0 %vm797_vm1, %v6175_v17  ;;  %5597 = vmatmul.msk.bf16.gmra.mxu1 %vm797_vm1, %v6175_v17  ;;  %10968 = vst [vmem:[#allocation93_spill] sm:$0xff] %v7601_v25  ;;  %v6240_v17 = vld [vmem:[%s10442_s1 + $0xd0] sm:$0xff] }
 0x1a7   : > { %v2535_v38 = vpop.f32.mrf.mxu2  ;;  %v2864_v39 = vpop.f32.mrf.mxu3  ;;  %10969 = vst [vmem:[#allocation94_spill] sm:$0xff] %v7604_v14  ;;  %v6176_v25 = vld [vmem:[%s6793_s25 + $0xd0] sm:$0xff] }
 0x1a8   : > { %v7617_v3 = vadd.f32 %v2535_v38, %v6904_v54  ;;  %v7620_v59 = vadd.f32 %v2864_v39, %v6906_v55 }
 0x1aa   : > { %10972 = vst [vmem:[#allocation97_spill] sm:$0xff] %v7617_v3 }
 0x1ab   : > { %v1093_v2 = vpop.f32.mrf.mxu0  ;;  %v1422_v56 = vpop.f32.mrf.mxu1  ;;  %10973 = vst [vmem:[#allocation98_spill] sm:$0xff] %v7620_v59 }
 0x1ac   : > { %v7607_v48 = vadd.f32 %v1093_v2, %v6885_v43  ;;  %v7610_v15 = vadd.f32 %v1422_v56, %v6887_v44 }
 0x1ae   : > { %10970 = vst [vmem:[#allocation95_spill] sm:$0xff] %v7607_v48 }
 0x1af   : > { %10971 = vst [vmem:[#allocation96_spill] sm:$0xff] %v7610_v15  ;;  %v2537_v24 = vpop.f32.mrf.mxu2  ;;  %v2866_v36 = vpop.f32.mrf.mxu3 }
 0x1b0   : > { %v7623_v2 = vadd.f32 %v2537_v24, %v6904_v54  ;;  %v7626_v56 = vadd.f32 %v2866_v36, %v6906_v55 }
 0x1b2   : > { %10974 = vst [vmem:[#allocation99_spill] sm:$0xff] %v7623_v2 }
 0x1b3   : > { %10975 = vst [vmem:[#allocation100_spill] sm:$0xff] %v7626_v56  ;;  %v1096_v14 = vpop.f32.mrf.mxu0  ;;  %v1425_v39 = vpop.f32.mrf.mxu1 }
 0x1b4   : > { %5918 = vmatmul.msk.bf16.gmra.mxu2 %vm797_vm1, %v6240_v17  ;;  %5982 = vmatmul.msk.bf16.gmra.mxu3 %vm797_vm1, %v6240_v17  ;;  %v7641_v57 = vadd.f32 %v1096_v14, %v6885_v43  ;;  %v7644_v38 = vadd.f32 %v1425_v39, %v6887_v44 }
 0x1b6   : > { %5534 = vmatmul.msk.bf16.gmra.mxu0 %vm797_vm1, %v6176_v25  ;;  %5598 = vmatmul.msk.bf16.gmra.mxu1 %vm797_vm1, %v6176_v25  ;;  %10976 = vst [vmem:[#allocation101_spill] sm:$0xff] %v7641_v57  ;;  %v6241_v25 = vld [vmem:[%s10442_s1 + $0xd8] sm:$0xff] }
 0x1b7   : > { %v2540_v24 = vpop.f32.mrf.mxu2  ;;  %v2869_v36 = vpop.f32.mrf.mxu3  ;;  %10977 = vst [vmem:[#allocation102_spill] sm:$0xff] %v7644_v38  ;;  %v6177_v57 = vld [vmem:[%s6793_s25 + $0xd8] sm:$0xff] }
 0x1b8   : > { %v7657_v14 = vadd.f32 %v2540_v24, %v6904_v54  ;;  %v7660_v39 = vadd.f32 %v2869_v36, %v6906_v55 }
 0x1ba   : > { %10980 = vst [vmem:[#allocation105_spill] sm:$0xff] %v7657_v14 }
 0x1bb   : > { %v1098_v15 = vpop.f32.mrf.mxu0  ;;  %v1427_v48 = vpop.f32.mrf.mxu1  ;;  %10981 = vst [vmem:[#allocation106_spill] sm:$0xff] %v7660_v39 }
 0x1bc   : > { %v7647_v59 = vadd.f32 %v1098_v15, %v6885_v43  ;;  %v7650_v17 = vadd.f32 %v1427_v48, %v6887_v44 }
 0x1be   : > { %10978 = vst [vmem:[#allocation103_spill] sm:$0xff] %v7647_v59 }
 0x1bf   : > { %10979 = vst [vmem:[#allocation104_spill] sm:$0xff] %v7650_v17  ;;  %v2542_v3 = vpop.f32.mrf.mxu2  ;;  %v2871_v2 = vpop.f32.mrf.mxu3 }
 0x1c0   : > { %v7663_v15 = vadd.f32 %v2542_v3, %v6904_v54  ;;  %v7666_v48 = vadd.f32 %v2871_v2, %v6906_v55 }
 0x1c2   : > { %10982 = vst [vmem:[#allocation107_spill] sm:$0xff] %v7663_v15 }
 0x1c3   : > { %10983 = vst [vmem:[#allocation108_spill] sm:$0xff] %v7666_v48  ;;  %v1101_v38 = vpop.f32.mrf.mxu0  ;;  %v1430_v36 = vpop.f32.mrf.mxu1 }
 0x1c4   : > { %5919 = vmatmul.msk.bf16.gmra.mxu2 %vm797_vm1, %v6241_v25  ;;  %5983 = vmatmul.msk.bf16.gmra.mxu3 %vm797_vm1, %v6241_v25  ;;  %v7681_v56 = vadd.f32 %v1101_v38, %v6885_v43  ;;  %v7684_v24 = vadd.f32 %v1430_v36, %v6887_v44 }
 0x1c6   : > { %5535 = vmatmul.msk.bf16.gmra.mxu0 %vm797_vm1, %v6177_v57  ;;  %5599 = vmatmul.msk.bf16.gmra.mxu1 %vm797_vm1, %v6177_v57  ;;  %10984 = vst [vmem:[#allocation109_spill] sm:$0xff] %v7681_v56  ;;  %v6242_v57 = vld [vmem:[%s10442_s1 + $0xe0] sm:$0xff] }
 0x1c7   : > { %v2545_v3 = vpop.f32.mrf.mxu2  ;;  %v2874_v2 = vpop.f32.mrf.mxu3  ;;  %10985 = vst [vmem:[#allocation110_spill] sm:$0xff] %v7684_v24  ;;  %v6178_v56 = vld [vmem:[%s6793_s25 + $0xe0] sm:$0xff] }
 0x1c8   : > { %v7697_v38 = vadd.f32 %v2545_v3, %v6904_v54  ;;  %v7700_v36 = vadd.f32 %v2874_v2, %v6906_v55 }
 0x1ca   : > { %10988 = vst [vmem:[#allocation113_spill] sm:$0xff] %v7697_v38 }
 0x1cb   : > { %v1103_v17 = vpop.f32.mrf.mxu0  ;;  %v1432_v59 = vpop.f32.mrf.mxu1  ;;  %10989 = vst [vmem:[#allocation114_spill] sm:$0xff] %v7700_v36 }
 0x1cc   : > { %v7687_v39 = vadd.f32 %v1103_v17, %v6885_v43  ;;  %v7690_v25 = vadd.f32 %v1432_v59, %v6887_v44 }
 0x1ce   : > { %10986 = vst [vmem:[#allocation111_spill] sm:$0xff] %v7687_v39 }
 0x1cf   : > { %10987 = vst [vmem:[#allocation112_spill] sm:$0xff] %v7690_v25  ;;  %v2547_v14 = vpop.f32.mrf.mxu2  ;;  %v2876_v15 = vpop.f32.mrf.mxu3 }
 0x1d0   : > { %v7703_v17 = vadd.f32 %v2547_v14, %v6904_v54  ;;  %v7706_v59 = vadd.f32 %v2876_v15, %v6906_v55 }
 0x1d2   : > { %10990 = vst [vmem:[#allocation115_spill] sm:$0xff] %v7703_v17 }
 0x1d3   : > { %10991 = vst [vmem:[#allocation116_spill] sm:$0xff] %v7706_v59  ;;  %v1106_v24 = vpop.f32.mrf.mxu0  ;;  %v1435_v2 = vpop.f32.mrf.mxu1 }
 0x1d4   : > { %5920 = vmatmul.msk.bf16.gmra.mxu2 %vm797_vm1, %v6242_v57  ;;  %5984 = vmatmul.msk.bf16.gmra.mxu3 %vm797_vm1, %v6242_v57  ;;  %v7721_v48 = vadd.f32 %v1106_v24, %v6885_v43  ;;  %v7724_v3 = vadd.f32 %v1435_v2, %v6887_v44 }
 0x1d6   : > { %5536 = vmatmul.msk.bf16.gmra.mxu0 %vm797_vm1, %v6178_v56  ;;  %5600 = vmatmul.msk.bf16.gmra.mxu1 %vm797_vm1, %v6178_v56  ;;  %10992 = vst [vmem:[#allocation117_spill] sm:$0xff] %v7721_v48  ;;  %v6243_v56 = vld [vmem:[%s10442_s1 + $0xe8] sm:$0xff] }
 0x1d7   : > { %v2550_v14 = vpop.f32.mrf.mxu2  ;;  %v2879_v15 = vpop.f32.mrf.mxu3  ;;  %10993 = vst [vmem:[#allocation118_spill] sm:$0xff] %v7724_v3  ;;  %v6179_v48 = vld [vmem:[%s6793_s25 + $0xe8] sm:$0xff] }
 0x1d8   : > { %v7737_v24 = vadd.f32 %v2550_v14, %v6904_v54  ;;  %v7740_v2 = vadd.f32 %v2879_v15, %v6906_v55 }
 0x1da   : > { %10996 = vst [vmem:[#allocation121_spill] sm:$0xff] %v7737_v24 }
 0x1db   : > { %v1108_v25 = vpop.f32.mrf.mxu0  ;;  %v1437_v39 = vpop.f32.mrf.mxu1  ;;  %10997 = vst [vmem:[#allocation122_spill] sm:$0xff] %v7740_v2 }
 0x1dc   : > { %v7727_v36 = vadd.f32 %v1108_v25, %v6885_v43  ;;  %v7730_v57 = vadd.f32 %v1437_v39, %v6887_v44 }
 0x1de   : > { %10994 = vst [vmem:[#allocation119_spill] sm:$0xff] %v7727_v36 }
 0x1df   : > { %10995 = vst [vmem:[#allocation120_spill] sm:$0xff] %v7730_v57  ;;  %v2552_v38 = vpop.f32.mrf.mxu2  ;;  %v2881_v17 = vpop.f32.mrf.mxu3 }
 0x1e0   : > { %v7743_v25 = vadd.f32 %v2552_v38, %v6904_v54  ;;  %v7746_v39 = vadd.f32 %v2881_v17, %v6906_v55 }
 0x1e2   : > { %10998 = vst [vmem:[#allocation123_spill] sm:$0xff] %v7743_v25 }
 0x1e3   : > { %10999 = vst [vmem:[#allocation124_spill] sm:$0xff] %v7746_v39  ;;  %v1111_v3 = vpop.f32.mrf.mxu0  ;;  %v1440_v15 = vpop.f32.mrf.mxu1 }
 0x1e4   : > { %5921 = vmatmul.msk.bf16.gmra.mxu2 %vm797_vm1, %v6243_v56  ;;  %5985 = vmatmul.msk.bf16.gmra.mxu3 %vm797_vm1, %v6243_v56  ;;  %v7761_v59 = vadd.f32 %v1111_v3, %v6885_v43  ;;  %v7764_v14 = vadd.f32 %v1440_v15, %v6887_v44 }
 0x1e6   : > { %5537 = vmatmul.msk.bf16.gmra.mxu0 %vm797_vm1, %v6179_v48  ;;  %5601 = vmatmul.msk.bf16.gmra.mxu1 %vm797_vm1, %v6179_v48  ;;  %11000 = vst [vmem:[#allocation125_spill] sm:$0xff] %v7761_v59  ;;  %v6244_v48 = vld [vmem:[%s10442_s1 + $0xf0] sm:$0xff] }
 0x1e7   : > { %v2555_v38 = vpop.f32.mrf.mxu2  ;;  %v2884_v17 = vpop.f32.mrf.mxu3  ;;  %11001 = vst [vmem:[#allocation126_spill] sm:$0xff] %v7764_v14  ;;  %v6180_v59 = vld [vmem:[%s6793_s25 + $0xf0] sm:$0xff] }
 0x1e8   : > { %v7777_v3 = vadd.f32 %v2555_v38, %v6904_v54  ;;  %v7780_v15 = vadd.f32 %v2884_v17, %v6906_v55 }
 0x1ea   : > { %11004 = vst [vmem:[#allocation129_spill] sm:$0xff] %v7777_v3 }
 0x1eb   : > { %v1113_v57 = vpop.f32.mrf.mxu0  ;;  %v1442_v36 = vpop.f32.mrf.mxu1  ;;  %11005 = vst [vmem:[#allocation130_spill] sm:$0xff] %v7780_v15  ;;  %v6305_v15 = vld [vmem:[%s10448_s7 + $0x58] sm:$0xff] }
 0x1ec   : > { %v7767_v2 = vadd.f32 %v1113_v57, %v6885_v43  ;;  %v7770_v56 = vadd.f32 %v1442_v36, %v6887_v44  ;;  %3720 = vmatpush.bf16.msrb.mxu1 %v6305_v15 }
 0x1ee   : > { %11002 = vst [vmem:[#allocation127_spill] sm:$0xff] %v7767_v2 }
 0x1ef   : > { %11003 = vst [vmem:[#allocation128_spill] sm:$0xff] %v7770_v56  ;;  %v2557_v24 = vpop.f32.mrf.mxu2  ;;  %v2886_v25 = vpop.f32.mrf.mxu3  ;;  %v6245_v56 = vld [vmem:[%s10442_s1 + $0xf8] sm:$0xff] }
 0x1f0   : > { %v7783_v57 = vadd.f32 %v2557_v24, %v6904_v54  ;;  %v7786_v36 = vadd.f32 %v2886_v25, %v6906_v55  ;;  %v6281_v24 = vld [vmem:[%s10447_s6 + $0x18] sm:$0xff] }
 0x1f1   : > { %v6289_v25 = vld [vmem:[%s10447_s6 + $0x58] sm:$0xff]  ;;  %4145 = vmatpush.bf16.msrb.mxu2 %v6281_v24 }
 0x1f2   : > { %11006 = vst [vmem:[#allocation131_spill] sm:$0xff] %v7783_v57  ;;  %4474 = vmatpush.bf16.msrb.mxu3 %v6289_v25 }
 0x1f3   : > { %11007 = vst [vmem:[#allocation132_spill] sm:$0xff] %v7786_v36  ;;  %v1116_v14 = vpop.f32.mrf.mxu0  ;;  %v1445_v17 = vpop.f32.mrf.mxu1 }
 0x1f4   : > { %5922 = vmatmul.msk.bf16.gmra.mxu2 %vm797_vm1, %v6244_v48  ;;  %5986 = vmatmul.msk.bf16.gmra.mxu3 %vm797_vm1, %v6244_v48  ;;  %v6297_v48 = vld [vmem:[%s10448_s7 + $0x18] sm:$0xff]  ;;  %v7816_v24 = vadd.f32 %v1445_v17, %v6887_v44 }
 0x1f5   : > { %3391 = vmatpush.bf16.msrb.mxu0 %v6297_v48 }
 0x1f6   : > { %5538 = vmatmul.msk.bf16.gmra.mxu0 %vm797_vm1, %v6180_v59  ;;  %5602 = vmatmul.msk.bf16.gmra.mxu1 %vm797_vm1, %v6180_v59  ;;  %v7813_v59 = vadd.f32 %v1116_v14, %v6885_v43  ;;  %11009 = vst [vmem:[#allocation134_spill] sm:$0xff] %v7816_v24 }
 0x1f7   : > { %v2560_v38 = vpop.f32.mrf.mxu2  ;;  %v2889_v39 = vpop.f32.mrf.mxu3 }
 0x1f8   : > { %11008 = vst [vmem:[#allocation133_spill] sm:$0xff] %v7813_v59  ;;  %v7829_v14 = vadd.f32 %v2560_v38, %v6904_v54  ;;  %v7832_v17 = vadd.f32 %v2889_v39, %v6906_v55  ;;  %v6181_v59 = vld [vmem:[%s6793_s25 + $0xf8] sm:$0xff] }
 0x1fa   : > { %11012 = vst [vmem:[#allocation137_spill] sm:$0xff] %v7829_v14 }
 0x1fb   : > { %v1118_v36 = vpop.f32.mrf.mxu0  ;;  %v1447_v3 = vpop.f32.mrf.mxu1  ;;  %11013 = vst [vmem:[#allocation138_spill] sm:$0xff] %v7832_v17 }
 0x1fc   : > { %v7819_v25 = vadd.f32 %v1118_v36, %v6885_v43  ;;  %v7822_v57 = vadd.f32 %v1447_v3, %v6887_v44 }
 0x1fe   : > { %11010 = vst [vmem:[#allocation135_spill] sm:$0xff] %v7819_v25 }
 0x1ff   : > { %11011 = vst [vmem:[#allocation136_spill] sm:$0xff] %v7822_v57  ;;  %v2562_v48 = vpop.f32.mrf.mxu2  ;;  %v2891_v15 = vpop.f32.mrf.mxu3 }
 0x200   : > { %v7835_v36 = vadd.f32 %v2562_v48, %v6904_v54  ;;  %v7838_v3 = vadd.f32 %v2891_v15, %v6906_v55 }
 0x202   : > { %11014 = vst [vmem:[#allocation139_spill] sm:$0xff] %v7835_v36 }
 0x203   : > { %11015 = vst [vmem:[#allocation140_spill] sm:$0xff] %v7838_v3  ;;  %v1121_v24 = vpop.f32.mrf.mxu0  ;;  %v1450_v39 = vpop.f32.mrf.mxu1 }
 0x204   : > { %5923 = vmatmul.msk.bf16.gmra.mxu2 %vm797_vm1, %v6245_v56  ;;  %5987 = vmatmul.msk.bf16.gmra.mxu3 %vm797_vm1, %v6245_v56  ;;  %v7853_v2 = vadd.f32 %v1121_v24, %v6885_v43  ;;  %v7856_v38 = vadd.f32 %v1450_v39, %v6887_v44 }
 0x206   : > { %5539 = vmatmul.msk.bf16.gmra.mxu0 %vm797_vm1, %v6181_v59  ;;  %5603 = vmatmul.msk.bf16.gmra.mxu1 %vm797_vm1, %v6181_v59  ;;  %11016 = vst [vmem:[#allocation141_spill] sm:$0xff] %v7853_v2  ;;  %v6246_v59 = vld [vmem:[%s10442_s1 + $0x100] sm:$0xff] }
 0x207   : > { %v2565_v48 = vpop.f32.mrf.mxu2  ;;  %v2894_v15 = vpop.f32.mrf.mxu3  ;;  %11017 = vst [vmem:[#allocation142_spill] sm:$0xff] %v7856_v38  ;;  %v6182_v2 = vld [vmem:[%s6793_s25 + $0x100] sm:$0xff] }
 0x208   : > { %v7869_v24 = vadd.f32 %v2565_v48, %v6904_v54  ;;  %v7872_v39 = vadd.f32 %v2894_v15, %v6906_v55 }
 0x20a   : > { %11020 = vst [vmem:[#allocation145_spill] sm:$0xff] %v7869_v24 }
 0x20b   : > { %v1123_v57 = vpop.f32.mrf.mxu0  ;;  %v1452_v25 = vpop.f32.mrf.mxu1  ;;  %11021 = vst [vmem:[#allocation146_spill] sm:$0xff] %v7872_v39 }
 0x20c   : > { %v7859_v17 = vadd.f32 %v1123_v57, %v6885_v43  ;;  %v7862_v56 = vadd.f32 %v1452_v25, %v6887_v44 }
 0x20e   : > { %11018 = vst [vmem:[#allocation143_spill] sm:$0xff] %v7859_v17 }
 0x20f   : > { %11019 = vst [vmem:[#allocation144_spill] sm:$0xff] %v7862_v56  ;;  %v2567_v14 = vpop.f32.mrf.mxu2  ;;  %v2896_v36 = vpop.f32.mrf.mxu3 }
 0x210   : > { %v7875_v57 = vadd.f32 %v2567_v14, %v6904_v54  ;;  %v7878_v25 = vadd.f32 %v2896_v36, %v6906_v55 }
 0x212   : > { %11022 = vst [vmem:[#allocation147_spill] sm:$0xff] %v7875_v57 }
 0x213   : > { %11023 = vst [vmem:[#allocation148_spill] sm:$0xff] %v7878_v25  ;;  %v1126_v38 = vpop.f32.mrf.mxu0  ;;  %v1455_v15 = vpop.f32.mrf.mxu1 }
 0x214   : > { %5924 = vmatmul.msk.bf16.gmra.mxu2 %vm797_vm1, %v6246_v59  ;;  %5988 = vmatmul.msk.bf16.gmra.mxu3 %vm797_vm1, %v6246_v59  ;;  %v7893_v3 = vadd.f32 %v1126_v38, %v6885_v43  ;;  %v7896_v48 = vadd.f32 %v1455_v15, %v6887_v44 }
 0x216   : > { %5540 = vmatmul.msk.bf16.gmra.mxu0 %vm797_vm1, %v6182_v2  ;;  %5604 = vmatmul.msk.bf16.gmra.mxu1 %vm797_vm1, %v6182_v2  ;;  %11024 = vst [vmem:[#allocation149_spill] sm:$0xff] %v7893_v3  ;;  %v6247_v2 = vld [vmem:[%s10442_s1 + $0x108] sm:$0xff] }
 0x217   : > { %v2570_v14 = vpop.f32.mrf.mxu2  ;;  %v2899_v36 = vpop.f32.mrf.mxu3  ;;  %11025 = vst [vmem:[#allocation150_spill] sm:$0xff] %v7896_v48  ;;  %v6183_v3 = vld [vmem:[%s6793_s25 + $0x108] sm:$0xff] }
 0x218   : > { %v7909_v38 = vadd.f32 %v2570_v14, %v6904_v54  ;;  %v7912_v15 = vadd.f32 %v2899_v36, %v6906_v55 }
 0x21a   : > { %11028 = vst [vmem:[#allocation153_spill] sm:$0xff] %v7909_v38 }
 0x21b   : > { %v1128_v56 = vpop.f32.mrf.mxu0  ;;  %v1457_v17 = vpop.f32.mrf.mxu1  ;;  %11029 = vst [vmem:[#allocation154_spill] sm:$0xff] %v7912_v15 }
 0x21c   : > { %v7899_v39 = vadd.f32 %v1128_v56, %v6885_v43  ;;  %v7902_v59 = vadd.f32 %v1457_v17, %v6887_v44 }
 0x21e   : > { %11026 = vst [vmem:[#allocation151_spill] sm:$0xff] %v7899_v39 }
 0x21f   : > { %11027 = vst [vmem:[#allocation152_spill] sm:$0xff] %v7902_v59  ;;  %v2572_v24 = vpop.f32.mrf.mxu2  ;;  %v2901_v57 = vpop.f32.mrf.mxu3 }
 0x220   : > { %v7915_v56 = vadd.f32 %v2572_v24, %v6904_v54  ;;  %v7918_v17 = vadd.f32 %v2901_v57, %v6906_v55 }
 0x222   : > { %11030 = vst [vmem:[#allocation155_spill] sm:$0xff] %v7915_v56 }
 0x223   : > { %11031 = vst [vmem:[#allocation156_spill] sm:$0xff] %v7918_v17  ;;  %v1131_v48 = vpop.f32.mrf.mxu0  ;;  %v1460_v36 = vpop.f32.mrf.mxu1 }
 0x224   : > { %5925 = vmatmul.msk.bf16.gmra.mxu2 %vm797_vm1, %v6247_v2  ;;  %5989 = vmatmul.msk.bf16.gmra.mxu3 %vm797_vm1, %v6247_v2  ;;  %v7933_v25 = vadd.f32 %v1131_v48, %v6885_v43  ;;  %v7936_v14 = vadd.f32 %v1460_v36, %v6887_v44 }
 0x226   : > { %5541 = vmatmul.msk.bf16.gmra.mxu0 %vm797_vm1, %v6183_v3  ;;  %5605 = vmatmul.msk.bf16.gmra.mxu1 %vm797_vm1, %v6183_v3  ;;  %11032 = vst [vmem:[#allocation157_spill] sm:$0xff] %v7933_v25  ;;  %v6248_v3 = vld [vmem:[%s10442_s1 + $0x110] sm:$0xff] }
 0x227   : > { %v2575_v24 = vpop.f32.mrf.mxu2  ;;  %v2904_v57 = vpop.f32.mrf.mxu3  ;;  %11033 = vst [vmem:[#allocation158_spill] sm:$0xff] %v7936_v14  ;;  %v6184_v25 = vld [vmem:[%s6793_s25 + $0x110] sm:$0xff] }
 0x228   : > { %v7949_v48 = vadd.f32 %v2575_v24, %v6904_v54  ;;  %v7952_v36 = vadd.f32 %v2904_v57, %v6906_v55 }
 0x22a   : > { %11036 = vst [vmem:[#allocation161_spill] sm:$0xff] %v7949_v48 }
 0x22b   : > { %v1133_v59 = vpop.f32.mrf.mxu0  ;;  %v1462_v39 = vpop.f32.mrf.mxu1  ;;  %11037 = vst [vmem:[#allocation162_spill] sm:$0xff] %v7952_v36 }
 0x22c   : > { %v7939_v15 = vadd.f32 %v1133_v59, %v6885_v43  ;;  %v7942_v2 = vadd.f32 %v1462_v39, %v6887_v44 }
 0x22e   : > { %11034 = vst [vmem:[#allocation159_spill] sm:$0xff] %v7939_v15 }
 0x22f   : > { %11035 = vst [vmem:[#allocation160_spill] sm:$0xff] %v7942_v2  ;;  %v2577_v38 = vpop.f32.mrf.mxu2  ;;  %v2906_v56 = vpop.f32.mrf.mxu3 }
 0x230   : > { %v7955_v59 = vadd.f32 %v2577_v38, %v6904_v54  ;;  %v7958_v39 = vadd.f32 %v2906_v56, %v6906_v55 }
 0x232   : > { %11038 = vst [vmem:[#allocation163_spill] sm:$0xff] %v7955_v59 }
 0x233   : > { %11039 = vst [vmem:[#allocation164_spill] sm:$0xff] %v7958_v39  ;;  %v1136_v14 = vpop.f32.mrf.mxu0  ;;  %v1465_v57 = vpop.f32.mrf.mxu1 }
 0x234   : > { %5926 = vmatmul.msk.bf16.gmra.mxu2 %vm797_vm1, %v6248_v3  ;;  %5990 = vmatmul.msk.bf16.gmra.mxu3 %vm797_vm1, %v6248_v3  ;;  %v7973_v17 = vadd.f32 %v1136_v14, %v6885_v43  ;;  %v7976_v24 = vadd.f32 %v1465_v57, %v6887_v44 }
 0x236   : > { %5542 = vmatmul.msk.bf16.gmra.mxu0 %vm797_vm1, %v6184_v25  ;;  %5606 = vmatmul.msk.bf16.gmra.mxu1 %vm797_vm1, %v6184_v25  ;;  %11040 = vst [vmem:[#allocation165_spill] sm:$0xff] %v7973_v17  ;;  %v6249_v25 = vld [vmem:[%s10442_s1 + $0x118] sm:$0xff] }
 0x237   : > { %v2580_v38 = vpop.f32.mrf.mxu2  ;;  %v2909_v56 = vpop.f32.mrf.mxu3  ;;  %11041 = vst [vmem:[#allocation166_spill] sm:$0xff] %v7976_v24  ;;  %v6185_v17 = vld [vmem:[%s6793_s25 + $0x118] sm:$0xff] }
 0x238   : > { %v7989_v14 = vadd.f32 %v2580_v38, %v6904_v54  ;;  %v7992_v57 = vadd.f32 %v2909_v56, %v6906_v55 }
 0x23a   : > { %11044 = vst [vmem:[#allocation169_spill] sm:$0xff] %v7989_v14 }
 0x23b   : > { %v1138_v2 = vpop.f32.mrf.mxu0  ;;  %v1467_v15 = vpop.f32.mrf.mxu1  ;;  %11045 = vst [vmem:[#allocation170_spill] sm:$0xff] %v7992_v57 }
 0x23c   : > { %v7979_v36 = vadd.f32 %v1138_v2, %v6885_v43  ;;  %v7982_v3 = vadd.f32 %v1467_v15, %v6887_v44 }
 0x23e   : > { %11042 = vst [vmem:[#allocation167_spill] sm:$0xff] %v7979_v36 }
 0x23f   : > { %11043 = vst [vmem:[#allocation168_spill] sm:$0xff] %v7982_v3  ;;  %v2582_v48 = vpop.f32.mrf.mxu2  ;;  %v2911_v59 = vpop.f32.mrf.mxu3 }
 0x240   : > { %v7995_v2 = vadd.f32 %v2582_v48, %v6904_v54  ;;  %v7998_v15 = vadd.f32 %v2911_v59, %v6906_v55 }
 0x242   : > { %11046 = vst [vmem:[#allocation171_spill] sm:$0xff] %v7995_v2 }
 0x243   : > { %11047 = vst [vmem:[#allocation172_spill] sm:$0xff] %v7998_v15  ;;  %v1141_v24 = vpop.f32.mrf.mxu0  ;;  %v1470_v56 = vpop.f32.mrf.mxu1 }
 0x244   : > { %5927 = vmatmul.msk.bf16.gmra.mxu2 %vm797_vm1, %v6249_v25  ;;  %5991 = vmatmul.msk.bf16.gmra.mxu3 %vm797_vm1, %v6249_v25  ;;  %v8013_v39 = vadd.f32 %v1141_v24, %v6885_v43  ;;  %v8016_v38 = vadd.f32 %v1470_v56, %v6887_v44 }
 0x246   : > { %5543 = vmatmul.msk.bf16.gmra.mxu0 %vm797_vm1, %v6185_v17  ;;  %5607 = vmatmul.msk.bf16.gmra.mxu1 %vm797_vm1, %v6185_v17  ;;  %11048 = vst [vmem:[#allocation173_spill] sm:$0xff] %v8013_v39  ;;  %v6250_v17 = vld [vmem:[%s10442_s1 + $0x120] sm:$0xff] }
 0x247   : > { %v2585_v48 = vpop.f32.mrf.mxu2  ;;  %v2914_v59 = vpop.f32.mrf.mxu3  ;;  %11049 = vst [vmem:[#allocation174_spill] sm:$0xff] %v8016_v38  ;;  %v6186_v39 = vld [vmem:[%s6793_s25 + $0x120] sm:$0xff] }
 0x248   : > { %v8029_v24 = vadd.f32 %v2585_v48, %v6904_v54  ;;  %v8032_v56 = vadd.f32 %v2914_v59, %v6906_v55 }
 0x24a   : > { %11052 = vst [vmem:[#allocation177_spill] sm:$0xff] %v8029_v24 }
 0x24b   : > { %v1143_v3 = vpop.f32.mrf.mxu0  ;;  %v1472_v36 = vpop.f32.mrf.mxu1  ;;  %11053 = vst [vmem:[#allocation178_spill] sm:$0xff] %v8032_v56 }
 0x24c   : > { %v8019_v57 = vadd.f32 %v1143_v3, %v6885_v43  ;;  %v8022_v25 = vadd.f32 %v1472_v36, %v6887_v44 }
 0x24e   : > { %11050 = vst [vmem:[#allocation175_spill] sm:$0xff] %v8019_v57 }
 0x24f   : > { %11051 = vst [vmem:[#allocation176_spill] sm:$0xff] %v8022_v25  ;;  %v2587_v14 = vpop.f32.mrf.mxu2  ;;  %v2916_v2 = vpop.f32.mrf.mxu3 }
 0x250   : > { %v8035_v3 = vadd.f32 %v2587_v14, %v6904_v54  ;;  %v8038_v36 = vadd.f32 %v2916_v2, %v6906_v55 }
 0x252   : > { %11054 = vst [vmem:[#allocation179_spill] sm:$0xff] %v8035_v3 }
 0x253   : > { %11055 = vst [vmem:[#allocation180_spill] sm:$0xff] %v8038_v36  ;;  %v1146_v38 = vpop.f32.mrf.mxu0  ;;  %v1475_v59 = vpop.f32.mrf.mxu1 }
 0x254   : > { %5928 = vmatmul.msk.bf16.gmra.mxu2 %vm797_vm1, %v6250_v17  ;;  %5992 = vmatmul.msk.bf16.gmra.mxu3 %vm797_vm1, %v6250_v17  ;;  %v8053_v15 = vadd.f32 %v1146_v38, %v6885_v43  ;;  %v8056_v48 = vadd.f32 %v1475_v59, %v6887_v44 }
 0x256   : > { %5544 = vmatmul.msk.bf16.gmra.mxu0 %vm797_vm1, %v6186_v39  ;;  %5608 = vmatmul.msk.bf16.gmra.mxu1 %vm797_vm1, %v6186_v39  ;;  %11056 = vst [vmem:[#allocation181_spill] sm:$0xff] %v8053_v15  ;;  %v6251_v39 = vld [vmem:[%s10442_s1 + $0x128] sm:$0xff] }
 0x257   : > { %v2590_v14 = vpop.f32.mrf.mxu2  ;;  %v2919_v2 = vpop.f32.mrf.mxu3  ;;  %11057 = vst [vmem:[#allocation182_spill] sm:$0xff] %v8056_v48  ;;  %v6187_v15 = vld [vmem:[%s6793_s25 + $0x128] sm:$0xff] }
 0x258   : > { %v8069_v38 = vadd.f32 %v2590_v14, %v6904_v54  ;;  %v8072_v59 = vadd.f32 %v2919_v2, %v6906_v55 }
 0x25a   : > { %11060 = vst [vmem:[#allocation185_spill] sm:$0xff] %v8069_v38 }
 0x25b   : > { %v1148_v25 = vpop.f32.mrf.mxu0  ;;  %v1477_v57 = vpop.f32.mrf.mxu1  ;;  %11061 = vst [vmem:[#allocation186_spill] sm:$0xff] %v8072_v59 }
 0x25c   : > { %v8059_v56 = vadd.f32 %v1148_v25, %v6885_v43  ;;  %v8062_v17 = vadd.f32 %v1477_v57, %v6887_v44 }
 0x25e   : > { %11058 = vst [vmem:[#allocation183_spill] sm:$0xff] %v8059_v56 }
 0x25f   : > { %11059 = vst [vmem:[#allocation184_spill] sm:$0xff] %v8062_v17  ;;  %v2592_v24 = vpop.f32.mrf.mxu2  ;;  %v2921_v3 = vpop.f32.mrf.mxu3 }
 0x260   : > { %v8075_v25 = vadd.f32 %v2592_v24, %v6904_v54  ;;  %v8078_v57 = vadd.f32 %v2921_v3, %v6906_v55 }
 0x262   : > { %11062 = vst [vmem:[#allocation187_spill] sm:$0xff] %v8075_v25 }
 0x263   : > { %11063 = vst [vmem:[#allocation188_spill] sm:$0xff] %v8078_v57  ;;  %v1151_v48 = vpop.f32.mrf.mxu0  ;;  %v1480_v2 = vpop.f32.mrf.mxu1 }
 0x264   : > { %5929 = vmatmul.msk.bf16.gmra.mxu2 %vm797_vm1, %v6251_v39  ;;  %5993 = vmatmul.msk.bf16.gmra.mxu3 %vm797_vm1, %v6251_v39  ;;  %v8093_v36 = vadd.f32 %v1151_v48, %v6885_v43  ;;  %v8096_v14 = vadd.f32 %v1480_v2, %v6887_v44 }
 0x266   : > { %5545 = vmatmul.msk.bf16.gmra.mxu0 %vm797_vm1, %v6187_v15  ;;  %5609 = vmatmul.msk.bf16.gmra.mxu1 %vm797_vm1, %v6187_v15  ;;  %11064 = vst [vmem:[#allocation189_spill] sm:$0xff] %v8093_v36  ;;  %v6252_v15 = vld [vmem:[%s10442_s1 + $0x130] sm:$0xff] }
 0x267   : > { %v2595_v24 = vpop.f32.mrf.mxu2  ;;  %v2924_v3 = vpop.f32.mrf.mxu3  ;;  %11065 = vst [vmem:[#allocation190_spill] sm:$0xff] %v8096_v14  ;;  %v6188_v36 = vld [vmem:[%s6793_s25 + $0x130] sm:$0xff] }
 0x268   : > { %v8109_v48 = vadd.f32 %v2595_v24, %v6904_v54  ;;  %v8112_v2 = vadd.f32 %v2924_v3, %v6906_v55 }
 0x26a   : > { %11068 = vst [vmem:[#allocation193_spill] sm:$0xff] %v8109_v48 }
 0x26b   : > { %v1153_v17 = vpop.f32.mrf.mxu0  ;;  %v1482_v56 = vpop.f32.mrf.mxu1  ;;  %11069 = vst [vmem:[#allocation194_spill] sm:$0xff] %v8112_v2  ;;  %v6304_v2 = vld [vmem:[%s10448_s7 + $0x50] sm:$0xff] }
 0x26c   : > { %v8099_v59 = vadd.f32 %v1153_v17, %v6885_v43  ;;  %v8102_v39 = vadd.f32 %v1482_v56, %v6887_v44  ;;  %3721 = vmatpush.bf16.msrb.mxu1 %v6304_v2 }
 0x26e   : > { %11066 = vst [vmem:[#allocation191_spill] sm:$0xff] %v8099_v59 }
 0x26f   : > { %11067 = vst [vmem:[#allocation192_spill] sm:$0xff] %v8102_v39  ;;  %v2597_v38 = vpop.f32.mrf.mxu2  ;;  %v2926_v25 = vpop.f32.mrf.mxu3  ;;  %v6253_v39 = vld [vmem:[%s10442_s1 + $0x138] sm:$0xff] }
 0x270   : > { %v8115_v17 = vadd.f32 %v2597_v38, %v6904_v54  ;;  %v8118_v56 = vadd.f32 %v2926_v25, %v6906_v55  ;;  %v6280_v38 = vld [vmem:[%s10447_s6 + $0x10] sm:$0xff] }
 0x271   : > { %v6288_v25 = vld [vmem:[%s10447_s6 + $0x50] sm:$0xff]  ;;  %4146 = vmatpush.bf16.msrb.mxu2 %v6280_v38 }
 0x272   : > { %11070 = vst [vmem:[#allocation195_spill] sm:$0xff] %v8115_v17  ;;  %4475 = vmatpush.bf16.msrb.mxu3 %v6288_v25 }
 0x273   : > { %11071 = vst [vmem:[#allocation196_spill] sm:$0xff] %v8118_v56  ;;  %v1156_v14 = vpop.f32.mrf.mxu0  ;;  %v1485_v3 = vpop.f32.mrf.mxu1 }
 0x274   : > { %5930 = vmatmul.msk.bf16.gmra.mxu2 %vm797_vm1, %v6252_v15  ;;  %5994 = vmatmul.msk.bf16.gmra.mxu3 %vm797_vm1, %v6252_v15  ;;  %v6296_v15 = vld [vmem:[%s10448_s7 + $0x10] sm:$0xff]  ;;  %v8148_v38 = vadd.f32 %v1485_v3, %v6887_v44 }
 0x275   : > { %3392 = vmatpush.bf16.msrb.mxu0 %v6296_v15 }
 0x276   : > { %5546 = vmatmul.msk.bf16.gmra.mxu0 %vm797_vm1, %v6188_v36  ;;  %5610 = vmatmul.msk.bf16.gmra.mxu1 %vm797_vm1, %v6188_v36  ;;  %v8145_v36 = vadd.f32 %v1156_v14, %v6885_v43  ;;  %11073 = vst [vmem:[#allocation198_spill] sm:$0xff] %v8148_v38 }
 0x277   : > { %v2600_v24 = vpop.f32.mrf.mxu2  ;;  %v2929_v57 = vpop.f32.mrf.mxu3 }
 0x278   : > { %11072 = vst [vmem:[#allocation197_spill] sm:$0xff] %v8145_v36  ;;  %v8161_v14 = vadd.f32 %v2600_v24, %v6904_v54  ;;  %v8164_v3 = vadd.f32 %v2929_v57, %v6906_v55  ;;  %v6189_v36 = vld [vmem:[%s6793_s25 + $0x138] sm:$0xff] }
 0x27a   : > { %11076 = vst [vmem:[#allocation201_spill] sm:$0xff] %v8161_v14 }
 0x27b   : > { %v1158_v56 = vpop.f32.mrf.mxu0  ;;  %v1487_v48 = vpop.f32.mrf.mxu1  ;;  %11077 = vst [vmem:[#allocation202_spill] sm:$0xff] %v8164_v3 }
 0x27c   : > { %v8151_v25 = vadd.f32 %v1158_v56, %v6885_v43  ;;  %v8154_v17 = vadd.f32 %v1487_v48, %v6887_v44 }
 0x27e   : > { %11074 = vst [vmem:[#allocation199_spill] sm:$0xff] %v8151_v25 }
 0x27f   : > { %11075 = vst [vmem:[#allocation200_spill] sm:$0xff] %v8154_v17  ;;  %v2602_v15 = vpop.f32.mrf.mxu2  ;;  %v2931_v2 = vpop.f32.mrf.mxu3 }
 0x280   : > { %v8167_v56 = vadd.f32 %v2602_v15, %v6904_v54  ;;  %v8170_v48 = vadd.f32 %v2931_v2, %v6906_v55 }
 0x282   : > { %11078 = vst [vmem:[#allocation203_spill] sm:$0xff] %v8167_v56 }
 0x283   : > { %11079 = vst [vmem:[#allocation204_spill] sm:$0xff] %v8170_v48  ;;  %v1161_v38 = vpop.f32.mrf.mxu0  ;;  %v1490_v57 = vpop.f32.mrf.mxu1 }
 0x284   : > { %5931 = vmatmul.msk.bf16.gmra.mxu2 %vm797_vm1, %v6253_v39  ;;  %5995 = vmatmul.msk.bf16.gmra.mxu3 %vm797_vm1, %v6253_v39  ;;  %v8185_v59 = vadd.f32 %v1161_v38, %v6885_v43  ;;  %v8188_v24 = vadd.f32 %v1490_v57, %v6887_v44 }
 0x286   : > { %5547 = vmatmul.msk.bf16.gmra.mxu0 %vm797_vm1, %v6189_v36  ;;  %5611 = vmatmul.msk.bf16.gmra.mxu1 %vm797_vm1, %v6189_v36  ;;  %11080 = vst [vmem:[#allocation205_spill] sm:$0xff] %v8185_v59  ;;  %v6254_v36 = vld [vmem:[%s10442_s1 + $0x140] sm:$0xff] }
 0x287   : > { %v2605_v15 = vpop.f32.mrf.mxu2  ;;  %v2934_v2 = vpop.f32.mrf.mxu3  ;;  %11081 = vst [vmem:[#allocation206_spill] sm:$0xff] %v8188_v24  ;;  %v6190_v59 = vld [vmem:[%s6793_s25 + $0x140] sm:$0xff] }
 0x288   : > { %v8201_v38 = vadd.f32 %v2605_v15, %v6904_v54  ;;  %v8204_v57 = vadd.f32 %v2934_v2, %v6906_v55 }
 0x28a   : > { %11084 = vst [vmem:[#allocation209_spill] sm:$0xff] %v8201_v38 }
 0x28b   : > { %v1163_v17 = vpop.f32.mrf.mxu0  ;;  %v1492_v25 = vpop.f32.mrf.mxu1  ;;  %11085 = vst [vmem:[#allocation210_spill] sm:$0xff] %v8204_v57 }
 0x28c   : > { %v8191_v3 = vadd.f32 %v1163_v17, %v6885_v43  ;;  %v8194_v39 = vadd.f32 %v1492_v25, %v6887_v44 }
 0x28e   : > { %11082 = vst [vmem:[#allocation207_spill] sm:$0xff] %v8191_v3 }
 0x28f   : > { %11083 = vst [vmem:[#allocation208_spill] sm:$0xff] %v8194_v39  ;;  %v2607_v14 = vpop.f32.mrf.mxu2  ;;  %v2936_v56 = vpop.f32.mrf.mxu3 }
 0x290   : > { %v8207_v17 = vadd.f32 %v2607_v14, %v6904_v54  ;;  %v8210_v25 = vadd.f32 %v2936_v56, %v6906_v55 }
 0x292   : > { %11086 = vst [vmem:[#allocation211_spill] sm:$0xff] %v8207_v17 }
 0x293   : > { %11087 = vst [vmem:[#allocation212_spill] sm:$0xff] %v8210_v25  ;;  %v1166_v24 = vpop.f32.mrf.mxu0  ;;  %v1495_v2 = vpop.f32.mrf.mxu1 }
 0x294   : > { %5932 = vmatmul.msk.bf16.gmra.mxu2 %vm797_vm1, %v6254_v36  ;;  %5996 = vmatmul.msk.bf16.gmra.mxu3 %vm797_vm1, %v6254_v36  ;;  %v8225_v48 = vadd.f32 %v1166_v24, %v6885_v43  ;;  %v8228_v15 = vadd.f32 %v1495_v2, %v6887_v44 }
 0x296   : > { %5548 = vmatmul.msk.bf16.gmra.mxu0 %vm797_vm1, %v6190_v59  ;;  %5612 = vmatmul.msk.bf16.gmra.mxu1 %vm797_vm1, %v6190_v59  ;;  %11088 = vst [vmem:[#allocation213_spill] sm:$0xff] %v8225_v48  ;;  %v6255_v59 = vld [vmem:[%s10442_s1 + $0x148] sm:$0xff] }
 0x297   : > { %v2610_v14 = vpop.f32.mrf.mxu2  ;;  %v2939_v56 = vpop.f32.mrf.mxu3  ;;  %11089 = vst [vmem:[#allocation214_spill] sm:$0xff] %v8228_v15  ;;  %v6191_v48 = vld [vmem:[%s6793_s25 + $0x148] sm:$0xff] }
 0x298   : > { %v8241_v24 = vadd.f32 %v2610_v14, %v6904_v54  ;;  %v8244_v2 = vadd.f32 %v2939_v56, %v6906_v55 }
 0x29a   : > { %11092 = vst [vmem:[#allocation217_spill] sm:$0xff] %v8241_v24 }
 0x29b   : > { %v1168_v39 = vpop.f32.mrf.mxu0  ;;  %v1497_v3 = vpop.f32.mrf.mxu1  ;;  %11093 = vst [vmem:[#allocation218_spill] sm:$0xff] %v8244_v2 }
 0x29c   : > { %v8231_v57 = vadd.f32 %v1168_v39, %v6885_v43  ;;  %v8234_v36 = vadd.f32 %v1497_v3, %v6887_v44 }
 0x29e   : > { %11090 = vst [vmem:[#allocation215_spill] sm:$0xff] %v8231_v57 }
 0x29f   : > { %11091 = vst [vmem:[#allocation216_spill] sm:$0xff] %v8234_v36  ;;  %v2612_v38 = vpop.f32.mrf.mxu2  ;;  %v2941_v17 = vpop.f32.mrf.mxu3 }
 0x2a0   : > { %v8247_v39 = vadd.f32 %v2612_v38, %v6904_v54  ;;  %v8250_v3 = vadd.f32 %v2941_v17, %v6906_v55 }
 0x2a2   : > { %11094 = vst [vmem:[#allocation219_spill] sm:$0xff] %v8247_v39 }
 0x2a3   : > { %11095 = vst [vmem:[#allocation220_spill] sm:$0xff] %v8250_v3  ;;  %v1171_v15 = vpop.f32.mrf.mxu0  ;;  %v1500_v56 = vpop.f32.mrf.mxu1 }
 0x2a4   : > { %5933 = vmatmul.msk.bf16.gmra.mxu2 %vm797_vm1, %v6255_v59  ;;  %5997 = vmatmul.msk.bf16.gmra.mxu3 %vm797_vm1, %v6255_v59  ;;  %v8265_v25 = vadd.f32 %v1171_v15, %v6885_v43  ;;  %v8268_v14 = vadd.f32 %v1500_v56, %v6887_v44 }
 0x2a6   : > { %5549 = vmatmul.msk.bf16.gmra.mxu0 %vm797_vm1, %v6191_v48  ;;  %5613 = vmatmul.msk.bf16.gmra.mxu1 %vm797_vm1, %v6191_v48  ;;  %11096 = vst [vmem:[#allocation221_spill] sm:$0xff] %v8265_v25  ;;  %v6256_v48 = vld [vmem:[%s10442_s1 + $0x150] sm:$0xff] }
 0x2a7   : > { %v2615_v38 = vpop.f32.mrf.mxu2  ;;  %v2944_v17 = vpop.f32.mrf.mxu3  ;;  %11097 = vst [vmem:[#allocation222_spill] sm:$0xff] %v8268_v14  ;;  %v6192_v25 = vld [vmem:[%s6793_s25 + $0x150] sm:$0xff] }
 0x2a8   : > { %v8281_v15 = vadd.f32 %v2615_v38, %v6904_v54  ;;  %v8284_v56 = vadd.f32 %v2944_v17, %v6906_v55 }
 0x2aa   : > { %11100 = vst [vmem:[#allocation225_spill] sm:$0xff] %v8281_v15 }
 0x2ab   : > { %v1173_v36 = vpop.f32.mrf.mxu0  ;;  %v1502_v57 = vpop.f32.mrf.mxu1  ;;  %11101 = vst [vmem:[#allocation226_spill] sm:$0xff] %v8284_v56 }
 0x2ac   : > { %v8271_v2 = vadd.f32 %v1173_v36, %v6885_v43  ;;  %v8274_v59 = vadd.f32 %v1502_v57, %v6887_v44 }
 0x2ae   : > { %11098 = vst [vmem:[#allocation223_spill] sm:$0xff] %v8271_v2 }
 0x2af   : > { %11099 = vst [vmem:[#allocation224_spill] sm:$0xff] %v8274_v59  ;;  %v2617_v24 = vpop.f32.mrf.mxu2  ;;  %v2946_v39 = vpop.f32.mrf.mxu3 }
 0x2b0   : > { %v8287_v36 = vadd.f32 %v2617_v24, %v6904_v54  ;;  %v8290_v57 = vadd.f32 %v2946_v39, %v6906_v55 }
 0x2b2   : > { %11102 = vst [vmem:[#allocation227_spill] sm:$0xff] %v8287_v36 }
 0x2b3   : > { %11103 = vst [vmem:[#allocation228_spill] sm:$0xff] %v8290_v57  ;;  %v1176_v14 = vpop.f32.mrf.mxu0  ;;  %v1505_v17 = vpop.f32.mrf.mxu1 }
 0x2b4   : > { %5934 = vmatmul.msk.bf16.gmra.mxu2 %vm797_vm1, %v6256_v48  ;;  %5998 = vmatmul.msk.bf16.gmra.mxu3 %vm797_vm1, %v6256_v48  ;;  %v8305_v3 = vadd.f32 %v1176_v14, %v6885_v43  ;;  %v8308_v38 = vadd.f32 %v1505_v17, %v6887_v44 }
 0x2b6   : > { %5550 = vmatmul.msk.bf16.gmra.mxu0 %vm797_vm1, %v6192_v25  ;;  %5614 = vmatmul.msk.bf16.gmra.mxu1 %vm797_vm1, %v6192_v25  ;;  %11104 = vst [vmem:[#allocation229_spill] sm:$0xff] %v8305_v3  ;;  %v6257_v25 = vld [vmem:[%s10442_s1 + $0x158] sm:$0xff] }
 0x2b7   : > { %v2620_v24 = vpop.f32.mrf.mxu2  ;;  %v2949_v39 = vpop.f32.mrf.mxu3  ;;  %11105 = vst [vmem:[#allocation230_spill] sm:$0xff] %v8308_v38  ;;  %v6193_v3 = vld [vmem:[%s6793_s25 + $0x158] sm:$0xff] }
 0x2b8   : > { %v8321_v14 = vadd.f32 %v2620_v24, %v6904_v54  ;;  %v8324_v17 = vadd.f32 %v2949_v39, %v6906_v55 }
 0x2ba   : > { %11108 = vst [vmem:[#allocation233_spill] sm:$0xff] %v8321_v14 }
 0x2bb   : > { %v1178_v59 = vpop.f32.mrf.mxu0  ;;  %v1507_v2 = vpop.f32.mrf.mxu1  ;;  %11109 = vst [vmem:[#allocation234_spill] sm:$0xff] %v8324_v17 }
 0x2bc   : > { %v8311_v56 = vadd.f32 %v1178_v59, %v6885_v43  ;;  %v8314_v48 = vadd.f32 %v1507_v2, %v6887_v44 }
 0x2be   : > { %11106 = vst [vmem:[#allocation231_spill] sm:$0xff] %v8311_v56 }
 0x2bf   : > { %11107 = vst [vmem:[#allocation232_spill] sm:$0xff] %v8314_v48  ;;  %v2622_v15 = vpop.f32.mrf.mxu2  ;;  %v2951_v36 = vpop.f32.mrf.mxu3 }
 0x2c0   : > { %v8327_v59 = vadd.f32 %v2622_v15, %v6904_v54  ;;  %v8330_v2 = vadd.f32 %v2951_v36, %v6906_v55 }
 0x2c2   : > { %11110 = vst [vmem:[#allocation235_spill] sm:$0xff] %v8327_v59 }
 0x2c3   : > { %11111 = vst [vmem:[#allocation236_spill] sm:$0xff] %v8330_v2  ;;  %v1181_v38 = vpop.f32.mrf.mxu0  ;;  %v1510_v39 = vpop.f32.mrf.mxu1 }
 0x2c4   : > { %5935 = vmatmul.msk.bf16.gmra.mxu2 %vm797_vm1, %v6257_v25  ;;  %5999 = vmatmul.msk.bf16.gmra.mxu3 %vm797_vm1, %v6257_v25  ;;  %v8345_v57 = vadd.f32 %v1181_v38, %v6885_v43  ;;  %v8348_v24 = vadd.f32 %v1510_v39, %v6887_v44 }
 0x2c6   : > { %5551 = vmatmul.msk.bf16.gmra.mxu0 %vm797_vm1, %v6193_v3  ;;  %5615 = vmatmul.msk.bf16.gmra.mxu1 %vm797_vm1, %v6193_v3  ;;  %11112 = vst [vmem:[#allocation237_spill] sm:$0xff] %v8345_v57  ;;  %v6258_v3 = vld [vmem:[%s10442_s1 + $0x160] sm:$0xff] }
 0x2c7   : > { %v2625_v15 = vpop.f32.mrf.mxu2  ;;  %v2954_v36 = vpop.f32.mrf.mxu3  ;;  %11113 = vst [vmem:[#allocation238_spill] sm:$0xff] %v8348_v24  ;;  %v6194_v57 = vld [vmem:[%s6793_s25 + $0x160] sm:$0xff] }
 0x2c8   : > { %v8361_v38 = vadd.f32 %v2625_v15, %v6904_v54  ;;  %v8364_v39 = vadd.f32 %v2954_v36, %v6906_v55 }
 0x2ca   : > { %11116 = vst [vmem:[#allocation241_spill] sm:$0xff] %v8361_v38 }
 0x2cb   : > { %v1183_v48 = vpop.f32.mrf.mxu0  ;;  %v1512_v56 = vpop.f32.mrf.mxu1  ;;  %11117 = vst [vmem:[#allocation242_spill] sm:$0xff] %v8364_v39 }
 0x2cc   : > { %v8351_v17 = vadd.f32 %v1183_v48, %v6885_v43  ;;  %v8354_v25 = vadd.f32 %v1512_v56, %v6887_v44 }
 0x2ce   : > { %11114 = vst [vmem:[#allocation239_spill] sm:$0xff] %v8351_v17 }
 0x2cf   : > { %11115 = vst [vmem:[#allocation240_spill] sm:$0xff] %v8354_v25  ;;  %v2627_v14 = vpop.f32.mrf.mxu2  ;;  %v2956_v59 = vpop.f32.mrf.mxu3 }
 0x2d0   : > { %v8367_v48 = vadd.f32 %v2627_v14, %v6904_v54  ;;  %v8370_v56 = vadd.f32 %v2956_v59, %v6906_v55 }
 0x2d2   : > { %11118 = vst [vmem:[#allocation243_spill] sm:$0xff] %v8367_v48 }
 0x2d3   : > { %11119 = vst [vmem:[#allocation244_spill] sm:$0xff] %v8370_v56  ;;  %v1186_v24 = vpop.f32.mrf.mxu0  ;;  %v1515_v36 = vpop.f32.mrf.mxu1 }
 0x2d4   : > { %5936 = vmatmul.msk.bf16.gmra.mxu2 %vm797_vm1, %v6258_v3  ;;  %6000 = vmatmul.msk.bf16.gmra.mxu3 %vm797_vm1, %v6258_v3  ;;  %v8385_v2 = vadd.f32 %v1186_v24, %v6885_v43  ;;  %v8388_v15 = vadd.f32 %v1515_v36, %v6887_v44 }
 0x2d6   : > { %5552 = vmatmul.msk.bf16.gmra.mxu0 %vm797_vm1, %v6194_v57  ;;  %5616 = vmatmul.msk.bf16.gmra.mxu1 %vm797_vm1, %v6194_v57  ;;  %11120 = vst [vmem:[#allocation245_spill] sm:$0xff] %v8385_v2  ;;  %v6259_v57 = vld [vmem:[%s10442_s1 + $0x168] sm:$0xff] }
 0x2d7   : > { %v2630_v14 = vpop.f32.mrf.mxu2  ;;  %v2959_v59 = vpop.f32.mrf.mxu3  ;;  %11121 = vst [vmem:[#allocation246_spill] sm:$0xff] %v8388_v15  ;;  %v6195_v2 = vld [vmem:[%s6793_s25 + $0x168] sm:$0xff] }
 0x2d8   : > { %v8401_v24 = vadd.f32 %v2630_v14, %v6904_v54  ;;  %v8404_v36 = vadd.f32 %v2959_v59, %v6906_v55 }
 0x2da   : > { %11124 = vst [vmem:[#allocation249_spill] sm:$0xff] %v8401_v24 }
 0x2db   : > { %v1188_v25 = vpop.f32.mrf.mxu0  ;;  %v1517_v17 = vpop.f32.mrf.mxu1  ;;  %11125 = vst [vmem:[#allocation250_spill] sm:$0xff] %v8404_v36 }
 0x2dc   : > { %v8391_v39 = vadd.f32 %v1188_v25, %v6885_v43  ;;  %v8394_v3 = vadd.f32 %v1517_v17, %v6887_v44 }
 0x2de   : > { %11122 = vst [vmem:[#allocation247_spill] sm:$0xff] %v8391_v39 }
 0x2df   : > { %11123 = vst [vmem:[#allocation248_spill] sm:$0xff] %v8394_v3  ;;  %v2632_v38 = vpop.f32.mrf.mxu2  ;;  %v2961_v48 = vpop.f32.mrf.mxu3 }
 0x2e0   : > { %v8407_v25 = vadd.f32 %v2632_v38, %v6904_v54  ;;  %v8410_v17 = vadd.f32 %v2961_v48, %v6906_v55 }
 0x2e2   : > { %11126 = vst [vmem:[#allocation251_spill] sm:$0xff] %v8407_v25 }
 0x2e3   : > { %11127 = vst [vmem:[#allocation252_spill] sm:$0xff] %v8410_v17  ;;  %v1191_v15 = vpop.f32.mrf.mxu0  ;;  %v1520_v59 = vpop.f32.mrf.mxu1 }
 0x2e4   : > { %5937 = vmatmul.msk.bf16.gmra.mxu2 %vm797_vm1, %v6259_v57  ;;  %6001 = vmatmul.msk.bf16.gmra.mxu3 %vm797_vm1, %v6259_v57  ;;  %v8425_v56 = vadd.f32 %v1191_v15, %v6885_v43  ;;  %v8428_v14 = vadd.f32 %v1520_v59, %v6887_v44 }
 0x2e6   : > { %5553 = vmatmul.msk.bf16.gmra.mxu0 %vm797_vm1, %v6195_v2  ;;  %5617 = vmatmul.msk.bf16.gmra.mxu1 %vm797_vm1, %v6195_v2  ;;  %11128 = vst [vmem:[#allocation253_spill] sm:$0xff] %v8425_v56  ;;  %v6260_v2 = vld [vmem:[%s10442_s1 + $0x170] sm:$0xff] }
 0x2e7   : > { %v2635_v38 = vpop.f32.mrf.mxu2  ;;  %v2964_v48 = vpop.f32.mrf.mxu3  ;;  %11129 = vst [vmem:[#allocation254_spill] sm:$0xff] %v8428_v14  ;;  %v6196_v56 = vld [vmem:[%s6793_s25 + $0x170] sm:$0xff] }
 0x2e8   : > { %v8441_v15 = vadd.f32 %v2635_v38, %v6904_v54  ;;  %v8444_v59 = vadd.f32 %v2964_v48, %v6906_v55 }
 0x2ea   : > { %11132 = vst [vmem:[#allocation257_spill] sm:$0xff] %v8441_v15 }
 0x2eb   : > { %v1193_v3 = vpop.f32.mrf.mxu0  ;;  %v1522_v39 = vpop.f32.mrf.mxu1  ;;  %11133 = vst [vmem:[#allocation258_spill] sm:$0xff] %v8444_v59  ;;  %v6303_v59 = vld [vmem:[%s10448_s7 + $0x48] sm:$0xff] }
 0x2ec   : > { %v8431_v36 = vadd.f32 %v1193_v3, %v6885_v43  ;;  %v8434_v57 = vadd.f32 %v1522_v39, %v6887_v44  ;;  %3722 = vmatpush.bf16.msrb.mxu1 %v6303_v59 }
 0x2ee   : > { %11130 = vst [vmem:[#allocation255_spill] sm:$0xff] %v8431_v36 }
 0x2ef   : > { %11131 = vst [vmem:[#allocation256_spill] sm:$0xff] %v8434_v57  ;;  %v2637_v24 = vpop.f32.mrf.mxu2  ;;  %v2966_v25 = vpop.f32.mrf.mxu3  ;;  %v6261_v57 = vld [vmem:[%s10442_s1 + $0x178] sm:$0xff] }
 0x2f0   : > { %v8447_v3 = vadd.f32 %v2637_v24, %v6904_v54  ;;  %v8450_v39 = vadd.f32 %v2966_v25, %v6906_v55  ;;  %v6279_v24 = vld [vmem:[%s10447_s6 + $0x8] sm:$0xff] }
 0x2f1   : > { %v6287_v25 = vld [vmem:[%s10447_s6 + $0x48] sm:$0xff]  ;;  %4147 = vmatpush.bf16.msrb.mxu2 %v6279_v24 }
 0x2f2   : > { %11134 = vst [vmem:[#allocation259_spill] sm:$0xff] %v8447_v3  ;;  %4476 = vmatpush.bf16.msrb.mxu3 %v6287_v25 }
 0x2f3   : > { %11135 = vst [vmem:[#allocation260_spill] sm:$0xff] %v8450_v39  ;;  %v1196_v14 = vpop.f32.mrf.mxu0  ;;  %v1525_v48 = vpop.f32.mrf.mxu1 }
 0x2f4   : > { %5938 = vmatmul.msk.bf16.gmra.mxu2 %vm797_vm1, %v6260_v2  ;;  %6002 = vmatmul.msk.bf16.gmra.mxu3 %vm797_vm1, %v6260_v2  ;;  %v6295_v2 = vld [vmem:[%s10448_s7 + $0x8] sm:$0xff]  ;;  %v8480_v24 = vadd.f32 %v1525_v48, %v6887_v44 }
 0x2f5   : > { %3393 = vmatpush.bf16.msrb.mxu0 %v6295_v2 }
 0x2f6   : > { %5554 = vmatmul.msk.bf16.gmra.mxu0 %vm797_vm1, %v6196_v56  ;;  %5618 = vmatmul.msk.bf16.gmra.mxu1 %vm797_vm1, %v6196_v56  ;;  %v8477_v56 = vadd.f32 %v1196_v14, %v6885_v43  ;;  %11137 = vst [vmem:[#allocation262_spill] sm:$0xff] %v8480_v24 }
 0x2f7   : > { %v2640_v38 = vpop.f32.mrf.mxu2  ;;  %v2969_v17 = vpop.f32.mrf.mxu3 }
 0x2f8   : > { %11136 = vst [vmem:[#allocation261_spill] sm:$0xff] %v8477_v56  ;;  %v8493_v14 = vadd.f32 %v2640_v38, %v6904_v54  ;;  %v8496_v48 = vadd.f32 %v2969_v17, %v6906_v55  ;;  %v6197_v56 = vld [vmem:[%s6793_s25 + $0x178] sm:$0xff] }
 0x2fa   : > { %11140 = vst [vmem:[#allocation265_spill] sm:$0xff] %v8493_v14 }
 0x2fb   : > { %v1198_v39 = vpop.f32.mrf.mxu0  ;;  %v1527_v15 = vpop.f32.mrf.mxu1  ;;  %11141 = vst [vmem:[#allocation266_spill] sm:$0xff] %v8496_v48 }
 0x2fc   : > { %v8483_v25 = vadd.f32 %v1198_v39, %v6885_v43  ;;  %v8486_v3 = vadd.f32 %v1527_v15, %v6887_v44 }
 0x2fe   : > { %11138 = vst [vmem:[#allocation263_spill] sm:$0xff] %v8483_v25 }
 0x2ff   : > { %11139 = vst [vmem:[#allocation264_spill] sm:$0xff] %v8486_v3  ;;  %v2642_v2 = vpop.f32.mrf.mxu2  ;;  %v2971_v59 = vpop.f32.mrf.mxu3 }
 0x300   : > { %v8499_v39 = vadd.f32 %v2642_v2, %v6904_v54  ;;  %v8502_v15 = vadd.f32 %v2971_v59, %v6906_v55 }
 0x302   : > { %11142 = vst [vmem:[#allocation267_spill] sm:$0xff] %v8499_v39 }
 0x303   : > { %11143 = vst [vmem:[#allocation268_spill] sm:$0xff] %v8502_v15  ;;  %v1201_v24 = vpop.f32.mrf.mxu0  ;;  %v1530_v17 = vpop.f32.mrf.mxu1 }
 0x304   : > { %5939 = vmatmul.msk.bf16.gmra.mxu2 %vm797_vm1, %v6261_v57  ;;  %6003 = vmatmul.msk.bf16.gmra.mxu3 %vm797_vm1, %v6261_v57  ;;  %v8517_v36 = vadd.f32 %v1201_v24, %v6885_v43  ;;  %v8520_v38 = vadd.f32 %v1530_v17, %v6887_v44 }
 0x306   : > { %5555 = vmatmul.msk.bf16.gmra.mxu0 %vm797_vm1, %v6197_v56  ;;  %5619 = vmatmul.msk.bf16.gmra.mxu1 %vm797_vm1, %v6197_v56  ;;  %11144 = vst [vmem:[#allocation269_spill] sm:$0xff] %v8517_v36  ;;  %v6262_v56 = vld [vmem:[%s10442_s1 + $0x180] sm:$0xff] }
 0x307   : > { %v2645_v2 = vpop.f32.mrf.mxu2  ;;  %v2974_v59 = vpop.f32.mrf.mxu3  ;;  %11145 = vst [vmem:[#allocation270_spill] sm:$0xff] %v8520_v38  ;;  %v6198_v36 = vld [vmem:[%s6793_s25 + $0x180] sm:$0xff] }
 0x308   : > { %v8533_v24 = vadd.f32 %v2645_v2, %v6904_v54  ;;  %v8536_v17 = vadd.f32 %v2974_v59, %v6906_v55 }
 0x30a   : > { %11148 = vst [vmem:[#allocation273_spill] sm:$0xff] %v8533_v24 }
 0x30b   : > { %v1203_v3 = vpop.f32.mrf.mxu0  ;;  %v1532_v25 = vpop.f32.mrf.mxu1  ;;  %11149 = vst [vmem:[#allocation274_spill] sm:$0xff] %v8536_v17 }
 0x30c   : > { %v8523_v48 = vadd.f32 %v1203_v3, %v6885_v43  ;;  %v8526_v57 = vadd.f32 %v1532_v25, %v6887_v44 }
 0x30e   : > { %11146 = vst [vmem:[#allocation271_spill] sm:$0xff] %v8523_v48 }
 0x30f   : > { %11147 = vst [vmem:[#allocation272_spill] sm:$0xff] %v8526_v57  ;;  %v2647_v14 = vpop.f32.mrf.mxu2  ;;  %v2976_v39 = vpop.f32.mrf.mxu3 }
 0x310   : > { %v8539_v3 = vadd.f32 %v2647_v14, %v6904_v54  ;;  %v8542_v25 = vadd.f32 %v2976_v39, %v6906_v55 }
 0x312   : > { %11150 = vst [vmem:[#allocation275_spill] sm:$0xff] %v8539_v3 }
 0x313   : > { %11151 = vst [vmem:[#allocation276_spill] sm:$0xff] %v8542_v25  ;;  %v1206_v38 = vpop.f32.mrf.mxu0  ;;  %v1535_v59 = vpop.f32.mrf.mxu1 }
 0x314   : > { %5940 = vmatmul.msk.bf16.gmra.mxu2 %vm797_vm1, %v6262_v56  ;;  %6004 = vmatmul.msk.bf16.gmra.mxu3 %vm797_vm1, %v6262_v56  ;;  %v8557_v15 = vadd.f32 %v1206_v38, %v6885_v43  ;;  %v8560_v2 = vadd.f32 %v1535_v59, %v6887_v44 }
 0x316   : > { %5556 = vmatmul.msk.bf16.gmra.mxu0 %vm797_vm1, %v6198_v36  ;;  %5620 = vmatmul.msk.bf16.gmra.mxu1 %vm797_vm1, %v6198_v36  ;;  %11152 = vst [vmem:[#allocation277_spill] sm:$0xff] %v8557_v15  ;;  %v6263_v36 = vld [vmem:[%s10442_s1 + $0x188] sm:$0xff] }
 0x317   : > { %v2650_v14 = vpop.f32.mrf.mxu2  ;;  %v2979_v39 = vpop.f32.mrf.mxu3  ;;  %11153 = vst [vmem:[#allocation278_spill] sm:$0xff] %v8560_v2  ;;  %v6199_v15 = vld [vmem:[%s6793_s25 + $0x188] sm:$0xff] }
 0x318   : > { %v8573_v38 = vadd.f32 %v2650_v14, %v6904_v54  ;;  %v8576_v59 = vadd.f32 %v2979_v39, %v6906_v55 }
 0x31a   : > { %11156 = vst [vmem:[#allocation281_spill] sm:$0xff] %v8573_v38 }
 0x31b   : > { %v1208_v57 = vpop.f32.mrf.mxu0  ;;  %v1537_v48 = vpop.f32.mrf.mxu1  ;;  %11157 = vst [vmem:[#allocation282_spill] sm:$0xff] %v8576_v59 }
 0x31c   : > { %v8563_v17 = vadd.f32 %v1208_v57, %v6885_v43  ;;  %v8566_v56 = vadd.f32 %v1537_v48, %v6887_v44 }
 0x31e   : > { %11154 = vst [vmem:[#allocation279_spill] sm:$0xff] %v8563_v17 }
 0x31f   : > { %11155 = vst [vmem:[#allocation280_spill] sm:$0xff] %v8566_v56  ;;  %v2652_v24 = vpop.f32.mrf.mxu2  ;;  %v2981_v3 = vpop.f32.mrf.mxu3 }
 0x320   : > { %v8579_v57 = vadd.f32 %v2652_v24, %v6904_v54  ;;  %v8582_v48 = vadd.f32 %v2981_v3, %v6906_v55 }
 0x322   : > { %11158 = vst [vmem:[#allocation283_spill] sm:$0xff] %v8579_v57 }
 0x323   : > { %11159 = vst [vmem:[#allocation284_spill] sm:$0xff] %v8582_v48  ;;  %v1211_v2 = vpop.f32.mrf.mxu0  ;;  %v1540_v39 = vpop.f32.mrf.mxu1 }
 0x324   : > { %5941 = vmatmul.msk.bf16.gmra.mxu2 %vm797_vm1, %v6263_v36  ;;  %6005 = vmatmul.msk.bf16.gmra.mxu3 %vm797_vm1, %v6263_v36  ;;  %v8597_v25 = vadd.f32 %v1211_v2, %v6885_v43  ;;  %v8600_v14 = vadd.f32 %v1540_v39, %v6887_v44 }
 0x326   : > { %5557 = vmatmul.msk.bf16.gmra.mxu0 %vm797_vm1, %v6199_v15  ;;  %5621 = vmatmul.msk.bf16.gmra.mxu1 %vm797_vm1, %v6199_v15  ;;  %11160 = vst [vmem:[#allocation285_spill] sm:$0xff] %v8597_v25  ;;  %v6264_v15 = vld [vmem:[%s10442_s1 + $0x190] sm:$0xff] }
 0x327   : > { %v2655_v24 = vpop.f32.mrf.mxu2  ;;  %v2984_v3 = vpop.f32.mrf.mxu3  ;;  %11161 = vst [vmem:[#allocation286_spill] sm:$0xff] %v8600_v14  ;;  %v6200_v25 = vld [vmem:[%s6793_s25 + $0x190] sm:$0xff] }
 0x328   : > { %v8613_v2 = vadd.f32 %v2655_v24, %v6904_v54  ;;  %v8616_v39 = vadd.f32 %v2984_v3, %v6906_v55 }
 0x32a   : > { %11164 = vst [vmem:[#allocation289_spill] sm:$0xff] %v8613_v2 }
 0x32b   : > { %v1213_v56 = vpop.f32.mrf.mxu0  ;;  %v1542_v17 = vpop.f32.mrf.mxu1  ;;  %11165 = vst [vmem:[#allocation290_spill] sm:$0xff] %v8616_v39 }
 0x32c   : > { %v8603_v59 = vadd.f32 %v1213_v56, %v6885_v43  ;;  %v8606_v36 = vadd.f32 %v1542_v17, %v6887_v44 }
 0x32e   : > { %11162 = vst [vmem:[#allocation287_spill] sm:$0xff] %v8603_v59 }
 0x32f   : > { %11163 = vst [vmem:[#allocation288_spill] sm:$0xff] %v8606_v36  ;;  %v2657_v38 = vpop.f32.mrf.mxu2  ;;  %v2986_v57 = vpop.f32.mrf.mxu3 }
 0x330   : > { %v8619_v56 = vadd.f32 %v2657_v38, %v6904_v54  ;;  %v8622_v17 = vadd.f32 %v2986_v57, %v6906_v55 }
 0x332   : > { %11166 = vst [vmem:[#allocation291_spill] sm:$0xff] %v8619_v56 }
 0x333   : > { %11167 = vst [vmem:[#allocation292_spill] sm:$0xff] %v8622_v17  ;;  %v1216_v14 = vpop.f32.mrf.mxu0  ;;  %v1545_v3 = vpop.f32.mrf.mxu1 }
 0x334   : > { %5942 = vmatmul.msk.bf16.gmra.mxu2 %vm797_vm1, %v6264_v15  ;;  %6006 = vmatmul.msk.bf16.gmra.mxu3 %vm797_vm1, %v6264_v15  ;;  %v8637_v48 = vadd.f32 %v1216_v14, %v6885_v43  ;;  %v8640_v24 = vadd.f32 %v1545_v3, %v6887_v44 }
 0x336   : > { %5558 = vmatmul.msk.bf16.gmra.mxu0 %vm797_vm1, %v6200_v25  ;;  %5622 = vmatmul.msk.bf16.gmra.mxu1 %vm797_vm1, %v6200_v25  ;;  %11168 = vst [vmem:[#allocation293_spill] sm:$0xff] %v8637_v48  ;;  %v6265_v25 = vld [vmem:[%s10442_s1 + $0x198] sm:$0xff] }
 0x337   : > { %v2660_v38 = vpop.f32.mrf.mxu2  ;;  %v2989_v57 = vpop.f32.mrf.mxu3  ;;  %11169 = vst [vmem:[#allocation294_spill] sm:$0xff] %v8640_v24  ;;  %v6201_v48 = vld [vmem:[%s6793_s25 + $0x198] sm:$0xff] }
 0x338   : > { %v8653_v14 = vadd.f32 %v2660_v38, %v6904_v54  ;;  %v8656_v3 = vadd.f32 %v2989_v57, %v6906_v55 }
 0x33a   : > { %11172 = vst [vmem:[#allocation297_spill] sm:$0xff] %v8653_v14 }
 0x33b   : > { %v1218_v36 = vpop.f32.mrf.mxu0  ;;  %v1547_v59 = vpop.f32.mrf.mxu1  ;;  %11173 = vst [vmem:[#allocation298_spill] sm:$0xff] %v8656_v3 }
 0x33c   : > { %v8643_v39 = vadd.f32 %v1218_v36, %v6885_v43  ;;  %v8646_v15 = vadd.f32 %v1547_v59, %v6887_v44 }
 0x33e   : > { %11170 = vst [vmem:[#allocation295_spill] sm:$0xff] %v8643_v39 }
 0x33f   : > { %11171 = vst [vmem:[#allocation296_spill] sm:$0xff] %v8646_v15  ;;  %v2662_v2 = vpop.f32.mrf.mxu2  ;;  %v2991_v56 = vpop.f32.mrf.mxu3 }
 0x340   : > { %v8659_v36 = vadd.f32 %v2662_v2, %v6904_v54  ;;  %v8662_v59 = vadd.f32 %v2991_v56, %v6906_v55 }
 0x342   : > { %11174 = vst [vmem:[#allocation299_spill] sm:$0xff] %v8659_v36 }
 0x343   : > { %11175 = vst [vmem:[#allocation300_spill] sm:$0xff] %v8662_v59  ;;  %v1221_v24 = vpop.f32.mrf.mxu0  ;;  %v1550_v57 = vpop.f32.mrf.mxu1 }
 0x344   : > { %5943 = vmatmul.msk.bf16.gmra.mxu2 %vm797_vm1, %v6265_v25  ;;  %6007 = vmatmul.msk.bf16.gmra.mxu3 %vm797_vm1, %v6265_v25  ;;  %v8677_v17 = vadd.f32 %v1221_v24, %v6885_v43  ;;  %v8680_v38 = vadd.f32 %v1550_v57, %v6887_v44 }
 0x346   : > { %5559 = vmatmul.msk.bf16.gmra.mxu0 %vm797_vm1, %v6201_v48  ;;  %5623 = vmatmul.msk.bf16.gmra.mxu1 %vm797_vm1, %v6201_v48  ;;  %11176 = vst [vmem:[#allocation301_spill] sm:$0xff] %v8677_v17  ;;  %v6266_v48 = vld [vmem:[%s10442_s1 + $0x1a0] sm:$0xff] }
 0x347   : > { %v2665_v2 = vpop.f32.mrf.mxu2  ;;  %v2994_v56 = vpop.f32.mrf.mxu3  ;;  %11177 = vst [vmem:[#allocation302_spill] sm:$0xff] %v8680_v38  ;;  %v6202_v17 = vld [vmem:[%s6793_s25 + $0x1a0] sm:$0xff] }
 0x348   : > { %v8693_v24 = vadd.f32 %v2665_v2, %v6904_v54  ;;  %v8696_v57 = vadd.f32 %v2994_v56, %v6906_v55 }
 0x34a   : > { %11180 = vst [vmem:[#allocation305_spill] sm:$0xff] %v8693_v24 }
 0x34b   : > { %v1223_v15 = vpop.f32.mrf.mxu0  ;;  %v1552_v39 = vpop.f32.mrf.mxu1  ;;  %11181 = vst [vmem:[#allocation306_spill] sm:$0xff] %v8696_v57 }
 0x34c   : > { %v8683_v3 = vadd.f32 %v1223_v15, %v6885_v43  ;;  %v8686_v25 = vadd.f32 %v1552_v39, %v6887_v44 }
 0x34e   : > { %11178 = vst [vmem:[#allocation303_spill] sm:$0xff] %v8683_v3 }
 0x34f   : > { %11179 = vst [vmem:[#allocation304_spill] sm:$0xff] %v8686_v25  ;;  %v2667_v14 = vpop.f32.mrf.mxu2  ;;  %v2996_v36 = vpop.f32.mrf.mxu3 }
 0x350   : > { %v8699_v15 = vadd.f32 %v2667_v14, %v6904_v54  ;;  %v8702_v39 = vadd.f32 %v2996_v36, %v6906_v55 }
 0x352   : > { %11182 = vst [vmem:[#allocation307_spill] sm:$0xff] %v8699_v15 }
 0x353   : > { %11183 = vst [vmem:[#allocation308_spill] sm:$0xff] %v8702_v39  ;;  %v1226_v38 = vpop.f32.mrf.mxu0  ;;  %v1555_v56 = vpop.f32.mrf.mxu1 }
 0x354   : > { %5944 = vmatmul.msk.bf16.gmra.mxu2 %vm797_vm1, %v6266_v48  ;;  %6008 = vmatmul.msk.bf16.gmra.mxu3 %vm797_vm1, %v6266_v48  ;;  %v8717_v59 = vadd.f32 %v1226_v38, %v6885_v43  ;;  %v8720_v2 = vadd.f32 %v1555_v56, %v6887_v44 }
 0x356   : > { %5560 = vmatmul.msk.bf16.gmra.mxu0 %vm797_vm1, %v6202_v17  ;;  %5624 = vmatmul.msk.bf16.gmra.mxu1 %vm797_vm1, %v6202_v17  ;;  %11184 = vst [vmem:[#allocation309_spill] sm:$0xff] %v8717_v59  ;;  %v6267_v17 = vld [vmem:[%s10442_s1 + $0x1a8] sm:$0xff] }
 0x357   : > { %v2670_v14 = vpop.f32.mrf.mxu2  ;;  %v2999_v36 = vpop.f32.mrf.mxu3  ;;  %11185 = vst [vmem:[#allocation310_spill] sm:$0xff] %v8720_v2  ;;  %v6203_v59 = vld [vmem:[%s6793_s25 + $0x1a8] sm:$0xff] }
 0x358   : > { %v8733_v38 = vadd.f32 %v2670_v14, %v6904_v54  ;;  %v8736_v56 = vadd.f32 %v2999_v36, %v6906_v55 }
 0x35a   : > { %11188 = vst [vmem:[#allocation313_spill] sm:$0xff] %v8733_v38 }
 0x35b   : > { %v1228_v25 = vpop.f32.mrf.mxu0  ;;  %v1557_v3 = vpop.f32.mrf.mxu1  ;;  %11189 = vst [vmem:[#allocation314_spill] sm:$0xff] %v8736_v56 }
 0x35c   : > { %v8723_v57 = vadd.f32 %v1228_v25, %v6885_v43  ;;  %v8726_v48 = vadd.f32 %v1557_v3, %v6887_v44 }
 0x35e   : > { %11186 = vst [vmem:[#allocation311_spill] sm:$0xff] %v8723_v57 }
 0x35f   : > { %11187 = vst [vmem:[#allocation312_spill] sm:$0xff] %v8726_v48  ;;  %v2672_v24 = vpop.f32.mrf.mxu2  ;;  %v3001_v15 = vpop.f32.mrf.mxu3 }
 0x360   : > { %v8739_v25 = vadd.f32 %v2672_v24, %v6904_v54  ;;  %v8742_v3 = vadd.f32 %v3001_v15, %v6906_v55 }
 0x362   : > { %11190 = vst [vmem:[#allocation315_spill] sm:$0xff] %v8739_v25 }
 0x363   : > { %11191 = vst [vmem:[#allocation316_spill] sm:$0xff] %v8742_v3  ;;  %v1231_v2 = vpop.f32.mrf.mxu0  ;;  %v1560_v36 = vpop.f32.mrf.mxu1 }
 0x364   : > { %5945 = vmatmul.msk.bf16.gmra.mxu2 %vm797_vm1, %v6267_v17  ;;  %6009 = vmatmul.msk.bf16.gmra.mxu3 %vm797_vm1, %v6267_v17  ;;  %v8757_v39 = vadd.f32 %v1231_v2, %v6885_v43  ;;  %v8760_v14 = vadd.f32 %v1560_v36, %v6887_v44 }
 0x366   : > { %5561 = vmatmul.msk.bf16.gmra.mxu0 %vm797_vm1, %v6203_v59  ;;  %5625 = vmatmul.msk.bf16.gmra.mxu1 %vm797_vm1, %v6203_v59  ;;  %11192 = vst [vmem:[#allocation317_spill] sm:$0xff] %v8757_v39  ;;  %v6268_v59 = vld [vmem:[%s10442_s1 + $0x1b0] sm:$0xff] }
 0x367   : > { %v2675_v24 = vpop.f32.mrf.mxu2  ;;  %v3004_v15 = vpop.f32.mrf.mxu3  ;;  %11193 = vst [vmem:[#allocation318_spill] sm:$0xff] %v8760_v14  ;;  %v6204_v39 = vld [vmem:[%s6793_s25 + $0x1b0] sm:$0xff] }
 0x368   : > { %v8773_v2 = vadd.f32 %v2675_v24, %v6904_v54  ;;  %v8776_v36 = vadd.f32 %v3004_v15, %v6906_v55 }
 0x36a   : > { %11196 = vst [vmem:[#allocation321_spill] sm:$0xff] %v8773_v2 }
 0x36b   : > { %v1233_v48 = vpop.f32.mrf.mxu0  ;;  %v1562_v57 = vpop.f32.mrf.mxu1  ;;  %11197 = vst [vmem:[#allocation322_spill] sm:$0xff] %v8776_v36  ;;  %v6302_v36 = vld [vmem:[%s10448_s7 + $0x40] sm:$0xff] }
 0x36c   : > { %v8763_v56 = vadd.f32 %v1233_v48, %v6885_v43  ;;  %v8766_v17 = vadd.f32 %v1562_v57, %v6887_v44  ;;  %3723 = vmatpush.bf16.msrb.mxu1 %v6302_v36 }
 0x36e   : > { %11194 = vst [vmem:[#allocation319_spill] sm:$0xff] %v8763_v56 }
 0x36f   : > { %11195 = vst [vmem:[#allocation320_spill] sm:$0xff] %v8766_v17  ;;  %v2677_v38 = vpop.f32.mrf.mxu2  ;;  %v3006_v25 = vpop.f32.mrf.mxu3  ;;  %v6269_v17 = vld [vmem:[%s10442_s1 + $0x1b8] sm:$0xff] }
 0x370   : > { %v8779_v48 = vadd.f32 %v2677_v38, %v6904_v54  ;;  %v8782_v57 = vadd.f32 %v3006_v25, %v6906_v55  ;;  %v6278_v38 = vld [vmem:[%s10447_s6] sm:$0xff] }
 0x371   : > { %v6286_v25 = vld [vmem:[%s10447_s6 + $0x40] sm:$0xff]  ;;  %4148 = vmatpush.bf16.msrb.mxu2 %v6278_v38 }
 0x372   : > { %11198 = vst [vmem:[#allocation323_spill] sm:$0xff] %v8779_v48  ;;  %4477 = vmatpush.bf16.msrb.mxu3 %v6286_v25 }
 0x373   : > { %11199 = vst [vmem:[#allocation324_spill] sm:$0xff] %v8782_v57  ;;  %v1236_v14 = vpop.f32.mrf.mxu0  ;;  %v1565_v15 = vpop.f32.mrf.mxu1 }
 0x374   : > { %5946 = vmatmul.msk.bf16.gmra.mxu2 %vm797_vm1, %v6268_v59  ;;  %6010 = vmatmul.msk.bf16.gmra.mxu3 %vm797_vm1, %v6268_v59  ;;  %v6294_v59 = vld [vmem:[%s10448_s7] sm:$0xff]  ;;  %v8812_v38 = vadd.f32 %v1565_v15, %v6887_v44 }
 0x375   : > { %3394 = vmatpush.bf16.msrb.mxu0 %v6294_v59 }
 0x376   : > { %5562 = vmatmul.msk.bf16.gmra.mxu0 %vm797_vm1, %v6204_v39  ;;  %5626 = vmatmul.msk.bf16.gmra.mxu1 %vm797_vm1, %v6204_v39  ;;  %v8809_v39 = vadd.f32 %v1236_v14, %v6885_v43  ;;  %11201 = vst [vmem:[#allocation326_spill] sm:$0xff] %v8812_v38 }
 0x377   : > { %v2680_v24 = vpop.f32.mrf.mxu2  ;;  %v3009_v3 = vpop.f32.mrf.mxu3 }
 0x378   : > { %11200 = vst [vmem:[#allocation325_spill] sm:$0xff] %v8809_v39  ;;  %v8825_v14 = vadd.f32 %v2680_v24, %v6904_v54  ;;  %v8828_v15 = vadd.f32 %v3009_v3, %v6906_v55  ;;  %v6205_v39 = vld [vmem:[%s6793_s25 + $0x1b8] sm:$0xff] }
 0x37a   : > { %11204 = vst [vmem:[#allocation329_spill] sm:$0xff] %v8825_v14 }
 0x37b   : > { %v1238_v57 = vpop.f32.mrf.mxu0  ;;  %v1567_v2 = vpop.f32.mrf.mxu1  ;;  %11205 = vst [vmem:[#allocation330_spill] sm:$0xff] %v8828_v15 }
 0x37c   : > { %v8815_v25 = vadd.f32 %v1238_v57, %v6885_v43  ;;  %v8818_v48 = vadd.f32 %v1567_v2, %v6887_v44 }
 0x37e   : > { %11202 = vst [vmem:[#allocation327_spill] sm:$0xff] %v8815_v25 }
 0x37f   : > { %11203 = vst [vmem:[#allocation328_spill] sm:$0xff] %v8818_v48  ;;  %v2682_v59 = vpop.f32.mrf.mxu2  ;;  %v3011_v36 = vpop.f32.mrf.mxu3 }
 0x380   : > { %v8831_v57 = vadd.f32 %v2682_v59, %v6904_v54  ;;  %v8834_v2 = vadd.f32 %v3011_v36, %v6906_v55 }
 0x382   : > { %11206 = vst [vmem:[#allocation331_spill] sm:$0xff] %v8831_v57 }
 0x383   : > { %11207 = vst [vmem:[#allocation332_spill] sm:$0xff] %v8834_v2  ;;  %v1241_v38 = vpop.f32.mrf.mxu0  ;;  %v1570_v3 = vpop.f32.mrf.mxu1 }
 0x384   : > { %5947 = vmatmul.msk.bf16.gmra.mxu2 %vm797_vm1, %v6269_v17  ;;  %6011 = vmatmul.msk.bf16.gmra.mxu3 %vm797_vm1, %v6269_v17  ;;  %v8849_v56 = vadd.f32 %v1241_v38, %v6885_v43  ;;  %v8852_v24 = vadd.f32 %v1570_v3, %v6887_v44 }
 0x386   : > { %5563 = vmatmul.msk.bf16.gmra.mxu0 %vm797_vm1, %v6205_v39  ;;  %5627 = vmatmul.msk.bf16.gmra.mxu1 %vm797_vm1, %v6205_v39  ;;  %11208 = vst [vmem:[#allocation333_spill] sm:$0xff] %v8849_v56  ;;  %v6270_v39 = vld [vmem:[%s10442_s1 + $0x1c0] sm:$0xff] }
 0x387   : > { %v2685_v59 = vpop.f32.mrf.mxu2  ;;  %v3014_v36 = vpop.f32.mrf.mxu3  ;;  %11209 = vst [vmem:[#allocation334_spill] sm:$0xff] %v8852_v24  ;;  %v6206_v56 = vld [vmem:[%s6793_s25 + $0x1c0] sm:$0xff] }
 0x388   : > { %v8865_v38 = vadd.f32 %v2685_v59, %v6904_v54  ;;  %v8868_v3 = vadd.f32 %v3014_v36, %v6906_v55 }
 0x38a   : > { %11212 = vst [vmem:[#allocation337_spill] sm:$0xff] %v8865_v38 }
 0x38b   : > { %v1243_v48 = vpop.f32.mrf.mxu0  ;;  %v1572_v25 = vpop.f32.mrf.mxu1  ;;  %11213 = vst [vmem:[#allocation338_spill] sm:$0xff] %v8868_v3 }
 0x38c   : > { %v8855_v15 = vadd.f32 %v1243_v48, %v6885_v43  ;;  %v8858_v17 = vadd.f32 %v1572_v25, %v6887_v44 }
 0x38e   : > { %11210 = vst [vmem:[#allocation335_spill] sm:$0xff] %v8855_v15 }
 0x38f   : > { %11211 = vst [vmem:[#allocation336_spill] sm:$0xff] %v8858_v17  ;;  %v2687_v14 = vpop.f32.mrf.mxu2  ;;  %v3016_v57 = vpop.f32.mrf.mxu3 }
 0x390   : > { %v8871_v48 = vadd.f32 %v2687_v14, %v6904_v54  ;;  %v8874_v25 = vadd.f32 %v3016_v57, %v6906_v55 }
 0x392   : > { %11214 = vst [vmem:[#allocation339_spill] sm:$0xff] %v8871_v48 }
 0x393   : > { %11215 = vst [vmem:[#allocation340_spill] sm:$0xff] %v8874_v25  ;;  %v1246_v24 = vpop.f32.mrf.mxu0  ;;  %v1575_v36 = vpop.f32.mrf.mxu1 }
 0x394   : > { %5948 = vmatmul.msk.bf16.gmra.mxu2 %vm797_vm1, %v6270_v39  ;;  %6012 = vmatmul.msk.bf16.gmra.mxu3 %vm797_vm1, %v6270_v39  ;;  %v8889_v2 = vadd.f32 %v1246_v24, %v6885_v43  ;;  %v8892_v59 = vadd.f32 %v1575_v36, %v6887_v44 }
 0x396   : > { %5564 = vmatmul.msk.bf16.gmra.mxu0 %vm797_vm1, %v6206_v56  ;;  %5628 = vmatmul.msk.bf16.gmra.mxu1 %vm797_vm1, %v6206_v56  ;;  %11216 = vst [vmem:[#allocation341_spill] sm:$0xff] %v8889_v2  ;;  %v6271_v56 = vld [vmem:[%s10442_s1 + $0x1c8] sm:$0xff] }
 0x397   : > { %v2690_v14 = vpop.f32.mrf.mxu2  ;;  %v3019_v57 = vpop.f32.mrf.mxu3  ;;  %11217 = vst [vmem:[#allocation342_spill] sm:$0xff] %v8892_v59  ;;  %v6207_v2 = vld [vmem:[%s6793_s25 + $0x1c8] sm:$0xff] }
 0x398   : > { %v8905_v24 = vadd.f32 %v2690_v14, %v6904_v54  ;;  %v8908_v36 = vadd.f32 %v3019_v57, %v6906_v55 }
 0x39a   : > { %11220 = vst [vmem:[#allocation345_spill] sm:$0xff] %v8905_v24 }
 0x39b   : > { %v1248_v17 = vpop.f32.mrf.mxu0  ;;  %v1577_v15 = vpop.f32.mrf.mxu1  ;;  %11221 = vst [vmem:[#allocation346_spill] sm:$0xff] %v8908_v36 }
 0x39c   : > { %v8895_v3 = vadd.f32 %v1248_v17, %v6885_v43  ;;  %v8898_v39 = vadd.f32 %v1577_v15, %v6887_v44 }
 0x39e   : > { %11218 = vst [vmem:[#allocation343_spill] sm:$0xff] %v8895_v3 }
 0x39f   : > { %11219 = vst [vmem:[#allocation344_spill] sm:$0xff] %v8898_v39  ;;  %v2692_v38 = vpop.f32.mrf.mxu2  ;;  %v3021_v48 = vpop.f32.mrf.mxu3 }
 0x3a0   : > { %v8911_v17 = vadd.f32 %v2692_v38, %v6904_v54  ;;  %v8914_v15 = vadd.f32 %v3021_v48, %v6906_v55 }
 0x3a2   : > { %11222 = vst [vmem:[#allocation347_spill] sm:$0xff] %v8911_v17 }
 0x3a3   : > { %11223 = vst [vmem:[#allocation348_spill] sm:$0xff] %v8914_v15  ;;  %v1251_v59 = vpop.f32.mrf.mxu0  ;;  %v1580_v57 = vpop.f32.mrf.mxu1 }
 0x3a4   : > { %5949 = vmatmul.msk.bf16.gmra.mxu2 %vm797_vm1, %v6271_v56  ;;  %6013 = vmatmul.msk.bf16.gmra.mxu3 %vm797_vm1, %v6271_v56  ;;  %v8929_v25 = vadd.f32 %v1251_v59, %v6885_v43  ;;  %v8932_v14 = vadd.f32 %v1580_v57, %v6887_v44 }
 0x3a6   : > { %5565 = vmatmul.msk.bf16.gmra.mxu0 %vm797_vm1, %v6207_v2  ;;  %5629 = vmatmul.msk.bf16.gmra.mxu1 %vm797_vm1, %v6207_v2  ;;  %11224 = vst [vmem:[#allocation349_spill] sm:$0xff] %v8929_v25  ;;  %v6272_v2 = vld [vmem:[%s10442_s1 + $0x1d0] sm:$0xff] }
 0x3a7   : > { %v2695_v38 = vpop.f32.mrf.mxu2  ;;  %v3024_v48 = vpop.f32.mrf.mxu3  ;;  %11225 = vst [vmem:[#allocation350_spill] sm:$0xff] %v8932_v14  ;;  %v6208_v25 = vld [vmem:[%s6793_s25 + $0x1d0] sm:$0xff] }
 0x3a8   : > { %v8945_v59 = vadd.f32 %v2695_v38, %v6904_v54  ;;  %v8948_v57 = vadd.f32 %v3024_v48, %v6906_v55 }
 0x3aa   : > { %11228 = vst [vmem:[#allocation353_spill] sm:$0xff] %v8945_v59 }
 0x3ab   : > { %v1253_v39 = vpop.f32.mrf.mxu0  ;;  %v1582_v3 = vpop.f32.mrf.mxu1  ;;  %11229 = vst [vmem:[#allocation354_spill] sm:$0xff] %v8948_v57 }
 0x3ac   : > { %v8935_v36 = vadd.f32 %v1253_v39, %v6885_v43  ;;  %v8938_v56 = vadd.f32 %v1582_v3, %v6887_v44 }
 0x3ae   : > { %11226 = vst [vmem:[#allocation351_spill] sm:$0xff] %v8935_v36 }
 0x3af   : > { %11227 = vst [vmem:[#allocation352_spill] sm:$0xff] %v8938_v56  ;;  %v2697_v24 = vpop.f32.mrf.mxu2  ;;  %v3026_v17 = vpop.f32.mrf.mxu3 }
 0x3b0   : > { %v8951_v39 = vadd.f32 %v2697_v24, %v6904_v54  ;;  %v8954_v3 = vadd.f32 %v3026_v17, %v6906_v55 }
 0x3b2   : > { %11230 = vst [vmem:[#allocation355_spill] sm:$0xff] %v8951_v39 }
 0x3b3   : > { %11231 = vst [vmem:[#allocation356_spill] sm:$0xff] %v8954_v3  ;;  %v1256_v14 = vpop.f32.mrf.mxu0  ;;  %v1585_v48 = vpop.f32.mrf.mxu1 }
 0x3b4   : > { %5950 = vmatmul.msk.bf16.gmra.mxu2 %vm797_vm1, %v6272_v2  ;;  %6014 = vmatmul.msk.bf16.gmra.mxu3 %vm797_vm1, %v6272_v2  ;;  %v8969_v15 = vadd.f32 %v1256_v14, %v6885_v43  ;;  %v8972_v38 = vadd.f32 %v1585_v48, %v6887_v44 }
 0x3b6   : > { %5566 = vmatmul.msk.bf16.gmra.mxu0 %vm797_vm1, %v6208_v25  ;;  %5630 = vmatmul.msk.bf16.gmra.mxu1 %vm797_vm1, %v6208_v25  ;;  %11232 = vst [vmem:[#allocation357_spill] sm:$0xff] %v8969_v15  ;;  %v6273_v25 = vld [vmem:[%s10442_s1 + $0x1d8] sm:$0xff] }
 0x3b7   : > { %v2700_v24 = vpop.f32.mrf.mxu2  ;;  %v3029_v17 = vpop.f32.mrf.mxu3  ;;  %11233 = vst [vmem:[#allocation358_spill] sm:$0xff] %v8972_v38  ;;  %v6209_v15 = vld [vmem:[%s6793_s25 + $0x1d8] sm:$0xff] }
 0x3b8   : > { %v8985_v14 = vadd.f32 %v2700_v24, %v6904_v54  ;;  %v8988_v48 = vadd.f32 %v3029_v17, %v6906_v55 }
 0x3ba   : > { %11236 = vst [vmem:[#allocation361_spill] sm:$0xff] %v8985_v14 }
 0x3bb   : > { %v1258_v56 = vpop.f32.mrf.mxu0  ;;  %v1587_v36 = vpop.f32.mrf.mxu1  ;;  %11237 = vst [vmem:[#allocation362_spill] sm:$0xff] %v8988_v48 }
 0x3bc   : > { %v8975_v57 = vadd.f32 %v1258_v56, %v6885_v43  ;;  %v8978_v2 = vadd.f32 %v1587_v36, %v6887_v44 }
 0x3be   : > { %11234 = vst [vmem:[#allocation359_spill] sm:$0xff] %v8975_v57 }
 0x3bf   : > { %11235 = vst [vmem:[#allocation360_spill] sm:$0xff] %v8978_v2  ;;  %v2702_v59 = vpop.f32.mrf.mxu2  ;;  %v3031_v39 = vpop.f32.mrf.mxu3 }
 0x3c0   : > { %v8991_v56 = vadd.f32 %v2702_v59, %v6904_v54  ;;  %v8994_v36 = vadd.f32 %v3031_v39, %v6906_v55 }
 0x3c2   : > { %11238 = vst [vmem:[#allocation363_spill] sm:$0xff] %v8991_v56 }
 0x3c3   : > { %11239 = vst [vmem:[#allocation364_spill] sm:$0xff] %v8994_v36  ;;  %v1261_v38 = vpop.f32.mrf.mxu0  ;;  %v1590_v17 = vpop.f32.mrf.mxu1 }
 0x3c4   : > { %5951 = vmatmul.msk.bf16.gmra.mxu2 %vm797_vm1, %v6273_v25  ;;  %6015 = vmatmul.msk.bf16.gmra.mxu3 %vm797_vm1, %v6273_v25  ;;  %v9009_v3 = vadd.f32 %v1261_v38, %v6885_v43  ;;  %v9012_v24 = vadd.f32 %v1590_v17, %v6887_v44 }
 0x3c6   : > { %5567 = vmatmul.msk.bf16.gmra.mxu0 %vm797_vm1, %v6209_v15  ;;  %5631 = vmatmul.msk.bf16.gmra.mxu1 %vm797_vm1, %v6209_v15  ;;  %11240 = vst [vmem:[#allocation365_spill] sm:$0xff] %v9009_v3  ;;  %v6274_v15 = vld [vmem:[%s10442_s1 + $0x1e0] sm:$0xff] }
 0x3c7   : > { %v2705_v59 = vpop.f32.mrf.mxu2  ;;  %v3034_v39 = vpop.f32.mrf.mxu3  ;;  %11241 = vst [vmem:[#allocation366_spill] sm:$0xff] %v9012_v24  ;;  %v6210_v3 = vld [vmem:[%s6793_s25 + $0x1e0] sm:$0xff] }
 0x3c8   : > { %v9025_v38 = vadd.f32 %v2705_v59, %v6904_v54  ;;  %v9028_v17 = vadd.f32 %v3034_v39, %v6906_v55 }
 0x3ca   : > { %11244 = vst [vmem:[#allocation369_spill] sm:$0xff] %v9025_v38 }
 0x3cb   : > { %v1263_v2 = vpop.f32.mrf.mxu0  ;;  %v1592_v57 = vpop.f32.mrf.mxu1  ;;  %11245 = vst [vmem:[#allocation370_spill] sm:$0xff] %v9028_v17 }
 0x3cc   : > { %v9015_v48 = vadd.f32 %v1263_v2, %v6885_v43  ;;  %v9018_v25 = vadd.f32 %v1592_v57, %v6887_v44 }
 0x3ce   : > { %11242 = vst [vmem:[#allocation367_spill] sm:$0xff] %v9015_v48 }
 0x3cf   : > { %11243 = vst [vmem:[#allocation368_spill] sm:$0xff] %v9018_v25  ;;  %v2707_v14 = vpop.f32.mrf.mxu2  ;;  %v3036_v56 = vpop.f32.mrf.mxu3 }
 0x3d0   : > { %v9031_v2 = vadd.f32 %v2707_v14, %v6904_v54  ;;  %v9034_v57 = vadd.f32 %v3036_v56, %v6906_v55 }
 0x3d2   : > { %11246 = vst [vmem:[#allocation371_spill] sm:$0xff] %v9031_v2 }
 0x3d3   : > { %11247 = vst [vmem:[#allocation372_spill] sm:$0xff] %v9034_v57  ;;  %v1266_v24 = vpop.f32.mrf.mxu0  ;;  %v1595_v39 = vpop.f32.mrf.mxu1 }
 0x3d4   : > { %5952 = vmatmul.msk.bf16.gmra.mxu2 %vm797_vm1, %v6274_v15  ;;  %6016 = vmatmul.msk.bf16.gmra.mxu3 %vm797_vm1, %v6274_v15  ;;  %v9049_v36 = vadd.f32 %v1266_v24, %v6885_v43  ;;  %v9052_v59 = vadd.f32 %v1595_v39, %v6887_v44 }
 0x3d6   : > { %5568 = vmatmul.msk.bf16.gmra.mxu0 %vm797_vm1, %v6210_v3  ;;  %5632 = vmatmul.msk.bf16.gmra.mxu1 %vm797_vm1, %v6210_v3  ;;  %11248 = vst [vmem:[#allocation373_spill] sm:$0xff] %v9049_v36  ;;  %v6275_v3 = vld [vmem:[%s10442_s1 + $0x1e8] sm:$0xff] }
 0x3d7   : > { %v2710_v14 = vpop.f32.mrf.mxu2  ;;  %v3039_v56 = vpop.f32.mrf.mxu3  ;;  %11249 = vst [vmem:[#allocation374_spill] sm:$0xff] %v9052_v59  ;;  %v6211_v36 = vld [vmem:[%s6793_s25 + $0x1e8] sm:$0xff] }
 0x3d8   : > { %v9065_v24 = vadd.f32 %v2710_v14, %v6904_v54  ;;  %v9068_v39 = vadd.f32 %v3039_v56, %v6906_v55 }
 0x3da   : > { %11252 = vst [vmem:[#allocation377_spill] sm:$0xff] %v9065_v24 }
 0x3db   : > { %v1268_v25 = vpop.f32.mrf.mxu0  ;;  %v1597_v48 = vpop.f32.mrf.mxu1  ;;  %11253 = vst [vmem:[#allocation378_spill] sm:$0xff] %v9068_v39 }
 0x3dc   : > { %v9055_v17 = vadd.f32 %v1268_v25, %v6885_v43  ;;  %v9058_v15 = vadd.f32 %v1597_v48, %v6887_v44 }
 0x3de   : > { %11250 = vst [vmem:[#allocation375_spill] sm:$0xff] %v9055_v17 }
 0x3df   : > { %11251 = vst [vmem:[#allocation376_spill] sm:$0xff] %v9058_v15  ;;  %v2712_v38 = vpop.f32.mrf.mxu2  ;;  %v3041_v2 = vpop.f32.mrf.mxu3 }
 0x3e0   : > { %v9071_v25 = vadd.f32 %v2712_v38, %v6904_v54  ;;  %v9074_v48 = vadd.f32 %v3041_v2, %v6906_v55 }
 0x3e2   : > { %11254 = vst [vmem:[#allocation379_spill] sm:$0xff] %v9071_v25 }
 0x3e3   : > { %11255 = vst [vmem:[#allocation380_spill] sm:$0xff] %v9074_v48  ;;  %v1271_v59 = vpop.f32.mrf.mxu0  ;;  %v1600_v56 = vpop.f32.mrf.mxu1 }
 0x3e4   : > { %5953 = vmatmul.msk.bf16.gmra.mxu2 %vm797_vm1, %v6275_v3  ;;  %6017 = vmatmul.msk.bf16.gmra.mxu3 %vm797_vm1, %v6275_v3  ;;  %v9089_v57 = vadd.f32 %v1271_v59, %v6885_v43  ;;  %v9092_v14 = vadd.f32 %v1600_v56, %v6887_v44 }
 0x3e6   : > { %5569 = vmatmul.msk.bf16.gmra.mxu0 %vm797_vm1, %v6211_v36  ;;  %5633 = vmatmul.msk.bf16.gmra.mxu1 %vm797_vm1, %v6211_v36  ;;  %11256 = vst [vmem:[#allocation381_spill] sm:$0xff] %v9089_v57  ;;  %v6276_v36 = vld [vmem:[%s10442_s1 + $0x1f0] sm:$0xff] }
 0x3e7   : > { %v2715_v38 = vpop.f32.mrf.mxu2  ;;  %v3044_v2 = vpop.f32.mrf.mxu3  ;;  %11257 = vst [vmem:[#allocation382_spill] sm:$0xff] %v9092_v14  ;;  %v6212_v57 = vld [vmem:[%s6793_s25 + $0x1f0] sm:$0xff] }
 0x3e8   : > { %v9105_v59 = vadd.f32 %v2715_v38, %v6904_v54  ;;  %v9108_v56 = vadd.f32 %v3044_v2, %v6906_v55 }
 0x3ea   : > { %11260 = vst [vmem:[#allocation385_spill] sm:$0xff] %v9105_v59 }
 0x3eb   : > { %v1273_v15 = vpop.f32.mrf.mxu0  ;;  %v1602_v17 = vpop.f32.mrf.mxu1  ;;  %11261 = vst [vmem:[#allocation386_spill] sm:$0xff] %v9108_v56 }
 0x3ec   : > { %v9095_v39 = vadd.f32 %v1273_v15, %v6885_v43  ;;  %v9098_v3 = vadd.f32 %v1602_v17, %v6887_v44 }
 0x3ee   : > { %11258 = vst [vmem:[#allocation383_spill] sm:$0xff] %v9095_v39 }
 0x3ef   : > { %11259 = vst [vmem:[#allocation384_spill] sm:$0xff] %v9098_v3  ;;  %v2717_v24 = vpop.f32.mrf.mxu2  ;;  %v3046_v25 = vpop.f32.mrf.mxu3 }
 0x3f0   : > { %v9111_v15 = vadd.f32 %v2717_v24, %v6904_v54  ;;  %v9114_v17 = vadd.f32 %v3046_v25, %v6906_v55 }
 0x3f2   : > { %11262 = vst [vmem:[#allocation387_spill] sm:$0xff] %v9111_v15 }
 0x3f3   : > { %11263 = vst [vmem:[#allocation388_spill] sm:$0xff] %v9114_v17  ;;  %v1276_v14 = vpop.f32.mrf.mxu0  ;;  %v1605_v2 = vpop.f32.mrf.mxu1 }
 0x3f4   : > { %5954 = vmatmul.msk.bf16.gmra.mxu2 %vm797_vm1, %v6276_v36  ;;  %6018 = vmatmul.msk.bf16.gmra.mxu3 %vm797_vm1, %v6276_v36  ;;  %v9129_v48 = vadd.f32 %v1276_v14, %v6885_v43  ;;  %v9132_v38 = vadd.f32 %v1605_v2, %v6887_v44 }
 0x3f6   : > { %5570 = vmatmul.msk.bf16.gmra.mxu0 %vm797_vm1, %v6212_v57  ;;  %5634 = vmatmul.msk.bf16.gmra.mxu1 %vm797_vm1, %v6212_v57  ;;  %11264 = vst [vmem:[#allocation389_spill] sm:$0xff] %v9129_v48  ;;  %v6277_v57 = vld [vmem:[%s10442_s1 + $0x1f8] sm:$0xff] }
 0x3f7   : > { %v2720_v24 = vpop.f32.mrf.mxu2  ;;  %v3049_v25 = vpop.f32.mrf.mxu3  ;;  %11265 = vst [vmem:[#allocation390_spill] sm:$0xff] %v9132_v38  ;;  %v6213_v48 = vld [vmem:[%s6793_s25 + $0x1f8] sm:$0xff] }
 0x3f8   : > { %v9145_v14 = vadd.f32 %v2720_v24, %v6904_v54  ;;  %v9148_v2 = vadd.f32 %v3049_v25, %v6906_v55 }
 0x3fa   : > { %11268 = vst [vmem:[#allocation393_spill] sm:$0xff] %v9145_v14 }
 0x3fb   : > { %v1278_v3 = vpop.f32.mrf.mxu0  ;;  %v1607_v39 = vpop.f32.mrf.mxu1  ;;  %11269 = vst [vmem:[#allocation394_spill] sm:$0xff] %v9148_v2 }
 0x3fc   : > { %v9135_v56 = vadd.f32 %v1278_v3, %v6885_v43  ;;  %v9138_v36 = vadd.f32 %v1607_v39, %v6887_v44 }
 0x3fe   : > { %11266 = vst [vmem:[#allocation391_spill] sm:$0xff] %v9135_v56 }
 0x3ff   : > { %11267 = vst [vmem:[#allocation392_spill] sm:$0xff] %v9138_v36  ;;  %v2722_v59 = vpop.f32.mrf.mxu2  ;;  %v3051_v15 = vpop.f32.mrf.mxu3 }
 0x400   : > { %v9151_v3 = vadd.f32 %v2722_v59, %v6904_v54  ;;  %v9154_v39 = vadd.f32 %v3051_v15, %v6906_v55 }
 0x402   : > { %11270 = vst [vmem:[#allocation395_spill] sm:$0xff] %v9154_v39 }
 0x403   : > { %v1281_v38 = vpop.f32.mrf.mxu0  ;;  %v1610_v25 = vpop.f32.mrf.mxu1 }
 0x404   : > { %5955 = vmatmul.msk.bf16.gmra.mxu2 %vm797_vm1, %v6277_v57  ;;  %6019 = vmatmul.msk.bf16.gmra.mxu3 %vm797_vm1, %v6277_v57  ;;  %v9169_v16 = vadd.f32 %v1281_v38, %v6885_v43  ;;  %v9172_v17 = vadd.f32 %v1610_v25, %v6887_v44 }
 0x406   : > { %5571 = vmatmul.msk.bf16.gmra.mxu0 %vm797_vm1, %v6213_v48  ;;  %5635 = vmatmul.msk.bf16.gmra.mxu1 %vm797_vm1, %v6213_v48  ;;  %11271 = vst [vmem:[#allocation396_spill] sm:$0xff] %v9172_v17 }
 0x407   : > { %v2725_v59 = vpop.f32.mrf.mxu2  ;;  %v3054_v15 = vpop.f32.mrf.mxu3 }
 0x408   : > { %v9185_v38 = vadd.f32 %v2725_v59, %v6904_v54  ;;  %v9188_v25 = vadd.f32 %v3054_v15, %v6906_v55  ;;  %v11276_v59 = vpack.c.bf16 %v6899_v52, %v6893_v50  ;;  %v11277_v15 = vpack.c.bf16 %v6902_v53, %v6896_v51 }
 0x40a   : > { %11273 = vst [vmem:[#allocation398_spill] sm:$0xff] %v9185_v38 }
 0x40b   : > { %v1283_v36 = vpop.f32.mrf.mxu0  ;;  %v1612_v56 = vpop.f32.mrf.mxu1  ;;  %11274 = vst [vmem:[#allocation399_spill] sm:$0xff] %v9188_v25 }
 0x40c   : > { %v9175_v24 = vadd.f32 %v1283_v36, %v6885_v43  ;;  %v9178_v2 = vadd.f32 %v1612_v56, %v6887_v44 }
 0x40e   : > { %11272 = vst [vmem:[#allocation397_spill] sm:$0xff] %v9178_v2 }
 0x40f   : > { %v2727_v39 = vpop.f32.mrf.mxu2  ;;  %v3056_v14 = vpop.f32.mrf.mxu3 }
 0x410   : > { %v9191_v36 = vadd.f32 %v2727_v39, %v6904_v54  ;;  %v9194_v56 = vadd.f32 %v3056_v14, %v6906_v55  ;;  %v11278_v14 = vpack.c.bf16 %v6919_v62, %v6913_v60  ;;  %v11279_v39 = vpack.c.bf16 %v6922_v63, %v6916_v61 }
 0x412   : > { %11275 = vst [vmem:[#allocation400_spill] sm:$0xff] %v9194_v56 }
 0x413   : > { %v1286_v17 = vpop.f32.mrf.mxu0  ;;  %v1615_v2 = vpop.f32.mrf.mxu1 }
 0x414   : > { %4149 = vmatmul.bf16.vlgmr.msrb.gmra.mxu2 %v11276_v59  ;;  %4478 = vmatmul.bf16.vlgmr.msrb.gmra.mxu3 %v11277_v15  ;;  %v9213_v38 = vadd.f32 %v1286_v17, %v6885_v43  ;;  %v9216_v50 = vadd.f32 %v1615_v2, %v6887_v44 }
 0x416   : > { %3395 = vmatmul.bf16.vlgmr.msrb.gmra.mxu0 %v11278_v14  ;;  %3724 = vmatmul.bf16.vlgmr.msrb.gmra.mxu1 %v11279_v39  ;;  %v11282_v39 = vpack.c.bf16 %v6959_v20, %v6953_v18 }
 0x417   : > { %v2730_v57 = vpop.f32.mrf.mxu2  ;;  %v3059_v48 = vpop.f32.mrf.mxu3 }
 0x418   : > { %v9229_v63 = vadd.f32 %v2730_v57, %v6904_v54  ;;  %v9232_v17 = vadd.f32 %v3059_v48, %v6906_v55  ;;  %v11280_v57 = vpack.c.bf16 %v6943_v12, %v6937_v10  ;;  %v11281_v48 = vpack.c.bf16 %v6946_v13, %v6940_v11 }
 0x41b   : > { %v1288_v25 = vpop.f32.mrf.mxu0  ;;  %v1617_v56 = vpop.f32.mrf.mxu1 }
 0x41c   : > { %v9219_v51 = vadd.f32 %v1288_v25, %v6885_v43  ;;  %v9222_v52 = vadd.f32 %v1617_v56, %v6887_v44 }
 0x41f   : > { %v2732_v61 = vpop.f32.mrf.mxu2  ;;  %v3061_v62 = vpop.f32.mrf.mxu3 }
 0x420   : > { %v9235_v2 = vadd.f32 %v2732_v61, %v6904_v54  ;;  %v9238_v25 = vadd.f32 %v3061_v62, %v6906_v55  ;;  %v11283_v61 = vpack.c.bf16 %v6962_v21, %v6956_v19 }
 0x423   : > { %v1291_v15 = vpop.f32.mrf.mxu0  ;;  %v1620_v14 = vpop.f32.mrf.mxu1 }
 0x424   : > { %4154 = vmatmul.bf16.gmra.mxu2 %v11280_v57  ;;  %4483 = vmatmul.bf16.gmra.mxu3 %v11281_v48  ;;  %v9257_v53 = vadd.f32 %v1291_v15, %v6885_v43  ;;  %v9260_v10 = vadd.f32 %v1620_v14, %v6887_v44 }
 0x426   : > { %3400 = vmatmul.bf16.gmra.mxu0 %v11282_v39  ;;  %3729 = vmatmul.bf16.gmra.mxu1 %v11283_v61  ;;  %v11284_v61 = vpack.c.bf16 %v6983_v34, %v6977_v32 }
 0x427   : > { %v2735_v62 = vpop.f32.mrf.mxu2  ;;  %v3064_v59 = vpop.f32.mrf.mxu3 }
 0x428   : > { %v9273_v21 = vadd.f32 %v2735_v62, %v6904_v54  ;;  %v9276_v15 = vadd.f32 %v3064_v59, %v6906_v55  ;;  %v11285_v59 = vpack.c.bf16 %v6986_v35, %v6980_v33  ;;  %v11286_v62 = vpack.c.bf16 %v6999_v42, %v6993_v40 }
 0x42b   : > { %v1293_v56 = vpop.f32.mrf.mxu0  ;;  %v1622_v60 = vpop.f32.mrf.mxu1 }
 0x42c   : > { %v9263_v11 = vadd.f32 %v1293_v56, %v6885_v43  ;;  %v9266_v12 = vadd.f32 %v1622_v60, %v6887_v44 }
 0x42f   : > { %v2737_v19 = vpop.f32.mrf.mxu2  ;;  %v3066_v20 = vpop.f32.mrf.mxu3 }
 0x430   : > { %v9279_v56 = vadd.f32 %v2737_v19, %v6904_v54  ;;  %v9282_v60 = vadd.f32 %v3066_v20, %v6906_v55  ;;  %v11287_v19 = vpack.c.bf16 %v7002_v45, %v6996_v41 }
 0x433   : > { %v1296_v48 = vpop.f32.mrf.mxu0  ;;  %v1625_v39 = vpop.f32.mrf.mxu1 }
 0x434   : > { %4159 = vmatmul.bf16.gmra.mxu2 %v11284_v61  ;;  %4488 = vmatmul.bf16.gmra.mxu3 %v11285_v59  ;;  %v9301_v13 = vadd.f32 %v1296_v48, %v6885_v43  ;;  %v9304_v32 = vadd.f32 %v1625_v39, %v6887_v44 }
 0x436   : > { %3405 = vmatmul.bf16.gmra.mxu0 %v11286_v62  ;;  %3734 = vmatmul.bf16.gmra.mxu1 %v11287_v19  ;;  %v11288_v19 = vpack.c.bf16 %v7023_v8, %v7017_v6 }
 0x437   : > { %v2740_v20 = vpop.f32.mrf.mxu2  ;;  %v3069_v57 = vpop.f32.mrf.mxu3 }
 0x438   : > { %v9317_v45 = vadd.f32 %v2740_v20, %v6904_v54  ;;  %v9320_v48 = vadd.f32 %v3069_v57, %v6906_v55  ;;  %v11289_v57 = vpack.c.bf16 %v7026_v9, %v7020_v7  ;;  %v11290_v20 = vpack.c.bf16 %v7039_v28, %v7033_v26 }
 0x43b   : > { %v1298_v14 = vpop.f32.mrf.mxu0  ;;  %v1627_v18 = vpop.f32.mrf.mxu1 }
 0x43c   : > { %v9307_v33 = vadd.f32 %v1298_v14, %v6885_v43  ;;  %v9310_v34 = vadd.f32 %v1627_v18, %v6887_v44 }
 0x43f   : > { %v2742_v41 = vpop.f32.mrf.mxu2  ;;  %v3071_v42 = vpop.f32.mrf.mxu3 }
 0x440   : > { %v9323_v14 = vadd.f32 %v2742_v41, %v6904_v54  ;;  %v9326_v18 = vadd.f32 %v3071_v42, %v6906_v55  ;;  %v11291_v41 = vpack.c.bf16 %v7042_v29, %v7036_v27 }
 0x443   : > { %v1301_v59 = vpop.f32.mrf.mxu0  ;;  %v1630_v62 = vpop.f32.mrf.mxu1 }
 0x444   : > { %4164 = vmatmul.bf16.gmra.mxu2 %v11288_v19  ;;  %4493 = vmatmul.bf16.gmra.mxu3 %v11289_v57  ;;  %v9345_v35 = vadd.f32 %v1301_v59, %v6885_v43  ;;  %v9348_v6 = vadd.f32 %v1630_v62, %v6887_v44 }
 0x446   : > { %3410 = vmatmul.bf16.gmra.mxu0 %v11290_v20  ;;  %3739 = vmatmul.bf16.gmra.mxu1 %v11291_v41  ;;  %v11292_v41 = vpack.c.bf16 %v7063_v22, %v7057_v4 }
 0x447   : > { %v2745_v42 = vpop.f32.mrf.mxu2  ;;  %v3074_v61 = vpop.f32.mrf.mxu3 }
 0x448   : > { %v9361_v29 = vadd.f32 %v2745_v42, %v6904_v54  ;;  %v9364_v59 = vadd.f32 %v3074_v61, %v6906_v55  ;;  %v11293_v61 = vpack.c.bf16 %v7066_v23, %v7060_v5  ;;  %v11294_v42 = vpack.c.bf16 %v7079_v0, %v7073_v46  ;;  %v11304_v46 = vld [vmem:[#allocation3_spill] sm:$0xff] }
 0x44b   : > { %v1303_v39 = vpop.f32.mrf.mxu0  ;;  %v1632_v40 = vpop.f32.mrf.mxu1 }
 0x44c   : > { %v9351_v7 = vadd.f32 %v1303_v39, %v6885_v43  ;;  %v9354_v8 = vadd.f32 %v1632_v40, %v6887_v44 }
 0x44f   : > { %v2747_v27 = vpop.f32.mrf.mxu2  ;;  %v3076_v28 = vpop.f32.mrf.mxu3 }
 0x450   : > { %v9367_v39 = vadd.f32 %v2747_v27, %v6904_v54  ;;  %v9370_v40 = vadd.f32 %v3076_v28, %v6906_v55  ;;  %v11295_v27 = vpack.c.bf16 %v7082_v1, %v7076_v47 }
 0x453   : > { %v1306_v57 = vpop.f32.mrf.mxu0  ;;  %v1635_v20 = vpop.f32.mrf.mxu1 }
 0x454   : > { %4169 = vmatmul.bf16.gmra.mxu2 %v11292_v41  ;;  %4498 = vmatmul.bf16.gmra.mxu3 %v11293_v61  ;;  %v9389_v9 = vadd.f32 %v1306_v57, %v6885_v43  ;;  %v9392_v4 = vadd.f32 %v1635_v20, %v6887_v44 }
 0x456   : > { %3415 = vmatmul.bf16.gmra.mxu0 %v11294_v42  ;;  %3744 = vmatmul.bf16.gmra.mxu1 %v11295_v27  ;;  %v11299_v27 = vpack.c.bf16 %v7103_v37, %v7097_v31 }
 0x457   : > { %v2750_v28 = vpop.f32.mrf.mxu2  ;;  %v3079_v19 = vpop.f32.mrf.mxu3 }
 0x458   : > { %v9405_v1 = vadd.f32 %v2750_v28, %v6904_v54  ;;  %v9408_v57 = vadd.f32 %v3079_v19, %v6906_v55  ;;  %v11300_v19 = vpack.c.bf16 %v7106_v30, %v7100_v58  ;;  %v11301_v28 = vld [vmem:[#allocation2_spill] sm:$0xff] }
 0x459   : > { %v11318_v30 = vld [vmem:[#allocation6_spill] sm:$0xff] }
 0x45a   : > { %11296 = vst [vmem:[#allocation401_spill] sm:$0xff] %v9405_v1 }
 0x45b   : > { %v1308_v62 = vpop.f32.mrf.mxu0  ;;  %v1637_v26 = vpop.f32.mrf.mxu1  ;;  %11297 = vst [vmem:[#allocation402_spill] sm:$0xff] %v9408_v57 }
 0x45c   : > { %v9395_v5 = vadd.f32 %v1308_v62, %v6885_v43  ;;  %v9398_v22 = vadd.f32 %v1637_v26, %v6887_v44 }
 0x45f   : > { %v2752_v47 = vpop.f32.mrf.mxu2  ;;  %v3081_v0 = vpop.f32.mrf.mxu3 }
 0x460   : > { %v9411_v62 = vadd.f32 %v2752_v47, %v6904_v54  ;;  %v9414_v26 = vadd.f32 %v3081_v0, %v6906_v55  ;;  %v11302_v47 = vpack.c.bf16 %v7119_v49, %v11301_v28  ;;  %v11303_v0 = vld [vmem:[#allocation4_spill] sm:$0xff] }
 0x461   : > { %v11305_v20 = vpack.c.bf16 %v11303_v0, %v11304_v46  ;;  %v11314_v0 = vld [vmem:[#allocation7_spill] sm:$0xff] }
 0x462   : > { %11298 = vst [vmem:[#allocation403_spill] sm:$0xff] %v9414_v26 }
 0x463   : > { %v1311_v61 = vpop.f32.mrf.mxu0  ;;  %v1640_v42 = vpop.f32.mrf.mxu1 }
 0x464   : > { %4174 = vmatmul.bf16.gmra.mxu2 %v11299_v27  ;;  %4503 = vmatmul.bf16.gmra.mxu3 %v11300_v19  ;;  %v9433_v1 = vadd.f32 %v1311_v61, %v6885_v43  ;;  %v9436_v37 = vadd.f32 %v1640_v42, %v6887_v44 }
 0x466   : > { %3420 = vmatmul.bf16.gmra.mxu0 %v11302_v47  ;;  %3749 = vmatmul.bf16.gmra.mxu1 %v11305_v20  ;;  %11306 = vst [vmem:[#allocation2_spill] sm:$0xff] %v9433_v1  ;;  %v11323_v1 = vld [vmem:[#allocation12_spill] sm:$0xff] }
 0x467   : > { %v2755_v23 = vpop.f32.mrf.mxu2  ;;  %v3084_v41 = vpop.f32.mrf.mxu3  ;;  %11307 = vst [vmem:[#allocation4_spill] sm:$0xff] %v9436_v37 }
 0x468   : > { %v9449_v61 = vadd.f32 %v2755_v23, %v6904_v54  ;;  %v9452_v42 = vadd.f32 %v3084_v41, %v6906_v55  ;;  %v11315_v23 = vld [vmem:[#allocation5_spill] sm:$0xff]  ;;  %v11317_v41 = vld [vmem:[#allocation8_spill] sm:$0xff] }
 0x469   : > { %v11316_v49 = vpack.c.bf16 %v11314_v0, %v11315_v23  ;;  %v11319_v37 = vpack.c.bf16 %v11317_v41, %v11318_v30 }
 0x46a   : > { %11310 = vst [vmem:[#allocation405_spill] sm:$0xff] %v9449_v61 }
 0x46b   : > { %v1313_v57 = vpop.f32.mrf.mxu0  ;;  %v1642_v26 = vpop.f32.mrf.mxu1  ;;  %11311 = vst [vmem:[#allocation406_spill] sm:$0xff] %v9452_v42 }
 0x46c   : > { %v9439_v31 = vadd.f32 %v1313_v57, %v6885_v43  ;;  %v9442_v58 = vadd.f32 %v1642_v26, %v6887_v44 }
 0x46e   : > { %11308 = vst [vmem:[#allocation3_spill] sm:$0xff] %v9439_v31  ;;  %v11324_v31 = vld [vmem:[#allocation10_spill] sm:$0xff] }
 0x46f   : > { %11309 = vst [vmem:[#allocation404_spill] sm:$0xff] %v9442_v58  ;;  %v2757_v46 = vpop.f32.mrf.mxu2  ;;  %v3086_v20 = vpop.f32.mrf.mxu3  ;;  %v11321_v58 = vld [vmem:[#allocation9_spill] sm:$0xff]  ;;  %v11325_v27 = vpack.c.bf16 %v11323_v1, %v11324_v31  ;;  %v11338_v1 = vld [vmem:[#allocation14_spill] sm:$0xff] }
 0x470   : > { %v9455_v57 = vadd.f32 %v2757_v46, %v6904_v54  ;;  %v9458_v26 = vadd.f32 %v3086_v20, %v6906_v55  ;;  %v11320_v46 = vld [vmem:[#allocation11_spill] sm:$0xff] }
 0x471   : > { %v11322_v20 = vpack.c.bf16 %v11320_v46, %v11321_v58 }
 0x472   : > { %11312 = vst [vmem:[#allocation407_spill] sm:$0xff] %v9455_v57 }
 0x473   : > { %11313 = vst [vmem:[#allocation408_spill] sm:$0xff] %v9458_v26  ;;  %v1316_v28 = vpop.f32.mrf.mxu0  ;;  %v1645_v47 = vpop.f32.mrf.mxu1 }
 0x474   : > { %4179 = vmatmul.bf16.gmra.mxu2 %v11316_v49  ;;  %4508 = vmatmul.bf16.gmra.mxu3 %v11319_v37  ;;  %v9477_v57 = vadd.f32 %v1316_v28, %v6885_v43  ;;  %v9480_v49 = vadd.f32 %v1645_v47, %v6887_v44 }
 0x476   : > { %3425 = vmatmul.bf16.gmra.mxu0 %v11322_v20  ;;  %3754 = vmatmul.bf16.gmra.mxu1 %v11325_v27  ;;  %11326 = vst [vmem:[#allocation7_spill] sm:$0xff] %v9477_v57  ;;  %v11334_v20 = vld [vmem:[#allocation15_spill] sm:$0xff]  ;;  %v11343_v57 = vld [vmem:[#allocation20_spill] sm:$0xff] }
 0x477   : > { %v2760_v61 = vpop.f32.mrf.mxu2  ;;  %v3089_v19 = vpop.f32.mrf.mxu3  ;;  %11327 = vst [vmem:[#allocation5_spill] sm:$0xff] %v9480_v49 }
 0x478   : > { %v9493_v28 = vadd.f32 %v2760_v61, %v6904_v54  ;;  %v9496_v47 = vadd.f32 %v3089_v19, %v6906_v55  ;;  %v11335_v61 = vld [vmem:[#allocation13_spill] sm:$0xff]  ;;  %v11337_v19 = vld [vmem:[#allocation16_spill] sm:$0xff] }
 0x479   : > { %v11336_v31 = vpack.c.bf16 %v11334_v20, %v11335_v61  ;;  %v11339_v49 = vpack.c.bf16 %v11337_v19, %v11338_v1  ;;  %v11354_v19 = vld [vmem:[#allocation23_spill] sm:$0xff] }
 0x47a   : > { %11330 = vst [vmem:[#allocation11_spill] sm:$0xff] %v9493_v28 }
 0x47b   : > { %v1318_v42 = vpop.f32.mrf.mxu0  ;;  %v1647_v26 = vpop.f32.mrf.mxu1  ;;  %11331 = vst [vmem:[#allocation9_spill] sm:$0xff] %v9496_v47 }
 0x47c   : > { %v9483_v37 = vadd.f32 %v1318_v42, %v6885_v43  ;;  %v9486_v58 = vadd.f32 %v1647_v26, %v6887_v44 }
 0x47e   : > { %11328 = vst [vmem:[#allocation8_spill] sm:$0xff] %v9483_v37  ;;  %v11344_v37 = vld [vmem:[#allocation18_spill] sm:$0xff] }
 0x47f   : > { %11329 = vst [vmem:[#allocation6_spill] sm:$0xff] %v9486_v58  ;;  %v2762_v30 = vpop.f32.mrf.mxu2  ;;  %v3091_v27 = vpop.f32.mrf.mxu3  ;;  %v11341_v58 = vld [vmem:[#allocation17_spill] sm:$0xff]  ;;  %v11345_v0 = vpack.c.bf16 %v11343_v57, %v11344_v37  ;;  %v11364_v57 = vld [vmem:[#allocation26_spill] sm:$0xff] }
 0x480   : > { %v9499_v42 = vadd.f32 %v2762_v30, %v6904_v54  ;;  %v9502_v26 = vadd.f32 %v3091_v27, %v6906_v55  ;;  %v11340_v30 = vld [vmem:[#allocation19_spill] sm:$0xff] }
 0x481   : > { %v11342_v27 = vpack.c.bf16 %v11340_v30, %v11341_v58 }
 0x482   : > { %11332 = vst [vmem:[#allocation12_spill] sm:$0xff] %v9499_v42 }
 0x483   : > { %11333 = vst [vmem:[#allocation10_spill] sm:$0xff] %v9502_v26  ;;  %v1321_v41 = vpop.f32.mrf.mxu0  ;;  %v1650_v46 = vpop.f32.mrf.mxu1 }
 0x484   : > { %4184 = vmatmul.bf16.gmra.mxu2 %v11336_v31  ;;  %4513 = vmatmul.bf16.gmra.mxu3 %v11339_v49  ;;  %v9521_v42 = vadd.f32 %v1321_v41, %v6885_v43  ;;  %v9524_v31 = vadd.f32 %v1650_v46, %v6887_v44 }
 0x486   : > { %3430 = vmatmul.bf16.gmra.mxu0 %v11342_v27  ;;  %3759 = vmatmul.bf16.gmra.mxu1 %v11345_v0  ;;  %11346 = vst [vmem:[#allocation15_spill] sm:$0xff] %v9521_v42  ;;  %v11358_v27 = vld [vmem:[#allocation22_spill] sm:$0xff] }
 0x487   : > { %v2765_v28 = vpop.f32.mrf.mxu2  ;;  %v3094_v23 = vpop.f32.mrf.mxu3  ;;  %11347 = vst [vmem:[#allocation13_spill] sm:$0xff] %v9524_v31 }
 0x488   : > { %v9537_v41 = vadd.f32 %v2765_v28, %v6904_v54  ;;  %v9540_v46 = vadd.f32 %v3094_v23, %v6906_v55  ;;  %v11355_v28 = vld [vmem:[#allocation21_spill] sm:$0xff]  ;;  %v11357_v23 = vld [vmem:[#allocation24_spill] sm:$0xff] }
 0x489   : > { %v11356_v30 = vpack.c.bf16 %v11354_v19, %v11355_v28  ;;  %v11359_v37 = vpack.c.bf16 %v11357_v23, %v11358_v27 }
 0x48a   : > { %11350 = vst [vmem:[#allocation19_spill] sm:$0xff] %v9537_v41 }
 0x48b   : > { %v1323_v47 = vpop.f32.mrf.mxu0  ;;  %v1652_v26 = vpop.f32.mrf.mxu1  ;;  %11351 = vst [vmem:[#allocation17_spill] sm:$0xff] %v9540_v46 }
 0x48c   : > { %v9527_v49 = vadd.f32 %v1323_v47, %v6885_v43  ;;  %v9530_v58 = vadd.f32 %v1652_v26, %v6887_v44 }
 0x48e   : > { %11348 = vst [vmem:[#allocation16_spill] sm:$0xff] %v9527_v49 }
 0x48f   : > { %11349 = vst [vmem:[#allocation14_spill] sm:$0xff] %v9530_v58  ;;  %v2767_v1 = vpop.f32.mrf.mxu2  ;;  %v3096_v0 = vpop.f32.mrf.mxu3 }
 0x490   : > { %v9543_v43 = vadd.f32 %v2767_v1, %v6904_v54  ;;  %v9546_v44 = vadd.f32 %v3096_v0, %v6906_v55  ;;  %v11360_v54 = vld [vmem:[#allocation27_spill] sm:$0xff]  ;;  %v11361_v1 = vld [vmem:[#allocation25_spill] sm:$0xff]  ;;  %v11363_v0 = vld [vmem:[#allocation28_spill] sm:$0xff] }
 0x491   : > { %v11362_v55 = vpack.c.bf16 %v11360_v54, %v11361_v1  ;;  %v11365_v47 = vpack.c.bf16 %v11363_v0, %v11364_v57 }
 0x492   : > { %11352 = vst [vmem:[#allocation20_spill] sm:$0xff] %v9543_v43 }
 0x493   : > { %11353 = vst [vmem:[#allocation18_spill] sm:$0xff] %v9546_v44  ;;  %v3396_v20 = vpop.f32.mrf.mxu0  ;;  %v3725_v61 = vpop.f32.mrf.mxu1 }
 0x494   : > { %4189 = vmatmul.bf16.gmra.mxu2 %v11356_v30  ;;  %4518 = vmatmul.bf16.gmra.mxu3 %v11359_v37  ;;  %v3726_v46 = vadd.f32 %v3725_v61, %v3396_v20  ;;  %v9567_v37 = vld [vmem:[%s10449_s8] ss:$0 sm:$0xff]  ;;  %v11366_v61 = vld [vmem:[#allocation31_spill] sm:$0xff] }
 0x496   : > { %3435 = vmatmul.bf16.gmra.mxu0 %v11362_v55  ;;  %3764 = vmatmul.bf16.gmra.mxu1 %v11365_v47  ;;  %v11367_v55 = vld [vmem:[#allocation29_spill] sm:$0xff] }
 0x497   : > { %v4150_v41 = vpop.f32.mrf.mxu2  ;;  %v4479_v26 = vpop.f32.mrf.mxu3 }
 0x498   : > { %v4151_v19 = vadd.f32 %v4150_v41, %v3726_v46  ;;  %v11368_v41 = vpack.c.bf16 %v11366_v61, %v11367_v55  ;;  %v11369_v46 = vld [vmem:[#allocation32_spill] sm:$0xff] }
 0x49a   : > { %v4480_v23 = vadd.f32 %v4479_v26, %v4151_v19  ;;  %v11373_v26 = vld [vmem:[#allocation33_spill] sm:$0xff]  ;;  %v11375_v19 = vld [vmem:[#allocation36_spill] sm:$0xff] }
 0x49b   : > { %v3398_v44 = vpop.f32.mrf.mxu0  ;;  %v3727_v43 = vpop.f32.mrf.mxu1 }
 0x49c   : > { %v3728_v28 = vadd.f32 %v3727_v43, %v3398_v44  ;;  %v4803_v1 = vadd.f32 %v9567_v37, %v4480_v23  ;;  %v11370_v43 = vld [vmem:[#allocation30_spill] sm:$0xff] }
 0x49d   : > { %v11371_v44 = vpack.c.bf16 %v11369_v46, %v11370_v43 }
 0x49f   : > { %v4152_v30 = vpop.f32.mrf.mxu2  ;;  %v4481_v31 = vpop.f32.mrf.mxu3 }
 0x4a0   : > { %v4153_v27 = vadd.f32 %v4152_v30, %v3728_v28  ;;  %v11376_v28 = vld [vmem:[#allocation34_spill] sm:$0xff] }
 0x4a1   : > { %v11377_v30 = vpack.c.bf16 %v11375_v19, %v11376_v28  ;;  %v11379_v28 = vld [vmem:[#allocation37_spill] sm:$0xff] }
 0x4a2   : > { %v4482_v54 = vadd.f32 %v4481_v31, %v4153_v27  ;;  %v11372_v31 = vld [vmem:[#allocation35_spill] sm:$0xff] }
 0x4a3   : > { %v3401_v57 = vpop.f32.mrf.mxu0  ;;  %v3730_v47 = vpop.f32.mrf.mxu1  ;;  %v11374_v0 = vpack.c.bf16 %v11372_v31, %v11373_v26 }
 0x4a4   : > { %v4804_v20 = vadd.f32 %v9567_v37, %v4482_v54  ;;  %4194 = vmatmul.bf16.gmra.mxu2 %v11368_v41  ;;  %4523 = vmatmul.bf16.gmra.mxu3 %v11371_v44  ;;  %v3731_v61 = vadd.f32 %v3730_v47, %v3401_v57  ;;  %v11381_v57 = vld [vmem:[#allocation40_spill] sm:$0xff]  ;;  %v11382_v47 = vld [vmem:[#allocation38_spill] sm:$0xff] }
 0x4a6   : > { %3440 = vmatmul.bf16.gmra.mxu0 %v11374_v0  ;;  %3769 = vmatmul.bf16.gmra.mxu1 %v11377_v30  ;;  %v6313_v23 = vpack.c.bf16 %v4804_v20, %v4803_v1  ;;  %v11378_v20 = vld [vmem:[#allocation39_spill] sm:$0xff] }
 0x4a7   : > { %v4155_v27 = vpop.f32.mrf.mxu2  ;;  %v4484_v54 = vpop.f32.mrf.mxu3  ;;  %v11380_v30 = vpack.c.bf16 %v11378_v20, %v11379_v28 }
 0x4a8   : > { %6314 = vst [vmem:[%s9582_s12] sm:$0xff] %v6313_v23   ;;  %v4156_v46 = vadd.f32 %v4155_v27, %v3731_v61  ;;  %v11383_v23 = vpack.c.bf16 %v11381_v57, %v11382_v47  ;;  %v11384_v27 = vld [vmem:[#allocation43_spill] sm:$0xff]  ;;  %v11385_v61 = vld [vmem:[#allocation41_spill] sm:$0xff] }
 0x4aa   : > { %v4485_v42 = vadd.f32 %v4484_v54, %v4156_v46  ;;  %v11387_v54 = vld [vmem:[#allocation44_spill] sm:$0xff] }
 0x4ab   : > { %v3403_v55 = vpop.f32.mrf.mxu0  ;;  %v3732_v41 = vpop.f32.mrf.mxu1 }
 0x4ac   : > { %v3733_v43 = vadd.f32 %v3732_v41, %v3403_v55  ;;  %v4805_v19 = vadd.f32 %v9567_v37, %v4485_v42  ;;  %v11386_v55 = vpack.c.bf16 %v11384_v27, %v11385_v61 }
 0x4af   : > { %v4157_v44 = vpop.f32.mrf.mxu2  ;;  %v4486_v58 = vpop.f32.mrf.mxu3 }
 0x4b0   : > { %v4158_v31 = vadd.f32 %v4157_v44, %v3733_v43 }
 0x4b2   : > { %v4487_v26 = vadd.f32 %v4486_v58, %v4158_v31  ;;  %v11388_v58 = vld [vmem:[#allocation42_spill] sm:$0xff] }
 0x4b3   : > { %v3406_v0 = vpop.f32.mrf.mxu0  ;;  %v3735_v49 = vpop.f32.mrf.mxu1  ;;  %v11389_v41 = vpack.c.bf16 %v11387_v54, %v11388_v58  ;;  %v11391_v58 = vld [vmem:[#allocation45_spill] sm:$0xff] }
 0x4b4   : > { %v4806_v1 = vadd.f32 %v9567_v37, %v4487_v26  ;;  %4199 = vmatmul.bf16.gmra.mxu2 %v11380_v30  ;;  %4528 = vmatmul.bf16.gmra.mxu3 %v11383_v23  ;;  %v3736_v44 = vadd.f32 %v3735_v49, %v3406_v0  ;;  %v11393_v49 = vld [vmem:[#allocation48_spill] sm:$0xff]  ;;  %v11394_v0 = vld [vmem:[#allocation46_spill] sm:$0xff] }
 0x4b6   : > { %3445 = vmatmul.bf16.gmra.mxu0 %v11386_v55  ;;  %3774 = vmatmul.bf16.gmra.mxu1 %v11389_v41  ;;  %v6318_v46 = vpack.c.bf16 %v4806_v1, %v4805_v19  ;;  %v11390_v1 = vld [vmem:[#allocation47_spill] sm:$0xff] }
 0x4b7   : > { %v4160_v42 = vpop.f32.mrf.mxu2  ;;  %v4489_v43 = vpop.f32.mrf.mxu3  ;;  %v11392_v41 = vpack.c.bf16 %v11390_v1, %v11391_v58 }
 0x4b8   : > { %6630 = vst [vmem:[%s9582_s12 + $0x8] sm:$0xff] %v6318_v46   ;;  %v4161_v20 = vadd.f32 %v4160_v42, %v3736_v44  ;;  %v11395_v46 = vpack.c.bf16 %v11393_v49, %v11394_v0  ;;  %v11396_v42 = vld [vmem:[#allocation51_spill] sm:$0xff]  ;;  %v11397_v44 = vld [vmem:[#allocation49_spill] sm:$0xff] }
 0x4ba   : > { %v4490_v47 = vadd.f32 %v4489_v43, %v4161_v20  ;;  %v11399_v43 = vld [vmem:[#allocation52_spill] sm:$0xff] }
 0x4bb   : > { %v3408_v31 = vpop.f32.mrf.mxu0  ;;  %v3737_v26 = vpop.f32.mrf.mxu1 }
 0x4bc   : > { %v3738_v28 = vadd.f32 %v3737_v26, %v3408_v31  ;;  %v4807_v54 = vadd.f32 %v9567_v37, %v4490_v47  ;;  %v11398_v31 = vpack.c.bf16 %v11396_v42, %v11397_v44  ;;  %v11400_v26 = vld [vmem:[#allocation50_spill] sm:$0xff] }
 0x4bd   : > { %v11401_v20 = vpack.c.bf16 %v11399_v43, %v11400_v26  ;;  %v11403_v26 = vld [vmem:[#allocation53_spill] sm:$0xff] }
 0x4bf   : > { %v4162_v30 = vpop.f32.mrf.mxu2  ;;  %v4491_v57 = vpop.f32.mrf.mxu3 }
 0x4c0   : > { %v4163_v23 = vadd.f32 %v4162_v30, %v3738_v28 }
 0x4c2   : > { %v4492_v27 = vadd.f32 %v4491_v57, %v4163_v23 }
 0x4c3   : > { %v3411_v61 = vpop.f32.mrf.mxu0  ;;  %v3740_v55 = vpop.f32.mrf.mxu1 }
 0x4c4   : > { %v4808_v19 = vadd.f32 %v9567_v37, %v4492_v27  ;;  %4204 = vmatmul.bf16.gmra.mxu2 %v11392_v41  ;;  %4533 = vmatmul.bf16.gmra.mxu3 %v11395_v46  ;;  %v3741_v47 = vadd.f32 %v3740_v55, %v3411_v61  ;;  %v11405_v61 = vld [vmem:[#allocation56_spill] sm:$0xff]  ;;  %v11406_v55 = vld [vmem:[#allocation54_spill] sm:$0xff] }
 0x4c6   : > { %3450 = vmatmul.bf16.gmra.mxu0 %v11398_v31  ;;  %3779 = vmatmul.bf16.gmra.mxu1 %v11401_v20  ;;  %v6323_v28 = vpack.c.bf16 %v4808_v19, %v4807_v54  ;;  %v11402_v19 = vld [vmem:[#allocation55_spill] sm:$0xff] }
 0x4c7   : > { %v4165_v30 = vpop.f32.mrf.mxu2  ;;  %v4494_v57 = vpop.f32.mrf.mxu3  ;;  %v11404_v20 = vpack.c.bf16 %v11402_v19, %v11403_v26 }
 0x4c8   : > { %6631 = vst [vmem:[%s9582_s12 + $0x10] sm:$0xff] %v6323_v28   ;;  %v4166_v1 = vadd.f32 %v4165_v30, %v3741_v47  ;;  %v11407_v28 = vpack.c.bf16 %v11405_v61, %v11406_v55  ;;  %v11408_v30 = vld [vmem:[#allocation59_spill] sm:$0xff]  ;;  %v11409_v47 = vld [vmem:[#allocation57_spill] sm:$0xff] }
 0x4ca   : > { %v4495_v0 = vadd.f32 %v4494_v57, %v4166_v1  ;;  %v11411_v57 = vld [vmem:[#allocation60_spill] sm:$0xff] }
 0x4cb   : > { %v3413_v23 = vpop.f32.mrf.mxu0  ;;  %v3742_v27 = vpop.f32.mrf.mxu1 }
 0x4cc   : > { %v3743_v58 = vadd.f32 %v3742_v27, %v3413_v23  ;;  %v4809_v43 = vadd.f32 %v9567_v37, %v4495_v0  ;;  %v11410_v23 = vpack.c.bf16 %v11408_v30, %v11409_v47  ;;  %v11412_v27 = vld [vmem:[#allocation58_spill] sm:$0xff] }
 0x4cd   : > { %v11413_v1 = vpack.c.bf16 %v11411_v57, %v11412_v27  ;;  %v11415_v27 = vld [vmem:[#allocation61_spill] sm:$0xff] }
 0x4cf   : > { %v4167_v41 = vpop.f32.mrf.mxu2  ;;  %v4496_v49 = vpop.f32.mrf.mxu3 }
 0x4d0   : > { %v4168_v46 = vadd.f32 %v4167_v41, %v3743_v58 }
 0x4d2   : > { %v4497_v42 = vadd.f32 %v4496_v49, %v4168_v46 }
 0x4d3   : > { %v3416_v44 = vpop.f32.mrf.mxu0  ;;  %v3745_v31 = vpop.f32.mrf.mxu1 }
 0x4d4   : > { %v4810_v54 = vadd.f32 %v9567_v37, %v4497_v42  ;;  %4209 = vmatmul.bf16.gmra.mxu2 %v11404_v20  ;;  %4538 = vmatmul.bf16.gmra.mxu3 %v11407_v28  ;;  %v3746_v0 = vadd.f32 %v3745_v31, %v3416_v44  ;;  %v11417_v44 = vld [vmem:[#allocation64_spill] sm:$0xff]  ;;  %v11418_v31 = vld [vmem:[#allocation62_spill] sm:$0xff] }
 0x4d6   : > { %3455 = vmatmul.bf16.gmra.mxu0 %v11410_v23  ;;  %3784 = vmatmul.bf16.gmra.mxu1 %v11413_v1  ;;  %v6328_v58 = vpack.c.bf16 %v4810_v54, %v4809_v43  ;;  %v11414_v54 = vld [vmem:[#allocation63_spill] sm:$0xff] }
 0x4d7   : > { %v4170_v41 = vpop.f32.mrf.mxu2  ;;  %v4499_v49 = vpop.f32.mrf.mxu3  ;;  %v11416_v1 = vpack.c.bf16 %v11414_v54, %v11415_v27 }
 0x4d8   : > { %6632 = vst [vmem:[%s9582_s12 + $0x18] sm:$0xff] %v6328_v58   ;;  %v4171_v19 = vadd.f32 %v4170_v41, %v3746_v0  ;;  %v11419_v58 = vpack.c.bf16 %v11417_v44, %v11418_v31  ;;  %v11420_v41 = vld [vmem:[#allocation67_spill] sm:$0xff]  ;;  %v11421_v0 = vld [vmem:[#allocation65_spill] sm:$0xff] }
 0x4da   : > { %v4500_v55 = vadd.f32 %v4499_v49, %v4171_v19  ;;  %v11423_v49 = vld [vmem:[#allocation68_spill] sm:$0xff] }
 0x4db   : > { %v3418_v46 = vpop.f32.mrf.mxu0  ;;  %v3747_v42 = vpop.f32.mrf.mxu1 }
 0x4dc   : > { %v3748_v26 = vadd.f32 %v3747_v42, %v3418_v46  ;;  %v4811_v57 = vadd.f32 %v9567_v37, %v4500_v55  ;;  %v11422_v46 = vpack.c.bf16 %v11420_v41, %v11421_v0  ;;  %v11424_v42 = vld [vmem:[#allocation66_spill] sm:$0xff] }
 0x4dd   : > { %v11425_v19 = vpack.c.bf16 %v11423_v49, %v11424_v42  ;;  %v11427_v42 = vld [vmem:[#allocation69_spill] sm:$0xff] }
 0x4df   : > { %v4172_v20 = vpop.f32.mrf.mxu2  ;;  %v4501_v61 = vpop.f32.mrf.mxu3 }
 0x4e0   : > { %v4173_v28 = vadd.f32 %v4172_v20, %v3748_v26 }
 0x4e2   : > { %v4502_v30 = vadd.f32 %v4501_v61, %v4173_v28 }
 0x4e3   : > { %v3421_v47 = vpop.f32.mrf.mxu0  ;;  %v3750_v23 = vpop.f32.mrf.mxu1 }
 0x4e4   : > { %v4812_v43 = vadd.f32 %v9567_v37, %v4502_v30  ;;  %4214 = vmatmul.bf16.gmra.mxu2 %v11416_v1  ;;  %4543 = vmatmul.bf16.gmra.mxu3 %v11419_v58  ;;  %v3751_v55 = vadd.f32 %v3750_v23, %v3421_v47  ;;  %v11429_v47 = vld [vmem:[#allocation72_spill] sm:$0xff]  ;;  %v11430_v23 = vld [vmem:[#allocation70_spill] sm:$0xff] }
 0x4e6   : > { %3460 = vmatmul.bf16.gmra.mxu0 %v11422_v46  ;;  %3789 = vmatmul.bf16.gmra.mxu1 %v11425_v19  ;;  %v6333_v26 = vpack.c.bf16 %v4812_v43, %v4811_v57  ;;  %v11426_v43 = vld [vmem:[#allocation71_spill] sm:$0xff] }
 0x4e7   : > { %v4175_v20 = vpop.f32.mrf.mxu2  ;;  %v4504_v61 = vpop.f32.mrf.mxu3  ;;  %v11428_v19 = vpack.c.bf16 %v11426_v43, %v11427_v42 }
 0x4e8   : > { %6633 = vst [vmem:[%s9582_s12 + $0x20] sm:$0xff] %v6333_v26   ;;  %v4176_v54 = vadd.f32 %v4175_v20, %v3751_v55  ;;  %v11431_v26 = vpack.c.bf16 %v11429_v47, %v11430_v23  ;;  %v11432_v20 = vld [vmem:[#allocation75_spill] sm:$0xff]  ;;  %v11433_v55 = vld [vmem:[#allocation73_spill] sm:$0xff] }
 0x4ea   : > { %v4505_v31 = vadd.f32 %v4504_v61, %v4176_v54  ;;  %v11435_v61 = vld [vmem:[#allocation76_spill] sm:$0xff] }
 0x4eb   : > { %v3423_v28 = vpop.f32.mrf.mxu0  ;;  %v3752_v30 = vpop.f32.mrf.mxu1 }
 0x4ec   : > { %v3753_v27 = vadd.f32 %v3752_v30, %v3423_v28  ;;  %v4813_v49 = vadd.f32 %v9567_v37, %v4505_v31  ;;  %v11434_v28 = vpack.c.bf16 %v11432_v20, %v11433_v55  ;;  %v11436_v30 = vld [vmem:[#allocation74_spill] sm:$0xff] }
 0x4ed   : > { %v11437_v54 = vpack.c.bf16 %v11435_v61, %v11436_v30  ;;  %v11439_v30 = vld [vmem:[#allocation77_spill] sm:$0xff] }
 0x4ef   : > { %v4177_v1 = vpop.f32.mrf.mxu2  ;;  %v4506_v44 = vpop.f32.mrf.mxu3 }
 0x4f0   : > { %v4178_v58 = vadd.f32 %v4177_v1, %v3753_v27 }
 0x4f2   : > { %v4507_v41 = vadd.f32 %v4506_v44, %v4178_v58 }
 0x4f3   : > { %v3426_v0 = vpop.f32.mrf.mxu0  ;;  %v3755_v46 = vpop.f32.mrf.mxu1 }
 0x4f4   : > { %v4814_v57 = vadd.f32 %v9567_v37, %v4507_v41  ;;  %4219 = vmatmul.bf16.gmra.mxu2 %v11428_v19  ;;  %4548 = vmatmul.bf16.gmra.mxu3 %v11431_v26  ;;  %v3756_v31 = vadd.f32 %v3755_v46, %v3426_v0  ;;  %v11441_v0 = vld [vmem:[#allocation80_spill] sm:$0xff]  ;;  %v11442_v46 = vld [vmem:[#allocation78_spill] sm:$0xff] }
 0x4f6   : > { %3465 = vmatmul.bf16.gmra.mxu0 %v11434_v28  ;;  %3794 = vmatmul.bf16.gmra.mxu1 %v11437_v54  ;;  %v6338_v27 = vpack.c.bf16 %v4814_v57, %v4813_v49  ;;  %v11438_v57 = vld [vmem:[#allocation79_spill] sm:$0xff] }
 0x4f7   : > { %v4180_v1 = vpop.f32.mrf.mxu2  ;;  %v4509_v44 = vpop.f32.mrf.mxu3  ;;  %v11440_v54 = vpack.c.bf16 %v11438_v57, %v11439_v30 }
 0x4f8   : > { %6634 = vst [vmem:[%s9582_s12 + $0x28] sm:$0xff] %v6338_v27   ;;  %v4181_v43 = vadd.f32 %v4180_v1, %v3756_v31  ;;  %v11443_v27 = vpack.c.bf16 %v11441_v0, %v11442_v46  ;;  %v11444_v1 = vld [vmem:[#allocation83_spill] sm:$0xff]  ;;  %v11445_v31 = vld [vmem:[#allocation81_spill] sm:$0xff] }
 0x4fa   : > { %v4510_v23 = vadd.f32 %v4509_v44, %v4181_v43  ;;  %v11447_v44 = vld [vmem:[#allocation84_spill] sm:$0xff] }
 0x4fb   : > { %v3428_v58 = vpop.f32.mrf.mxu0  ;;  %v3757_v41 = vpop.f32.mrf.mxu1 }
 0x4fc   : > { %v3758_v42 = vadd.f32 %v3757_v41, %v3428_v58  ;;  %v4815_v61 = vadd.f32 %v9567_v37, %v4510_v23  ;;  %v11446_v58 = vpack.c.bf16 %v11444_v1, %v11445_v31  ;;  %v11448_v41 = vld [vmem:[#allocation82_spill] sm:$0xff] }
 0x4fd   : > { %v11449_v43 = vpack.c.bf16 %v11447_v44, %v11448_v41  ;;  %v11451_v41 = vld [vmem:[#allocation85_spill] sm:$0xff] }
 0x4ff   : > { %v4182_v19 = vpop.f32.mrf.mxu2  ;;  %v4511_v47 = vpop.f32.mrf.mxu3 }
 0x500   : > { %v4183_v26 = vadd.f32 %v4182_v19, %v3758_v42 }
 0x502   : > { %v4512_v20 = vadd.f32 %v4511_v47, %v4183_v26 }
 0x503   : > { %v3431_v55 = vpop.f32.mrf.mxu0  ;;  %v3760_v28 = vpop.f32.mrf.mxu1 }
 0x504   : > { %v4816_v49 = vadd.f32 %v9567_v37, %v4512_v20  ;;  %4224 = vmatmul.bf16.gmra.mxu2 %v11440_v54  ;;  %4553 = vmatmul.bf16.gmra.mxu3 %v11443_v27  ;;  %v3761_v23 = vadd.f32 %v3760_v28, %v3431_v55  ;;  %v11453_v55 = vld [vmem:[#allocation88_spill] sm:$0xff]  ;;  %v11454_v28 = vld [vmem:[#allocation86_spill] sm:$0xff] }
 0x506   : > { %3470 = vmatmul.bf16.gmra.mxu0 %v11446_v58  ;;  %3799 = vmatmul.bf16.gmra.mxu1 %v11449_v43  ;;  %v6343_v42 = vpack.c.bf16 %v4816_v49, %v4815_v61  ;;  %v11450_v49 = vld [vmem:[#allocation87_spill] sm:$0xff] }
 0x507   : > { %v4185_v19 = vpop.f32.mrf.mxu2  ;;  %v4514_v47 = vpop.f32.mrf.mxu3  ;;  %v11452_v43 = vpack.c.bf16 %v11450_v49, %v11451_v41 }
 0x508   : > { %6635 = vst [vmem:[%s9582_s12 + $0x30] sm:$0xff] %v6343_v42   ;;  %v4186_v57 = vadd.f32 %v4185_v19, %v3761_v23  ;;  %v11455_v42 = vpack.c.bf16 %v11453_v55, %v11454_v28  ;;  %v11456_v19 = vld [vmem:[#allocation91_spill] sm:$0xff]  ;;  %v11457_v23 = vld [vmem:[#allocation89_spill] sm:$0xff] }
 0x50a   : > { %v4515_v46 = vadd.f32 %v4514_v47, %v4186_v57  ;;  %v11459_v47 = vld [vmem:[#allocation92_spill] sm:$0xff] }
 0x50b   : > { %v3433_v26 = vpop.f32.mrf.mxu0  ;;  %v3762_v20 = vpop.f32.mrf.mxu1 }
 0x50c   : > { %v3763_v30 = vadd.f32 %v3762_v20, %v3433_v26  ;;  %v4817_v44 = vadd.f32 %v9567_v37, %v4515_v46  ;;  %v11458_v26 = vpack.c.bf16 %v11456_v19, %v11457_v23  ;;  %v11460_v20 = vld [vmem:[#allocation90_spill] sm:$0xff] }
 0x50d   : > { %v11461_v57 = vpack.c.bf16 %v11459_v47, %v11460_v20  ;;  %v11463_v20 = vld [vmem:[#allocation93_spill] sm:$0xff] }
 0x50f   : > { %v4187_v54 = vpop.f32.mrf.mxu2  ;;  %v4516_v0 = vpop.f32.mrf.mxu3 }
 0x510   : > { %v4188_v27 = vadd.f32 %v4187_v54, %v3763_v30 }
 0x512   : > { %v4517_v1 = vadd.f32 %v4516_v0, %v4188_v27 }
 0x513   : > { %v3436_v31 = vpop.f32.mrf.mxu0  ;;  %v3765_v58 = vpop.f32.mrf.mxu1 }
 0x514   : > { %v4818_v61 = vadd.f32 %v9567_v37, %v4517_v1  ;;  %4229 = vmatmul.bf16.gmra.mxu2 %v11452_v43  ;;  %4558 = vmatmul.bf16.gmra.mxu3 %v11455_v42  ;;  %v3766_v46 = vadd.f32 %v3765_v58, %v3436_v31  ;;  %v11465_v31 = vld [vmem:[#allocation96_spill] sm:$0xff]  ;;  %v11466_v58 = vld [vmem:[#allocation94_spill] sm:$0xff] }
 0x516   : > { %3475 = vmatmul.bf16.gmra.mxu0 %v11458_v26  ;;  %3804 = vmatmul.bf16.gmra.mxu1 %v11461_v57  ;;  %v6348_v30 = vpack.c.bf16 %v4818_v61, %v4817_v44  ;;  %v11462_v61 = vld [vmem:[#allocation95_spill] sm:$0xff] }
 0x517   : > { %v4190_v54 = vpop.f32.mrf.mxu2  ;;  %v4519_v0 = vpop.f32.mrf.mxu3  ;;  %v11464_v57 = vpack.c.bf16 %v11462_v61, %v11463_v20 }
 0x518   : > { %6636 = vst [vmem:[%s9582_s12 + $0x38] sm:$0xff] %v6348_v30   ;;  %v4191_v49 = vadd.f32 %v4190_v54, %v3766_v46  ;;  %v11467_v30 = vpack.c.bf16 %v11465_v31, %v11466_v58  ;;  %v11468_v54 = vld [vmem:[#allocation99_spill] sm:$0xff]  ;;  %v11469_v46 = vld [vmem:[#allocation97_spill] sm:$0xff] }
 0x51a   : > { %v4520_v28 = vadd.f32 %v4519_v0, %v4191_v49  ;;  %v11471_v0 = vld [vmem:[#allocation100_spill] sm:$0xff] }
 0x51b   : > { %v3438_v27 = vpop.f32.mrf.mxu0  ;;  %v3767_v1 = vpop.f32.mrf.mxu1 }
 0x51c   : > { %v3768_v41 = vadd.f32 %v3767_v1, %v3438_v27  ;;  %v4819_v47 = vadd.f32 %v9567_v37, %v4520_v28  ;;  %v11470_v27 = vpack.c.bf16 %v11468_v54, %v11469_v46  ;;  %v11472_v1 = vld [vmem:[#allocation98_spill] sm:$0xff] }
 0x51d   : > { %v11473_v49 = vpack.c.bf16 %v11471_v0, %v11472_v1  ;;  %v11475_v1 = vld [vmem:[#allocation101_spill] sm:$0xff] }
 0x51f   : > { %v4192_v43 = vpop.f32.mrf.mxu2  ;;  %v4521_v55 = vpop.f32.mrf.mxu3 }
 0x520   : > { %v4193_v42 = vadd.f32 %v4192_v43, %v3768_v41 }
 0x522   : > { %v4522_v19 = vadd.f32 %v4521_v55, %v4193_v42 }
 0x523   : > { %v3441_v23 = vpop.f32.mrf.mxu0  ;;  %v3770_v26 = vpop.f32.mrf.mxu1 }
 0x524   : > { %v4820_v44 = vadd.f32 %v9567_v37, %v4522_v19  ;;  %4234 = vmatmul.bf16.gmra.mxu2 %v11464_v57  ;;  %4563 = vmatmul.bf16.gmra.mxu3 %v11467_v30  ;;  %v3771_v28 = vadd.f32 %v3770_v26, %v3441_v23  ;;  %v11477_v23 = vld [vmem:[#allocation104_spill] sm:$0xff]  ;;  %v11478_v26 = vld [vmem:[#allocation102_spill] sm:$0xff] }
 0x526   : > { %3480 = vmatmul.bf16.gmra.mxu0 %v11470_v27  ;;  %3809 = vmatmul.bf16.gmra.mxu1 %v11473_v49  ;;  %v6353_v41 = vpack.c.bf16 %v4820_v44, %v4819_v47  ;;  %v11474_v44 = vld [vmem:[#allocation103_spill] sm:$0xff] }
 0x527   : > { %v4195_v43 = vpop.f32.mrf.mxu2  ;;  %v4524_v55 = vpop.f32.mrf.mxu3  ;;  %v11476_v49 = vpack.c.bf16 %v11474_v44, %v11475_v1 }
 0x528   : > { %6637 = vst [vmem:[%s9582_s12 + $0x40] sm:$0xff] %v6353_v41   ;;  %v4196_v61 = vadd.f32 %v4195_v43, %v3771_v28  ;;  %v11479_v41 = vpack.c.bf16 %v11477_v23, %v11478_v26  ;;  %v11480_v43 = vld [vmem:[#allocation107_spill] sm:$0xff]  ;;  %v11481_v28 = vld [vmem:[#allocation105_spill] sm:$0xff] }
 0x52a   : > { %v4525_v58 = vadd.f32 %v4524_v55, %v4196_v61  ;;  %v11483_v55 = vld [vmem:[#allocation108_spill] sm:$0xff] }
 0x52b   : > { %v3443_v42 = vpop.f32.mrf.mxu0  ;;  %v3772_v19 = vpop.f32.mrf.mxu1 }
 0x52c   : > { %v3773_v20 = vadd.f32 %v3772_v19, %v3443_v42  ;;  %v4821_v0 = vadd.f32 %v9567_v37, %v4525_v58  ;;  %v11482_v42 = vpack.c.bf16 %v11480_v43, %v11481_v28  ;;  %v11484_v19 = vld [vmem:[#allocation106_spill] sm:$0xff] }
 0x52d   : > { %v11485_v61 = vpack.c.bf16 %v11483_v55, %v11484_v19  ;;  %v11487_v19 = vld [vmem:[#allocation109_spill] sm:$0xff] }
 0x52f   : > { %v4197_v57 = vpop.f32.mrf.mxu2  ;;  %v4526_v31 = vpop.f32.mrf.mxu3 }
 0x530   : > { %v4198_v30 = vadd.f32 %v4197_v57, %v3773_v20 }
 0x532   : > { %v4527_v54 = vadd.f32 %v4526_v31, %v4198_v30 }
 0x533   : > { %v3446_v46 = vpop.f32.mrf.mxu0  ;;  %v3775_v27 = vpop.f32.mrf.mxu1 }
 0x534   : > { %v4822_v47 = vadd.f32 %v9567_v37, %v4527_v54  ;;  %4239 = vmatmul.bf16.gmra.mxu2 %v11476_v49  ;;  %4568 = vmatmul.bf16.gmra.mxu3 %v11479_v41  ;;  %v3776_v58 = vadd.f32 %v3775_v27, %v3446_v46  ;;  %v11489_v46 = vld [vmem:[#allocation112_spill] sm:$0xff]  ;;  %v11490_v27 = vld [vmem:[#allocation110_spill] sm:$0xff] }
 0x536   : > { %3485 = vmatmul.bf16.gmra.mxu0 %v11482_v42  ;;  %3814 = vmatmul.bf16.gmra.mxu1 %v11485_v61  ;;  %v6358_v20 = vpack.c.bf16 %v4822_v47, %v4821_v0  ;;  %v11486_v47 = vld [vmem:[#allocation111_spill] sm:$0xff] }
 0x537   : > { %v4200_v57 = vpop.f32.mrf.mxu2  ;;  %v4529_v31 = vpop.f32.mrf.mxu3  ;;  %v11488_v61 = vpack.c.bf16 %v11486_v47, %v11487_v19 }
 0x538   : > { %6638 = vst [vmem:[%s9582_s12 + $0x48] sm:$0xff] %v6358_v20   ;;  %v4201_v44 = vadd.f32 %v4200_v57, %v3776_v58  ;;  %v11491_v20 = vpack.c.bf16 %v11489_v46, %v11490_v27  ;;  %v11492_v57 = vld [vmem:[#allocation115_spill] sm:$0xff]  ;;  %v11493_v58 = vld [vmem:[#allocation113_spill] sm:$0xff] }
 0x53a   : > { %v4530_v26 = vadd.f32 %v4529_v31, %v4201_v44  ;;  %v11495_v31 = vld [vmem:[#allocation116_spill] sm:$0xff] }
 0x53b   : > { %v3448_v30 = vpop.f32.mrf.mxu0  ;;  %v3777_v54 = vpop.f32.mrf.mxu1 }
 0x53c   : > { %v3778_v1 = vadd.f32 %v3777_v54, %v3448_v30  ;;  %v4823_v55 = vadd.f32 %v9567_v37, %v4530_v26  ;;  %v11494_v30 = vpack.c.bf16 %v11492_v57, %v11493_v58  ;;  %v11496_v54 = vld [vmem:[#allocation114_spill] sm:$0xff] }
 0x53d   : > { %v11497_v44 = vpack.c.bf16 %v11495_v31, %v11496_v54  ;;  %v11499_v54 = vld [vmem:[#allocation117_spill] sm:$0xff] }
 0x53f   : > { %v4202_v49 = vpop.f32.mrf.mxu2  ;;  %v4531_v23 = vpop.f32.mrf.mxu3 }
 0x540   : > { %v4203_v41 = vadd.f32 %v4202_v49, %v3778_v1 }
 0x542   : > { %v4532_v43 = vadd.f32 %v4531_v23, %v4203_v41 }
 0x543   : > { %v3451_v28 = vpop.f32.mrf.mxu0  ;;  %v3780_v42 = vpop.f32.mrf.mxu1 }
 0x544   : > { %v4824_v0 = vadd.f32 %v9567_v37, %v4532_v43  ;;  %4244 = vmatmul.bf16.gmra.mxu2 %v11488_v61  ;;  %4573 = vmatmul.bf16.gmra.mxu3 %v11491_v20  ;;  %v3781_v26 = vadd.f32 %v3780_v42, %v3451_v28  ;;  %v11501_v28 = vld [vmem:[#allocation120_spill] sm:$0xff]  ;;  %v11502_v42 = vld [vmem:[#allocation118_spill] sm:$0xff] }
 0x546   : > { %3490 = vmatmul.bf16.gmra.mxu0 %v11494_v30  ;;  %3819 = vmatmul.bf16.gmra.mxu1 %v11497_v44  ;;  %v6363_v1 = vpack.c.bf16 %v4824_v0, %v4823_v55  ;;  %v11498_v0 = vld [vmem:[#allocation119_spill] sm:$0xff] }
 0x547   : > { %v4205_v49 = vpop.f32.mrf.mxu2  ;;  %v4534_v23 = vpop.f32.mrf.mxu3  ;;  %v11500_v44 = vpack.c.bf16 %v11498_v0, %v11499_v54 }
 0x548   : > { %6639 = vst [vmem:[%s9582_s12 + $0x50] sm:$0xff] %v6363_v1   ;;  %v4206_v47 = vadd.f32 %v4205_v49, %v3781_v26  ;;  %v11503_v1 = vpack.c.bf16 %v11501_v28, %v11502_v42  ;;  %v11504_v49 = vld [vmem:[#allocation123_spill] sm:$0xff]  ;;  %v11505_v26 = vld [vmem:[#allocation121_spill] sm:$0xff] }
 0x54a   : > { %v4535_v27 = vadd.f32 %v4534_v23, %v4206_v47  ;;  %v11507_v23 = vld [vmem:[#allocation124_spill] sm:$0xff] }
 0x54b   : > { %v3453_v41 = vpop.f32.mrf.mxu0  ;;  %v3782_v43 = vpop.f32.mrf.mxu1 }
 0x54c   : > { %v3783_v19 = vadd.f32 %v3782_v43, %v3453_v41  ;;  %v4825_v31 = vadd.f32 %v9567_v37, %v4535_v27  ;;  %v11506_v41 = vpack.c.bf16 %v11504_v49, %v11505_v26  ;;  %v11508_v43 = vld [vmem:[#allocation122_spill] sm:$0xff] }
 0x54d   : > { %v11509_v47 = vpack.c.bf16 %v11507_v23, %v11508_v43  ;;  %v11511_v43 = vld [vmem:[#allocation125_spill] sm:$0xff] }
 0x54f   : > { %v4207_v61 = vpop.f32.mrf.mxu2  ;;  %v4536_v46 = vpop.f32.mrf.mxu3 }
 0x550   : > { %v4208_v20 = vadd.f32 %v4207_v61, %v3783_v19 }
 0x552   : > { %v4537_v57 = vadd.f32 %v4536_v46, %v4208_v20 }
 0x553   : > { %v3456_v58 = vpop.f32.mrf.mxu0  ;;  %v3785_v30 = vpop.f32.mrf.mxu1 }
 0x554   : > { %v4826_v55 = vadd.f32 %v9567_v37, %v4537_v57  ;;  %4249 = vmatmul.bf16.gmra.mxu2 %v11500_v44  ;;  %4578 = vmatmul.bf16.gmra.mxu3 %v11503_v1  ;;  %v3786_v27 = vadd.f32 %v3785_v30, %v3456_v58  ;;  %v11513_v58 = vld [vmem:[#allocation128_spill] sm:$0xff]  ;;  %v11514_v30 = vld [vmem:[#allocation126_spill] sm:$0xff] }
 0x556   : > { %3495 = vmatmul.bf16.gmra.mxu0 %v11506_v41  ;;  %3824 = vmatmul.bf16.gmra.mxu1 %v11509_v47  ;;  %v6368_v19 = vpack.c.bf16 %v4826_v55, %v4825_v31  ;;  %v11510_v55 = vld [vmem:[#allocation127_spill] sm:$0xff] }
 0x557   : > { %v4210_v61 = vpop.f32.mrf.mxu2  ;;  %v4539_v46 = vpop.f32.mrf.mxu3  ;;  %v11512_v47 = vpack.c.bf16 %v11510_v55, %v11511_v43 }
 0x558   : > { %6640 = vst [vmem:[%s9582_s12 + $0x58] sm:$0xff] %v6368_v19   ;;  %v4211_v0 = vadd.f32 %v4210_v61, %v3786_v27  ;;  %v11515_v19 = vpack.c.bf16 %v11513_v58, %v11514_v30  ;;  %v11516_v61 = vld [vmem:[#allocation131_spill] sm:$0xff]  ;;  %v11517_v27 = vld [vmem:[#allocation129_spill] sm:$0xff] }
 0x55a   : > { %v4540_v42 = vadd.f32 %v4539_v46, %v4211_v0  ;;  %v11519_v46 = vld [vmem:[#allocation132_spill] sm:$0xff] }
 0x55b   : > { %v3458_v20 = vpop.f32.mrf.mxu0  ;;  %v3787_v57 = vpop.f32.mrf.mxu1 }
 0x55c   : > { %v3788_v54 = vadd.f32 %v3787_v57, %v3458_v20  ;;  %v4827_v23 = vadd.f32 %v9567_v37, %v4540_v42  ;;  %v11518_v20 = vpack.c.bf16 %v11516_v61, %v11517_v27  ;;  %v11520_v57 = vld [vmem:[#allocation130_spill] sm:$0xff] }
 0x55d   : > { %v11521_v0 = vpack.c.bf16 %v11519_v46, %v11520_v57  ;;  %v11523_v57 = vld [vmem:[#allocation133_spill] sm:$0xff] }
 0x55f   : > { %v4212_v44 = vpop.f32.mrf.mxu2  ;;  %v4541_v28 = vpop.f32.mrf.mxu3 }
 0x560   : > { %v4213_v1 = vadd.f32 %v4212_v44, %v3788_v54 }
 0x562   : > { %v4542_v49 = vadd.f32 %v4541_v28, %v4213_v1 }
 0x563   : > { %v3461_v26 = vpop.f32.mrf.mxu0  ;;  %v3790_v41 = vpop.f32.mrf.mxu1 }
 0x564   : > { %v4828_v31 = vadd.f32 %v9567_v37, %v4542_v49  ;;  %4254 = vmatmul.bf16.gmra.mxu2 %v11512_v47  ;;  %4583 = vmatmul.bf16.gmra.mxu3 %v11515_v19  ;;  %v3791_v42 = vadd.f32 %v3790_v41, %v3461_v26  ;;  %v11525_v26 = vld [vmem:[#allocation136_spill] sm:$0xff]  ;;  %v11526_v41 = vld [vmem:[#allocation134_spill] sm:$0xff] }
 0x566   : > { %3500 = vmatmul.bf16.gmra.mxu0 %v11518_v20  ;;  %3829 = vmatmul.bf16.gmra.mxu1 %v11521_v0  ;;  %v6373_v54 = vpack.c.bf16 %v4828_v31, %v4827_v23  ;;  %v11522_v31 = vld [vmem:[#allocation135_spill] sm:$0xff] }
 0x567   : > { %v4215_v44 = vpop.f32.mrf.mxu2  ;;  %v4544_v28 = vpop.f32.mrf.mxu3  ;;  %v11524_v0 = vpack.c.bf16 %v11522_v31, %v11523_v57 }
 0x568   : > { %6641 = vst [vmem:[%s9582_s12 + $0x60] sm:$0xff] %v6373_v54   ;;  %v4216_v55 = vadd.f32 %v4215_v44, %v3791_v42  ;;  %v11527_v54 = vpack.c.bf16 %v11525_v26, %v11526_v41  ;;  %v11528_v44 = vld [vmem:[#allocation139_spill] sm:$0xff]  ;;  %v11529_v42 = vld [vmem:[#allocation137_spill] sm:$0xff] }
 0x56a   : > { %v4545_v30 = vadd.f32 %v4544_v28, %v4216_v55  ;;  %v11531_v28 = vld [vmem:[#allocation140_spill] sm:$0xff] }
 0x56b   : > { %v3463_v1 = vpop.f32.mrf.mxu0  ;;  %v3792_v49 = vpop.f32.mrf.mxu1 }
 0x56c   : > { %v3793_v43 = vadd.f32 %v3792_v49, %v3463_v1  ;;  %v4829_v46 = vadd.f32 %v9567_v37, %v4545_v30  ;;  %v11530_v1 = vpack.c.bf16 %v11528_v44, %v11529_v42  ;;  %v11532_v49 = vld [vmem:[#allocation138_spill] sm:$0xff] }
 0x56d   : > { %v11533_v55 = vpack.c.bf16 %v11531_v28, %v11532_v49  ;;  %v11535_v49 = vld [vmem:[#allocation141_spill] sm:$0xff] }
 0x56f   : > { %v4217_v47 = vpop.f32.mrf.mxu2  ;;  %v4546_v58 = vpop.f32.mrf.mxu3 }
 0x570   : > { %v4218_v19 = vadd.f32 %v4217_v47, %v3793_v43 }
 0x572   : > { %v4547_v61 = vadd.f32 %v4546_v58, %v4218_v19 }
 0x573   : > { %v3466_v27 = vpop.f32.mrf.mxu0  ;;  %v3795_v20 = vpop.f32.mrf.mxu1 }
 0x574   : > { %v4830_v23 = vadd.f32 %v9567_v37, %v4547_v61  ;;  %4259 = vmatmul.bf16.gmra.mxu2 %v11524_v0  ;;  %4588 = vmatmul.bf16.gmra.mxu3 %v11527_v54  ;;  %v3796_v30 = vadd.f32 %v3795_v20, %v3466_v27  ;;  %v11537_v27 = vld [vmem:[#allocation144_spill] sm:$0xff]  ;;  %v11538_v20 = vld [vmem:[#allocation142_spill] sm:$0xff] }
 0x576   : > { %3505 = vmatmul.bf16.gmra.mxu0 %v11530_v1  ;;  %3834 = vmatmul.bf16.gmra.mxu1 %v11533_v55  ;;  %v6378_v43 = vpack.c.bf16 %v4830_v23, %v4829_v46  ;;  %v11534_v23 = vld [vmem:[#allocation143_spill] sm:$0xff] }
 0x577   : > { %v4220_v47 = vpop.f32.mrf.mxu2  ;;  %v4549_v58 = vpop.f32.mrf.mxu3  ;;  %v11536_v55 = vpack.c.bf16 %v11534_v23, %v11535_v49 }
 0x578   : > { %6642 = vst [vmem:[%s9582_s12 + $0x68] sm:$0xff] %v6378_v43   ;;  %v4221_v31 = vadd.f32 %v4220_v47, %v3796_v30  ;;  %v11539_v43 = vpack.c.bf16 %v11537_v27, %v11538_v20  ;;  %v11540_v47 = vld [vmem:[#allocation147_spill] sm:$0xff]  ;;  %v11541_v30 = vld [vmem:[#allocation145_spill] sm:$0xff] }
 0x57a   : > { %v4550_v41 = vadd.f32 %v4549_v58, %v4221_v31  ;;  %v11543_v58 = vld [vmem:[#allocation148_spill] sm:$0xff] }
 0x57b   : > { %v3468_v19 = vpop.f32.mrf.mxu0  ;;  %v3797_v61 = vpop.f32.mrf.mxu1 }
 0x57c   : > { %v3798_v57 = vadd.f32 %v3797_v61, %v3468_v19  ;;  %v4831_v28 = vadd.f32 %v9567_v37, %v4550_v41  ;;  %v11542_v19 = vpack.c.bf16 %v11540_v47, %v11541_v30  ;;  %v11544_v61 = vld [vmem:[#allocation146_spill] sm:$0xff] }
 0x57d   : > { %v11545_v31 = vpack.c.bf16 %v11543_v58, %v11544_v61  ;;  %v11547_v61 = vld [vmem:[#allocation149_spill] sm:$0xff] }
 0x57f   : > { %v4222_v0 = vpop.f32.mrf.mxu2  ;;  %v4551_v26 = vpop.f32.mrf.mxu3 }
 0x580   : > { %v4223_v54 = vadd.f32 %v4222_v0, %v3798_v57 }
 0x582   : > { %v4552_v44 = vadd.f32 %v4551_v26, %v4223_v54 }
 0x583   : > { %v3471_v42 = vpop.f32.mrf.mxu0  ;;  %v3800_v1 = vpop.f32.mrf.mxu1 }
 0x584   : > { %v4832_v46 = vadd.f32 %v9567_v37, %v4552_v44  ;;  %4264 = vmatmul.bf16.gmra.mxu2 %v11536_v55  ;;  %4593 = vmatmul.bf16.gmra.mxu3 %v11539_v43  ;;  %v3801_v41 = vadd.f32 %v3800_v1, %v3471_v42  ;;  %v11549_v42 = vld [vmem:[#allocation152_spill] sm:$0xff]  ;;  %v11550_v1 = vld [vmem:[#allocation150_spill] sm:$0xff] }
 0x586   : > { %3510 = vmatmul.bf16.gmra.mxu0 %v11542_v19  ;;  %3839 = vmatmul.bf16.gmra.mxu1 %v11545_v31  ;;  %v6383_v57 = vpack.c.bf16 %v4832_v46, %v4831_v28  ;;  %v11546_v46 = vld [vmem:[#allocation151_spill] sm:$0xff] }
 0x587   : > { %v4225_v0 = vpop.f32.mrf.mxu2  ;;  %v4554_v26 = vpop.f32.mrf.mxu3  ;;  %v11548_v31 = vpack.c.bf16 %v11546_v46, %v11547_v61 }
 0x588   : > { %6643 = vst [vmem:[%s9582_s12 + $0x70] sm:$0xff] %v6383_v57   ;;  %v4226_v23 = vadd.f32 %v4225_v0, %v3801_v41  ;;  %v11551_v57 = vpack.c.bf16 %v11549_v42, %v11550_v1  ;;  %v11552_v0 = vld [vmem:[#allocation155_spill] sm:$0xff]  ;;  %v11553_v41 = vld [vmem:[#allocation153_spill] sm:$0xff] }
 0x58a   : > { %v4555_v20 = vadd.f32 %v4554_v26, %v4226_v23  ;;  %v11555_v26 = vld [vmem:[#allocation156_spill] sm:$0xff] }
 0x58b   : > { %v3473_v54 = vpop.f32.mrf.mxu0  ;;  %v3802_v44 = vpop.f32.mrf.mxu1 }
 0x58c   : > { %v3803_v49 = vadd.f32 %v3802_v44, %v3473_v54  ;;  %v4833_v58 = vadd.f32 %v9567_v37, %v4555_v20  ;;  %v11554_v54 = vpack.c.bf16 %v11552_v0, %v11553_v41  ;;  %v11556_v44 = vld [vmem:[#allocation154_spill] sm:$0xff] }
 0x58d   : > { %v11557_v23 = vpack.c.bf16 %v11555_v26, %v11556_v44  ;;  %v11559_v44 = vld [vmem:[#allocation157_spill] sm:$0xff] }
 0x58f   : > { %v4227_v55 = vpop.f32.mrf.mxu2  ;;  %v4556_v27 = vpop.f32.mrf.mxu3 }
 0x590   : > { %v4228_v43 = vadd.f32 %v4227_v55, %v3803_v49 }
 0x592   : > { %v4557_v47 = vadd.f32 %v4556_v27, %v4228_v43 }
 0x593   : > { %v3476_v30 = vpop.f32.mrf.mxu0  ;;  %v3805_v19 = vpop.f32.mrf.mxu1 }
 0x594   : > { %v4834_v28 = vadd.f32 %v9567_v37, %v4557_v47  ;;  %4269 = vmatmul.bf16.gmra.mxu2 %v11548_v31  ;;  %4598 = vmatmul.bf16.gmra.mxu3 %v11551_v57  ;;  %v3806_v20 = vadd.f32 %v3805_v19, %v3476_v30  ;;  %v11561_v30 = vld [vmem:[#allocation160_spill] sm:$0xff]  ;;  %v11562_v19 = vld [vmem:[#allocation158_spill] sm:$0xff] }
 0x596   : > { %3515 = vmatmul.bf16.gmra.mxu0 %v11554_v54  ;;  %3844 = vmatmul.bf16.gmra.mxu1 %v11557_v23  ;;  %v6388_v49 = vpack.c.bf16 %v4834_v28, %v4833_v58  ;;  %v11558_v28 = vld [vmem:[#allocation159_spill] sm:$0xff] }
 0x597   : > { %v4230_v55 = vpop.f32.mrf.mxu2  ;;  %v4559_v27 = vpop.f32.mrf.mxu3  ;;  %v11560_v23 = vpack.c.bf16 %v11558_v28, %v11559_v44 }
 0x598   : > { %6644 = vst [vmem:[%s9582_s12 + $0x78] sm:$0xff] %v6388_v49   ;;  %v4231_v46 = vadd.f32 %v4230_v55, %v3806_v20  ;;  %v11563_v49 = vpack.c.bf16 %v11561_v30, %v11562_v19  ;;  %v11564_v55 = vld [vmem:[#allocation163_spill] sm:$0xff]  ;;  %v11565_v20 = vld [vmem:[#allocation161_spill] sm:$0xff] }
 0x59a   : > { %v4560_v1 = vadd.f32 %v4559_v27, %v4231_v46  ;;  %v11567_v27 = vld [vmem:[#allocation164_spill] sm:$0xff] }
 0x59b   : > { %v3478_v43 = vpop.f32.mrf.mxu0  ;;  %v3807_v47 = vpop.f32.mrf.mxu1 }
 0x59c   : > { %v3808_v61 = vadd.f32 %v3807_v47, %v3478_v43  ;;  %v4835_v26 = vadd.f32 %v9567_v37, %v4560_v1  ;;  %v11566_v43 = vpack.c.bf16 %v11564_v55, %v11565_v20  ;;  %v11568_v47 = vld [vmem:[#allocation162_spill] sm:$0xff] }
 0x59d   : > { %v11569_v46 = vpack.c.bf16 %v11567_v27, %v11568_v47  ;;  %v11571_v47 = vld [vmem:[#allocation165_spill] sm:$0xff] }
 0x59f   : > { %v4232_v31 = vpop.f32.mrf.mxu2  ;;  %v4561_v42 = vpop.f32.mrf.mxu3 }
 0x5a0   : > { %v4233_v57 = vadd.f32 %v4232_v31, %v3808_v61 }
 0x5a2   : > { %v4562_v0 = vadd.f32 %v4561_v42, %v4233_v57 }
 0x5a3   : > { %v3481_v41 = vpop.f32.mrf.mxu0  ;;  %v3810_v54 = vpop.f32.mrf.mxu1 }
 0x5a4   : > { %v4836_v58 = vadd.f32 %v9567_v37, %v4562_v0  ;;  %4274 = vmatmul.bf16.gmra.mxu2 %v11560_v23  ;;  %4603 = vmatmul.bf16.gmra.mxu3 %v11563_v49  ;;  %v3811_v1 = vadd.f32 %v3810_v54, %v3481_v41  ;;  %v11573_v41 = vld [vmem:[#allocation168_spill] sm:$0xff]  ;;  %v11574_v54 = vld [vmem:[#allocation166_spill] sm:$0xff] }
 0x5a6   : > { %3520 = vmatmul.bf16.gmra.mxu0 %v11566_v43  ;;  %3849 = vmatmul.bf16.gmra.mxu1 %v11569_v46  ;;  %v6393_v61 = vpack.c.bf16 %v4836_v58, %v4835_v26  ;;  %v11570_v58 = vld [vmem:[#allocation167_spill] sm:$0xff] }
 0x5a7   : > { %v4235_v31 = vpop.f32.mrf.mxu2  ;;  %v4564_v42 = vpop.f32.mrf.mxu3  ;;  %v11572_v46 = vpack.c.bf16 %v11570_v58, %v11571_v47 }
 0x5a8   : > { %6645 = vst [vmem:[%s9582_s12 + $0x80] sm:$0xff] %v6393_v61   ;;  %v4236_v28 = vadd.f32 %v4235_v31, %v3811_v1  ;;  %v11575_v61 = vpack.c.bf16 %v11573_v41, %v11574_v54  ;;  %v11576_v31 = vld [vmem:[#allocation171_spill] sm:$0xff]  ;;  %v11577_v1 = vld [vmem:[#allocation169_spill] sm:$0xff] }
 0x5aa   : > { %v4565_v19 = vadd.f32 %v4564_v42, %v4236_v28  ;;  %v11579_v42 = vld [vmem:[#allocation172_spill] sm:$0xff] }
 0x5ab   : > { %v3483_v57 = vpop.f32.mrf.mxu0  ;;  %v3812_v0 = vpop.f32.mrf.mxu1 }
 0x5ac   : > { %v3813_v44 = vadd.f32 %v3812_v0, %v3483_v57  ;;  %v4837_v27 = vadd.f32 %v9567_v37, %v4565_v19  ;;  %v11578_v57 = vpack.c.bf16 %v11576_v31, %v11577_v1  ;;  %v11580_v0 = vld [vmem:[#allocation170_spill] sm:$0xff] }
 0x5ad   : > { %v11581_v28 = vpack.c.bf16 %v11579_v42, %v11580_v0  ;;  %v11583_v0 = vld [vmem:[#allocation173_spill] sm:$0xff] }
 0x5af   : > { %v4237_v23 = vpop.f32.mrf.mxu2  ;;  %v4566_v30 = vpop.f32.mrf.mxu3 }
 0x5b0   : > { %v4238_v49 = vadd.f32 %v4237_v23, %v3813_v44 }
 0x5b2   : > { %v4567_v55 = vadd.f32 %v4566_v30, %v4238_v49 }
 0x5b3   : > { %v3486_v20 = vpop.f32.mrf.mxu0  ;;  %v3815_v43 = vpop.f32.mrf.mxu1 }
 0x5b4   : > { %v4838_v26 = vadd.f32 %v9567_v37, %v4567_v55  ;;  %4279 = vmatmul.bf16.gmra.mxu2 %v11572_v46  ;;  %4608 = vmatmul.bf16.gmra.mxu3 %v11575_v61  ;;  %v3816_v19 = vadd.f32 %v3815_v43, %v3486_v20  ;;  %v11585_v20 = vld [vmem:[#allocation176_spill] sm:$0xff]  ;;  %v11586_v43 = vld [vmem:[#allocation174_spill] sm:$0xff] }
 0x5b6   : > { %3525 = vmatmul.bf16.gmra.mxu0 %v11578_v57  ;;  %3854 = vmatmul.bf16.gmra.mxu1 %v11581_v28  ;;  %v6398_v44 = vpack.c.bf16 %v4838_v26, %v4837_v27  ;;  %v11582_v26 = vld [vmem:[#allocation175_spill] sm:$0xff] }
 0x5b7   : > { %v4240_v23 = vpop.f32.mrf.mxu2  ;;  %v4569_v30 = vpop.f32.mrf.mxu3  ;;  %v11584_v28 = vpack.c.bf16 %v11582_v26, %v11583_v0 }
 0x5b8   : > { %6646 = vst [vmem:[%s9582_s12 + $0x88] sm:$0xff] %v6398_v44   ;;  %v4241_v58 = vadd.f32 %v4240_v23, %v3816_v19  ;;  %v11587_v44 = vpack.c.bf16 %v11585_v20, %v11586_v43  ;;  %v11588_v23 = vld [vmem:[#allocation179_spill] sm:$0xff]  ;;  %v11589_v19 = vld [vmem:[#allocation177_spill] sm:$0xff] }
 0x5ba   : > { %v4570_v54 = vadd.f32 %v4569_v30, %v4241_v58  ;;  %v11591_v30 = vld [vmem:[#allocation180_spill] sm:$0xff] }
 0x5bb   : > { %v3488_v49 = vpop.f32.mrf.mxu0  ;;  %v3817_v55 = vpop.f32.mrf.mxu1 }
 0x5bc   : > { %v3818_v47 = vadd.f32 %v3817_v55, %v3488_v49  ;;  %v4839_v42 = vadd.f32 %v9567_v37, %v4570_v54  ;;  %v11590_v49 = vpack.c.bf16 %v11588_v23, %v11589_v19  ;;  %v11592_v55 = vld [vmem:[#allocation178_spill] sm:$0xff] }
 0x5bd   : > { %v11593_v58 = vpack.c.bf16 %v11591_v30, %v11592_v55  ;;  %v11595_v55 = vld [vmem:[#allocation181_spill] sm:$0xff] }
 0x5bf   : > { %v4242_v46 = vpop.f32.mrf.mxu2  ;;  %v4571_v41 = vpop.f32.mrf.mxu3 }
 0x5c0   : > { %v4243_v61 = vadd.f32 %v4242_v46, %v3818_v47 }
 0x5c2   : > { %v4572_v31 = vadd.f32 %v4571_v41, %v4243_v61 }
 0x5c3   : > { %v3491_v1 = vpop.f32.mrf.mxu0  ;;  %v3820_v57 = vpop.f32.mrf.mxu1 }
 0x5c4   : > { %v4840_v27 = vadd.f32 %v9567_v37, %v4572_v31  ;;  %4284 = vmatmul.bf16.gmra.mxu2 %v11584_v28  ;;  %4613 = vmatmul.bf16.gmra.mxu3 %v11587_v44  ;;  %v3821_v54 = vadd.f32 %v3820_v57, %v3491_v1  ;;  %v11597_v1 = vld [vmem:[#allocation184_spill] sm:$0xff]  ;;  %v11598_v57 = vld [vmem:[#allocation182_spill] sm:$0xff] }
 0x5c6   : > { %3530 = vmatmul.bf16.gmra.mxu0 %v11590_v49  ;;  %3859 = vmatmul.bf16.gmra.mxu1 %v11593_v58  ;;  %v6403_v47 = vpack.c.bf16 %v4840_v27, %v4839_v42  ;;  %v11594_v27 = vld [vmem:[#allocation183_spill] sm:$0xff] }
 0x5c7   : > { %v4245_v46 = vpop.f32.mrf.mxu2  ;;  %v4574_v41 = vpop.f32.mrf.mxu3  ;;  %v11596_v58 = vpack.c.bf16 %v11594_v27, %v11595_v55 }
 0x5c8   : > { %6647 = vst [vmem:[%s9582_s12 + $0x90] sm:$0xff] %v6403_v47   ;;  %v4246_v26 = vadd.f32 %v4245_v46, %v3821_v54  ;;  %v11599_v47 = vpack.c.bf16 %v11597_v1, %v11598_v57  ;;  %v11600_v46 = vld [vmem:[#allocation187_spill] sm:$0xff]  ;;  %v11601_v54 = vld [vmem:[#allocation185_spill] sm:$0xff] }
 0x5ca   : > { %v4575_v43 = vadd.f32 %v4574_v41, %v4246_v26  ;;  %v11603_v41 = vld [vmem:[#allocation188_spill] sm:$0xff] }
 0x5cb   : > { %v3493_v61 = vpop.f32.mrf.mxu0  ;;  %v3822_v31 = vpop.f32.mrf.mxu1 }
 0x5cc   : > { %v3823_v0 = vadd.f32 %v3822_v31, %v3493_v61  ;;  %v4841_v30 = vadd.f32 %v9567_v37, %v4575_v43  ;;  %v11602_v61 = vpack.c.bf16 %v11600_v46, %v11601_v54  ;;  %v11604_v31 = vld [vmem:[#allocation186_spill] sm:$0xff] }
 0x5cd   : > { %v11605_v26 = vpack.c.bf16 %v11603_v41, %v11604_v31  ;;  %v11607_v31 = vld [vmem:[#allocation189_spill] sm:$0xff] }
 0x5cf   : > { %v4247_v28 = vpop.f32.mrf.mxu2  ;;  %v4576_v20 = vpop.f32.mrf.mxu3 }
 0x5d0   : > { %v4248_v44 = vadd.f32 %v4247_v28, %v3823_v0 }
 0x5d2   : > { %v4577_v23 = vadd.f32 %v4576_v20, %v4248_v44 }
 0x5d3   : > { %v3496_v19 = vpop.f32.mrf.mxu0  ;;  %v3825_v49 = vpop.f32.mrf.mxu1 }
 0x5d4   : > { %v4842_v42 = vadd.f32 %v9567_v37, %v4577_v23  ;;  %4289 = vmatmul.bf16.gmra.mxu2 %v11596_v58  ;;  %4618 = vmatmul.bf16.gmra.mxu3 %v11599_v47  ;;  %v3826_v43 = vadd.f32 %v3825_v49, %v3496_v19  ;;  %v11609_v19 = vld [vmem:[#allocation192_spill] sm:$0xff]  ;;  %v11610_v49 = vld [vmem:[#allocation190_spill] sm:$0xff] }
 0x5d6   : > { %3535 = vmatmul.bf16.gmra.mxu0 %v11602_v61  ;;  %3864 = vmatmul.bf16.gmra.mxu1 %v11605_v26  ;;  %v6408_v0 = vpack.c.bf16 %v4842_v42, %v4841_v30  ;;  %v11606_v42 = vld [vmem:[#allocation191_spill] sm:$0xff] }
 0x5d7   : > { %v4250_v28 = vpop.f32.mrf.mxu2  ;;  %v4579_v20 = vpop.f32.mrf.mxu3  ;;  %v11608_v26 = vpack.c.bf16 %v11606_v42, %v11607_v31 }
 0x5d8   : > { %6648 = vst [vmem:[%s9582_s12 + $0x98] sm:$0xff] %v6408_v0   ;;  %v4251_v27 = vadd.f32 %v4250_v28, %v3826_v43  ;;  %v11611_v0 = vpack.c.bf16 %v11609_v19, %v11610_v49  ;;  %v11612_v28 = vld [vmem:[#allocation195_spill] sm:$0xff]  ;;  %v11613_v43 = vld [vmem:[#allocation193_spill] sm:$0xff] }
 0x5da   : > { %v4580_v57 = vadd.f32 %v4579_v20, %v4251_v27  ;;  %v11615_v20 = vld [vmem:[#allocation196_spill] sm:$0xff] }
 0x5db   : > { %v3498_v44 = vpop.f32.mrf.mxu0  ;;  %v3827_v23 = vpop.f32.mrf.mxu1 }
 0x5dc   : > { %v3828_v55 = vadd.f32 %v3827_v23, %v3498_v44  ;;  %v4843_v41 = vadd.f32 %v9567_v37, %v4580_v57  ;;  %v11614_v44 = vpack.c.bf16 %v11612_v28, %v11613_v43  ;;  %v11616_v23 = vld [vmem:[#allocation194_spill] sm:$0xff] }
 0x5dd   : > { %v11617_v27 = vpack.c.bf16 %v11615_v20, %v11616_v23  ;;  %v11619_v23 = vld [vmem:[#allocation197_spill] sm:$0xff] }
 0x5df   : > { %v4252_v58 = vpop.f32.mrf.mxu2  ;;  %v4581_v1 = vpop.f32.mrf.mxu3 }
 0x5e0   : > { %v4253_v47 = vadd.f32 %v4252_v58, %v3828_v55 }
 0x5e2   : > { %v4582_v46 = vadd.f32 %v4581_v1, %v4253_v47 }
 0x5e3   : > { %v3501_v54 = vpop.f32.mrf.mxu0  ;;  %v3830_v61 = vpop.f32.mrf.mxu1 }
 0x5e4   : > { %v4844_v30 = vadd.f32 %v9567_v37, %v4582_v46  ;;  %4294 = vmatmul.bf16.gmra.mxu2 %v11608_v26  ;;  %4623 = vmatmul.bf16.gmra.mxu3 %v11611_v0  ;;  %v3831_v57 = vadd.f32 %v3830_v61, %v3501_v54  ;;  %v11621_v54 = vld [vmem:[#allocation200_spill] sm:$0xff]  ;;  %v11622_v61 = vld [vmem:[#allocation198_spill] sm:$0xff] }
 0x5e6   : > { %3540 = vmatmul.bf16.gmra.mxu0 %v11614_v44  ;;  %3869 = vmatmul.bf16.gmra.mxu1 %v11617_v27  ;;  %v6413_v55 = vpack.c.bf16 %v4844_v30, %v4843_v41  ;;  %v11618_v30 = vld [vmem:[#allocation199_spill] sm:$0xff] }
 0x5e7   : > { %v4255_v58 = vpop.f32.mrf.mxu2  ;;  %v4584_v1 = vpop.f32.mrf.mxu3  ;;  %v11620_v27 = vpack.c.bf16 %v11618_v30, %v11619_v23 }
 0x5e8   : > { %6649 = vst [vmem:[%s9582_s12 + $0xa0] sm:$0xff] %v6413_v55   ;;  %v4256_v42 = vadd.f32 %v4255_v58, %v3831_v57  ;;  %v11623_v55 = vpack.c.bf16 %v11621_v54, %v11622_v61  ;;  %v11624_v58 = vld [vmem:[#allocation203_spill] sm:$0xff]  ;;  %v11625_v57 = vld [vmem:[#allocation201_spill] sm:$0xff] }
 0x5ea   : > { %v4585_v49 = vadd.f32 %v4584_v1, %v4256_v42  ;;  %v11627_v1 = vld [vmem:[#allocation204_spill] sm:$0xff] }
 0x5eb   : > { %v3503_v47 = vpop.f32.mrf.mxu0  ;;  %v3832_v46 = vpop.f32.mrf.mxu1 }
 0x5ec   : > { %v3833_v31 = vadd.f32 %v3832_v46, %v3503_v47  ;;  %v4845_v20 = vadd.f32 %v9567_v37, %v4585_v49  ;;  %v11626_v47 = vpack.c.bf16 %v11624_v58, %v11625_v57  ;;  %v11628_v46 = vld [vmem:[#allocation202_spill] sm:$0xff] }
 0x5ed   : > { %v11629_v42 = vpack.c.bf16 %v11627_v1, %v11628_v46  ;;  %v11631_v46 = vld [vmem:[#allocation205_spill] sm:$0xff] }
 0x5ef   : > { %v4257_v26 = vpop.f32.mrf.mxu2  ;;  %v4586_v19 = vpop.f32.mrf.mxu3 }
 0x5f0   : > { %v4258_v0 = vadd.f32 %v4257_v26, %v3833_v31 }
 0x5f2   : > { %v4587_v28 = vadd.f32 %v4586_v19, %v4258_v0 }
 0x5f3   : > { %v3506_v43 = vpop.f32.mrf.mxu0  ;;  %v3835_v44 = vpop.f32.mrf.mxu1 }
 0x5f4   : > { %v4846_v41 = vadd.f32 %v9567_v37, %v4587_v28  ;;  %4299 = vmatmul.bf16.gmra.mxu2 %v11620_v27  ;;  %4628 = vmatmul.bf16.gmra.mxu3 %v11623_v55  ;;  %v3836_v49 = vadd.f32 %v3835_v44, %v3506_v43  ;;  %v11633_v43 = vld [vmem:[#allocation208_spill] sm:$0xff]  ;;  %v11634_v44 = vld [vmem:[#allocation206_spill] sm:$0xff] }
 0x5f6   : > { %3545 = vmatmul.bf16.gmra.mxu0 %v11626_v47  ;;  %3874 = vmatmul.bf16.gmra.mxu1 %v11629_v42  ;;  %v6418_v31 = vpack.c.bf16 %v4846_v41, %v4845_v20  ;;  %v11630_v41 = vld [vmem:[#allocation207_spill] sm:$0xff] }
 0x5f7   : > { %v4260_v26 = vpop.f32.mrf.mxu2  ;;  %v4589_v19 = vpop.f32.mrf.mxu3  ;;  %v11632_v42 = vpack.c.bf16 %v11630_v41, %v11631_v46 }
 0x5f8   : > { %6650 = vst [vmem:[%s9582_s12 + $0xa8] sm:$0xff] %v6418_v31   ;;  %v4261_v30 = vadd.f32 %v4260_v26, %v3836_v49  ;;  %v11635_v31 = vpack.c.bf16 %v11633_v43, %v11634_v44  ;;  %v11636_v26 = vld [vmem:[#allocation211_spill] sm:$0xff]  ;;  %v11637_v49 = vld [vmem:[#allocation209_spill] sm:$0xff] }
 0x5fa   : > { %v4590_v61 = vadd.f32 %v4589_v19, %v4261_v30  ;;  %v11639_v19 = vld [vmem:[#allocation212_spill] sm:$0xff] }
 0x5fb   : > { %v3508_v0 = vpop.f32.mrf.mxu0  ;;  %v3837_v28 = vpop.f32.mrf.mxu1 }
 0x5fc   : > { %v3838_v23 = vadd.f32 %v3837_v28, %v3508_v0  ;;  %v4847_v1 = vadd.f32 %v9567_v37, %v4590_v61  ;;  %v11638_v0 = vpack.c.bf16 %v11636_v26, %v11637_v49  ;;  %v11640_v28 = vld [vmem:[#allocation210_spill] sm:$0xff] }
 0x5fd   : > { %v11641_v30 = vpack.c.bf16 %v11639_v19, %v11640_v28  ;;  %v11645_v28 = vld [vmem:[#allocation216_spill] sm:$0xff] }
 0x5ff   : > { %v4262_v27 = vpop.f32.mrf.mxu2  ;;  %v4591_v54 = vpop.f32.mrf.mxu3 }
 0x600   : > { %v4263_v55 = vadd.f32 %v4262_v27, %v3838_v23 }
 0x602   : > { %v4592_v58 = vadd.f32 %v4591_v54, %v4263_v55 }
 0x603   : > { %v3511_v57 = vpop.f32.mrf.mxu0  ;;  %v3840_v47 = vpop.f32.mrf.mxu1 }
 0x604   : > { %v4848_v20 = vadd.f32 %v9567_v37, %v4592_v58  ;;  %4304 = vmatmul.bf16.gmra.mxu2 %v11632_v42  ;;  %4633 = vmatmul.bf16.gmra.mxu3 %v11635_v31  ;;  %v3841_v37 = vadd.f32 %v3840_v47, %v3511_v57  ;;  %v11642_v47 = vld [vmem:[#allocation215_spill] sm:$0xff] }
 0x606   : > { %3550 = vmatmul.bf16.gmra.mxu0 %v11638_v0  ;;  %3879 = vmatmul.bf16.gmra.mxu1 %v11641_v30  ;;  %v6423_v23 = vpack.c.bf16 %v4848_v20, %v4847_v1  ;;  %v9924_v1 = vld [vmem:[%s10449_s8] ss:$0 sm:$0xff]  ;;  %v11643_v0 = vld [vmem:[#allocation213_spill] sm:$0xff] }
 0x607   : > { %v4265_v27 = vpop.f32.mrf.mxu2  ;;  %v4594_v54 = vpop.f32.mrf.mxu3  ;;  %v11644_v19 = vpack.c.bf16 %v11642_v47, %v11643_v0  ;;  %v11646_v30 = vld [vmem:[#allocation214_spill] sm:$0xff] }
 0x608   : > { %6651 = vst [vmem:[%s9582_s12 + $0xb0] sm:$0xff] %v6423_v23   ;;  %v4266_v58 = vadd.f32 %v4265_v27, %v3841_v37  ;;  %v11647_v23 = vpack.c.bf16 %v11645_v28, %v11646_v30  ;;  %v11648_v27 = vld [vmem:[#allocation219_spill] sm:$0xff] }
 0x60a   : > { %v4595_v43 = vadd.f32 %v4594_v54, %v4266_v58  ;;  %v11649_v54 = vld [vmem:[#allocation217_spill] sm:$0xff] }
 0x60b   : > { %v3513_v61 = vpop.f32.mrf.mxu0  ;;  %v3842_v55 = vpop.f32.mrf.mxu1  ;;  %v11650_v37 = vpack.c.bf16 %v11648_v27, %v11649_v54 }
 0x60c   : > { %v3843_v41 = vadd.f32 %v3842_v55, %v3513_v61  ;;  %v4849_v20 = vadd.f32 %v9924_v1, %v4595_v43  ;;  %v11651_v61 = vld [vmem:[#allocation220_spill] sm:$0xff]  ;;  %v11652_v55 = vld [vmem:[#allocation218_spill] sm:$0xff] }
 0x60d   : > { %v11653_v58 = vpack.c.bf16 %v11651_v61, %v11652_v55  ;;  %v11655_v55 = vld [vmem:[#allocation221_spill] sm:$0xff] }
 0x60f   : > { %v4267_v46 = vpop.f32.mrf.mxu2  ;;  %v4596_v42 = vpop.f32.mrf.mxu3 }
 0x610   : > { %v4268_v44 = vadd.f32 %v4267_v46, %v3843_v41 }
 0x612   : > { %v4597_v31 = vadd.f32 %v4596_v42, %v4268_v44 }
 0x613   : > { %v3516_v26 = vpop.f32.mrf.mxu0  ;;  %v3845_v49 = vpop.f32.mrf.mxu1 }
 0x614   : > { %v4850_v57 = vadd.f32 %v9924_v1, %v4597_v31  ;;  %4309 = vmatmul.bf16.gmra.mxu2 %v11644_v19  ;;  %4638 = vmatmul.bf16.gmra.mxu3 %v11647_v23  ;;  %v3846_v43 = vadd.f32 %v3845_v49, %v3516_v26  ;;  %v11657_v26 = vld [vmem:[#allocation224_spill] sm:$0xff]  ;;  %v11658_v49 = vld [vmem:[#allocation222_spill] sm:$0xff] }
 0x616   : > { %3555 = vmatmul.bf16.gmra.mxu0 %v11650_v37  ;;  %3884 = vmatmul.bf16.gmra.mxu1 %v11653_v58  ;;  %v6428_v41 = vpack.c.bf16 %v4850_v57, %v4849_v20  ;;  %v11654_v57 = vld [vmem:[#allocation223_spill] sm:$0xff] }
 0x617   : > { %v4270_v46 = vpop.f32.mrf.mxu2  ;;  %v4599_v42 = vpop.f32.mrf.mxu3  ;;  %v11656_v58 = vpack.c.bf16 %v11654_v57, %v11655_v55 }
 0x618   : > { %6652 = vst [vmem:[%s9582_s12 + $0xb8] sm:$0xff] %v6428_v41   ;;  %v4271_v47 = vadd.f32 %v4270_v46, %v3846_v43  ;;  %v11659_v41 = vpack.c.bf16 %v11657_v26, %v11658_v49  ;;  %v11660_v46 = vld [vmem:[#allocation227_spill] sm:$0xff]  ;;  %v11661_v43 = vld [vmem:[#allocation225_spill] sm:$0xff] }
 0x61a   : > { %v4600_v30 = vadd.f32 %v4599_v42, %v4271_v47  ;;  %v11663_v42 = vld [vmem:[#allocation228_spill] sm:$0xff] }
 0x61b   : > { %v3518_v44 = vpop.f32.mrf.mxu0  ;;  %v3847_v31 = vpop.f32.mrf.mxu1 }
 0x61c   : > { %v3848_v0 = vadd.f32 %v3847_v31, %v3518_v44  ;;  %v4851_v61 = vadd.f32 %v9924_v1, %v4600_v30  ;;  %v11662_v44 = vpack.c.bf16 %v11660_v46, %v11661_v43  ;;  %v11664_v31 = vld [vmem:[#allocation226_spill] sm:$0xff] }
 0x61d   : > { %v11665_v47 = vpack.c.bf16 %v11663_v42, %v11664_v31  ;;  %v11667_v31 = vld [vmem:[#allocation229_spill] sm:$0xff] }
 0x61f   : > { %v4272_v19 = vpop.f32.mrf.mxu2  ;;  %v4601_v28 = vpop.f32.mrf.mxu3 }
 0x620   : > { %v4273_v23 = vadd.f32 %v4272_v19, %v3848_v0 }
 0x622   : > { %v4602_v27 = vadd.f32 %v4601_v28, %v4273_v23 }
 0x623   : > { %v3521_v54 = vpop.f32.mrf.mxu0  ;;  %v3850_v37 = vpop.f32.mrf.mxu1 }
 0x624   : > { %v4852_v20 = vadd.f32 %v9924_v1, %v4602_v27  ;;  %4314 = vmatmul.bf16.gmra.mxu2 %v11656_v58  ;;  %4643 = vmatmul.bf16.gmra.mxu3 %v11659_v41  ;;  %v3851_v30 = vadd.f32 %v3850_v37, %v3521_v54  ;;  %v11669_v54 = vld [vmem:[#allocation232_spill] sm:$0xff]  ;;  %v11670_v37 = vld [vmem:[#allocation230_spill] sm:$0xff] }
 0x626   : > { %3560 = vmatmul.bf16.gmra.mxu0 %v11662_v44  ;;  %3889 = vmatmul.bf16.gmra.mxu1 %v11665_v47  ;;  %v6433_v0 = vpack.c.bf16 %v4852_v20, %v4851_v61  ;;  %v11666_v20 = vld [vmem:[#allocation231_spill] sm:$0xff] }
 0x627   : > { %v4275_v19 = vpop.f32.mrf.mxu2  ;;  %v4604_v28 = vpop.f32.mrf.mxu3  ;;  %v11668_v47 = vpack.c.bf16 %v11666_v20, %v11667_v31 }
 0x628   : > { %6653 = vst [vmem:[%s9582_s12 + $0xc0] sm:$0xff] %v6433_v0   ;;  %v4276_v57 = vadd.f32 %v4275_v19, %v3851_v30  ;;  %v11671_v0 = vpack.c.bf16 %v11669_v54, %v11670_v37  ;;  %v11672_v19 = vld [vmem:[#allocation235_spill] sm:$0xff]  ;;  %v11673_v30 = vld [vmem:[#allocation233_spill] sm:$0xff] }
 0x62a   : > { %v4605_v49 = vadd.f32 %v4604_v28, %v4276_v57  ;;  %v11675_v28 = vld [vmem:[#allocation236_spill] sm:$0xff] }
 0x62b   : > { %v3523_v23 = vpop.f32.mrf.mxu0  ;;  %v3852_v27 = vpop.f32.mrf.mxu1 }
 0x62c   : > { %v3853_v55 = vadd.f32 %v3852_v27, %v3523_v23  ;;  %v4853_v42 = vadd.f32 %v9924_v1, %v4605_v49  ;;  %v11674_v23 = vpack.c.bf16 %v11672_v19, %v11673_v30  ;;  %v11676_v27 = vld [vmem:[#allocation234_spill] sm:$0xff] }
 0x62d   : > { %v11677_v57 = vpack.c.bf16 %v11675_v28, %v11676_v27  ;;  %v11679_v27 = vld [vmem:[#allocation237_spill] sm:$0xff] }
 0x62f   : > { %v4277_v58 = vpop.f32.mrf.mxu2  ;;  %v4606_v26 = vpop.f32.mrf.mxu3 }
 0x630   : > { %v4278_v41 = vadd.f32 %v4277_v58, %v3853_v55 }
 0x632   : > { %v4607_v46 = vadd.f32 %v4606_v26, %v4278_v41 }
 0x633   : > { %v3526_v43 = vpop.f32.mrf.mxu0  ;;  %v3855_v44 = vpop.f32.mrf.mxu1 }
 0x634   : > { %v4854_v61 = vadd.f32 %v9924_v1, %v4607_v46  ;;  %4319 = vmatmul.bf16.gmra.mxu2 %v11668_v47  ;;  %4648 = vmatmul.bf16.gmra.mxu3 %v11671_v0  ;;  %v3856_v49 = vadd.f32 %v3855_v44, %v3526_v43  ;;  %v11681_v43 = vld [vmem:[#allocation240_spill] sm:$0xff]  ;;  %v11682_v44 = vld [vmem:[#allocation238_spill] sm:$0xff] }
 0x636   : > { %3565 = vmatmul.bf16.gmra.mxu0 %v11674_v23  ;;  %3894 = vmatmul.bf16.gmra.mxu1 %v11677_v57  ;;  %v6438_v55 = vpack.c.bf16 %v4854_v61, %v4853_v42  ;;  %v11678_v61 = vld [vmem:[#allocation239_spill] sm:$0xff] }
 0x637   : > { %v4280_v58 = vpop.f32.mrf.mxu2  ;;  %v4609_v26 = vpop.f32.mrf.mxu3  ;;  %v11680_v57 = vpack.c.bf16 %v11678_v61, %v11679_v27 }
 0x638   : > { %6654 = vst [vmem:[%s9582_s12 + $0xc8] sm:$0xff] %v6438_v55   ;;  %v4281_v20 = vadd.f32 %v4280_v58, %v3856_v49  ;;  %v11683_v55 = vpack.c.bf16 %v11681_v43, %v11682_v44  ;;  %v11684_v58 = vld [vmem:[#allocation243_spill] sm:$0xff]  ;;  %v11685_v49 = vld [vmem:[#allocation241_spill] sm:$0xff] }
 0x63a   : > { %v4610_v37 = vadd.f32 %v4609_v26, %v4281_v20  ;;  %v11687_v26 = vld [vmem:[#allocation244_spill] sm:$0xff] }
 0x63b   : > { %v3528_v41 = vpop.f32.mrf.mxu0  ;;  %v3857_v46 = vpop.f32.mrf.mxu1 }
 0x63c   : > { %v3858_v31 = vadd.f32 %v3857_v46, %v3528_v41  ;;  %v4855_v28 = vadd.f32 %v9924_v1, %v4610_v37  ;;  %v11686_v41 = vpack.c.bf16 %v11684_v58, %v11685_v49  ;;  %v11688_v46 = vld [vmem:[#allocation242_spill] sm:$0xff] }
 0x63d   : > { %v11689_v20 = vpack.c.bf16 %v11687_v26, %v11688_v46  ;;  %v11691_v46 = vld [vmem:[#allocation245_spill] sm:$0xff] }
 0x63f   : > { %v4282_v47 = vpop.f32.mrf.mxu2  ;;  %v4611_v54 = vpop.f32.mrf.mxu3 }
 0x640   : > { %v4283_v0 = vadd.f32 %v4282_v47, %v3858_v31 }
 0x642   : > { %v4612_v19 = vadd.f32 %v4611_v54, %v4283_v0 }
 0x643   : > { %v3531_v30 = vpop.f32.mrf.mxu0  ;;  %v3860_v23 = vpop.f32.mrf.mxu1 }
 0x644   : > { %v4856_v42 = vadd.f32 %v9924_v1, %v4612_v19  ;;  %4324 = vmatmul.bf16.gmra.mxu2 %v11680_v57  ;;  %4653 = vmatmul.bf16.gmra.mxu3 %v11683_v55  ;;  %v3861_v37 = vadd.f32 %v3860_v23, %v3531_v30  ;;  %v11693_v30 = vld [vmem:[#allocation248_spill] sm:$0xff]  ;;  %v11694_v23 = vld [vmem:[#allocation246_spill] sm:$0xff] }
 0x646   : > { %3570 = vmatmul.bf16.gmra.mxu0 %v11686_v41  ;;  %3899 = vmatmul.bf16.gmra.mxu1 %v11689_v20  ;;  %v6443_v31 = vpack.c.bf16 %v4856_v42, %v4855_v28  ;;  %v11690_v42 = vld [vmem:[#allocation247_spill] sm:$0xff] }
 0x647   : > { %v4285_v47 = vpop.f32.mrf.mxu2  ;;  %v4614_v54 = vpop.f32.mrf.mxu3  ;;  %v11692_v20 = vpack.c.bf16 %v11690_v42, %v11691_v46 }
 0x648   : > { %6655 = vst [vmem:[%s9582_s12 + $0xd0] sm:$0xff] %v6443_v31   ;;  %v4286_v61 = vadd.f32 %v4285_v47, %v3861_v37  ;;  %v11695_v31 = vpack.c.bf16 %v11693_v30, %v11694_v23  ;;  %v11696_v47 = vld [vmem:[#allocation251_spill] sm:$0xff]  ;;  %v11697_v37 = vld [vmem:[#allocation249_spill] sm:$0xff] }
 0x64a   : > { %v4615_v44 = vadd.f32 %v4614_v54, %v4286_v61  ;;  %v11699_v54 = vld [vmem:[#allocation252_spill] sm:$0xff] }
 0x64b   : > { %v3533_v0 = vpop.f32.mrf.mxu0  ;;  %v3862_v19 = vpop.f32.mrf.mxu1 }
 0x64c   : > { %v3863_v27 = vadd.f32 %v3862_v19, %v3533_v0  ;;  %v4857_v26 = vadd.f32 %v9924_v1, %v4615_v44  ;;  %v11698_v0 = vpack.c.bf16 %v11696_v47, %v11697_v37  ;;  %v11700_v19 = vld [vmem:[#allocation250_spill] sm:$0xff] }
 0x64d   : > { %v11701_v61 = vpack.c.bf16 %v11699_v54, %v11700_v19  ;;  %v11703_v19 = vld [vmem:[#allocation253_spill] sm:$0xff] }
 0x64f   : > { %v4287_v57 = vpop.f32.mrf.mxu2  ;;  %v4616_v43 = vpop.f32.mrf.mxu3 }
 0x650   : > { %v4288_v55 = vadd.f32 %v4287_v57, %v3863_v27 }
 0x652   : > { %v4617_v58 = vadd.f32 %v4616_v43, %v4288_v55 }
 0x653   : > { %v3536_v49 = vpop.f32.mrf.mxu0  ;;  %v3865_v41 = vpop.f32.mrf.mxu1 }
 0x654   : > { %v4858_v28 = vadd.f32 %v9924_v1, %v4617_v58  ;;  %4329 = vmatmul.bf16.gmra.mxu2 %v11692_v20  ;;  %4658 = vmatmul.bf16.gmra.mxu3 %v11695_v31  ;;  %v3866_v44 = vadd.f32 %v3865_v41, %v3536_v49  ;;  %v11705_v49 = vld [vmem:[#allocation256_spill] sm:$0xff]  ;;  %v11706_v41 = vld [vmem:[#allocation254_spill] sm:$0xff] }
 0x656   : > { %3575 = vmatmul.bf16.gmra.mxu0 %v11698_v0  ;;  %3904 = vmatmul.bf16.gmra.mxu1 %v11701_v61  ;;  %v6448_v27 = vpack.c.bf16 %v4858_v28, %v4857_v26  ;;  %v11702_v28 = vld [vmem:[#allocation255_spill] sm:$0xff] }
 0x657   : > { %v4290_v57 = vpop.f32.mrf.mxu2  ;;  %v4619_v43 = vpop.f32.mrf.mxu3  ;;  %v11704_v61 = vpack.c.bf16 %v11702_v28, %v11703_v19 }
 0x658   : > { %6656 = vst [vmem:[%s9582_s12 + $0xd8] sm:$0xff] %v6448_v27   ;;  %v4291_v42 = vadd.f32 %v4290_v57, %v3866_v44  ;;  %v11707_v27 = vpack.c.bf16 %v11705_v49, %v11706_v41  ;;  %v11708_v57 = vld [vmem:[#allocation259_spill] sm:$0xff]  ;;  %v11709_v44 = vld [vmem:[#allocation257_spill] sm:$0xff] }
 0x65a   : > { %v4620_v23 = vadd.f32 %v4619_v43, %v4291_v42  ;;  %v11711_v43 = vld [vmem:[#allocation260_spill] sm:$0xff] }
 0x65b   : > { %v3538_v55 = vpop.f32.mrf.mxu0  ;;  %v3867_v58 = vpop.f32.mrf.mxu1 }
 0x65c   : > { %v3868_v46 = vadd.f32 %v3867_v58, %v3538_v55  ;;  %v4859_v54 = vadd.f32 %v9924_v1, %v4620_v23  ;;  %v11710_v55 = vpack.c.bf16 %v11708_v57, %v11709_v44  ;;  %v11712_v58 = vld [vmem:[#allocation258_spill] sm:$0xff] }
 0x65d   : > { %v11713_v42 = vpack.c.bf16 %v11711_v43, %v11712_v58  ;;  %v11715_v58 = vld [vmem:[#allocation261_spill] sm:$0xff] }
 0x65f   : > { %v4292_v20 = vpop.f32.mrf.mxu2  ;;  %v4621_v30 = vpop.f32.mrf.mxu3 }
 0x660   : > { %v4293_v31 = vadd.f32 %v4292_v20, %v3868_v46 }
 0x662   : > { %v4622_v47 = vadd.f32 %v4621_v30, %v4293_v31 }
 0x663   : > { %v3541_v37 = vpop.f32.mrf.mxu0  ;;  %v3870_v0 = vpop.f32.mrf.mxu1 }
 0x664   : > { %v4860_v26 = vadd.f32 %v9924_v1, %v4622_v47  ;;  %4334 = vmatmul.bf16.gmra.mxu2 %v11704_v61  ;;  %4663 = vmatmul.bf16.gmra.mxu3 %v11707_v27  ;;  %v3871_v23 = vadd.f32 %v3870_v0, %v3541_v37  ;;  %v11717_v37 = vld [vmem:[#allocation264_spill] sm:$0xff]  ;;  %v11718_v0 = vld [vmem:[#allocation262_spill] sm:$0xff] }
 0x666   : > { %3580 = vmatmul.bf16.gmra.mxu0 %v11710_v55  ;;  %3909 = vmatmul.bf16.gmra.mxu1 %v11713_v42  ;;  %v6453_v46 = vpack.c.bf16 %v4860_v26, %v4859_v54  ;;  %v11714_v26 = vld [vmem:[#allocation263_spill] sm:$0xff] }
 0x667   : > { %v4295_v20 = vpop.f32.mrf.mxu2  ;;  %v4624_v30 = vpop.f32.mrf.mxu3  ;;  %v11716_v42 = vpack.c.bf16 %v11714_v26, %v11715_v58 }
 0x668   : > { %6657 = vst [vmem:[%s9582_s12 + $0xe0] sm:$0xff] %v6453_v46   ;;  %v4296_v28 = vadd.f32 %v4295_v20, %v3871_v23  ;;  %v11719_v46 = vpack.c.bf16 %v11717_v37, %v11718_v0  ;;  %v11720_v20 = vld [vmem:[#allocation267_spill] sm:$0xff]  ;;  %v11721_v23 = vld [vmem:[#allocation265_spill] sm:$0xff] }
 0x66a   : > { %v4625_v41 = vadd.f32 %v4624_v30, %v4296_v28  ;;  %v11723_v30 = vld [vmem:[#allocation268_spill] sm:$0xff] }
 0x66b   : > { %v3543_v31 = vpop.f32.mrf.mxu0  ;;  %v3872_v47 = vpop.f32.mrf.mxu1 }
 0x66c   : > { %v3873_v19 = vadd.f32 %v3872_v47, %v3543_v31  ;;  %v4861_v43 = vadd.f32 %v9924_v1, %v4625_v41  ;;  %v11722_v31 = vpack.c.bf16 %v11720_v20, %v11721_v23  ;;  %v11724_v47 = vld [vmem:[#allocation266_spill] sm:$0xff] }
 0x66d   : > { %v11725_v28 = vpack.c.bf16 %v11723_v30, %v11724_v47  ;;  %v11727_v47 = vld [vmem:[#allocation269_spill] sm:$0xff] }
 0x66f   : > { %v4297_v61 = vpop.f32.mrf.mxu2  ;;  %v4626_v49 = vpop.f32.mrf.mxu3 }
 0x670   : > { %v4298_v27 = vadd.f32 %v4297_v61, %v3873_v19 }
 0x672   : > { %v4627_v57 = vadd.f32 %v4626_v49, %v4298_v27 }
 0x673   : > { %v3546_v44 = vpop.f32.mrf.mxu0  ;;  %v3875_v55 = vpop.f32.mrf.mxu1 }
 0x674   : > { %v4862_v54 = vadd.f32 %v9924_v1, %v4627_v57  ;;  %4339 = vmatmul.bf16.gmra.mxu2 %v11716_v42  ;;  %4668 = vmatmul.bf16.gmra.mxu3 %v11719_v46  ;;  %v3876_v41 = vadd.f32 %v3875_v55, %v3546_v44  ;;  %v11729_v44 = vld [vmem:[#allocation272_spill] sm:$0xff]  ;;  %v11730_v55 = vld [vmem:[#allocation270_spill] sm:$0xff] }
 0x676   : > { %3585 = vmatmul.bf16.gmra.mxu0 %v11722_v31  ;;  %3914 = vmatmul.bf16.gmra.mxu1 %v11725_v28  ;;  %v6458_v19 = vpack.c.bf16 %v4862_v54, %v4861_v43  ;;  %v11726_v54 = vld [vmem:[#allocation271_spill] sm:$0xff] }
 0x677   : > { %v4300_v61 = vpop.f32.mrf.mxu2  ;;  %v4629_v49 = vpop.f32.mrf.mxu3  ;;  %v11728_v28 = vpack.c.bf16 %v11726_v54, %v11727_v47 }
 0x678   : > { %6658 = vst [vmem:[%s9582_s12 + $0xe8] sm:$0xff] %v6458_v19   ;;  %v4301_v26 = vadd.f32 %v4300_v61, %v3876_v41  ;;  %v11731_v19 = vpack.c.bf16 %v11729_v44, %v11730_v55  ;;  %v11732_v61 = vld [vmem:[#allocation275_spill] sm:$0xff]  ;;  %v11733_v41 = vld [vmem:[#allocation273_spill] sm:$0xff] }
 0x67a   : > { %v4630_v0 = vadd.f32 %v4629_v49, %v4301_v26  ;;  %v11735_v49 = vld [vmem:[#allocation276_spill] sm:$0xff] }
 0x67b   : > { %v3548_v27 = vpop.f32.mrf.mxu0  ;;  %v3877_v57 = vpop.f32.mrf.mxu1 }
 0x67c   : > { %v3878_v58 = vadd.f32 %v3877_v57, %v3548_v27  ;;  %v4863_v30 = vadd.f32 %v9924_v1, %v4630_v0  ;;  %v11734_v27 = vpack.c.bf16 %v11732_v61, %v11733_v41  ;;  %v11736_v57 = vld [vmem:[#allocation274_spill] sm:$0xff] }
 0x67d   : > { %v11737_v26 = vpack.c.bf16 %v11735_v49, %v11736_v57  ;;  %v11739_v57 = vld [vmem:[#allocation277_spill] sm:$0xff] }
 0x67f   : > { %v4302_v42 = vpop.f32.mrf.mxu2  ;;  %v4631_v37 = vpop.f32.mrf.mxu3 }
 0x680   : > { %v4303_v46 = vadd.f32 %v4302_v42, %v3878_v58 }
 0x682   : > { %v4632_v20 = vadd.f32 %v4631_v37, %v4303_v46 }
 0x683   : > { %v3551_v23 = vpop.f32.mrf.mxu0  ;;  %v3880_v31 = vpop.f32.mrf.mxu1 }
 0x684   : > { %v4864_v43 = vadd.f32 %v9924_v1, %v4632_v20  ;;  %4344 = vmatmul.bf16.gmra.mxu2 %v11728_v28  ;;  %4673 = vmatmul.bf16.gmra.mxu3 %v11731_v19  ;;  %v3881_v0 = vadd.f32 %v3880_v31, %v3551_v23  ;;  %v11741_v23 = vld [vmem:[#allocation280_spill] sm:$0xff]  ;;  %v11742_v31 = vld [vmem:[#allocation278_spill] sm:$0xff] }
 0x686   : > { %3590 = vmatmul.bf16.gmra.mxu0 %v11734_v27  ;;  %3919 = vmatmul.bf16.gmra.mxu1 %v11737_v26  ;;  %v6463_v58 = vpack.c.bf16 %v4864_v43, %v4863_v30  ;;  %v11738_v43 = vld [vmem:[#allocation279_spill] sm:$0xff] }
 0x687   : > { %v4305_v42 = vpop.f32.mrf.mxu2  ;;  %v4634_v37 = vpop.f32.mrf.mxu3  ;;  %v11740_v26 = vpack.c.bf16 %v11738_v43, %v11739_v57 }
 0x688   : > { %6659 = vst [vmem:[%s9582_s12 + $0xf0] sm:$0xff] %v6463_v58   ;;  %v4306_v54 = vadd.f32 %v4305_v42, %v3881_v0  ;;  %v11743_v58 = vpack.c.bf16 %v11741_v23, %v11742_v31  ;;  %v11744_v42 = vld [vmem:[#allocation283_spill] sm:$0xff]  ;;  %v11745_v0 = vld [vmem:[#allocation281_spill] sm:$0xff] }
 0x68a   : > { %v4635_v55 = vadd.f32 %v4634_v37, %v4306_v54  ;;  %v11747_v37 = vld [vmem:[#allocation284_spill] sm:$0xff] }
 0x68b   : > { %v3553_v46 = vpop.f32.mrf.mxu0  ;;  %v3882_v20 = vpop.f32.mrf.mxu1 }
 0x68c   : > { %v3883_v47 = vadd.f32 %v3882_v20, %v3553_v46  ;;  %v4865_v49 = vadd.f32 %v9924_v1, %v4635_v55  ;;  %v11746_v46 = vpack.c.bf16 %v11744_v42, %v11745_v0  ;;  %v11748_v20 = vld [vmem:[#allocation282_spill] sm:$0xff] }
 0x68d   : > { %v11749_v54 = vpack.c.bf16 %v11747_v37, %v11748_v20  ;;  %v11751_v20 = vld [vmem:[#allocation285_spill] sm:$0xff] }
 0x68f   : > { %v4307_v28 = vpop.f32.mrf.mxu2  ;;  %v4636_v44 = vpop.f32.mrf.mxu3 }
 0x690   : > { %v4308_v19 = vadd.f32 %v4307_v28, %v3883_v47 }
 0x692   : > { %v4637_v61 = vadd.f32 %v4636_v44, %v4308_v19 }
 0x693   : > { %v3556_v41 = vpop.f32.mrf.mxu0  ;;  %v3885_v27 = vpop.f32.mrf.mxu1 }
 0x694   : > { %v4866_v30 = vadd.f32 %v9924_v1, %v4637_v61  ;;  %4349 = vmatmul.bf16.gmra.mxu2 %v11740_v26  ;;  %4678 = vmatmul.bf16.gmra.mxu3 %v11743_v58  ;;  %v3886_v55 = vadd.f32 %v3885_v27, %v3556_v41  ;;  %v11753_v41 = vld [vmem:[#allocation288_spill] sm:$0xff]  ;;  %v11754_v27 = vld [vmem:[#allocation286_spill] sm:$0xff] }
 0x696   : > { %3595 = vmatmul.bf16.gmra.mxu0 %v11746_v46  ;;  %3924 = vmatmul.bf16.gmra.mxu1 %v11749_v54  ;;  %v6468_v47 = vpack.c.bf16 %v4866_v30, %v4865_v49  ;;  %v11750_v30 = vld [vmem:[#allocation287_spill] sm:$0xff] }
 0x697   : > { %v4310_v28 = vpop.f32.mrf.mxu2  ;;  %v4639_v44 = vpop.f32.mrf.mxu3  ;;  %v11752_v54 = vpack.c.bf16 %v11750_v30, %v11751_v20 }
 0x698   : > { %6660 = vst [vmem:[%s9582_s12 + $0xf8] sm:$0xff] %v6468_v47   ;;  %v4311_v43 = vadd.f32 %v4310_v28, %v3886_v55  ;;  %v11755_v47 = vpack.c.bf16 %v11753_v41, %v11754_v27  ;;  %v11756_v28 = vld [vmem:[#allocation291_spill] sm:$0xff]  ;;  %v11757_v55 = vld [vmem:[#allocation289_spill] sm:$0xff] }
 0x69a   : > { %v4640_v31 = vadd.f32 %v4639_v44, %v4311_v43  ;;  %v11759_v44 = vld [vmem:[#allocation292_spill] sm:$0xff] }
 0x69b   : > { %v3558_v19 = vpop.f32.mrf.mxu0  ;;  %v3887_v61 = vpop.f32.mrf.mxu1 }
 0x69c   : > { %v3888_v57 = vadd.f32 %v3887_v61, %v3558_v19  ;;  %v4867_v37 = vadd.f32 %v9924_v1, %v4640_v31  ;;  %v11758_v19 = vpack.c.bf16 %v11756_v28, %v11757_v55  ;;  %v11760_v61 = vld [vmem:[#allocation290_spill] sm:$0xff] }
 0x69d   : > { %v11761_v43 = vpack.c.bf16 %v11759_v44, %v11760_v61  ;;  %v11763_v61 = vld [vmem:[#allocation293_spill] sm:$0xff] }
 0x69f   : > { %v4312_v26 = vpop.f32.mrf.mxu2  ;;  %v4641_v23 = vpop.f32.mrf.mxu3 }
 0x6a0   : > { %v4313_v58 = vadd.f32 %v4312_v26, %v3888_v57 }
 0x6a2   : > { %v4642_v42 = vadd.f32 %v4641_v23, %v4313_v58 }
 0x6a3   : > { %v3561_v0 = vpop.f32.mrf.mxu0  ;;  %v3890_v46 = vpop.f32.mrf.mxu1 }
 0x6a4   : > { %v4868_v49 = vadd.f32 %v9924_v1, %v4642_v42  ;;  %4354 = vmatmul.bf16.gmra.mxu2 %v11752_v54  ;;  %4683 = vmatmul.bf16.gmra.mxu3 %v11755_v47  ;;  %v3891_v31 = vadd.f32 %v3890_v46, %v3561_v0  ;;  %v11765_v0 = vld [vmem:[#allocation296_spill] sm:$0xff]  ;;  %v11766_v46 = vld [vmem:[#allocation294_spill] sm:$0xff] }
 0x6a6   : > { %3600 = vmatmul.bf16.gmra.mxu0 %v11758_v19  ;;  %3929 = vmatmul.bf16.gmra.mxu1 %v11761_v43  ;;  %v6473_v57 = vpack.c.bf16 %v4868_v49, %v4867_v37  ;;  %v11762_v49 = vld [vmem:[#allocation295_spill] sm:$0xff] }
 0x6a7   : > { %v4315_v26 = vpop.f32.mrf.mxu2  ;;  %v4644_v23 = vpop.f32.mrf.mxu3  ;;  %v11764_v43 = vpack.c.bf16 %v11762_v49, %v11763_v61 }
 0x6a8   : > { %6661 = vst [vmem:[%s9582_s12 + $0x100] sm:$0xff] %v6473_v57   ;;  %v4316_v30 = vadd.f32 %v4315_v26, %v3891_v31  ;;  %v11767_v57 = vpack.c.bf16 %v11765_v0, %v11766_v46  ;;  %v11768_v26 = vld [vmem:[#allocation299_spill] sm:$0xff]  ;;  %v11769_v31 = vld [vmem:[#allocation297_spill] sm:$0xff] }
 0x6aa   : > { %v4645_v27 = vadd.f32 %v4644_v23, %v4316_v30  ;;  %v11771_v23 = vld [vmem:[#allocation300_spill] sm:$0xff] }
 0x6ab   : > { %v3563_v58 = vpop.f32.mrf.mxu0  ;;  %v3892_v42 = vpop.f32.mrf.mxu1 }
 0x6ac   : > { %v3893_v20 = vadd.f32 %v3892_v42, %v3563_v58  ;;  %v4869_v44 = vadd.f32 %v9924_v1, %v4645_v27  ;;  %v11770_v58 = vpack.c.bf16 %v11768_v26, %v11769_v31  ;;  %v11772_v42 = vld [vmem:[#allocation298_spill] sm:$0xff] }
 0x6ad   : > { %v11773_v30 = vpack.c.bf16 %v11771_v23, %v11772_v42  ;;  %v11775_v42 = vld [vmem:[#allocation301_spill] sm:$0xff] }
 0x6af   : > { %v4317_v54 = vpop.f32.mrf.mxu2  ;;  %v4646_v41 = vpop.f32.mrf.mxu3 }
 0x6b0   : > { %v4318_v47 = vadd.f32 %v4317_v54, %v3893_v20 }
 0x6b2   : > { %v4647_v28 = vadd.f32 %v4646_v41, %v4318_v47 }
 0x6b3   : > { %v3566_v55 = vpop.f32.mrf.mxu0  ;;  %v3895_v19 = vpop.f32.mrf.mxu1 }
 0x6b4   : > { %v4870_v37 = vadd.f32 %v9924_v1, %v4647_v28  ;;  %4359 = vmatmul.bf16.gmra.mxu2 %v11764_v43  ;;  %4688 = vmatmul.bf16.gmra.mxu3 %v11767_v57  ;;  %v3896_v27 = vadd.f32 %v3895_v19, %v3566_v55  ;;  %v11777_v55 = vld [vmem:[#allocation304_spill] sm:$0xff]  ;;  %v11778_v19 = vld [vmem:[#allocation302_spill] sm:$0xff] }
 0x6b6   : > { %3605 = vmatmul.bf16.gmra.mxu0 %v11770_v58  ;;  %3934 = vmatmul.bf16.gmra.mxu1 %v11773_v30  ;;  %v6478_v20 = vpack.c.bf16 %v4870_v37, %v4869_v44  ;;  %v11774_v37 = vld [vmem:[#allocation303_spill] sm:$0xff] }
 0x6b7   : > { %v4320_v54 = vpop.f32.mrf.mxu2  ;;  %v4649_v41 = vpop.f32.mrf.mxu3  ;;  %v11776_v30 = vpack.c.bf16 %v11774_v37, %v11775_v42 }
 0x6b8   : > { %6662 = vst [vmem:[%s9582_s12 + $0x108] sm:$0xff] %v6478_v20   ;;  %v4321_v49 = vadd.f32 %v4320_v54, %v3896_v27  ;;  %v11779_v20 = vpack.c.bf16 %v11777_v55, %v11778_v19  ;;  %v11780_v54 = vld [vmem:[#allocation307_spill] sm:$0xff]  ;;  %v11781_v27 = vld [vmem:[#allocation305_spill] sm:$0xff] }
 0x6ba   : > { %v4650_v46 = vadd.f32 %v4649_v41, %v4321_v49  ;;  %v11783_v41 = vld [vmem:[#allocation308_spill] sm:$0xff] }
 0x6bb   : > { %v3568_v47 = vpop.f32.mrf.mxu0  ;;  %v3897_v28 = vpop.f32.mrf.mxu1 }
 0x6bc   : > { %v3898_v61 = vadd.f32 %v3897_v28, %v3568_v47  ;;  %v4871_v23 = vadd.f32 %v9924_v1, %v4650_v46  ;;  %v11782_v47 = vpack.c.bf16 %v11780_v54, %v11781_v27  ;;  %v11784_v28 = vld [vmem:[#allocation306_spill] sm:$0xff] }
 0x6bd   : > { %v11785_v49 = vpack.c.bf16 %v11783_v41, %v11784_v28  ;;  %v11787_v28 = vld [vmem:[#allocation309_spill] sm:$0xff] }
 0x6bf   : > { %v4322_v43 = vpop.f32.mrf.mxu2  ;;  %v4651_v0 = vpop.f32.mrf.mxu3 }
 0x6c0   : > { %v4323_v57 = vadd.f32 %v4322_v43, %v3898_v61 }
 0x6c2   : > { %v4652_v26 = vadd.f32 %v4651_v0, %v4323_v57 }
 0x6c3   : > { %v3571_v31 = vpop.f32.mrf.mxu0  ;;  %v3900_v58 = vpop.f32.mrf.mxu1 }
 0x6c4   : > { %v4872_v44 = vadd.f32 %v9924_v1, %v4652_v26  ;;  %4364 = vmatmul.bf16.gmra.mxu2 %v11776_v30  ;;  %4693 = vmatmul.bf16.gmra.mxu3 %v11779_v20  ;;  %v3901_v46 = vadd.f32 %v3900_v58, %v3571_v31  ;;  %v11789_v31 = vld [vmem:[#allocation312_spill] sm:$0xff]  ;;  %v11790_v58 = vld [vmem:[#allocation310_spill] sm:$0xff] }
 0x6c6   : > { %3610 = vmatmul.bf16.gmra.mxu0 %v11782_v47  ;;  %3939 = vmatmul.bf16.gmra.mxu1 %v11785_v49  ;;  %v6483_v61 = vpack.c.bf16 %v4872_v44, %v4871_v23  ;;  %v11786_v44 = vld [vmem:[#allocation311_spill] sm:$0xff] }
 0x6c7   : > { %v4325_v43 = vpop.f32.mrf.mxu2  ;;  %v4654_v0 = vpop.f32.mrf.mxu3  ;;  %v11788_v49 = vpack.c.bf16 %v11786_v44, %v11787_v28 }
 0x6c8   : > { %6663 = vst [vmem:[%s9582_s12 + $0x110] sm:$0xff] %v6483_v61   ;;  %v4326_v37 = vadd.f32 %v4325_v43, %v3901_v46  ;;  %v11791_v61 = vpack.c.bf16 %v11789_v31, %v11790_v58  ;;  %v11792_v43 = vld [vmem:[#allocation315_spill] sm:$0xff]  ;;  %v11793_v46 = vld [vmem:[#allocation313_spill] sm:$0xff] }
 0x6ca   : > { %v4655_v19 = vadd.f32 %v4654_v0, %v4326_v37  ;;  %v11795_v0 = vld [vmem:[#allocation316_spill] sm:$0xff] }
 0x6cb   : > { %v3573_v57 = vpop.f32.mrf.mxu0  ;;  %v3902_v26 = vpop.f32.mrf.mxu1 }
 0x6cc   : > { %v3903_v42 = vadd.f32 %v3902_v26, %v3573_v57  ;;  %v4873_v41 = vadd.f32 %v9924_v1, %v4655_v19  ;;  %v11794_v57 = vpack.c.bf16 %v11792_v43, %v11793_v46  ;;  %v11796_v26 = vld [vmem:[#allocation314_spill] sm:$0xff] }
 0x6cd   : > { %v11797_v37 = vpack.c.bf16 %v11795_v0, %v11796_v26  ;;  %v11799_v26 = vld [vmem:[#allocation317_spill] sm:$0xff] }
 0x6cf   : > { %v4327_v30 = vpop.f32.mrf.mxu2  ;;  %v4656_v55 = vpop.f32.mrf.mxu3 }
 0x6d0   : > { %v4328_v20 = vadd.f32 %v4327_v30, %v3903_v42 }
 0x6d2   : > { %v4657_v54 = vadd.f32 %v4656_v55, %v4328_v20 }
 0x6d3   : > { %v3576_v27 = vpop.f32.mrf.mxu0  ;;  %v3905_v47 = vpop.f32.mrf.mxu1 }
 0x6d4   : > { %v4874_v23 = vadd.f32 %v9924_v1, %v4657_v54  ;;  %4369 = vmatmul.bf16.gmra.mxu2 %v11788_v49  ;;  %4698 = vmatmul.bf16.gmra.mxu3 %v11791_v61  ;;  %v3906_v19 = vadd.f32 %v3905_v47, %v3576_v27  ;;  %v11801_v27 = vld [vmem:[#allocation320_spill] sm:$0xff]  ;;  %v11802_v47 = vld [vmem:[#allocation318_spill] sm:$0xff] }
 0x6d6   : > { %3615 = vmatmul.bf16.gmra.mxu0 %v11794_v57  ;;  %3944 = vmatmul.bf16.gmra.mxu1 %v11797_v37  ;;  %v6488_v42 = vpack.c.bf16 %v4874_v23, %v4873_v41  ;;  %v11798_v23 = vld [vmem:[#allocation319_spill] sm:$0xff] }
 0x6d7   : > { %v4330_v30 = vpop.f32.mrf.mxu2  ;;  %v4659_v55 = vpop.f32.mrf.mxu3  ;;  %v11800_v37 = vpack.c.bf16 %v11798_v23, %v11799_v26 }
 0x6d8   : > { %6664 = vst [vmem:[%s9582_s12 + $0x118] sm:$0xff] %v6488_v42   ;;  %v4331_v44 = vadd.f32 %v4330_v30, %v3906_v19  ;;  %v11803_v42 = vpack.c.bf16 %v11801_v27, %v11802_v47  ;;  %v11804_v30 = vld [vmem:[#allocation323_spill] sm:$0xff]  ;;  %v11805_v19 = vld [vmem:[#allocation321_spill] sm:$0xff] }
 0x6da   : > { %v4660_v58 = vadd.f32 %v4659_v55, %v4331_v44  ;;  %v11807_v55 = vld [vmem:[#allocation324_spill] sm:$0xff] }
 0x6db   : > { %v3578_v20 = vpop.f32.mrf.mxu0  ;;  %v3907_v54 = vpop.f32.mrf.mxu1 }
 0x6dc   : > { %v3908_v28 = vadd.f32 %v3907_v54, %v3578_v20  ;;  %v4875_v0 = vadd.f32 %v9924_v1, %v4660_v58  ;;  %v11806_v20 = vpack.c.bf16 %v11804_v30, %v11805_v19  ;;  %v11808_v54 = vld [vmem:[#allocation322_spill] sm:$0xff] }
 0x6dd   : > { %v11809_v44 = vpack.c.bf16 %v11807_v55, %v11808_v54  ;;  %v11811_v54 = vld [vmem:[#allocation325_spill] sm:$0xff] }
 0x6df   : > { %v4332_v49 = vpop.f32.mrf.mxu2  ;;  %v4661_v31 = vpop.f32.mrf.mxu3 }
 0x6e0   : > { %v4333_v61 = vadd.f32 %v4332_v49, %v3908_v28 }
 0x6e2   : > { %v4662_v43 = vadd.f32 %v4661_v31, %v4333_v61 }
 0x6e3   : > { %v3581_v46 = vpop.f32.mrf.mxu0  ;;  %v3910_v57 = vpop.f32.mrf.mxu1 }
 0x6e4   : > { %v4876_v41 = vadd.f32 %v9924_v1, %v4662_v43  ;;  %4374 = vmatmul.bf16.gmra.mxu2 %v11800_v37  ;;  %4703 = vmatmul.bf16.gmra.mxu3 %v11803_v42  ;;  %v3911_v58 = vadd.f32 %v3910_v57, %v3581_v46  ;;  %v11813_v46 = vld [vmem:[#allocation328_spill] sm:$0xff]  ;;  %v11814_v57 = vld [vmem:[#allocation326_spill] sm:$0xff] }
 0x6e6   : > { %3620 = vmatmul.bf16.gmra.mxu0 %v11806_v20  ;;  %3949 = vmatmul.bf16.gmra.mxu1 %v11809_v44  ;;  %v6493_v28 = vpack.c.bf16 %v4876_v41, %v4875_v0  ;;  %v11810_v41 = vld [vmem:[#allocation327_spill] sm:$0xff] }
 0x6e7   : > { %v4335_v49 = vpop.f32.mrf.mxu2  ;;  %v4664_v31 = vpop.f32.mrf.mxu3  ;;  %v11812_v44 = vpack.c.bf16 %v11810_v41, %v11811_v54 }
 0x6e8   : > { %6665 = vst [vmem:[%s9582_s12 + $0x120] sm:$0xff] %v6493_v28   ;;  %v4336_v23 = vadd.f32 %v4335_v49, %v3911_v58  ;;  %v11815_v28 = vpack.c.bf16 %v11813_v46, %v11814_v57  ;;  %v11816_v49 = vld [vmem:[#allocation331_spill] sm:$0xff]  ;;  %v11817_v58 = vld [vmem:[#allocation329_spill] sm:$0xff] }
 0x6ea   : > { %v4665_v47 = vadd.f32 %v4664_v31, %v4336_v23  ;;  %v11819_v31 = vld [vmem:[#allocation332_spill] sm:$0xff] }
 0x6eb   : > { %v3583_v61 = vpop.f32.mrf.mxu0  ;;  %v3912_v43 = vpop.f32.mrf.mxu1 }
 0x6ec   : > { %v3913_v26 = vadd.f32 %v3912_v43, %v3583_v61  ;;  %v4877_v55 = vadd.f32 %v9924_v1, %v4665_v47  ;;  %v11818_v61 = vpack.c.bf16 %v11816_v49, %v11817_v58  ;;  %v11820_v43 = vld [vmem:[#allocation330_spill] sm:$0xff] }
 0x6ed   : > { %v11821_v23 = vpack.c.bf16 %v11819_v31, %v11820_v43  ;;  %v11823_v43 = vld [vmem:[#allocation333_spill] sm:$0xff] }
 0x6ef   : > { %v4337_v37 = vpop.f32.mrf.mxu2  ;;  %v4666_v27 = vpop.f32.mrf.mxu3 }
 0x6f0   : > { %v4338_v42 = vadd.f32 %v4337_v37, %v3913_v26 }
 0x6f2   : > { %v4667_v30 = vadd.f32 %v4666_v27, %v4338_v42 }
 0x6f3   : > { %v3586_v19 = vpop.f32.mrf.mxu0  ;;  %v3915_v20 = vpop.f32.mrf.mxu1 }
 0x6f4   : > { %v4878_v0 = vadd.f32 %v9924_v1, %v4667_v30  ;;  %4379 = vmatmul.bf16.gmra.mxu2 %v11812_v44  ;;  %4708 = vmatmul.bf16.gmra.mxu3 %v11815_v28  ;;  %v3916_v47 = vadd.f32 %v3915_v20, %v3586_v19  ;;  %v11825_v19 = vld [vmem:[#allocation336_spill] sm:$0xff]  ;;  %v11826_v20 = vld [vmem:[#allocation334_spill] sm:$0xff] }
 0x6f6   : > { %3625 = vmatmul.bf16.gmra.mxu0 %v11818_v61  ;;  %3954 = vmatmul.bf16.gmra.mxu1 %v11821_v23  ;;  %v6498_v26 = vpack.c.bf16 %v4878_v0, %v4877_v55  ;;  %v11822_v0 = vld [vmem:[#allocation335_spill] sm:$0xff] }
 0x6f7   : > { %v4340_v37 = vpop.f32.mrf.mxu2  ;;  %v4669_v27 = vpop.f32.mrf.mxu3  ;;  %v11824_v23 = vpack.c.bf16 %v11822_v0, %v11823_v43 }
 0x6f8   : > { %6666 = vst [vmem:[%s9582_s12 + $0x128] sm:$0xff] %v6498_v26   ;;  %v4341_v41 = vadd.f32 %v4340_v37, %v3916_v47  ;;  %v11827_v26 = vpack.c.bf16 %v11825_v19, %v11826_v20  ;;  %v11828_v37 = vld [vmem:[#allocation339_spill] sm:$0xff]  ;;  %v11829_v47 = vld [vmem:[#allocation337_spill] sm:$0xff] }
 0x6fa   : > { %v4670_v57 = vadd.f32 %v4669_v27, %v4341_v41  ;;  %v11831_v27 = vld [vmem:[#allocation340_spill] sm:$0xff] }
 0x6fb   : > { %v3588_v42 = vpop.f32.mrf.mxu0  ;;  %v3917_v30 = vpop.f32.mrf.mxu1 }
 0x6fc   : > { %v3918_v54 = vadd.f32 %v3917_v30, %v3588_v42  ;;  %v4879_v31 = vadd.f32 %v9924_v1, %v4670_v57  ;;  %v11830_v42 = vpack.c.bf16 %v11828_v37, %v11829_v47  ;;  %v11832_v30 = vld [vmem:[#allocation338_spill] sm:$0xff] }
 0x6fd   : > { %v11833_v41 = vpack.c.bf16 %v11831_v27, %v11832_v30  ;;  %v11835_v30 = vld [vmem:[#allocation341_spill] sm:$0xff] }
 0x6ff   : > { %v4342_v44 = vpop.f32.mrf.mxu2  ;;  %v4671_v46 = vpop.f32.mrf.mxu3 }
 0x700   : > { %v4343_v28 = vadd.f32 %v4342_v44, %v3918_v54 }
 0x702   : > { %v4672_v49 = vadd.f32 %v4671_v46, %v4343_v28 }
 0x703   : > { %v3591_v58 = vpop.f32.mrf.mxu0  ;;  %v3920_v61 = vpop.f32.mrf.mxu1 }
 0x704   : > { %v4880_v55 = vadd.f32 %v9924_v1, %v4672_v49  ;;  %4384 = vmatmul.bf16.gmra.mxu2 %v11824_v23  ;;  %4713 = vmatmul.bf16.gmra.mxu3 %v11827_v26  ;;  %v3921_v57 = vadd.f32 %v3920_v61, %v3591_v58  ;;  %v11837_v58 = vld [vmem:[#allocation344_spill] sm:$0xff]  ;;  %v11838_v61 = vld [vmem:[#allocation342_spill] sm:$0xff] }
 0x706   : > { %3630 = vmatmul.bf16.gmra.mxu0 %v11830_v42  ;;  %3959 = vmatmul.bf16.gmra.mxu1 %v11833_v41  ;;  %v6503_v54 = vpack.c.bf16 %v4880_v55, %v4879_v31  ;;  %v11834_v55 = vld [vmem:[#allocation343_spill] sm:$0xff] }
 0x707   : > { %v4345_v44 = vpop.f32.mrf.mxu2  ;;  %v4674_v46 = vpop.f32.mrf.mxu3  ;;  %v11836_v41 = vpack.c.bf16 %v11834_v55, %v11835_v30 }
 0x708   : > { %6667 = vst [vmem:[%s9582_s12 + $0x130] sm:$0xff] %v6503_v54   ;;  %v4346_v0 = vadd.f32 %v4345_v44, %v3921_v57  ;;  %v11839_v54 = vpack.c.bf16 %v11837_v58, %v11838_v61  ;;  %v11840_v44 = vld [vmem:[#allocation347_spill] sm:$0xff]  ;;  %v11841_v57 = vld [vmem:[#allocation345_spill] sm:$0xff] }
 0x70a   : > { %v4675_v20 = vadd.f32 %v4674_v46, %v4346_v0  ;;  %v11843_v46 = vld [vmem:[#allocation348_spill] sm:$0xff] }
 0x70b   : > { %v3593_v28 = vpop.f32.mrf.mxu0  ;;  %v3922_v49 = vpop.f32.mrf.mxu1 }
 0x70c   : > { %v3923_v43 = vadd.f32 %v3922_v49, %v3593_v28  ;;  %v4881_v27 = vadd.f32 %v9924_v1, %v4675_v20  ;;  %v11842_v28 = vpack.c.bf16 %v11840_v44, %v11841_v57  ;;  %v11844_v49 = vld [vmem:[#allocation346_spill] sm:$0xff] }
 0x70d   : > { %v11845_v0 = vpack.c.bf16 %v11843_v46, %v11844_v49  ;;  %v11847_v49 = vld [vmem:[#allocation349_spill] sm:$0xff] }
 0x70f   : > { %v4347_v23 = vpop.f32.mrf.mxu2  ;;  %v4676_v19 = vpop.f32.mrf.mxu3 }
 0x710   : > { %v4348_v26 = vadd.f32 %v4347_v23, %v3923_v43 }
 0x712   : > { %v4677_v37 = vadd.f32 %v4676_v19, %v4348_v26 }
 0x713   : > { %v3596_v47 = vpop.f32.mrf.mxu0  ;;  %v3925_v42 = vpop.f32.mrf.mxu1 }
 0x714   : > { %v4882_v31 = vadd.f32 %v9924_v1, %v4677_v37  ;;  %4389 = vmatmul.bf16.gmra.mxu2 %v11836_v41  ;;  %4718 = vmatmul.bf16.gmra.mxu3 %v11839_v54  ;;  %v3926_v20 = vadd.f32 %v3925_v42, %v3596_v47  ;;  %v11849_v47 = vld [vmem:[#allocation352_spill] sm:$0xff]  ;;  %v11850_v42 = vld [vmem:[#allocation350_spill] sm:$0xff] }
 0x716   : > { %3635 = vmatmul.bf16.gmra.mxu0 %v11842_v28  ;;  %3964 = vmatmul.bf16.gmra.mxu1 %v11845_v0  ;;  %v6508_v43 = vpack.c.bf16 %v4882_v31, %v4881_v27  ;;  %v11846_v31 = vld [vmem:[#allocation351_spill] sm:$0xff] }
 0x717   : > { %v4350_v23 = vpop.f32.mrf.mxu2  ;;  %v4679_v19 = vpop.f32.mrf.mxu3  ;;  %v11848_v0 = vpack.c.bf16 %v11846_v31, %v11847_v49 }
 0x718   : > { %6668 = vst [vmem:[%s9582_s12 + $0x138] sm:$0xff] %v6508_v43   ;;  %v4351_v55 = vadd.f32 %v4350_v23, %v3926_v20  ;;  %v11851_v43 = vpack.c.bf16 %v11849_v47, %v11850_v42  ;;  %v11852_v23 = vld [vmem:[#allocation355_spill] sm:$0xff]  ;;  %v11853_v20 = vld [vmem:[#allocation353_spill] sm:$0xff] }
 0x71a   : > { %v4680_v61 = vadd.f32 %v4679_v19, %v4351_v55  ;;  %v11855_v19 = vld [vmem:[#allocation356_spill] sm:$0xff] }
 0x71b   : > { %v3598_v26 = vpop.f32.mrf.mxu0  ;;  %v3927_v37 = vpop.f32.mrf.mxu1 }
 0x71c   : > { %v3928_v30 = vadd.f32 %v3927_v37, %v3598_v26  ;;  %v4883_v46 = vadd.f32 %v9924_v1, %v4680_v61  ;;  %v11854_v26 = vpack.c.bf16 %v11852_v23, %v11853_v20  ;;  %v11856_v37 = vld [vmem:[#allocation354_spill] sm:$0xff] }
 0x71d   : > { %v11857_v55 = vpack.c.bf16 %v11855_v19, %v11856_v37  ;;  %v11859_v37 = vld [vmem:[#allocation357_spill] sm:$0xff] }
 0x71f   : > { %v4352_v41 = vpop.f32.mrf.mxu2  ;;  %v4681_v58 = vpop.f32.mrf.mxu3 }
 0x720   : > { %v4353_v54 = vadd.f32 %v4352_v41, %v3928_v30 }
 0x722   : > { %v4682_v44 = vadd.f32 %v4681_v58, %v4353_v54 }
 0x723   : > { %v3601_v57 = vpop.f32.mrf.mxu0  ;;  %v3930_v28 = vpop.f32.mrf.mxu1 }
 0x724   : > { %v4884_v27 = vadd.f32 %v9924_v1, %v4682_v44  ;;  %4394 = vmatmul.bf16.gmra.mxu2 %v11848_v0  ;;  %4723 = vmatmul.bf16.gmra.mxu3 %v11851_v43  ;;  %v3931_v61 = vadd.f32 %v3930_v28, %v3601_v57  ;;  %v11861_v57 = vld [vmem:[#allocation360_spill] sm:$0xff]  ;;  %v11862_v28 = vld [vmem:[#allocation358_spill] sm:$0xff] }
 0x726   : > { %3640 = vmatmul.bf16.gmra.mxu0 %v11854_v26  ;;  %3969 = vmatmul.bf16.gmra.mxu1 %v11857_v55  ;;  %v6513_v30 = vpack.c.bf16 %v4884_v27, %v4883_v46  ;;  %v11858_v27 = vld [vmem:[#allocation359_spill] sm:$0xff] }
 0x727   : > { %v4355_v41 = vpop.f32.mrf.mxu2  ;;  %v4684_v58 = vpop.f32.mrf.mxu3  ;;  %v11860_v55 = vpack.c.bf16 %v11858_v27, %v11859_v37 }
 0x728   : > { %6669 = vst [vmem:[%s9582_s12 + $0x140] sm:$0xff] %v6513_v30   ;;  %v4356_v31 = vadd.f32 %v4355_v41, %v3931_v61  ;;  %v11863_v30 = vpack.c.bf16 %v11861_v57, %v11862_v28  ;;  %v11864_v41 = vld [vmem:[#allocation363_spill] sm:$0xff]  ;;  %v11865_v61 = vld [vmem:[#allocation361_spill] sm:$0xff] }
 0x72a   : > { %v4685_v42 = vadd.f32 %v4684_v58, %v4356_v31  ;;  %v11867_v58 = vld [vmem:[#allocation364_spill] sm:$0xff] }
 0x72b   : > { %v3603_v54 = vpop.f32.mrf.mxu0  ;;  %v3932_v44 = vpop.f32.mrf.mxu1 }
 0x72c   : > { %v3933_v49 = vadd.f32 %v3932_v44, %v3603_v54  ;;  %v4885_v19 = vadd.f32 %v9924_v1, %v4685_v42  ;;  %v11866_v54 = vpack.c.bf16 %v11864_v41, %v11865_v61  ;;  %v11868_v44 = vld [vmem:[#allocation362_spill] sm:$0xff] }
 0x72d   : > { %v11869_v31 = vpack.c.bf16 %v11867_v58, %v11868_v44  ;;  %v11871_v44 = vld [vmem:[#allocation365_spill] sm:$0xff] }
 0x72f   : > { %v4357_v0 = vpop.f32.mrf.mxu2  ;;  %v4686_v47 = vpop.f32.mrf.mxu3 }
 0x730   : > { %v4358_v43 = vadd.f32 %v4357_v0, %v3933_v49 }
 0x732   : > { %v4687_v23 = vadd.f32 %v4686_v47, %v4358_v43 }
 0x733   : > { %v3606_v20 = vpop.f32.mrf.mxu0  ;;  %v3935_v26 = vpop.f32.mrf.mxu1 }
 0x734   : > { %v4886_v46 = vadd.f32 %v9924_v1, %v4687_v23  ;;  %4399 = vmatmul.bf16.gmra.mxu2 %v11860_v55  ;;  %4728 = vmatmul.bf16.gmra.mxu3 %v11863_v30  ;;  %v3936_v42 = vadd.f32 %v3935_v26, %v3606_v20  ;;  %v11873_v20 = vld [vmem:[#allocation368_spill] sm:$0xff]  ;;  %v11874_v26 = vld [vmem:[#allocation366_spill] sm:$0xff] }
 0x736   : > { %3645 = vmatmul.bf16.gmra.mxu0 %v11866_v54  ;;  %3974 = vmatmul.bf16.gmra.mxu1 %v11869_v31  ;;  %v6518_v49 = vpack.c.bf16 %v4886_v46, %v4885_v19  ;;  %v11870_v46 = vld [vmem:[#allocation367_spill] sm:$0xff] }
 0x737   : > { %v4360_v0 = vpop.f32.mrf.mxu2  ;;  %v4689_v47 = vpop.f32.mrf.mxu3  ;;  %v11872_v31 = vpack.c.bf16 %v11870_v46, %v11871_v44 }
 0x738   : > { %6670 = vst [vmem:[%s9582_s12 + $0x148] sm:$0xff] %v6518_v49   ;;  %v4361_v27 = vadd.f32 %v4360_v0, %v3936_v42  ;;  %v11875_v49 = vpack.c.bf16 %v11873_v20, %v11874_v26  ;;  %v11876_v0 = vld [vmem:[#allocation371_spill] sm:$0xff]  ;;  %v11877_v42 = vld [vmem:[#allocation369_spill] sm:$0xff] }
 0x73a   : > { %v4690_v28 = vadd.f32 %v4689_v47, %v4361_v27  ;;  %v11879_v47 = vld [vmem:[#allocation372_spill] sm:$0xff] }
 0x73b   : > { %v3608_v43 = vpop.f32.mrf.mxu0  ;;  %v3937_v23 = vpop.f32.mrf.mxu1 }
 0x73c   : > { %v3938_v37 = vadd.f32 %v3937_v23, %v3608_v43  ;;  %v4887_v58 = vadd.f32 %v9924_v1, %v4690_v28  ;;  %v11878_v43 = vpack.c.bf16 %v11876_v0, %v11877_v42  ;;  %v11880_v23 = vld [vmem:[#allocation370_spill] sm:$0xff] }
 0x73d   : > { %v11881_v27 = vpack.c.bf16 %v11879_v47, %v11880_v23  ;;  %v11883_v23 = vld [vmem:[#allocation373_spill] sm:$0xff] }
 0x73f   : > { %v4362_v55 = vpop.f32.mrf.mxu2  ;;  %v4691_v57 = vpop.f32.mrf.mxu3 }
 0x740   : > { %v4363_v30 = vadd.f32 %v4362_v55, %v3938_v37 }
 0x742   : > { %v4692_v41 = vadd.f32 %v4691_v57, %v4363_v30 }
 0x743   : > { %v3611_v61 = vpop.f32.mrf.mxu0  ;;  %v3940_v54 = vpop.f32.mrf.mxu1 }
 0x744   : > { %v4888_v19 = vadd.f32 %v9924_v1, %v4692_v41  ;;  %4404 = vmatmul.bf16.gmra.mxu2 %v11872_v31  ;;  %4733 = vmatmul.bf16.gmra.mxu3 %v11875_v49  ;;  %v3941_v28 = vadd.f32 %v3940_v54, %v3611_v61  ;;  %v11885_v61 = vld [vmem:[#allocation376_spill] sm:$0xff]  ;;  %v11886_v54 = vld [vmem:[#allocation374_spill] sm:$0xff] }
 0x746   : > { %3650 = vmatmul.bf16.gmra.mxu0 %v11878_v43  ;;  %3979 = vmatmul.bf16.gmra.mxu1 %v11881_v27  ;;  %v6523_v37 = vpack.c.bf16 %v4888_v19, %v4887_v58  ;;  %v11882_v19 = vld [vmem:[#allocation375_spill] sm:$0xff] }
 0x747   : > { %v4365_v55 = vpop.f32.mrf.mxu2  ;;  %v4694_v57 = vpop.f32.mrf.mxu3  ;;  %v11884_v27 = vpack.c.bf16 %v11882_v19, %v11883_v23 }
 0x748   : > { %6671 = vst [vmem:[%s9582_s12 + $0x150] sm:$0xff] %v6523_v37   ;;  %v4366_v46 = vadd.f32 %v4365_v55, %v3941_v28  ;;  %v11887_v37 = vpack.c.bf16 %v11885_v61, %v11886_v54  ;;  %v11888_v55 = vld [vmem:[#allocation379_spill] sm:$0xff]  ;;  %v11889_v28 = vld [vmem:[#allocation377_spill] sm:$0xff] }
 0x74a   : > { %v4695_v26 = vadd.f32 %v4694_v57, %v4366_v46  ;;  %v11891_v57 = vld [vmem:[#allocation380_spill] sm:$0xff] }
 0x74b   : > { %v3613_v30 = vpop.f32.mrf.mxu0  ;;  %v3942_v41 = vpop.f32.mrf.mxu1 }
 0x74c   : > { %v3943_v44 = vadd.f32 %v3942_v41, %v3613_v30  ;;  %v4889_v47 = vadd.f32 %v9924_v1, %v4695_v26  ;;  %v11890_v30 = vpack.c.bf16 %v11888_v55, %v11889_v28  ;;  %v11892_v41 = vld [vmem:[#allocation378_spill] sm:$0xff] }
 0x74d   : > { %v11893_v46 = vpack.c.bf16 %v11891_v57, %v11892_v41  ;;  %v11895_v41 = vld [vmem:[#allocation381_spill] sm:$0xff] }
 0x74f   : > { %v4367_v31 = vpop.f32.mrf.mxu2  ;;  %v4696_v20 = vpop.f32.mrf.mxu3 }
 0x750   : > { %v4368_v49 = vadd.f32 %v4367_v31, %v3943_v44 }
 0x752   : > { %v4697_v0 = vadd.f32 %v4696_v20, %v4368_v49 }
 0x753   : > { %v3616_v42 = vpop.f32.mrf.mxu0  ;;  %v3945_v43 = vpop.f32.mrf.mxu1 }
 0x754   : > { %v4890_v58 = vadd.f32 %v9924_v1, %v4697_v0  ;;  %4409 = vmatmul.bf16.gmra.mxu2 %v11884_v27  ;;  %4738 = vmatmul.bf16.gmra.mxu3 %v11887_v37  ;;  %v3946_v26 = vadd.f32 %v3945_v43, %v3616_v42  ;;  %v11897_v42 = vld [vmem:[#allocation384_spill] sm:$0xff]  ;;  %v11898_v43 = vld [vmem:[#allocation382_spill] sm:$0xff] }
 0x756   : > { %3655 = vmatmul.bf16.gmra.mxu0 %v11890_v30  ;;  %3984 = vmatmul.bf16.gmra.mxu1 %v11893_v46  ;;  %v6528_v44 = vpack.c.bf16 %v4890_v58, %v4889_v47  ;;  %v11894_v58 = vld [vmem:[#allocation383_spill] sm:$0xff] }
 0x757   : > { %v4370_v31 = vpop.f32.mrf.mxu2  ;;  %v4699_v20 = vpop.f32.mrf.mxu3  ;;  %v11896_v46 = vpack.c.bf16 %v11894_v58, %v11895_v41 }
 0x758   : > { %6672 = vst [vmem:[%s9582_s12 + $0x158] sm:$0xff] %v6528_v44   ;;  %v4371_v19 = vadd.f32 %v4370_v31, %v3946_v26  ;;  %v11899_v44 = vpack.c.bf16 %v11897_v42, %v11898_v43  ;;  %v11900_v31 = vld [vmem:[#allocation387_spill] sm:$0xff]  ;;  %v11901_v26 = vld [vmem:[#allocation385_spill] sm:$0xff] }
 0x75a   : > { %v4700_v54 = vadd.f32 %v4699_v20, %v4371_v19  ;;  %v11903_v20 = vld [vmem:[#allocation388_spill] sm:$0xff] }
 0x75b   : > { %v3618_v49 = vpop.f32.mrf.mxu0  ;;  %v3947_v0 = vpop.f32.mrf.mxu1 }
 0x75c   : > { %v3948_v23 = vadd.f32 %v3947_v0, %v3618_v49  ;;  %v4891_v57 = vadd.f32 %v9924_v1, %v4700_v54  ;;  %v11902_v49 = vpack.c.bf16 %v11900_v31, %v11901_v26  ;;  %v11904_v0 = vld [vmem:[#allocation386_spill] sm:$0xff] }
 0x75d   : > { %v11905_v19 = vpack.c.bf16 %v11903_v20, %v11904_v0  ;;  %v11907_v0 = vld [vmem:[#allocation389_spill] sm:$0xff] }
 0x75f   : > { %v4372_v27 = vpop.f32.mrf.mxu2  ;;  %v4701_v61 = vpop.f32.mrf.mxu3 }
 0x760   : > { %v4373_v37 = vadd.f32 %v4372_v27, %v3948_v23 }
 0x762   : > { %v4702_v55 = vadd.f32 %v4701_v61, %v4373_v37 }
 0x763   : > { %v3621_v28 = vpop.f32.mrf.mxu0  ;;  %v3950_v30 = vpop.f32.mrf.mxu1 }
 0x764   : > { %v4892_v47 = vadd.f32 %v9924_v1, %v4702_v55  ;;  %4414 = vmatmul.bf16.gmra.mxu2 %v11896_v46  ;;  %4743 = vmatmul.bf16.gmra.mxu3 %v11899_v44  ;;  %v3951_v54 = vadd.f32 %v3950_v30, %v3621_v28  ;;  %v11909_v28 = vld [vmem:[#allocation392_spill] sm:$0xff]  ;;  %v11910_v30 = vld [vmem:[#allocation390_spill] sm:$0xff] }
 0x766   : > { %3660 = vmatmul.bf16.gmra.mxu0 %v11902_v49  ;;  %3989 = vmatmul.bf16.gmra.mxu1 %v11905_v19  ;;  %v6533_v23 = vpack.c.bf16 %v4892_v47, %v4891_v57  ;;  %v11906_v47 = vld [vmem:[#allocation391_spill] sm:$0xff] }
 0x767   : > { %v4375_v27 = vpop.f32.mrf.mxu2  ;;  %v4704_v61 = vpop.f32.mrf.mxu3  ;;  %v11908_v19 = vpack.c.bf16 %v11906_v47, %v11907_v0 }
 0x768   : > { %6673 = vst [vmem:[%s9582_s12 + $0x160] sm:$0xff] %v6533_v23   ;;  %v4376_v58 = vadd.f32 %v4375_v27, %v3951_v54  ;;  %v11911_v23 = vpack.c.bf16 %v11909_v28, %v11910_v30  ;;  %v11912_v27 = vld [vmem:[#allocation393_spill] sm:$0xff] }
 0x769   : > { %v11913_v54 = vpack.c.bf16 %v9151_v3, %v11912_v27 }
 0x76a   : > { %v4705_v43 = vadd.f32 %v4704_v61, %v4376_v58  ;;  %v11914_v61 = vld [vmem:[#allocation395_spill] sm:$0xff] }
 0x76b   : > { %v3623_v37 = vpop.f32.mrf.mxu0  ;;  %v3952_v55 = vpop.f32.mrf.mxu1 }
 0x76c   : > { %v3953_v41 = vadd.f32 %v3952_v55, %v3623_v37  ;;  %v4893_v20 = vadd.f32 %v9924_v1, %v4705_v43  ;;  %v11915_v37 = vld [vmem:[#allocation394_spill] sm:$0xff] }
 0x76d   : > { %v11916_v55 = vpack.c.bf16 %v11914_v61, %v11915_v37  ;;  %v11921_v37 = vld [vmem:[#allocation398_spill] sm:$0xff] }
 0x76f   : > { %v4377_v46 = vpop.f32.mrf.mxu2  ;;  %v4706_v42 = vpop.f32.mrf.mxu3 }
 0x770   : > { %v4378_v44 = vadd.f32 %v4377_v46, %v3953_v41 }
 0x772   : > { %v4707_v31 = vadd.f32 %v4706_v42, %v4378_v44 }
 0x773   : > { %v3626_v26 = vpop.f32.mrf.mxu0  ;;  %v3955_v49 = vpop.f32.mrf.mxu1 }
 0x774   : > { %v4894_v57 = vadd.f32 %v9924_v1, %v4707_v31  ;;  %4419 = vmatmul.bf16.gmra.mxu2 %v11908_v19  ;;  %4748 = vmatmul.bf16.gmra.mxu3 %v11911_v23  ;;  %v3956_v42 = vadd.f32 %v3955_v49, %v3626_v26  ;;  %v11918_v26 = vld [vmem:[#allocation397_spill] sm:$0xff]  ;;  %v11919_v49 = vld [vmem:[#allocation396_spill] sm:$0xff] }
 0x775   : > { %v11920_v61 = vpack.c.bf16 %v11918_v26, %v11919_v49  ;;  %v11927_v26 = vpack.c.bf16 %v9222_v52, %v9216_v50  ;;  %v11928_v49 = vpack.c.bf16 %v9235_v2, %v9229_v63 }
 0x776   : > { %3665 = vmatmul.bf16.gmra.mxu0 %v11913_v54  ;;  %3994 = vmatmul.bf16.gmra.mxu1 %v11916_v55  ;;  %v6538_v58 = vpack.c.bf16 %v4894_v57, %v4893_v20  ;;  %v11917_v57 = vpack.c.bf16 %v9175_v24, %v9169_v16  ;;  %v11922_v55 = vpack.c.bf16 %v9191_v36, %v11921_v37 }
 0x777   : > { %v4380_v41 = vpop.f32.mrf.mxu2  ;;  %v4709_v46 = vpop.f32.mrf.mxu3 }
 0x778   : > { %6674 = vst [vmem:[%s9582_s12 + $0x168] sm:$0xff] %v6538_v58   ;;  %v4381_v31 = vadd.f32 %v4380_v41, %v3956_v42  ;;  %v11923_v58 = vld [vmem:[#allocation400_spill] sm:$0xff]  ;;  %v11924_v41 = vld [vmem:[#allocation399_spill] sm:$0xff] }
 0x77a   : > { %v4710_v28 = vadd.f32 %v4709_v46, %v4381_v31  ;;  %v11925_v46 = vpack.c.bf16 %v11923_v58, %v11924_v41 }
 0x77b   : > { %v3628_v43 = vpop.f32.mrf.mxu0  ;;  %v3957_v44 = vpop.f32.mrf.mxu1 }
 0x77c   : > { %v3958_v47 = vadd.f32 %v3957_v44, %v3628_v43  ;;  %v4895_v54 = vadd.f32 %v9924_v1, %v4710_v28 }
 0x77f   : > { %v4382_v0 = vpop.f32.mrf.mxu2  ;;  %v4711_v19 = vpop.f32.mrf.mxu3 }
 0x780   : > { %v4383_v30 = vadd.f32 %v4382_v0, %v3958_v47 }
 0x782   : > { %v4712_v3 = vadd.f32 %v4711_v19, %v4383_v30 }
 0x783   : > { %v3631_v23 = vpop.f32.mrf.mxu0  ;;  %v3960_v27 = vpop.f32.mrf.mxu1 }
 0x784   : > { %v4896_v20 = vadd.f32 %v9924_v1, %v4712_v3  ;;  %4424 = vmatmul.bf16.gmra.mxu2 %v11917_v57  ;;  %4753 = vmatmul.bf16.gmra.mxu3 %v11920_v61  ;;  %v3961_v1 = vadd.f32 %v3960_v27, %v3631_v23  ;;  %v11926_v27 = vpack.c.bf16 %v9219_v51, %v9213_v38 }
 0x785   : > { %v11929_v61 = vpack.c.bf16 %v9238_v25, %v9232_v17 }
 0x786   : > { %3670 = vmatmul.bf16.gmra.mxu0 %v11922_v55  ;;  %3999 = vmatmul.bf16.gmra.mxu1 %v11925_v46  ;;  %v6543_v42 = vpack.c.bf16 %v4896_v20, %v4895_v54  ;;  %v10289_v54 = vld [vmem:[%s10449_s8] ss:$0 sm:$0xff] }
 0x787   : > { %v4385_v43 = vpop.f32.mrf.mxu2  ;;  %v4714_v44 = vpop.f32.mrf.mxu3 }
 0x788   : > { %6675 = vst [vmem:[%s9582_s12 + $0x170] sm:$0xff] %v6543_v42   ;;  %v4386_v24 = vadd.f32 %v4385_v43, %v3961_v1 }
 0x78a   : > { %v4715_v28 = vadd.f32 %v4714_v44, %v4386_v24  ;;  %v11932_v24 = vpack.c.bf16 %v9279_v56, %v9273_v21 }
 0x78b   : > { %v3633_v31 = vpop.f32.mrf.mxu0  ;;  %v3962_v16 = vpop.f32.mrf.mxu1 }
 0x78c   : > { %v3963_v47 = vadd.f32 %v3962_v16, %v3633_v31  ;;  %v4897_v20 = vadd.f32 %v10289_v54, %v4715_v28  ;;  %v11930_v31 = vpack.c.bf16 %v9263_v11, %v9257_v53  ;;  %v11931_v16 = vpack.c.bf16 %v9266_v12, %v9260_v10 }
 0x78f   : > { %v4387_v0 = vpop.f32.mrf.mxu2  ;;  %v4716_v19 = vpop.f32.mrf.mxu3 }
 0x790   : > { %v4388_v30 = vadd.f32 %v4387_v0, %v3963_v47  ;;  %v11933_v47 = vpack.c.bf16 %v9282_v60, %v9276_v15 }
 0x792   : > { %v4717_v36 = vadd.f32 %v4716_v19, %v4388_v30 }
 0x793   : > { %v3636_v3 = vpop.f32.mrf.mxu0  ;;  %v3965_v57 = vpop.f32.mrf.mxu1 }
 0x794   : > { %v4898_v23 = vadd.f32 %v10289_v54, %v4717_v36  ;;  %4429 = vmatmul.bf16.gmra.mxu2 %v11926_v27  ;;  %4758 = vmatmul.bf16.gmra.mxu3 %v11927_v26  ;;  %v3966_v41 = vadd.f32 %v3965_v57, %v3636_v3  ;;  %v11934_v27 = vpack.c.bf16 %v9307_v33, %v9301_v13 }
 0x795   : > { %v11935_v26 = vpack.c.bf16 %v9310_v34, %v9304_v32 }
 0x796   : > { %3675 = vmatmul.bf16.gmra.mxu0 %v11928_v49  ;;  %4004 = vmatmul.bf16.gmra.mxu1 %v11929_v61  ;;  %v6548_v37 = vpack.c.bf16 %v4898_v23, %v4897_v20  ;;  %v11936_v49 = vpack.c.bf16 %v9323_v14, %v9317_v45  ;;  %v11937_v61 = vpack.c.bf16 %v9326_v18, %v9320_v48 }
 0x797   : > { %v4390_v55 = vpop.f32.mrf.mxu2  ;;  %v4719_v58 = vpop.f32.mrf.mxu3 }
 0x798   : > { %6676 = vst [vmem:[%s9582_s12 + $0x178] sm:$0xff] %v6548_v37   ;;  %v4391_v51 = vadd.f32 %v4390_v55, %v3966_v41 }
 0x79a   : > { %v4720_v52 = vadd.f32 %v4719_v58, %v4391_v51 }
 0x79b   : > { %v3638_v46 = vpop.f32.mrf.mxu0  ;;  %v3967_v38 = vpop.f32.mrf.mxu1 }
 0x79c   : > { %v3968_v42 = vadd.f32 %v3967_v38, %v3638_v46  ;;  %v4899_v17 = vadd.f32 %v10289_v54, %v4720_v52  ;;  %v11939_v52 = vpack.c.bf16 %v9354_v8, %v9348_v6 }
 0x79f   : > { %v4392_v43 = vpop.f32.mrf.mxu2  ;;  %v4721_v50 = vpop.f32.mrf.mxu3 }
 0x7a0   : > { %v4393_v44 = vadd.f32 %v4392_v43, %v3968_v42 }
 0x7a2   : > { %v4722_v63 = vadd.f32 %v4721_v50, %v4393_v44  ;;  %v11938_v50 = vpack.c.bf16 %v9351_v7, %v9345_v35  ;;  %v11940_v44 = vpack.c.bf16 %v9367_v39, %v9361_v29 }
 0x7a3   : > { %v3641_v2 = vpop.f32.mrf.mxu0  ;;  %v3970_v1 = vpop.f32.mrf.mxu1 }
 0x7a4   : > { %v4900_v25 = vadd.f32 %v10289_v54, %v4722_v63  ;;  %4434 = vmatmul.bf16.gmra.mxu2 %v11930_v31  ;;  %4763 = vmatmul.bf16.gmra.mxu3 %v11931_v16  ;;  %v3971_v30 = vadd.f32 %v3970_v1, %v3641_v2  ;;  %v11941_v63 = vpack.c.bf16 %v9370_v40, %v9364_v59 }
 0x7a6   : > { %3680 = vmatmul.bf16.gmra.mxu0 %v11932_v24  ;;  %4009 = vmatmul.bf16.gmra.mxu1 %v11933_v47  ;;  %v6553_v0 = vpack.c.bf16 %v4900_v25, %v4899_v17 }
 0x7a7   : > { %v4395_v19 = vpop.f32.mrf.mxu2  ;;  %v4724_v28 = vpop.f32.mrf.mxu3 }
 0x7a8   : > { %6677 = vst [vmem:[%s9582_s12 + $0x180] sm:$0xff] %v6553_v0   ;;  %v4396_v11 = vadd.f32 %v4395_v19, %v3971_v30  ;;  %v11942_v19 = vpack.c.bf16 %v9395_v5, %v9389_v9  ;;  %v11944_v30 = vld [vmem:[#allocation401_spill] sm:$0xff] }
 0x7aa   : > { %v4725_v12 = vadd.f32 %v4724_v28, %v4396_v11  ;;  %v11943_v28 = vpack.c.bf16 %v9398_v22, %v9392_v4  ;;  %v11947_v11 = vld [vmem:[#allocation402_spill] sm:$0xff] }
 0x7ab   : > { %v3643_v36 = vpop.f32.mrf.mxu0  ;;  %v3972_v53 = vpop.f32.mrf.mxu1 }
 0x7ac   : > { %v3973_v3 = vadd.f32 %v3972_v53, %v3643_v36  ;;  %v4901_v15 = vadd.f32 %v10289_v54, %v4725_v12  ;;  %v11945_v36 = vpack.c.bf16 %v9411_v62, %v11944_v30  ;;  %v11946_v53 = vld [vmem:[#allocation403_spill] sm:$0xff] }
 0x7af   : > { %v4397_v57 = vpop.f32.mrf.mxu2  ;;  %v4726_v10 = vpop.f32.mrf.mxu3 }
 0x7b0   : > { %v4398_v20 = vadd.f32 %v4397_v57, %v3973_v3  ;;  %v11948_v3 = vpack.c.bf16 %v11946_v53, %v11947_v11 }
 0x7b2   : > { %v4727_v21 = vadd.f32 %v4726_v10, %v4398_v20 }
 0x7b3   : > { %v3646_v56 = vpop.f32.mrf.mxu0  ;;  %v3975_v23 = vpop.f32.mrf.mxu1 }
 0x7b4   : > { %v4902_v60 = vadd.f32 %v10289_v54, %v4727_v21  ;;  %4439 = vmatmul.bf16.gmra.mxu2 %v11934_v27  ;;  %4768 = vmatmul.bf16.gmra.mxu3 %v11935_v26  ;;  %v3976_v41 = vadd.f32 %v3975_v23, %v3646_v56 }
 0x7b6   : > { %3685 = vmatmul.bf16.gmra.mxu0 %v11936_v49  ;;  %4014 = vmatmul.bf16.gmra.mxu1 %v11937_v61  ;;  %v6558_v37 = vpack.c.bf16 %v4902_v60, %v4901_v15  ;;  %v11949_v61 = vld [vmem:[#allocation3_spill] sm:$0xff] }
 0x7b7   : > { %v4400_v55 = vpop.f32.mrf.mxu2  ;;  %v4729_v58 = vpop.f32.mrf.mxu3 }
 0x7b8   : > { %6678 = vst [vmem:[%s9582_s12 + $0x188] sm:$0xff] %v6558_v37   ;;  %v4401_v33 = vadd.f32 %v4400_v55, %v3976_v41  ;;  %v11950_v37 = vld [vmem:[#allocation2_spill] sm:$0xff]  ;;  %v11953_v41 = vld [vmem:[#allocation4_spill] sm:$0xff] }
 0x7b9   : > { %v11951_v55 = vpack.c.bf16 %v11949_v61, %v11950_v37  ;;  %v11979_v37 = vld [vmem:[#allocation20_spill] sm:$0xff] }
 0x7ba   : > { %v4730_v34 = vadd.f32 %v4729_v58, %v4401_v33  ;;  %v11952_v58 = vld [vmem:[#allocation404_spill] sm:$0xff]  ;;  %v11956_v33 = vld [vmem:[#allocation405_spill] sm:$0xff] }
 0x7bb   : > { %v3648_v46 = vpop.f32.mrf.mxu0  ;;  %v3977_v13 = vpop.f32.mrf.mxu1 }
 0x7bc   : > { %v3978_v38 = vadd.f32 %v3977_v13, %v3648_v46  ;;  %v4903_v48 = vadd.f32 %v10289_v54, %v4730_v34  ;;  %v11954_v46 = vpack.c.bf16 %v11952_v58, %v11953_v41  ;;  %v11955_v13 = vld [vmem:[#allocation407_spill] sm:$0xff]  ;;  %v11982_v41 = vld [vmem:[#allocation18_spill] sm:$0xff] }
 0x7bf   : > { %v4402_v51 = vpop.f32.mrf.mxu2  ;;  %v4731_v32 = vpop.f32.mrf.mxu3 }
 0x7c0   : > { %v4403_v42 = vadd.f32 %v4402_v51, %v3978_v38  ;;  %v11957_v38 = vpack.c.bf16 %v11955_v13, %v11956_v33  ;;  %v11958_v51 = vld [vmem:[#allocation408_spill] sm:$0xff] }
 0x7c2   : > { %v4732_v45 = vadd.f32 %v4731_v32, %v4403_v42  ;;  %v11959_v32 = vld [vmem:[#allocation406_spill] sm:$0xff] }
 0x7c3   : > { %v3651_v14 = vpop.f32.mrf.mxu0  ;;  %v3980_v43 = vpop.f32.mrf.mxu1  ;;  %v11960_v34 = vpack.c.bf16 %v11958_v51, %v11959_v32 }
 0x7c4   : > { %v4904_v18 = vadd.f32 %v10289_v54, %v4732_v45  ;;  %4444 = vmatmul.bf16.gmra.mxu2 %v11938_v50  ;;  %4773 = vmatmul.bf16.gmra.mxu3 %v11939_v52  ;;  %v3981_v25 = vadd.f32 %v3980_v43, %v3651_v14 }
 0x7c6   : > { %3690 = vmatmul.bf16.gmra.mxu0 %v11940_v44  ;;  %4019 = vmatmul.bf16.gmra.mxu1 %v11941_v63  ;;  %v6563_v2 = vpack.c.bf16 %v4904_v18, %v4903_v48 }
 0x7c7   : > { %v4405_v1 = vpop.f32.mrf.mxu2  ;;  %v4734_v17 = vpop.f32.mrf.mxu3 }
 0x7c8   : > { %6679 = vst [vmem:[%s9582_s12 + $0x190] sm:$0xff] %v6563_v2   ;;  %v4406_v7 = vadd.f32 %v4405_v1, %v3981_v25 }
 0x7ca   : > { %v4735_v8 = vadd.f32 %v4734_v17, %v4406_v7 }
 0x7cb   : > { %v3653_v31 = vpop.f32.mrf.mxu0  ;;  %v3982_v35 = vpop.f32.mrf.mxu1 }
 0x7cc   : > { %v3983_v16 = vadd.f32 %v3982_v35, %v3653_v31  ;;  %v4905_v59 = vadd.f32 %v10289_v54, %v4735_v8  ;;  %v11964_v8 = vld [vmem:[#allocation6_spill] sm:$0xff] }
 0x7cf   : > { %v4407_v24 = vpop.f32.mrf.mxu2  ;;  %v4736_v6 = vpop.f32.mrf.mxu3 }
 0x7d0   : > { %v4408_v47 = vadd.f32 %v4407_v24, %v3983_v16  ;;  %v11961_v16 = vld [vmem:[#allocation8_spill] sm:$0xff]  ;;  %v11962_v24 = vld [vmem:[#allocation7_spill] sm:$0xff] }
 0x7d2   : > { %v4737_v29 = vadd.f32 %v4736_v6, %v4408_v47  ;;  %v11963_v6 = vpack.c.bf16 %v11961_v16, %v11962_v24  ;;  %v11965_v47 = vld [vmem:[#allocation5_spill] sm:$0xff] }
 0x7d3   : > { %v3656_v39 = vpop.f32.mrf.mxu0  ;;  %v3985_v0 = vpop.f32.mrf.mxu1 }
 0x7d4   : > { %v4906_v40 = vadd.f32 %v10289_v54, %v4737_v29  ;;  %4449 = vmatmul.bf16.gmra.mxu2 %v11942_v19  ;;  %4778 = vmatmul.bf16.gmra.mxu3 %v11943_v28  ;;  %v3986_v20 = vadd.f32 %v3985_v0, %v3656_v39  ;;  %v11966_v29 = vpack.c.bf16 %v11964_v8, %v11965_v47  ;;  %v11967_v39 = vld [vmem:[#allocation12_spill] sm:$0xff]  ;;  %v11968_v0 = vld [vmem:[#allocation11_spill] sm:$0xff]  ;;  %v11971_v19 = vld [vmem:[#allocation9_spill] sm:$0xff] }
 0x7d6   : > { %3695 = vmatmul.bf16.gmra.mxu0 %v11945_v36  ;;  %4024 = vmatmul.bf16.gmra.mxu1 %v11948_v3  ;;  %v6568_v57 = vpack.c.bf16 %v4906_v40, %v4905_v59  ;;  %v11969_v59 = vpack.c.bf16 %v11967_v39, %v11968_v0  ;;  %v11970_v40 = vld [vmem:[#allocation10_spill] sm:$0xff] }
 0x7d7   : > { %v4410_v10 = vpop.f32.mrf.mxu2  ;;  %v4739_v12 = vpop.f32.mrf.mxu3  ;;  %v11972_v28 = vpack.c.bf16 %v11970_v40, %v11971_v19 }
 0x7d8   : > { %6680 = vst [vmem:[%s9582_s12 + $0x198] sm:$0xff] %v6568_v57   ;;  %v4411_v5 = vadd.f32 %v4410_v10, %v3986_v20 }
 0x7da   : > { %v4740_v22 = vadd.f32 %v4739_v12, %v4411_v5 }
 0x7db   : > { %v3658_v21 = vpop.f32.mrf.mxu0  ;;  %v3987_v9 = vpop.f32.mrf.mxu1 }
 0x7dc   : > { %v3988_v56 = vadd.f32 %v3987_v9, %v3658_v21  ;;  %v4907_v26 = vadd.f32 %v10289_v54, %v4740_v22 }
 0x7df   : > { %v4412_v23 = vpop.f32.mrf.mxu2  ;;  %v4741_v4 = vpop.f32.mrf.mxu3 }
 0x7e0   : > { %v4413_v15 = vadd.f32 %v4412_v23, %v3988_v56 }
 0x7e2   : > { %v4742_v62 = vadd.f32 %v4741_v4, %v4413_v15 }
 0x7e3   : > { %v3661_v60 = vpop.f32.mrf.mxu0  ;;  %v3990_v27 = vpop.f32.mrf.mxu1 }
 0x7e4   : > { %v4908_v49 = vadd.f32 %v10289_v54, %v4742_v62  ;;  %4454 = vmatmul.bf16.gmra.mxu2 %v11951_v55  ;;  %4783 = vmatmul.bf16.gmra.mxu3 %v11954_v46  ;;  %v3991_v43 = vadd.f32 %v3990_v27, %v3661_v60  ;;  %v11973_v62 = vld [vmem:[#allocation16_spill] sm:$0xff]  ;;  %v11974_v60 = vld [vmem:[#allocation15_spill] sm:$0xff]  ;;  %v11983_v46 = vld [vmem:[#allocation17_spill] sm:$0xff] }
 0x7e5   : > { %v11975_v27 = vpack.c.bf16 %v11973_v62, %v11974_v60  ;;  %v11980_v55 = vld [vmem:[#allocation19_spill] sm:$0xff]  ;;  %v11984_v13 = vpack.c.bf16 %v11982_v41, %v11983_v46 }
 0x7e6   : > { %3700 = vmatmul.bf16.gmra.mxu0 %v11957_v38  ;;  %4029 = vmatmul.bf16.gmra.mxu1 %v11960_v34  ;;  %v6573_v42 = vpack.c.bf16 %v4908_v49, %v4907_v26  ;;  %v11976_v26 = vld [vmem:[#allocation14_spill] sm:$0xff]  ;;  %v11977_v49 = vld [vmem:[#allocation13_spill] sm:$0xff]  ;;  %v11981_v58 = vpack.c.bf16 %v11979_v37, %v11980_v55 }
 0x7e7   : > { %v4415_v45 = vpop.f32.mrf.mxu2  ;;  %v4744_v14 = vpop.f32.mrf.mxu3  ;;  %v11978_v61 = vpack.c.bf16 %v11976_v26, %v11977_v49 }
 0x7e8   : > { %6681 = vst [vmem:[%s9582_s12 + $0x1a0] sm:$0xff] %v6573_v42   ;;  %v4416_v50 = vadd.f32 %v4415_v45, %v3991_v43 }
 0x7ea   : > { %v4745_v2 = vadd.f32 %v4744_v14, %v4416_v50 }
 0x7eb   : > { %v3663_v48 = vpop.f32.mrf.mxu0  ;;  %v3992_v18 = vpop.f32.mrf.mxu1 }
 0x7ec   : > { %v3993_v52 = vadd.f32 %v3992_v18, %v3663_v48  ;;  %v4909_v35 = vadd.f32 %v10289_v54, %v4745_v2 }
 0x7ef   : > { %v4417_v44 = vpop.f32.mrf.mxu2  ;;  %v4746_v63 = vpop.f32.mrf.mxu3 }
 0x7f0   : > { %v4418_v1 = vadd.f32 %v4417_v44, %v3993_v52 }
 0x7f2   : > { %v4747_v17 = vadd.f32 %v4746_v63, %v4418_v1 }
 0x7f3   : > { %v3666_v25 = vpop.f32.mrf.mxu0  ;;  %v3995_v31 = vpop.f32.mrf.mxu1 }
 0x7f4   : > { %v4910_v7 = vadd.f32 %v10289_v54, %v4747_v17  ;;  %4459 = vmatmul.bf16.gmra.mxu2 %v11963_v6  ;;  %4788 = vmatmul.bf16.gmra.mxu3 %v11966_v29  ;;  %v3996_v11 = vadd.f32 %v3995_v31, %v3666_v25 }
 0x7f6   : > { %3705 = vmatmul.bf16.gmra.mxu0 %v11969_v59  ;;  %4034 = vmatmul.bf16.gmra.mxu1 %v11972_v28  ;;  %v6578_v30 = vpack.c.bf16 %v4910_v7, %v4909_v35 }
 0x7f7   : > { %v4420_v36 = vpop.f32.mrf.mxu2  ;;  %v4749_v53 = vpop.f32.mrf.mxu3 }
 0x7f8   : > { %6682 = vst [vmem:[%s9582_s12 + $0x1a8] sm:$0xff] %v6578_v30   ;;  %v4421_v10 = vadd.f32 %v4420_v36, %v3996_v11 }
 0x7fa   : > { %v4750_v9 = vadd.f32 %v4749_v53, %v4421_v10 }
 0x7fb   : > { %v3668_v3 = vpop.f32.mrf.mxu0  ;;  %v3997_v57 = vpop.f32.mrf.mxu1 }
 0x7fc   : > { %v3998_v12 = vadd.f32 %v3997_v57, %v3668_v3  ;;  %v4911_v22 = vadd.f32 %v10289_v54, %v4750_v9 }
 0x7ff   : > { %v4422_v20 = vpop.f32.mrf.mxu2  ;;  %v4751_v21 = vpop.f32.mrf.mxu3 }
 0x800   : > { %v4423_v5 = vadd.f32 %v4422_v20, %v3998_v12 }
 0x802   : > { %v4752_v56 = vadd.f32 %v4751_v21, %v4423_v5 }
 0x803   : > { %v3671_v23 = vpop.f32.mrf.mxu0  ;;  %v4000_v4 = vpop.f32.mrf.mxu1 }
 0x804   : > { %v4912_v15 = vadd.f32 %v10289_v54, %v4752_v56  ;;  %4464 = vmatmul.bf16.gmra.mxu2 %v11975_v27  ;;  %4793 = vmatmul.bf16.gmra.mxu3 %v11978_v61  ;;  %v4001_v32 = vadd.f32 %v4000_v4, %v3671_v23 }
 0x806   : > { %3710 = vmatmul.bf16.gmra.mxu0 %v11981_v58  ;;  %4039 = vmatmul.bf16.gmra.mxu1 %v11984_v13  ;;  %v6583_v33 = vpack.c.bf16 %v4912_v15, %v4911_v22 }
 0x807   : > { %v4425_v38 = vpop.f32.mrf.mxu2  ;;  %v4754_v51 = vpop.f32.mrf.mxu3 }
 0x808   : > { %6683 = vst [vmem:[%s9582_s12 + $0x1b0] sm:$0xff] %v6583_v33   ;;  %v4426_v45 = vadd.f32 %v4425_v38, %v4001_v32 }
 0x80a   : > { %v4755_v18 = vadd.f32 %v4754_v51, %v4426_v45 }
 0x80b   : > { %v3673_v34 = vpop.f32.mrf.mxu0  ;;  %v4002_v42 = vpop.f32.mrf.mxu1 }
 0x80c   : > { %v4003_v14 = vadd.f32 %v4002_v42, %v3673_v34  ;;  %v4913_v2 = vadd.f32 %v10289_v54, %v4755_v18 }
 0x80f   : > { %v4427_v43 = vpop.f32.mrf.mxu2  ;;  %v4756_v48 = vpop.f32.mrf.mxu3 }
 0x810   : > { %v4428_v50 = vadd.f32 %v4427_v43, %v4003_v14 }
 0x812   : > { %v4757_v52 = vadd.f32 %v4756_v48, %v4428_v50 }
 0x813   : > { %v3676_v44 = vpop.f32.mrf.mxu0  ;;  %v4005_v63 = vpop.f32.mrf.mxu1 }
 0x814   : > { %v4914_v1 = vadd.f32 %v10289_v54, %v4757_v52  ;;  %v4006_v35 = vadd.f32 %v4005_v63, %v3676_v44 }
 0x816   : > { %v6588_v17 = vpack.c.bf16 %v4914_v1, %v4913_v2 }
 0x817   : > { %v4430_v25 = vpop.f32.mrf.mxu2  ;;  %v4759_v31 = vpop.f32.mrf.mxu3 }
 0x818   : > { %6684 = vst [vmem:[%s9582_s12 + $0x1b8] sm:$0xff] %v6588_v17   ;;  %v4431_v24 = vadd.f32 %v4430_v25, %v4006_v35 }
 0x81a   : > { %v4760_v29 = vadd.f32 %v4759_v31, %v4431_v24 }
 0x81b   : > { %v3678_v7 = vpop.f32.mrf.mxu0  ;;  %v4007_v16 = vpop.f32.mrf.mxu1 }
 0x81c   : > { %v4008_v6 = vadd.f32 %v4007_v16, %v3678_v7  ;;  %v4915_v19 = vadd.f32 %v10289_v54, %v4760_v29 }
 0x81f   : > { %v4432_v8 = vpop.f32.mrf.mxu2  ;;  %v4761_v47 = vpop.f32.mrf.mxu3 }
 0x820   : > { %v4433_v39 = vadd.f32 %v4432_v8, %v4008_v6 }
 0x822   : > { %v4762_v0 = vadd.f32 %v4761_v47, %v4433_v39 }
 0x823   : > { %v3681_v59 = vpop.f32.mrf.mxu0  ;;  %v4010_v40 = vpop.f32.mrf.mxu1 }
 0x824   : > { %v4916_v28 = vadd.f32 %v10289_v54, %v4762_v0  ;;  %v4011_v11 = vadd.f32 %v4010_v40, %v3681_v59 }
 0x826   : > { %v6593_v30 = vpack.c.bf16 %v4916_v28, %v4915_v19 }
 0x827   : > { %v4435_v36 = vpop.f32.mrf.mxu2  ;;  %v4764_v53 = vpop.f32.mrf.mxu3 }
 0x828   : > { %6685 = vst [vmem:[%s9582_s12 + $0x1c0] sm:$0xff] %v6593_v30   ;;  %v4436_v10 = vadd.f32 %v4435_v36, %v4011_v11 }
 0x82a   : > { %v4765_v9 = vadd.f32 %v4764_v53, %v4436_v10 }
 0x82b   : > { %v3683_v3 = vpop.f32.mrf.mxu0  ;;  %v4012_v57 = vpop.f32.mrf.mxu1 }
 0x82c   : > { %v4013_v12 = vadd.f32 %v4012_v57, %v3683_v3  ;;  %v4917_v22 = vadd.f32 %v10289_v54, %v4765_v9 }
 0x82f   : > { %v4437_v20 = vpop.f32.mrf.mxu2  ;;  %v4766_v21 = vpop.f32.mrf.mxu3 }
 0x830   : > { %v4438_v5 = vadd.f32 %v4437_v20, %v4013_v12 }
 0x832   : > { %v4767_v56 = vadd.f32 %v4766_v21, %v4438_v5 }
 0x833   : > { %v3686_v23 = vpop.f32.mrf.mxu0  ;;  %v4015_v4 = vpop.f32.mrf.mxu1 }
 0x834   : > { %v4918_v15 = vadd.f32 %v10289_v54, %v4767_v56  ;;  %v4016_v26 = vadd.f32 %v4015_v4, %v3686_v23 }
 0x836   : > { %v6598_v62 = vpack.c.bf16 %v4918_v15, %v4917_v22 }
 0x837   : > { %v4440_v60 = vpop.f32.mrf.mxu2  ;;  %v4769_v27 = vpop.f32.mrf.mxu3 }
 0x838   : > { %6686 = vst [vmem:[%s9582_s12 + $0x1c8] sm:$0xff] %v6598_v62   ;;  %v4441_v37 = vadd.f32 %v4440_v60, %v4016_v26 }
 0x83a   : > { %v4770_v46 = vadd.f32 %v4769_v27, %v4441_v37 }
 0x83b   : > { %v3688_v49 = vpop.f32.mrf.mxu0  ;;  %v4017_v61 = vpop.f32.mrf.mxu1 }
 0x83c   : > { %v4018_v55 = vadd.f32 %v4017_v61, %v3688_v49  ;;  %v4919_v32 = vadd.f32 %v10289_v54, %v4770_v46 }
 0x83f   : > { %v4442_v58 = vpop.f32.mrf.mxu2  ;;  %v4771_v41 = vpop.f32.mrf.mxu3 }
 0x840   : > { %v4443_v13 = vadd.f32 %v4442_v58, %v4018_v55 }
 0x842   : > { %v4772_v33 = vadd.f32 %v4771_v41, %v4443_v13 }
 0x843   : > { %v3691_v38 = vpop.f32.mrf.mxu0  ;;  %v4020_v51 = vpop.f32.mrf.mxu1 }
 0x844   : > { %v4920_v34 = vadd.f32 %v10289_v54, %v4772_v33  ;;  %v4021_v43 = vadd.f32 %v4020_v51, %v3691_v38 }
 0x846   : > { %v6603_v42 = vpack.c.bf16 %v4920_v34, %v4919_v32 }
 0x847   : > { %v4445_v45 = vpop.f32.mrf.mxu2  ;;  %v4774_v14 = vpop.f32.mrf.mxu3 }
 0x848   : > { %6687 = vst [vmem:[%s9582_s12 + $0x1d0] sm:$0xff] %v6603_v42   ;;  %v4446_v50 = vadd.f32 %v4445_v45, %v4021_v43 }
 0x84a   : > { %v4775_v2 = vadd.f32 %v4774_v14, %v4446_v50 }
 0x84b   : > { %v3693_v48 = vpop.f32.mrf.mxu0  ;;  %v4022_v18 = vpop.f32.mrf.mxu1 }
 0x84c   : > { %v4023_v52 = vadd.f32 %v4022_v18, %v3693_v48  ;;  %v4921_v35 = vadd.f32 %v10289_v54, %v4775_v2 }
 0x84f   : > { %v4447_v44 = vpop.f32.mrf.mxu2  ;;  %v4776_v63 = vpop.f32.mrf.mxu3 }
 0x850   : > { %v4448_v1 = vadd.f32 %v4447_v44, %v4023_v52 }
 0x852   : > { %v4777_v17 = vadd.f32 %v4776_v63, %v4448_v1 }
 0x853   : > { %v3696_v25 = vpop.f32.mrf.mxu0  ;;  %v4025_v31 = vpop.f32.mrf.mxu1 }
 0x854   : > { %v4922_v7 = vadd.f32 %v10289_v54, %v4777_v17  ;;  %v4026_v8 = vadd.f32 %v4025_v31, %v3696_v25 }
 0x856   : > { %v6608_v16 = vpack.c.bf16 %v4922_v7, %v4921_v35 }
 0x857   : > { %v4450_v24 = vpop.f32.mrf.mxu2  ;;  %v4779_v6 = vpop.f32.mrf.mxu3 }
 0x858   : > { %6688 = vst [vmem:[%s9582_s12 + $0x1d8] sm:$0xff] %v6608_v16   ;;  %v4451_v39 = vadd.f32 %v4450_v24, %v4026_v8 }
 0x85a   : > { %v4780_v19 = vadd.f32 %v4779_v6, %v4451_v39 }
 0x85b   : > { %v3698_v47 = vpop.f32.mrf.mxu0  ;;  %v4027_v29 = vpop.f32.mrf.mxu1 }
 0x85c   : > { %v4028_v0 = vadd.f32 %v4027_v29, %v3698_v47  ;;  %v4923_v11 = vadd.f32 %v10289_v54, %v4780_v19 }
 0x85f   : > { %v4452_v59 = vpop.f32.mrf.mxu2  ;;  %v4781_v40 = vpop.f32.mrf.mxu3 }
 0x860   : > { %v4453_v28 = vadd.f32 %v4452_v59, %v4028_v0 }
 0x862   : > { %v4782_v30 = vadd.f32 %v4781_v40, %v4453_v28 }
 0x863   : > { %v3701_v36 = vpop.f32.mrf.mxu0  ;;  %v4030_v53 = vpop.f32.mrf.mxu1 }
 0x864   : > { %v4924_v3 = vadd.f32 %v10289_v54, %v4782_v30  ;;  %v4031_v20 = vadd.f32 %v4030_v53, %v3701_v36 }
 0x866   : > { %v6613_v57 = vpack.c.bf16 %v4924_v3, %v4923_v11 }
 0x867   : > { %v4455_v10 = vpop.f32.mrf.mxu2  ;;  %v4784_v12 = vpop.f32.mrf.mxu3 }
 0x868   : > { %6689 = vst [vmem:[%s9582_s12 + $0x1e0] sm:$0xff] %v6613_v57   ;;  %v4456_v5 = vadd.f32 %v4455_v10, %v4031_v20 }
 0x86a   : > { %v4785_v22 = vadd.f32 %v4784_v12, %v4456_v5 }
 0x86b   : > { %v3703_v21 = vpop.f32.mrf.mxu0  ;;  %v4032_v9 = vpop.f32.mrf.mxu1 }
 0x86c   : > { %v4033_v56 = vadd.f32 %v4032_v9, %v3703_v21  ;;  %v4925_v26 = vadd.f32 %v10289_v54, %v4785_v22 }
 0x86f   : > { %v4457_v23 = vpop.f32.mrf.mxu2  ;;  %v4786_v4 = vpop.f32.mrf.mxu3 }
 0x870   : > { %v4458_v15 = vadd.f32 %v4457_v23, %v4033_v56 }
 0x872   : > { %v4787_v62 = vadd.f32 %v4786_v4, %v4458_v15 }
 0x873   : > { %v3706_v60 = vpop.f32.mrf.mxu0  ;;  %v4035_v27 = vpop.f32.mrf.mxu1 }
 0x874   : > { %v4926_v49 = vadd.f32 %v10289_v54, %v4787_v62  ;;  %v4036_v58 = vadd.f32 %v4035_v27, %v3706_v60 }
 0x876   : > { %v6618_v61 = vpack.c.bf16 %v4926_v49, %v4925_v26 }
 0x877   : > { %v4460_v37 = vpop.f32.mrf.mxu2  ;;  %v4789_v55 = vpop.f32.mrf.mxu3 }
 0x878   : > { %6690 = vst [vmem:[%s9582_s12 + $0x1e8] sm:$0xff] %v6618_v61   ;;  %v4461_v13 = vadd.f32 %v4460_v37, %v4036_v58 }
 0x87a   : > { %v4790_v32 = vadd.f32 %v4789_v55, %v4461_v13 }
 0x87b   : > { %v3708_v41 = vpop.f32.mrf.mxu0  ;;  %v4037_v46 = vpop.f32.mrf.mxu1 }
 0x87c   : > { %v4038_v33 = vadd.f32 %v4037_v46, %v3708_v41  ;;  %v4927_v43 = vadd.f32 %v10289_v54, %v4790_v32 }
 0x87f   : > { %v4462_v38 = vpop.f32.mrf.mxu2  ;;  %v4791_v51 = vpop.f32.mrf.mxu3 }
 0x880   : > { %v4463_v34 = vadd.f32 %v4462_v38, %v4038_v33 }
 0x882   : > { %v4792_v42 = vadd.f32 %v4791_v51, %v4463_v34 }
 0x883   : > { %v3711_v45 = vpop.f32.mrf.mxu0  ;;  %v4040_v14 = vpop.f32.mrf.mxu1 }
 0x884   : > { %v4928_v48 = vadd.f32 %v10289_v54, %v4792_v42  ;;  %v4041_v44 = vadd.f32 %v4040_v14, %v3711_v45 }
 0x886   : > { %v6623_v18 = vpack.c.bf16 %v4928_v48, %v4927_v43 }
 0x887   : > { %v4465_v50 = vpop.f32.mrf.mxu2  ;;  %v4794_v52 = vpop.f32.mrf.mxu3 }
 0x888   : > { %6691 = vst [vmem:[%s9582_s12 + $0x1f0] sm:$0xff] %v6623_v18   ;;  %v4466_v1 = vadd.f32 %v4465_v50, %v4041_v44 }
 0x88a   : > { %v4795_v31 = vadd.f32 %v4794_v52, %v4466_v1 }
 0x88b   : > { %v3713_v63 = vpop.f32.mrf.mxu0  ;;  %v4042_v2 = vpop.f32.mrf.mxu1 }
 0x88c   : > { %v4043_v17 = vadd.f32 %v4042_v2, %v3713_v63  ;;  %v4929_v24 = vadd.f32 %v10289_v54, %v4795_v31 }
 0x88f   : > { %v4467_v25 = vpop.f32.mrf.mxu2  ;;  %v4796_v7 = vpop.f32.mrf.mxu3 }
 0x890   : > { %v4468_v35 = vadd.f32 %v4467_v25, %v4043_v17 }
 0x892   : > { %v4797_v16 = vadd.f32 %v4796_v7, %v4468_v35 }
 0x894   : > { %v4930_v6 = vadd.f32 %v10289_v54, %v4797_v16 }
 0x896   : > { %v6628_v8 = vpack.c.bf16 %v4930_v6, %v4929_v24 }
 0x898   : > { %6692 = vst [vmem:[%s9582_s12 + $0x1f8] sm:$0xff] %v6628_v8  }
 0x899 PF: > { %s19_s30 = sadd.s32 1, %s6710_s30  }
 0x89a   : > { %p16_p4 = scmp.ge.s32.totalorder %s19_s30, 4  }
 0x89c   :  { %18 = sbr.rel (!%p16_p4) target bundleno = 1 (0x1), region = 86 }

</bundles_post_ra>
